<compile_context>
chip_gen: v7x
topology: tpu7x:2x2x1
jax: 0.10.0
libtpu: 0.0.40
codegen_flags: <defaults>
</compile_context>

<pallas_src>
import jax
import jax.numpy as jnp
from jax.experimental import pallas as pl
from jax.experimental.pallas import tpu as pltpu
import numpy as np


def _round_up(x, m):
    return ((x + m - 1) // m) * m


def _ali_encoder_kernel(idx_ref, xnum_ref, m1_ref, wn1_ref, b1_ref,
                        w2_ref, b2_ref, out_ref):
    # idx_ref : (TB, F)   int32 categorical indices (offsets folded in on host)
    # xnum_ref: (TB, Np)  bf16 numerical features (zero padded 63 -> 128)
    # m1_ref  : (Vpad,H1) bf16 fused  table @ W1_cat  (BN1 scale folded in)
    # wn1_ref : (Np, H1)  bf16 fused  wnum  @ W1_num  (BN1 scale folded in)
    # b1_ref  : (1, H1)   f32  fused layer-1 bias (b1, bnum@W1_num, BN1)
    # w2_ref  : (H1, H2)  bf16 W2 with BN2 scale folded in
    # b2_ref  : (1, H2)   f32  fused layer-2 bias
    TB, F = idx_ref.shape
    Vpad = m1_ref.shape[0]

    # Multi-hot over the (offset) vocabulary: field vocab ranges are disjoint,
    # so summing the 16 per-field one-hots is exact. Cheap VPU work that hides
    # under the matmuls.
    lane_ids = jax.lax.broadcasted_iota(jnp.int32, (TB, Vpad), 1)
    multihot = jnp.zeros((TB, Vpad), jnp.float32)
    for f in range(F):  # static unroll, F = 16
        multihot = multihot + jnp.where(lane_ids == idx_ref[:, f:f + 1], 1.0, 0.0)
    multihot = multihot.astype(jnp.bfloat16)

    # Layer 1: fused categorical + numerical contractions, fp32 accumulation.
    acc = jnp.dot(multihot, m1_ref[...], preferred_element_type=jnp.float32)
    acc = acc + jnp.dot(xnum_ref[...], wn1_ref[...],
                        preferred_element_type=jnp.float32)
    h1 = jnp.maximum(acc + b1_ref[...], 0.0).astype(jnp.bfloat16)

    # Layer 2.
    h2 = jnp.dot(h1, w2_ref[...], preferred_element_type=jnp.float32) + b2_ref[...]
    out_ref[...] = jnp.maximum(h2, 0.0)


def ali_encoder_forward(params, x, *, block_b=256):
    """x: (B, 16 + 63) float32 -> (B, 256) float32 shared-bottom feature."""
    assert block_b % 16 == 0
    B = x.shape[0]
    offsets = np.asarray(params["offsets"]).astype(np.int64)
    F = int(offsets.shape[0])                    # 16 categorical fields
    V, D = params["table"].shape                 # 129, 128
    H1 = params["w1"].shape[1]                   # 512
    H2 = params["w2"].shape[1]                   # 256
    nnum = params["wnum"].shape[0]               # 63
    eps = 1e-5
    hp = jax.lax.Precision.HIGHEST
    assert params["w1"].shape[0] == (F + 1) * D

    # ---- host-side algebraic fusion (done once per parameter set) ----
    # Eval-mode BatchNorm as per-channel scale/shift.
    s1 = params["bn1_gamma"] / jnp.sqrt(params["bn1_var"] + eps)
    t1 = params["bn1_beta"] - params["bn1_mean"] * s1
    s2 = params["bn2_gamma"] / jnp.sqrt(params["bn2_var"] + eps)
    t2 = params["bn2_beta"] - params["bn2_mean"] * s2

    # Fuse the embedding table into layer 1: each vocab row v belongs to one
    # field f (offset ranges are disjoint), M_cat[v] = table[v] @ W1[f*D:(f+1)*D].
    bounds = [int(o) for o in offsets] + [int(V)]
    pieces = []
    for f in range(F):
        w1_f = params["w1"][f * D:(f + 1) * D, :]
        pieces.append(jnp.dot(params["table"][bounds[f]:bounds[f + 1]], w1_f,
                              precision=hp))
    m_cat = jnp.concatenate(pieces, axis=0) * s1[None, :]          # (V, H1)
    Vpad = _round_up(V, 128)                                       # 256
    m_cat_pad = (jnp.zeros((Vpad, H1), jnp.float32).at[:V].set(m_cat)
                 .astype(jnp.bfloat16))

    # Fuse the numerical Linear into layer 1.
    w1_num = params["w1"][F * D:(F + 1) * D, :]                    # (D, H1)
    wn1 = jnp.dot(params["wnum"], w1_num, precision=hp) * s1[None, :]  # (63, H1)
    Np = _round_up(nnum, 128)                                      # 128
    wn1_pad = (jnp.zeros((Np, H1), jnp.float32).at[:nnum].set(wn1)
               .astype(jnp.bfloat16))

    # Fused biases (b1, bnum routed through W1_num, BN1) and layer 2 weights.
    bias1 = ((params["b1"] + jnp.dot(params["bnum"], w1_num, precision=hp))
             * s1 + t1).reshape(1, H1).astype(jnp.float32)
    w2s = (params["w2"] * s2[None, :]).astype(jnp.bfloat16)
    bias2 = (params["b2"] * s2 + t2).reshape(1, H2).astype(jnp.float32)

    # ---- activations ----
    x_cat = x[:, :F].astype(jnp.int32) + params["offsets"][None, :].astype(jnp.int32)
    x_num = x[:, F:F + nnum].astype(jnp.float32)
    x_num = jnp.pad(x_num, ((0, 0), (0, Np - nnum))).astype(jnp.bfloat16)

    # Pad the batch to a multiple of the batch tile (padded rows sliced off;
    # they gather vocab row 0 which is harmless).
    Bp = _round_up(B, block_b)
    x_cat_p = jnp.pad(x_cat, ((0, Bp - B), (0, 0)))
    x_num_p = jnp.pad(x_num, ((0, Bp - B), (0, 0)))

    const = lambda i: (0, 0)   # weights: same full block every step -> VMEM-resident
    row = lambda i: (i, 0)     # activations: one batch tile per grid step

    grid_spec = pltpu.PrefetchScalarGridSpec(
        num_scalar_prefetch=0,
        grid=(Bp // block_b,),
        in_specs=[
            pl.BlockSpec((block_b, F), row),     # categorical indices
            pl.BlockSpec((block_b, Np), row),    # numerical features (bf16)
            pl.BlockSpec((Vpad, H1), const),     # fused table@W1   (bf16)
            pl.BlockSpec((Np, H1), const),       # fused wnum@W1    (bf16)
            pl.BlockSpec((1, H1), const),        # fused layer-1 bias
            pl.BlockSpec((H1, H2), const),       # W2 * BN2 scale   (bf16)
            pl.BlockSpec((1, H2), const),        # fused layer-2 bias
        ],
        out_specs=pl.BlockSpec((block_b, H2), row),
    )

    out = pl.pallas_call(
        _ali_encoder_kernel,
        out_shape=jax.ShapeDtypeStruct((Bp, H2), jnp.float32),
        grid_spec=grid_spec,
        compiler_params=pltpu.CompilerParams(
            dimension_semantics=("parallel",),
            vmem_limit_bytes=32 * 1024 * 1024,
        ),
    )(x_cat_p, x_num_p, m_cat_pad, wn1_pad, bias1, w2s, bias2)

    return out[:B]


def make_params(field_dims, numerical_num, embed_dim, bottom_mlp_dims, key):
    """Deterministic init mirroring the PyTorch module (fresh-module state)."""
    vocab = int(sum(field_dims))
    nfields = len(field_dims)
    in_dim = (nfields + 1) * embed_dim
    h1, h2 = bottom_mlp_dims
    keys = jax.random.split(key, 7)

    xavier = float(np.sqrt(6.0 / (vocab + embed_dim)))
    table = jax.random.uniform(keys[0], (vocab, embed_dim), jnp.float32,
                               -xavier, xavier)
    offsets = jnp.asarray(np.array((0, *np.cumsum(field_dims)[:-1]), dtype=np.int32))

    def linear(kw, kb, fan_in, fan_out):
        bound = 1.0 / float(np.sqrt(fan_in))
        w = jax.random.uniform(kw, (fan_in, fan_out), jnp.float32, -bound, bound)
        b = jax.random.uniform(kb, (fan_out,), jnp.float32, -bound, bound)
        return w, b

    wnum, bnum = linear(keys[1], keys[2], numerical_num, embed_dim)
    w1, b1 = linear(keys[3], keys[4], in_dim, h1)
    w2, b2 = linear(keys[5], keys[6], h1, h2)

    return dict(
        table=table, offsets=offsets, wnum=wnum, bnum=bnum,
        w1=w1, b1=b1, w2=w2, b2=b2,
        bn1_gamma=jnp.ones((h1,), jnp.float32), bn1_beta=jnp.zeros((h1,), jnp.float32),
        bn1_mean=jnp.zeros((h1,), jnp.float32), bn1_var=jnp.ones((h1,), jnp.float32),
        bn2_gamma=jnp.ones((h2,), jnp.float32), bn2_beta=jnp.zeros((h2,), jnp.float32),
        bn2_mean=jnp.zeros((h2,), jnp.float32), bn2_var=jnp.ones((h2,), jnp.float32),
    )


def reference_forward(params, x):
    """Pure-JAX fp32 reference of the AliEncoder eval-mode forward."""
    hp = jax.lax.Precision.HIGHEST
    eps = 1e-5
    B = x.shape[0]
    F = params["offsets"].shape[0]
    x_cat = x[:, :F].astype(jnp.int32) + params["offsets"][None, :].astype(jnp.int32)
    x_num = x[:, F:].astype(jnp.float32)

    emb = jnp.take(params["table"], x_cat, axis=0).reshape(B, -1)      # (B, 2048)
    num_emb = jnp.dot(x_num, params["wnum"], precision=hp) + params["bnum"]
    flat = jnp.concatenate([emb, num_emb], axis=1)                     # (B, 2176)

    s1 = params["bn1_gamma"] / jnp.sqrt(params["bn1_var"] + eps)
    t1 = params["bn1_beta"] - params["bn1_mean"] * s1
    h1 = jnp.dot(flat, params["w1"], precision=hp) + params["b1"]
    h1 = jnp.maximum(h1 * s1 + t1, 0.0)

    s2 = params["bn2_gamma"] / jnp.sqrt(params["bn2_var"] + eps)
    t2 = params["bn2_beta"] - params["bn2_mean"] * s2
    h2 = jnp.dot(h1, params["w2"], precision=hp) + params["b2"]
    return jnp.maximum(h2 * s2 + t2, 0.0)


if __name__ == "__main__":
    categorical_field_dims = (9, 4, 7, 2, 20, 7, 50, 8, 8, 2, 2, 2, 2, 2, 2, 2)
    numerical_num = 63
    embed_dim = 128
    bottom_mlp_dims = (512, 256)
    batch = 16

    root = jax.random.PRNGKey(0)
    kparams, kcat, knum = jax.random.split(root, 3)
    params = make_params(categorical_field_dims, numerical_num, embed_dim,
                         bottom_mlp_dims, kparams)

    # Build the combined (B, 16 + 63) float input like the PyTorch forward expects.
    cat_keys = jax.random.split(kcat, len(categorical_field_dims))
    cat_cols = [
        jax.random.randint(cat_keys[f], (batch, 1), 0,
                           categorical_field_dims[f], dtype=jnp.int32)
        for f in range(len(categorical_field_dims))
    ]
    x_cat_raw = jnp.concatenate(cat_cols, axis=1).astype(jnp.float32)
    x_num_raw = jax.random.normal(knum, (batch, numerical_num), dtype=jnp.float32)
    x = jnp.concatenate([x_cat_raw, x_num_raw], axis=1)   # (batch, 79) float32

    out = ali_encoder_forward(params, x)
    out = jax.block_until_ready(out)

    ref = reference_forward(params, x)
    assert out.shape == (batch, bottom_mlp_dims[-1])
    # bf16 weights/activations (fp32 accumulation) introduce ~1e-3 rounding
    # vs. the fp32-HIGHEST reference; tolerance sized accordingly.
    np.testing.assert_allclose(np.asarray(out), np.asarray(ref),
                               rtol=2e-2, atol=5e-3)

    print("KERNEL_OK")
</pallas_src>

<mosaic_0001>
module attributes {stable_mosaic.version = 11 : i64} {
  func.func @_ali_encoder_kernel(%arg0: i32, %arg1: memref<256x16xi32, #tpu.memory_space<vmem>>, %arg2: memref<256x128xbf16, #tpu.memory_space<vmem>>, %arg3: memref<256x512xbf16, #tpu.memory_space<vmem>>, %arg4: memref<128x512xbf16, #tpu.memory_space<vmem>>, %arg5: memref<1x512xf32, #tpu.memory_space<vmem>>, %arg6: memref<512x256xbf16, #tpu.memory_space<vmem>>, %arg7: memref<1x256xf32, #tpu.memory_space<vmem>>, %arg8: memref<256x256xf32, #tpu.memory_space<vmem>>) attributes {dimension_semantics = [#tpu.dimension_semantics<parallel>], iteration_bounds = array<i64: 1>, scalar_prefetch = 0 : i64, scratch_operands = 0 : i64, tpu.core_type = #tpu.core_type<tc>, window_params = [{transform_indices = @transform_0, window_bounds = array<i64: 256, 16>}, {transform_indices = @transform_1, window_bounds = array<i64: 256, 128>}, {pipeline_mode = #tpu.pipeline_mode<synchronous>, transform_indices = @transform_2, window_bounds = array<i64: 256, 512>}, {pipeline_mode = #tpu.pipeline_mode<synchronous>, transform_indices = @transform_3, window_bounds = array<i64: 128, 512>}, {pipeline_mode = #tpu.pipeline_mode<synchronous>, transform_indices = @transform_4, window_bounds = array<i64: 1, 512>}, {pipeline_mode = #tpu.pipeline_mode<synchronous>, transform_indices = @transform_5, window_bounds = array<i64: 512, 256>}, {pipeline_mode = #tpu.pipeline_mode<synchronous>, transform_indices = @transform_6, window_bounds = array<i64: 1, 256>}, {transform_indices = @transform_7, window_bounds = array<i64: 256, 256>}]} {
    %0 = tpu.iota {dimensions = array<i32: 1>} : vector<256x256xi32>
    %cst = arith.constant 0.000000e+00 : f32
    %1 = vector.broadcast %cst : f32 to vector<256x256xf32>
    %c0 = arith.constant 0 : index
    %c0_0 = arith.constant 0 : index
    %2 = vector.load %arg1[%c0, %c0_0] : memref<256x16xi32, #tpu.memory_space<vmem>>, vector<256x1xi32>
    %3 = vector.broadcast %2 : vector<256x1xi32> to vector<256x256xi32>
    %4 = arith.cmpi eq, %0, %3 : vector<256x256xi32>
    %cst_1 = arith.constant 1.000000e+00 : f32
    %cst_2 = arith.constant 0.000000e+00 : f32
    %5 = vector.broadcast %cst_1 : f32 to vector<256x256xf32>
    %6 = vector.broadcast %cst_2 : f32 to vector<256x256xf32>
    %7 = arith.select %4, %5, %6 : vector<256x256xi1>, vector<256x256xf32>
    %8 = arith.addf %1, %7 : vector<256x256xf32>
    %c0_3 = arith.constant 0 : index
    %c1 = arith.constant 1 : index
    %9 = vector.load %arg1[%c0_3, %c1] : memref<256x16xi32, #tpu.memory_space<vmem>>, vector<256x1xi32>
    %10 = vector.broadcast %9 : vector<256x1xi32> to vector<256x256xi32>
    %11 = arith.cmpi eq, %0, %10 : vector<256x256xi32>
    %cst_4 = arith.constant 1.000000e+00 : f32
    %cst_5 = arith.constant 0.000000e+00 : f32
    %12 = vector.broadcast %cst_4 : f32 to vector<256x256xf32>
    %13 = vector.broadcast %cst_5 : f32 to vector<256x256xf32>
    %14 = arith.select %11, %12, %13 : vector<256x256xi1>, vector<256x256xf32>
    %15 = arith.addf %8, %14 : vector<256x256xf32>
    %c0_6 = arith.constant 0 : index
    %c2 = arith.constant 2 : index
    %16 = vector.load %arg1[%c0_6, %c2] : memref<256x16xi32, #tpu.memory_space<vmem>>, vector<256x1xi32>
    %17 = vector.broadcast %16 : vector<256x1xi32> to vector<256x256xi32>
    %18 = arith.cmpi eq, %0, %17 : vector<256x256xi32>
    %cst_7 = arith.constant 1.000000e+00 : f32
    %cst_8 = arith.constant 0.000000e+00 : f32
    %19 = vector.broadcast %cst_7 : f32 to vector<256x256xf32>
    %20 = vector.broadcast %cst_8 : f32 to vector<256x256xf32>
    %21 = arith.select %18, %19, %20 : vector<256x256xi1>, vector<256x256xf32>
    %22 = arith.addf %15, %21 : vector<256x256xf32>
    %c0_9 = arith.constant 0 : index
    %c3 = arith.constant 3 : index
    %23 = vector.load %arg1[%c0_9, %c3] : memref<256x16xi32, #tpu.memory_space<vmem>>, vector<256x1xi32>
    %24 = vector.broadcast %23 : vector<256x1xi32> to vector<256x256xi32>
    %25 = arith.cmpi eq, %0, %24 : vector<256x256xi32>
    %cst_10 = arith.constant 1.000000e+00 : f32
    %cst_11 = arith.constant 0.000000e+00 : f32
    %26 = vector.broadcast %cst_10 : f32 to vector<256x256xf32>
    %27 = vector.broadcast %cst_11 : f32 to vector<256x256xf32>
    %28 = arith.select %25, %26, %27 : vector<256x256xi1>, vector<256x256xf32>
    %29 = arith.addf %22, %28 : vector<256x256xf32>
    %c0_12 = arith.constant 0 : index
    %c4 = arith.constant 4 : index
    %30 = vector.load %arg1[%c0_12, %c4] : memref<256x16xi32, #tpu.memory_space<vmem>>, vector<256x1xi32>
    %31 = vector.broadcast %30 : vector<256x1xi32> to vector<256x256xi32>
    %32 = arith.cmpi eq, %0, %31 : vector<256x256xi32>
    %cst_13 = arith.constant 1.000000e+00 : f32
    %cst_14 = arith.constant 0.000000e+00 : f32
    %33 = vector.broadcast %cst_13 : f32 to vector<256x256xf32>
    %34 = vector.broadcast %cst_14 : f32 to vector<256x256xf32>
    %35 = arith.select %32, %33, %34 : vector<256x256xi1>, vector<256x256xf32>
    %36 = arith.addf %29, %35 : vector<256x256xf32>
    %c0_15 = arith.constant 0 : index
    %c5 = arith.constant 5 : index
    %37 = vector.load %arg1[%c0_15, %c5] : memref<256x16xi32, #tpu.memory_space<vmem>>, vector<256x1xi32>
    %38 = vector.broadcast %37 : vector<256x1xi32> to vector<256x256xi32>
    %39 = arith.cmpi eq, %0, %38 : vector<256x256xi32>
    %cst_16 = arith.constant 1.000000e+00 : f32
    %cst_17 = arith.constant 0.000000e+00 : f32
    %40 = vector.broadcast %cst_16 : f32 to vector<256x256xf32>
    %41 = vector.broadcast %cst_17 : f32 to vector<256x256xf32>
    %42 = arith.select %39, %40, %41 : vector<256x256xi1>, vector<256x256xf32>
    %43 = arith.addf %36, %42 : vector<256x256xf32>
    %c0_18 = arith.constant 0 : index
    %c6 = arith.constant 6 : index
    %44 = vector.load %arg1[%c0_18, %c6] : memref<256x16xi32, #tpu.memory_space<vmem>>, vector<256x1xi32>
    %45 = vector.broadcast %44 : vector<256x1xi32> to vector<256x256xi32>
    %46 = arith.cmpi eq, %0, %45 : vector<256x256xi32>
    %cst_19 = arith.constant 1.000000e+00 : f32
    %cst_20 = arith.constant 0.000000e+00 : f32
    %47 = vector.broadcast %cst_19 : f32 to vector<256x256xf32>
    %48 = vector.broadcast %cst_20 : f32 to vector<256x256xf32>
    %49 = arith.select %46, %47, %48 : vector<256x256xi1>, vector<256x256xf32>
    %50 = arith.addf %43, %49 : vector<256x256xf32>
    %c0_21 = arith.constant 0 : index
    %c7 = arith.constant 7 : index
    %51 = vector.load %arg1[%c0_21, %c7] : memref<256x16xi32, #tpu.memory_space<vmem>>, vector<256x1xi32>
    %52 = vector.broadcast %51 : vector<256x1xi32> to vector<256x256xi32>
    %53 = arith.cmpi eq, %0, %52 : vector<256x256xi32>
    %cst_22 = arith.constant 1.000000e+00 : f32
    %cst_23 = arith.constant 0.000000e+00 : f32
    %54 = vector.broadcast %cst_22 : f32 to vector<256x256xf32>
    %55 = vector.broadcast %cst_23 : f32 to vector<256x256xf32>
    %56 = arith.select %53, %54, %55 : vector<256x256xi1>, vector<256x256xf32>
    %57 = arith.addf %50, %56 : vector<256x256xf32>
    %c0_24 = arith.constant 0 : index
    %c8 = arith.constant 8 : index
    %58 = vector.load %arg1[%c0_24, %c8] : memref<256x16xi32, #tpu.memory_space<vmem>>, vector<256x1xi32>
    %59 = vector.broadcast %58 : vector<256x1xi32> to vector<256x256xi32>
    %60 = arith.cmpi eq, %0, %59 : vector<256x256xi32>
    %cst_25 = arith.constant 1.000000e+00 : f32
    %cst_26 = arith.constant 0.000000e+00 : f32
    %61 = vector.broadcast %cst_25 : f32 to vector<256x256xf32>
    %62 = vector.broadcast %cst_26 : f32 to vector<256x256xf32>
    %63 = arith.select %60, %61, %62 : vector<256x256xi1>, vector<256x256xf32>
    %64 = arith.addf %57, %63 : vector<256x256xf32>
    %c0_27 = arith.constant 0 : index
    %c9 = arith.constant 9 : index
    %65 = vector.load %arg1[%c0_27, %c9] : memref<256x16xi32, #tpu.memory_space<vmem>>, vector<256x1xi32>
    %66 = vector.broadcast %65 : vector<256x1xi32> to vector<256x256xi32>
    %67 = arith.cmpi eq, %0, %66 : vector<256x256xi32>
    %cst_28 = arith.constant 1.000000e+00 : f32
    %cst_29 = arith.constant 0.000000e+00 : f32
    %68 = vector.broadcast %cst_28 : f32 to vector<256x256xf32>
    %69 = vector.broadcast %cst_29 : f32 to vector<256x256xf32>
    %70 = arith.select %67, %68, %69 : vector<256x256xi1>, vector<256x256xf32>
    %71 = arith.addf %64, %70 : vector<256x256xf32>
    %c0_30 = arith.constant 0 : index
    %c10 = arith.constant 10 : index
    %72 = vector.load %arg1[%c0_30, %c10] : memref<256x16xi32, #tpu.memory_space<vmem>>, vector<256x1xi32>
    %73 = vector.broadcast %72 : vector<256x1xi32> to vector<256x256xi32>
    %74 = arith.cmpi eq, %0, %73 : vector<256x256xi32>
    %cst_31 = arith.constant 1.000000e+00 : f32
    %cst_32 = arith.constant 0.000000e+00 : f32
    %75 = vector.broadcast %cst_31 : f32 to vector<256x256xf32>
    %76 = vector.broadcast %cst_32 : f32 to vector<256x256xf32>
    %77 = arith.select %74, %75, %76 : vector<256x256xi1>, vector<256x256xf32>
    %78 = arith.addf %71, %77 : vector<256x256xf32>
    %c0_33 = arith.constant 0 : index
    %c11 = arith.constant 11 : index
    %79 = vector.load %arg1[%c0_33, %c11] : memref<256x16xi32, #tpu.memory_space<vmem>>, vector<256x1xi32>
    %80 = vector.broadcast %79 : vector<256x1xi32> to vector<256x256xi32>
    %81 = arith.cmpi eq, %0, %80 : vector<256x256xi32>
    %cst_34 = arith.constant 1.000000e+00 : f32
    %cst_35 = arith.constant 0.000000e+00 : f32
    %82 = vector.broadcast %cst_34 : f32 to vector<256x256xf32>
    %83 = vector.broadcast %cst_35 : f32 to vector<256x256xf32>
    %84 = arith.select %81, %82, %83 : vector<256x256xi1>, vector<256x256xf32>
    %85 = arith.addf %78, %84 : vector<256x256xf32>
    %c0_36 = arith.constant 0 : index
    %c12 = arith.constant 12 : index
    %86 = vector.load %arg1[%c0_36, %c12] : memref<256x16xi32, #tpu.memory_space<vmem>>, vector<256x1xi32>
    %87 = vector.broadcast %86 : vector<256x1xi32> to vector<256x256xi32>
    %88 = arith.cmpi eq, %0, %87 : vector<256x256xi32>
    %cst_37 = arith.constant 1.000000e+00 : f32
    %cst_38 = arith.constant 0.000000e+00 : f32
    %89 = vector.broadcast %cst_37 : f32 to vector<256x256xf32>
    %90 = vector.broadcast %cst_38 : f32 to vector<256x256xf32>
    %91 = arith.select %88, %89, %90 : vector<256x256xi1>, vector<256x256xf32>
    %92 = arith.addf %85, %91 : vector<256x256xf32>
    %c0_39 = arith.constant 0 : index
    %c13 = arith.constant 13 : index
    %93 = vector.load %arg1[%c0_39, %c13] : memref<256x16xi32, #tpu.memory_space<vmem>>, vector<256x1xi32>
    %94 = vector.broadcast %93 : vector<256x1xi32> to vector<256x256xi32>
    %95 = arith.cmpi eq, %0, %94 : vector<256x256xi32>
    %cst_40 = arith.constant 1.000000e+00 : f32
    %cst_41 = arith.constant 0.000000e+00 : f32
    %96 = vector.broadcast %cst_40 : f32 to vector<256x256xf32>
    %97 = vector.broadcast %cst_41 : f32 to vector<256x256xf32>
    %98 = arith.select %95, %96, %97 : vector<256x256xi1>, vector<256x256xf32>
    %99 = arith.addf %92, %98 : vector<256x256xf32>
    %c0_42 = arith.constant 0 : index
    %c14 = arith.constant 14 : index
    %100 = vector.load %arg1[%c0_42, %c14] : memref<256x16xi32, #tpu.memory_space<vmem>>, vector<256x1xi32>
    %101 = vector.broadcast %100 : vector<256x1xi32> to vector<256x256xi32>
    %102 = arith.cmpi eq, %0, %101 : vector<256x256xi32>
    %cst_43 = arith.constant 1.000000e+00 : f32
    %cst_44 = arith.constant 0.000000e+00 : f32
    %103 = vector.broadcast %cst_43 : f32 to vector<256x256xf32>
    %104 = vector.broadcast %cst_44 : f32 to vector<256x256xf32>
    %105 = arith.select %102, %103, %104 : vector<256x256xi1>, vector<256x256xf32>
    %106 = arith.addf %99, %105 : vector<256x256xf32>
    %c0_45 = arith.constant 0 : index
    %c15 = arith.constant 15 : index
    %107 = vector.load %arg1[%c0_45, %c15] : memref<256x16xi32, #tpu.memory_space<vmem>>, vector<256x1xi32>
    %108 = vector.broadcast %107 : vector<256x1xi32> to vector<256x256xi32>
    %109 = arith.cmpi eq, %0, %108 : vector<256x256xi32>
    %cst_46 = arith.constant 1.000000e+00 : f32
    %cst_47 = arith.constant 0.000000e+00 : f32
    %110 = vector.broadcast %cst_46 : f32 to vector<256x256xf32>
    %111 = vector.broadcast %cst_47 : f32 to vector<256x256xf32>
    %112 = arith.select %109, %110, %111 : vector<256x256xi1>, vector<256x256xf32>
    %113 = arith.addf %106, %112 : vector<256x256xf32>
    %114 = arith.truncf %113 : vector<256x256xf32> to vector<256x256xbf16>
    %c0_48 = arith.constant 0 : index
    %c0_49 = arith.constant 0 : index
    %115 = vector.load %arg3[%c0_48, %c0_49] : memref<256x512xbf16, #tpu.memory_space<vmem>>, vector<256x512xbf16>
    %cst_50 = arith.constant dense<0.000000e+00> : vector<256x512xf32>
    %116 = tpu.matmul %114, %115, %cst_50 {dimension_numbers = #tpu.dot_dimension_numbers<[1], [0], [0], [1], [0, 0, 1, 1], [], []>} : vector<256x256xbf16>, vector<256x512xbf16>, vector<256x512xf32> -> vector<256x512xf32>
    %c0_51 = arith.constant 0 : index
    %c0_52 = arith.constant 0 : index
    %117 = vector.load %arg2[%c0_51, %c0_52] : memref<256x128xbf16, #tpu.memory_space<vmem>>, vector<256x128xbf16>
    %c0_53 = arith.constant 0 : index
    %c0_54 = arith.constant 0 : index
    %118 = vector.load %arg4[%c0_53, %c0_54] : memref<128x512xbf16, #tpu.memory_space<vmem>>, vector<128x512xbf16>
    %cst_55 = arith.constant dense<0.000000e+00> : vector<256x512xf32>
    %119 = tpu.matmul %117, %118, %cst_55 {dimension_numbers = #tpu.dot_dimension_numbers<[1], [0], [0], [1], [0, 0, 1, 1], [], []>} : vector<256x128xbf16>, vector<128x512xbf16>, vector<256x512xf32> -> vector<256x512xf32>
    %120 = arith.addf %116, %119 : vector<256x512xf32>
    %c0_56 = arith.constant 0 : index
    %c0_57 = arith.constant 0 : index
    %121 = vector.load %arg5[%c0_56, %c0_57] : memref<1x512xf32, #tpu.memory_space<vmem>>, vector<1x512xf32>
    %122 = vector.broadcast %121 : vector<1x512xf32> to vector<256x512xf32>
    %123 = arith.addf %120, %122 : vector<256x512xf32>
    %cst_58 = arith.constant 0.000000e+00 : f32
    %124 = vector.broadcast %cst_58 : f32 to vector<256x512xf32>
    %125 = arith.maximumf %123, %124 : vector<256x512xf32>
    %126 = arith.truncf %125 : vector<256x512xf32> to vector<256x512xbf16>
    %c0_59 = arith.constant 0 : index
    %c0_60 = arith.constant 0 : index
    %127 = vector.load %arg6[%c0_59, %c0_60] : memref<512x256xbf16, #tpu.memory_space<vmem>>, vector<512x256xbf16>
    %cst_61 = arith.constant dense<0.000000e+00> : vector<256x256xf32>
    %128 = tpu.matmul %126, %127, %cst_61 {dimension_numbers = #tpu.dot_dimension_numbers<[1], [0], [0], [1], [0, 0, 1, 1], [], []>} : vector<256x512xbf16>, vector<512x256xbf16>, vector<256x256xf32> -> vector<256x256xf32>
    %c0_62 = arith.constant 0 : index
    %c0_63 = arith.constant 0 : index
    %129 = vector.load %arg7[%c0_62, %c0_63] : memref<1x256xf32, #tpu.memory_space<vmem>>, vector<1x256xf32>
    %130 = vector.broadcast %129 : vector<1x256xf32> to vector<256x256xf32>
    %131 = arith.addf %128, %130 : vector<256x256xf32>
    %cst_64 = arith.constant 0.000000e+00 : f32
    %132 = vector.broadcast %cst_64 : f32 to vector<256x256xf32>
    %133 = arith.maximumf %131, %132 : vector<256x256xf32>
    %c0_65 = arith.constant 0 : index
    %c0_66 = arith.constant 0 : index
    %134 = vector.load %arg8[%c0_65, %c0_66] : memref<256x256xf32, #tpu.memory_space<vmem>>, vector<256x256xf32>
    tpu.vector_store %arg8[%c0_65, %c0_66], %133 {strides = array<i32>} : memref<256x256xf32, #tpu.memory_space<vmem>>, vector<256x256xf32>,
    return
  }
  func.func @transform_0(%arg0: i32) -> (i32, i32) {
    %c0_i32 = arith.constant 0 : i32
    %c0_i32_0 = arith.constant 0 : i32
    return %arg0, %c0_i32 : i32, i32
  }
  func.func @transform_1(%arg0: i32) -> (i32, i32) {
    %c0_i32 = arith.constant 0 : i32
    %c0_i32_0 = arith.constant 0 : i32
    return %arg0, %c0_i32 : i32, i32
  }
  func.func @transform_2(%arg0: i32) -> (i32, i32) {
    %c0_i32 = arith.constant 0 : i32
    %c0_i32_0 = arith.constant 0 : i32
    %c0_i32_1 = arith.constant 0 : i32
    return %c0_i32, %c0_i32_0 : i32, i32
  }
  func.func @transform_3(%arg0: i32) -> (i32, i32) {
    %c0_i32 = arith.constant 0 : i32
    %c0_i32_0 = arith.constant 0 : i32
    %c0_i32_1 = arith.constant 0 : i32
    return %c0_i32, %c0_i32_0 : i32, i32
  }
  func.func @transform_4(%arg0: i32) -> (i32, i32) {
    %c0_i32 = arith.constant 0 : i32
    %c0_i32_0 = arith.constant 0 : i32
    %c0_i32_1 = arith.constant 0 : i32
    return %c0_i32, %c0_i32_0 : i32, i32
  }
  func.func @transform_5(%arg0: i32) -> (i32, i32) {
    %c0_i32 = arith.constant 0 : i32
    %c0_i32_0 = arith.constant 0 : i32
    %c0_i32_1 = arith.constant 0 : i32
    return %c0_i32, %c0_i32_0 : i32, i32
  }
  func.func @transform_6(%arg0: i32) -> (i32, i32) {
    %c0_i32 = arith.constant 0 : i32
    %c0_i32_0 = arith.constant 0 : i32
    %c0_i32_1 = arith.constant 0 : i32
    return %c0_i32, %c0_i32_0 : i32, i32
  }
  func.func @transform_7(%arg0: i32) -> (i32, i32) {
    %c0_i32 = arith.constant 0 : i32
    %c0_i32_0 = arith.constant 0 : i32
    return %arg0, %c0_i32 : i32, i32
  }
}

</mosaic_0001>

<bundles_post_ra>
// kernel: tpu_custom_call.1
= control target key start
LH: loop header
LB: loop body
LE: loop exit
PB: predicated region body
PF: predicated region fallthrough
CT: control target
= control target key end

     0   :  { %12 = vsyncpa [#allocation3], 0  ;;  %s17552_s0 = inlined_call_operand.vmem [shape: s32[256,16], index: 0, kind: input, shape index: {}]   ;;  %s17553_s1 = inlined_call_operand.hbm [shape: bf16[256,128], index: 1, kind: input, shape index: {}]   ;;  %s17554_s2 = inlined_call_operand.hbm [shape: bf16[256,512], index: 2, kind: input, shape index: {}]   ;;  %s17555_s3 = inlined_call_operand.vmem [shape: bf16[128,512], index: 3, kind: input, shape index: {}]   ;;  %s17556_s4 = inlined_call_operand.vmem [shape: f32[1,512], index: 4, kind: input, shape index: {}]   ;;  %s17557_s5 = inlined_call_operand.hbm [shape: bf16[512,256], index: 5, kind: input, shape index: {}]   ;;  %s17558_s6 = inlined_call_operand.vmem [shape: f32[1,256], index: 6, kind: input, shape index: {}]   ;;  %s17559_s7 = inlined_call_operand.hbm [shape: f32[256,256], index: 7, kind: output, shape index: {}]  }
   0x1   :  { %13 = vsyncpa [#allocation6], 0 }
   0x2   :  { %14 = vsyncpa [#allocation4], 0  ;;  %s8531_s24 = smov [#allocation5]   ;;  %s8437_s28 = scalar_lea.hbm %s17554_s2, 8192 }
   0x3   :  { %s34_s25 = sshll.u32 %s8531_s24, 4  ;;  %p8438_p0 = scmp.ne.s32.totalorder %s17554_s2, %s8437_s28  ;;  %s35_s25 = int_to_ptr.vmem [resolvable:$true] %s34_s25 }
   0x4   :  { %p8441_p1 = scmp.lt.u32.totalorder %s8437_s28, %s17554_s2 }
   0x6   :  { %p8443_p2 = pnand %p8441_p1, %p8438_p0 }
   0x8   :  { %8446 = shalt.err (!%p8443_p2)
}
   0x9   :  { %s8447_s10 = scalar_lea.vmem %s35_s25, 8192  ;;  %p8452_p4 = scmp.lt.s32.totalorder %s35_s25, %s35_s25 }
   0xa   :  { %p8448_p3 = scmp.ne.s32.totalorder %s35_s25, %s8447_s10  ;;  %p8453_p5 = scmp.lt.s32.totalorder %s8447_s10, %s8447_s10 }
   0xc   :  { %p8454_p6 = por %p8453_p5, %p8452_p4 }
   0xe   :  { %p8455_p7 = pnand %p8454_p6, %p8448_p3 }
  0x10   :  { %8458 = shalt.err (!%p8455_p7)
}
  0x11   :  { %s8532_s11 = smov 256   ;;  %s8533_s12 = smov 16  }
  0x12   :  { %40 = dma.hbm_to_vmem [thread:$0]  %s17554_s2, 8192, %s35_s25, [#allocation6], %s8532_s11, %s8532_s11, %s8533_s12  }
  0x13   :  { %s8534_s15 = smov [#allocation2]   ;;  %s8459_s19 = scalar_lea.hbm %s17553_s1, 2048 }
  0x14   :  { %s22_s16 = sshll.u32 %s8534_s15, 4  ;;  %p8460_p8 = scmp.ne.s32.totalorder %s17553_s1, %s8459_s19  ;;  %s23_s16 = int_to_ptr.vmem [resolvable:$true] %s22_s16 }
  0x15   :  { %p8463_p9 = scmp.lt.u32.totalorder %s8459_s19, %s17553_s1 }
  0x17   :  { %p8465_p10 = pnand %p8463_p9, %p8460_p8 }
  0x19   :  { %8468 = shalt.err (!%p8465_p10)
}
  0x1a   :  { %s8469_s24 = scalar_lea.vmem %s23_s16, 2048  ;;  %p8474_p12 = scmp.lt.s32.totalorder %s23_s16, %s23_s16 }
  0x1b   :  { %p8470_p11 = scmp.ne.s32.totalorder %s23_s16, %s8469_s24  ;;  %p8475_p13 = scmp.lt.s32.totalorder %s8469_s24, %s8469_s24 }
  0x1d   :  { %p8476_p0 = por %p8475_p13, %p8474_p12 }
  0x1f   :  { %p8477_p1 = pnand %p8476_p0, %p8470_p11 }
  0x21   :  { %8480 = shalt.err (!%p8477_p1)
}
  0x22   :  { %s8535_s2 = smov 64   ;;  %s8536_s25 = smov 4  }
  0x23   :  { %28 = dma.hbm_to_vmem [thread:$0]  %s17553_s1, 2048, %s23_s16, [#allocation3], %s8535_s2, %s8535_s2, %s8536_s25  }
  0x24   :  { %s8537_s28 = smov [#allocation7]   ;;  %s8481_s9 = scalar_lea.hbm %s17557_s5, 8192 }
  0x25   :  { %s50_s29 = sshll.u32 %s8537_s28, 4  ;;  %p8482_p2 = scmp.ne.s32.totalorder %s17557_s5, %s8481_s9  ;;  %s51_s29 = int_to_ptr.vmem [resolvable:$true] %s50_s29 }
  0x26   :  { %p8485_p3 = scmp.lt.u32.totalorder %s8481_s9, %s17557_s5 }
  0x28   :  { %p8487_p4 = pnand %p8485_p3, %p8482_p2 }
  0x2a   :  { %8490 = shalt.err (!%p8487_p4)
}
  0x2b   :  { %s8491_s17 = scalar_lea.vmem %s51_s29, 8192  ;;  %p8496_p6 = scmp.lt.s32.totalorder %s51_s29, %s51_s29 }
  0x2c   :  { %p8492_p5 = scmp.ne.s32.totalorder %s51_s29, %s8491_s17  ;;  %p8497_p7 = scmp.lt.s32.totalorder %s8491_s17, %s8491_s17 }
  0x2e   :  { %p8498_p8 = por %p8497_p7, %p8496_p6 }
  0x30   :  { %p8499_p9 = pnand %p8498_p8, %p8492_p5 }
  0x32   :  { %8502 = shalt.err (!%p8499_p9)
}
  0x33   :  { %s8538_s1 = smov 128   ;;  %s8539_s16 = smov 8  }
  0x34   :  { %56 = dma.hbm_to_vmem [thread:$0]  %s17557_s5, 8192, %s51_s29, [#allocation6], %s8538_s1, %s8538_s1, %s8539_s16  }
  0x35   :  { %8525 = dma.done.wait [#allocation3], 2048  }
  0x36   :  { %8526 = vsyncadd [#allocation3], 4294965248 }
  0x37   :  { %8527 = dma.done.wait [#allocation6], 16384  }
  0x38   :  { %8528 = vsyncadd [#allocation6], 4294950912  ;;  %v17560_v0 = vmov 0   ;;  %v8644_v1 = vld [vmem:[%s17552_s0 + $0x10] sm:$0xff]  ;;  %v8649_v2 = vld [vmem:[%s17552_s0] sm:$0xff]  ;;  %v8541_v33 = vmov 1  }
  0x39   :  { %7950 = vset.pattern.permute.xlu1 %v17560_v0  ;;  %7949 = vset.pattern.permute.xlu0 %v17560_v0  ;;  %v8656_v3 = vld [vmem:[%s17552_s0 + $0x18] sm:$0xff]  ;;  %v8661_v4 = vld [vmem:[%s17552_s0 + $0x8] sm:$0xff]  ;;  %v8673_v6 = vld [vmem:[%s17552_s0 + $0x20] sm:$0xff]  ;;  %v8542_v36 = vmov 2  }
  0x3a   :  { %5353 = vmatprep.mubr.bf16.mxu1 %v17560_v0  ;;  %5160 = vmatprep.mubr.bf16.mxu0 %v17560_v0  ;;  %v8668_v5 = vld [vmem:[%s17552_s0 + $0x28] sm:$0xff]  ;;  %v8680_v7 = vld [vmem:[%s17552_s0 + $0x38] sm:$0xff]  ;;  %v8685_v8 = vld [vmem:[%s17552_s0 + $0x30] sm:$0xff] }
  0x3b   :  { %111 = vperm.xlu1 %7950, %v8644_v1   ;;  %105 = vperm.xlu0 %7949, %v8649_v2   ;;  %v8690_v9 = vld [vmem:[%s17552_s0 + $0x48] sm:$0xff]  ;;  %v8695_v10 = vld [vmem:[%s17552_s0 + $0x40] sm:$0xff]  ;;  %v8702_v11 = vld [vmem:[%s17552_s0 + $0x58] sm:$0xff] }
  0x3c   :  { %v8707_v12 = vld [vmem:[%s17552_s0 + $0x50] sm:$0xff]  ;;  %v8714_v13 = vld [vmem:[%s17552_s0 + $0x68] sm:$0xff]  ;;  %v8719_v14 = vld [vmem:[%s17552_s0 + $0x60] sm:$0xff] }
  0x3d   :  { %v8726_v15 = vld [vmem:[%s17552_s0 + $0x78] sm:$0xff]  ;;  %v8731_v16 = vld [vmem:[%s17552_s0 + $0x70] sm:$0xff]  ;;  %v8738_v17 = vld [vmem:[%s17552_s0 + $0x88] sm:$0xff] }
  0x3e   :  { %v8743_v18 = vld [vmem:[%s17552_s0 + $0x80] sm:$0xff]  ;;  %v8750_v19 = vld [vmem:[%s17552_s0 + $0x98] sm:$0xff]  ;;  %v8755_v20 = vld [vmem:[%s17552_s0 + $0x90] sm:$0xff] }
  0x3f   :  { %114 = vperm.xlu1 %7950, %v8656_v3   ;;  %108 = vperm.xlu0 %7949, %v8661_v4   ;;  %v8762_v21 = vld [vmem:[%s17552_s0 + $0xa8] sm:$0xff]  ;;  %v8767_v22 = vld [vmem:[%s17552_s0 + $0xa0] sm:$0xff]  ;;  %v8774_v23 = vld [vmem:[%s17552_s0 + $0xb8] sm:$0xff] }
  0x40   :  { %v8779_v24 = vld [vmem:[%s17552_s0 + $0xb0] sm:$0xff]  ;;  %v8786_v25 = vld [vmem:[%s17552_s0 + $0xc8] sm:$0xff]  ;;  %v8791_v26 = vld [vmem:[%s17552_s0 + $0xc0] sm:$0xff] }
  0x41   :  { %v8798_v27 = vld [vmem:[%s17552_s0 + $0xd8] sm:$0xff]  ;;  %v8803_v28 = vld [vmem:[%s17552_s0 + $0xd0] sm:$0xff]  ;;  %v8810_v29 = vld [vmem:[%s17552_s0 + $0xe8] sm:$0xff] }
  0x42   :  { %v8815_v30 = vld [vmem:[%s17552_s0 + $0xe0] sm:$0xff]  ;;  %v8822_v31 = vld [vmem:[%s17552_s0 + $0xf8] sm:$0xff]  ;;  %v8827_v32 = vld [vmem:[%s17552_s0 + $0xf0] sm:$0xff] }
  0x43   :  { %120 = vperm.xlu1 %7950, %v8668_v5   ;;  %117 = vperm.xlu0 %7949, %v8673_v6  }
  0x47   :  { %126 = vperm.xlu1 %7950, %v8680_v7   ;;  %123 = vperm.xlu0 %7949, %v8685_v8  }
  0x4b   :  { %132 = vperm.xlu1 %7950, %v8690_v9   ;;  %129 = vperm.xlu0 %7949, %v8695_v10  }
  0x4f   :  { %138 = vperm.xlu1 %7950, %v8702_v11   ;;  %135 = vperm.xlu0 %7949, %v8707_v12  }
  0x53   :  { %144 = vperm.xlu1 %7950, %v8714_v13   ;;  %141 = vperm.xlu0 %7949, %v8719_v14  }
  0x57   :  { %150 = vperm.xlu1 %7950, %v8726_v15   ;;  %147 = vperm.xlu0 %7949, %v8731_v16  }
  0x5b   :  { %156 = vperm.xlu1 %7950, %v8738_v17   ;;  %153 = vperm.xlu0 %7949, %v8743_v18  }
  0x5f   :  { %162 = vperm.xlu1 %7950, %v8750_v19   ;;  %159 = vperm.xlu0 %7949, %v8755_v20  }
  0x63   :  { %168 = vperm.xlu1 %7950, %v8762_v21   ;;  %165 = vperm.xlu0 %7949, %v8767_v22  }
  0x67   :  { %174 = vperm.xlu1 %7950, %v8774_v23   ;;  %171 = vperm.xlu0 %7949, %v8779_v24  }
  0x6b   :  { %180 = vperm.xlu1 %7950, %v8786_v25   ;;  %177 = vperm.xlu0 %7949, %v8791_v26  }
  0x6f   :  { %186 = vperm.xlu1 %7950, %v8798_v27   ;;  %183 = vperm.xlu0 %7949, %v8803_v28  }
  0x73   :  { %192 = vperm.xlu1 %7950, %v8810_v29   ;;  %189 = vperm.xlu0 %7949, %v8815_v30  }
  0x77   :  { %198 = vperm.xlu1 %7950, %v8822_v31   ;;  %195 = vperm.xlu0 %7949, %v8827_v32  }
  0x7b   :  { %7952 = vset.pattern.permute.xlu1 %v8541_v33  ;;  %7951 = vset.pattern.permute.xlu0 %v8541_v33 }
  0x7c   :  { %396 = vperm.xlu1 %7952, %v8661_v4   ;;  %393 = vperm.xlu0 %7951, %v8649_v2  }
  0x80   :  { %399 = vperm.xlu1 %7952, %v8644_v1   ;;  %402 = vperm.xlu0 %7951, %v8656_v3  }
  0x84   :  { %405 = vperm.xlu1 %7952, %v8673_v6   ;;  %408 = vperm.xlu0 %7951, %v8668_v5  }
  0x88   :  { %411 = vperm.xlu1 %7952, %v8685_v8   ;;  %414 = vperm.xlu0 %7951, %v8680_v7  }
  0x8c   :  { %417 = vperm.xlu1 %7952, %v8695_v10   ;;  %420 = vperm.xlu0 %7951, %v8690_v9  }
  0x90   :  { %423 = vperm.xlu1 %7952, %v8707_v12   ;;  %426 = vperm.xlu0 %7951, %v8702_v11  }
  0x94   :  { %429 = vperm.xlu1 %7952, %v8719_v14   ;;  %432 = vperm.xlu0 %7951, %v8714_v13  }
  0x98   :  { %435 = vperm.xlu1 %7952, %v8731_v16   ;;  %438 = vperm.xlu0 %7951, %v8726_v15  }
  0x9c   :  { %441 = vperm.xlu1 %7952, %v8743_v18   ;;  %444 = vperm.xlu0 %7951, %v8738_v17  }
  0xa0   :  { %447 = vperm.xlu1 %7952, %v8755_v20   ;;  %450 = vperm.xlu0 %7951, %v8750_v19  }
  0xa4   :  { %453 = vperm.xlu1 %7952, %v8767_v22   ;;  %456 = vperm.xlu0 %7951, %v8762_v21  }
  0xa8   :  { %459 = vperm.xlu1 %7952, %v8779_v24   ;;  %462 = vperm.xlu0 %7951, %v8774_v23  }
  0xac   :  { %465 = vperm.xlu1 %7952, %v8791_v26   ;;  %468 = vperm.xlu0 %7951, %v8786_v25  }
  0xb0   :  { %471 = vperm.xlu1 %7952, %v8803_v28   ;;  %474 = vperm.xlu0 %7951, %v8798_v27  }
  0xb4   :  { %477 = vperm.xlu1 %7952, %v8815_v30   ;;  %480 = vperm.xlu0 %7951, %v8810_v29  }
  0xb8   :  { %483 = vperm.xlu1 %7952, %v8827_v32   ;;  %486 = vperm.xlu0 %7951, %v8822_v31  }
  0xba   :  { %v8865_v34 = vpop.permute.xlu1 %111  ;;  %v8867_v35 = vpop.permute.xlu0 %105 }
  0xbc   :  { %7953 = vset.pattern.permute.xlu1 %v8542_v36  ;;  %7954 = vset.pattern.permute.xlu0 %v8542_v36 }
  0xbd   :  { %681 = vperm.xlu1 %7953, %v8649_v2   ;;  %684 = vperm.xlu0 %7954, %v8661_v4  }
  0xbe   :  { %v8871_v37 = vpop.permute.xlu1 %114  ;;  %v8873_v38 = vpop.permute.xlu0 %108 }
  0xc1   :  { %687 = vperm.xlu1 %7953, %v8644_v1   ;;  %693 = vperm.xlu0 %7954, %v8673_v6  }
  0xc2   :  { %v8877_v39 = vpop.permute.xlu1 %120  ;;  %v8879_v40 = vpop.permute.xlu0 %117 }
  0xc5   :  { %690 = vperm.xlu1 %7953, %v8656_v3   ;;  %699 = vperm.xlu0 %7954, %v8685_v8  }
  0xc6   :  { %v8883_v41 = vpop.permute.xlu1 %126  ;;  %v8885_v42 = vpop.permute.xlu0 %123 }
  0xc9   :  { %696 = vperm.xlu1 %7953, %v8668_v5   ;;  %705 = vperm.xlu0 %7954, %v8695_v10  }
  0xca   :  { %v8889_v43 = vpop.permute.xlu1 %132  ;;  %v8891_v44 = vpop.permute.xlu0 %129 }
  0xcd   :  { %702 = vperm.xlu1 %7953, %v8680_v7   ;;  %711 = vperm.xlu0 %7954, %v8707_v12  }
  0xce   :  { %v8895_v45 = vpop.permute.xlu1 %138  ;;  %v8897_v46 = vpop.permute.xlu0 %135 }
  0xd1   :  { %708 = vperm.xlu1 %7953, %v8690_v9   ;;  %717 = vperm.xlu0 %7954, %v8719_v14  }
  0xd2   :  { %v8901_v47 = vpop.permute.xlu1 %144  ;;  %v8903_v48 = vpop.permute.xlu0 %141 }
  0xd5   :  { %714 = vperm.xlu1 %7953, %v8702_v11   ;;  %723 = vperm.xlu0 %7954, %v8731_v16  }
  0xd6   :  { %v8907_v49 = vpop.permute.xlu1 %150  ;;  %v8909_v50 = vpop.permute.xlu0 %147 }
  0xd9   :  { %720 = vperm.xlu1 %7953, %v8714_v13   ;;  %729 = vperm.xlu0 %7954, %v8743_v18  }
  0xda   :  { %v8913_v51 = vpop.permute.xlu1 %156  ;;  %v8915_v52 = vpop.permute.xlu0 %153 }
  0xdd   :  { %726 = vperm.xlu1 %7953, %v8726_v15   ;;  %735 = vperm.xlu0 %7954, %v8755_v20  }
  0xde   :  { %v8919_v53 = vpop.permute.xlu1 %162  ;;  %v8921_v54 = vpop.permute.xlu0 %159 }
  0xe1   :  { %732 = vperm.xlu1 %7953, %v8738_v17   ;;  %741 = vperm.xlu0 %7954, %v8767_v22  }
  0xe2   :  { %v8925_v55 = vpop.permute.xlu1 %168  ;;  %v8927_v56 = vpop.permute.xlu0 %165 }
  0xe5   :  { %738 = vperm.xlu1 %7953, %v8750_v19   ;;  %747 = vperm.xlu0 %7954, %v8779_v24  }
  0xe6   :  { %v8931_v57 = vpop.permute.xlu1 %174  ;;  %v8933_v58 = vpop.permute.xlu0 %171 }
  0xe7   :  { %17944 = vst [vmem:[#allocation12_spill] sm:$0xff] %v8933_v58 }
  0xe9   :  { %744 = vperm.xlu1 %7953, %v8762_v21   ;;  %753 = vperm.xlu0 %7954, %v8791_v26  }
  0xea   :  { %v8937_v59 = vpop.permute.xlu1 %180  ;;  %v8939_v60 = vpop.permute.xlu0 %177 }
  0xeb   :  { %17945 = vst [vmem:[#allocation13_spill] sm:$0xff] %v8939_v60  ;;  %v8543_v60 = vmov 3  }
  0xed   :  { %750 = vperm.xlu1 %7953, %v8774_v23   ;;  %759 = vperm.xlu0 %7954, %v8803_v28  }
  0xee   :  { %v8943_v61 = vpop.permute.xlu1 %186  ;;  %v8945_v62 = vpop.permute.xlu0 %183 }
  0xef   :  { %17946 = vst [vmem:[#allocation14_spill] sm:$0xff] %v8945_v62 }
  0xf1   :  { %756 = vperm.xlu1 %7953, %v8786_v25   ;;  %765 = vperm.xlu0 %7954, %v8815_v30  }
  0xf2   :  { %v8949_v63 = vpop.permute.xlu1 %192  ;;  %v8951_v33 = vpop.permute.xlu0 %189 }
  0xf3   :  { %17947 = vst [vmem:[#allocation15_spill] sm:$0xff] %v8949_v63  ;;  %17948 = vst [vmem:[#allocation16_spill] sm:$0xff] %v8951_v33 }
  0xf5   :  { %762 = vperm.xlu1 %7953, %v8798_v27   ;;  %771 = vperm.xlu0 %7954, %v8827_v32  }
  0xf6   :  { %v8955_v36 = vpop.permute.xlu1 %198  ;;  %v8957_v0 = vpop.permute.xlu0 %195 }
  0xf7   :  { %17949 = vst [vmem:[#allocation17_spill] sm:$0xff] %v8955_v36  ;;  %17950 = vst [vmem:[#allocation18_spill] sm:$0xff] %v8957_v0 }
  0xf9   :  { %768 = vperm.xlu1 %7953, %v8810_v29   ;;  %7955 = vset.pattern.permute.xlu0 %v8543_v60 }
  0xfa   :  { %969 = vperm.xlu0 %7955, %v8649_v2  }
  0xfb   :  { %v8961_v62 = vpop.permute.xlu1 %396  ;;  %v8963_v58 = vpop.permute.xlu0 %393 }
  0xfc   :  { %17951 = vst [vmem:[#allocation19_spill] sm:$0xff] %v8961_v62  ;;  %17952 = vst [vmem:[#allocation20_spill] sm:$0xff] %v8963_v58 }
  0xfd   :  { %774 = vperm.xlu1 %7953, %v8822_v31  }
  0xfe   :  { %978 = vperm.xlu0 %7955, %v8656_v3  }
  0xff   :  { %v8967_v33 = vpop.permute.xlu1 %399  ;;  %v8969_v63 = vpop.permute.xlu0 %402 }
 0x100   :  { %17953 = vst [vmem:[#allocation21_spill] sm:$0xff] %v8967_v33  ;;  %17954 = vst [vmem:[#allocation22_spill] sm:$0xff] %v8969_v63 }
 0x101   :  { %7956 = vset.pattern.permute.xlu1 %v8543_v60 }
 0x102   :  { %972 = vperm.xlu1 %7956, %v8661_v4   ;;  %984 = vperm.xlu0 %7955, %v8668_v5  }
 0x103   :  { %v8973_v0 = vpop.permute.xlu1 %405  ;;  %v8975_v36 = vpop.permute.xlu0 %408 }
 0x104   :  { %17955 = vst [vmem:[#allocation23_spill] sm:$0xff] %v8973_v0  ;;  %17956 = vst [vmem:[#allocation24_spill] sm:$0xff] %v8975_v36 }
 0x106   :  { %975 = vperm.xlu1 %7956, %v8644_v1   ;;  %990 = vperm.xlu0 %7955, %v8680_v7  }
 0x107   :  { %v8979_v58 = vpop.permute.xlu1 %411  ;;  %v8981_v62 = vpop.permute.xlu0 %414 }
 0x108   :  { %17957 = vst [vmem:[#allocation25_spill] sm:$0xff] %v8979_v58  ;;  %17958 = vst [vmem:[#allocation26_spill] sm:$0xff] %v8981_v62 }
 0x10a   :  { %981 = vperm.xlu1 %7956, %v8673_v6   ;;  %996 = vperm.xlu0 %7955, %v8690_v9  }
 0x10b   :  { %v8985_v60 = vpop.permute.xlu1 %417  ;;  %v8987_v63 = vpop.permute.xlu0 %420 }
 0x10c   :  { %17959 = vst [vmem:[#allocation27_spill] sm:$0xff] %v8985_v60  ;;  %17960 = vst [vmem:[#allocation28_spill] sm:$0xff] %v8987_v63 }
 0x10e   :  { %987 = vperm.xlu1 %7956, %v8685_v8   ;;  %1002 = vperm.xlu0 %7955, %v8702_v11  }
 0x10f   :  { %v8991_v36 = vpop.permute.xlu1 %423  ;;  %v8993_v0 = vpop.permute.xlu0 %426 }
 0x110   :  { %17961 = vst [vmem:[#allocation29_spill] sm:$0xff] %v8991_v36  ;;  %17962 = vst [vmem:[#allocation30_spill] sm:$0xff] %v8993_v0 }
 0x112   :  { %993 = vperm.xlu1 %7956, %v8695_v10   ;;  %1008 = vperm.xlu0 %7955, %v8714_v13  }
 0x113   :  { %v8997_v62 = vpop.permute.xlu1 %429  ;;  %v8999_v58 = vpop.permute.xlu0 %432 }
 0x114   :  { %17963 = vst [vmem:[#allocation31_spill] sm:$0xff] %v8997_v62  ;;  %17964 = vst [vmem:[#allocation32_spill] sm:$0xff] %v8999_v58 }
 0x116   :  { %999 = vperm.xlu1 %7956, %v8707_v12   ;;  %1014 = vperm.xlu0 %7955, %v8726_v15  }
 0x117   :  { %v9003_v63 = vpop.permute.xlu1 %435  ;;  %v9005_v60 = vpop.permute.xlu0 %438 }
 0x118   :  { %17965 = vst [vmem:[#allocation33_spill] sm:$0xff] %v9003_v63  ;;  %17966 = vst [vmem:[#allocation34_spill] sm:$0xff] %v9005_v60 }
 0x11a   :  { %1005 = vperm.xlu1 %7956, %v8719_v14   ;;  %1020 = vperm.xlu0 %7955, %v8738_v17  }
 0x11b   :  { %v9009_v0 = vpop.permute.xlu1 %441  ;;  %v9011_v36 = vpop.permute.xlu0 %444 }
 0x11c   :  { %17967 = vst [vmem:[#allocation35_spill] sm:$0xff] %v9009_v0  ;;  %17968 = vst [vmem:[#allocation36_spill] sm:$0xff] %v9011_v36 }
 0x11e   :  { %1011 = vperm.xlu1 %7956, %v8731_v16   ;;  %1026 = vperm.xlu0 %7955, %v8750_v19  }
 0x11f   :  { %v9015_v58 = vpop.permute.xlu1 %447  ;;  %v9017_v62 = vpop.permute.xlu0 %450 }
 0x120   :  { %17969 = vst [vmem:[#allocation37_spill] sm:$0xff] %v9015_v58  ;;  %17970 = vst [vmem:[#allocation38_spill] sm:$0xff] %v9017_v62 }
 0x122   :  { %1017 = vperm.xlu1 %7956, %v8743_v18   ;;  %1032 = vperm.xlu0 %7955, %v8762_v21  }
 0x123   :  { %v9021_v60 = vpop.permute.xlu1 %453  ;;  %v9023_v63 = vpop.permute.xlu0 %456 }
 0x124   :  { %17971 = vst [vmem:[#allocation39_spill] sm:$0xff] %v9021_v60  ;;  %17972 = vst [vmem:[#allocation40_spill] sm:$0xff] %v9023_v63 }
 0x126   :  { %1023 = vperm.xlu1 %7956, %v8755_v20   ;;  %1038 = vperm.xlu0 %7955, %v8774_v23  }
 0x127   :  { %v9027_v36 = vpop.permute.xlu1 %459  ;;  %v9029_v0 = vpop.permute.xlu0 %462 }
 0x128   :  { %17973 = vst [vmem:[#allocation41_spill] sm:$0xff] %v9027_v36  ;;  %17974 = vst [vmem:[#allocation42_spill] sm:$0xff] %v9029_v0 }
 0x12a   :  { %1029 = vperm.xlu1 %7956, %v8767_v22   ;;  %1044 = vperm.xlu0 %7955, %v8786_v25  }
 0x12b   :  { %v9033_v62 = vpop.permute.xlu1 %465  ;;  %v9035_v58 = vpop.permute.xlu0 %468 }
 0x12c   :  { %17975 = vst [vmem:[#allocation43_spill] sm:$0xff] %v9033_v62  ;;  %17976 = vst [vmem:[#allocation44_spill] sm:$0xff] %v9035_v58 }
 0x12e   :  { %1035 = vperm.xlu1 %7956, %v8779_v24   ;;  %1050 = vperm.xlu0 %7955, %v8798_v27  }
 0x12f   :  { %v9039_v63 = vpop.permute.xlu1 %471  ;;  %v9041_v60 = vpop.permute.xlu0 %474 }
 0x130   :  { %17977 = vst [vmem:[#allocation45_spill] sm:$0xff] %v9039_v63  ;;  %17978 = vst [vmem:[#allocation46_spill] sm:$0xff] %v9041_v60  ;;  %v8544_v63 = vmov 4  }
 0x132   :  { %1041 = vperm.xlu1 %7956, %v8791_v26   ;;  %1056 = vperm.xlu0 %7955, %v8810_v29  }
 0x133   :  { %v9045_v36 = vpop.permute.xlu1 %477  ;;  %v9047_v0 = vpop.permute.xlu0 %480 }
 0x134   :  { %17979 = vst [vmem:[#allocation47_spill] sm:$0xff] %v9045_v36  ;;  %17980 = vst [vmem:[#allocation48_spill] sm:$0xff] %v9047_v0 }
 0x136   :  { %1047 = vperm.xlu1 %7956, %v8803_v28   ;;  %1062 = vperm.xlu0 %7955, %v8822_v31  }
 0x137   :  { %v9051_v62 = vpop.permute.xlu1 %483  ;;  %v9053_v58 = vpop.permute.xlu0 %486 }
 0x138   :  { %17981 = vst [vmem:[#allocation49_spill] sm:$0xff] %v9051_v62  ;;  %17982 = vst [vmem:[#allocation50_spill] sm:$0xff] %v9053_v58 }
 0x13a   :  { %1053 = vperm.xlu1 %7956, %v8815_v30   ;;  %7958 = vset.pattern.permute.xlu0 %v8544_v63 }
 0x13b   :  { %1260 = vperm.xlu0 %7958, %v8661_v4  }
 0x13c   :  { %v9057_v60 = vpop.permute.xlu1 %681  ;;  %v9059_v33 = vpop.permute.xlu0 %684 }
 0x13d   :  { %17983 = vst [vmem:[#allocation51_spill] sm:$0xff] %v9057_v60  ;;  %17984 = vst [vmem:[#allocation52_spill] sm:$0xff] %v9059_v33 }
 0x13e   :  { %1059 = vperm.xlu1 %7956, %v8827_v32  }
 0x13f   :  { %1269 = vperm.xlu0 %7958, %v8673_v6  }
 0x140   :  { %v9063_v36 = vpop.permute.xlu1 %687  ;;  %v9065_v0 = vpop.permute.xlu0 %693 }
 0x141   :  { %17985 = vst [vmem:[#allocation53_spill] sm:$0xff] %v9063_v36  ;;  %17986 = vst [vmem:[#allocation54_spill] sm:$0xff] %v9065_v0 }
 0x142   :  { %7957 = vset.pattern.permute.xlu1 %v8544_v63 }
 0x143   :  { %1257 = vperm.xlu1 %7957, %v8649_v2   ;;  %1275 = vperm.xlu0 %7958, %v8685_v8  }
 0x144   :  { %v9069_v58 = vpop.permute.xlu1 %690  ;;  %v9071_v62 = vpop.permute.xlu0 %699 }
 0x145   :  { %17987 = vst [vmem:[#allocation55_spill] sm:$0xff] %v9069_v58  ;;  %17988 = vst [vmem:[#allocation56_spill] sm:$0xff] %v9071_v62 }
 0x147   :  { %1263 = vperm.xlu1 %7957, %v8644_v1   ;;  %1281 = vperm.xlu0 %7958, %v8695_v10  }
 0x148   :  { %v9075_v33 = vpop.permute.xlu1 %696  ;;  %v9077_v60 = vpop.permute.xlu0 %705 }
 0x149   :  { %17989 = vst [vmem:[#allocation57_spill] sm:$0xff] %v9075_v33  ;;  %17990 = vst [vmem:[#allocation58_spill] sm:$0xff] %v9077_v60 }
 0x14b   :  { %1266 = vperm.xlu1 %7957, %v8656_v3   ;;  %1287 = vperm.xlu0 %7958, %v8707_v12  }
 0x14c   :  { %v9081_v63 = vpop.permute.xlu1 %702  ;;  %v9083_v0 = vpop.permute.xlu0 %711 }
 0x14d   :  { %17991 = vst [vmem:[#allocation59_spill] sm:$0xff] %v9081_v63  ;;  %17992 = vst [vmem:[#allocation60_spill] sm:$0xff] %v9083_v0 }
 0x14f   :  { %1272 = vperm.xlu1 %7957, %v8668_v5   ;;  %1293 = vperm.xlu0 %7958, %v8719_v14  }
 0x150   :  { %v9087_v62 = vpop.permute.xlu1 %708  ;;  %v9089_v58 = vpop.permute.xlu0 %717 }
 0x151   :  { %17993 = vst [vmem:[#allocation61_spill] sm:$0xff] %v9087_v62  ;;  %17994 = vst [vmem:[#allocation62_spill] sm:$0xff] %v9089_v58 }
 0x153   :  { %1278 = vperm.xlu1 %7957, %v8680_v7   ;;  %1299 = vperm.xlu0 %7958, %v8731_v16  }
 0x154   :  { %v9093_v60 = vpop.permute.xlu1 %714  ;;  %v9095_v33 = vpop.permute.xlu0 %723 }
 0x155   :  { %17995 = vst [vmem:[#allocation63_spill] sm:$0xff] %v9093_v60  ;;  %17996 = vst [vmem:[#allocation64_spill] sm:$0xff] %v9095_v33 }
 0x157   :  { %1284 = vperm.xlu1 %7957, %v8690_v9   ;;  %1305 = vperm.xlu0 %7958, %v8743_v18  }
 0x158   :  { %v9099_v0 = vpop.permute.xlu1 %720  ;;  %v9101_v63 = vpop.permute.xlu0 %729 }
 0x159   :  { %17997 = vst [vmem:[#allocation65_spill] sm:$0xff] %v9099_v0  ;;  %17998 = vst [vmem:[#allocation66_spill] sm:$0xff] %v9101_v63 }
 0x15b   :  { %1290 = vperm.xlu1 %7957, %v8702_v11   ;;  %1311 = vperm.xlu0 %7958, %v8755_v20  }
 0x15c   :  { %v9105_v58 = vpop.permute.xlu1 %726  ;;  %v9107_v62 = vpop.permute.xlu0 %735 }
 0x15d   :  { %17999 = vst [vmem:[#allocation67_spill] sm:$0xff] %v9105_v58  ;;  %18000 = vst [vmem:[#allocation68_spill] sm:$0xff] %v9107_v62 }
 0x15f   :  { %1296 = vperm.xlu1 %7957, %v8714_v13   ;;  %1317 = vperm.xlu0 %7958, %v8767_v22  }
 0x160   :  { %v9111_v33 = vpop.permute.xlu1 %732  ;;  %v9113_v60 = vpop.permute.xlu0 %741 }
 0x161   :  { %18001 = vst [vmem:[#allocation69_spill] sm:$0xff] %v9111_v33  ;;  %18002 = vst [vmem:[#allocation70_spill] sm:$0xff] %v9113_v60 }
 0x163   :  { %1302 = vperm.xlu1 %7957, %v8726_v15   ;;  %1323 = vperm.xlu0 %7958, %v8779_v24  }
 0x164   :  { %v9117_v63 = vpop.permute.xlu1 %738  ;;  %v9119_v0 = vpop.permute.xlu0 %747 }
 0x165   :  { %18003 = vst [vmem:[#allocation71_spill] sm:$0xff] %v9117_v63  ;;  %18004 = vst [vmem:[#allocation72_spill] sm:$0xff] %v9119_v0 }
 0x167   :  { %1308 = vperm.xlu1 %7957, %v8738_v17   ;;  %1329 = vperm.xlu0 %7958, %v8791_v26  }
 0x168   :  { %v9123_v62 = vpop.permute.xlu1 %744  ;;  %v9125_v58 = vpop.permute.xlu0 %753 }
 0x169   :  { %18005 = vst [vmem:[#allocation73_spill] sm:$0xff] %v9123_v62  ;;  %18006 = vst [vmem:[#allocation74_spill] sm:$0xff] %v9125_v58 }
 0x16b   :  { %1314 = vperm.xlu1 %7957, %v8750_v19   ;;  %1335 = vperm.xlu0 %7958, %v8803_v28  }
 0x16c   :  { %v9129_v60 = vpop.permute.xlu1 %750  ;;  %v9131_v33 = vpop.permute.xlu0 %759 }
 0x16d   :  { %18007 = vst [vmem:[#allocation75_spill] sm:$0xff] %v9129_v60  ;;  %18008 = vst [vmem:[#allocation76_spill] sm:$0xff] %v9131_v33  ;;  %v8545_v60 = vmov 5  }
 0x16f   :  { %1320 = vperm.xlu1 %7957, %v8762_v21   ;;  %1341 = vperm.xlu0 %7958, %v8815_v30  }
 0x170   :  { %v9135_v0 = vpop.permute.xlu1 %756  ;;  %v9137_v63 = vpop.permute.xlu0 %765 }
 0x171   :  { %18009 = vst [vmem:[#allocation77_spill] sm:$0xff] %v9135_v0  ;;  %18010 = vst [vmem:[#allocation78_spill] sm:$0xff] %v9137_v63 }
 0x173   :  { %1326 = vperm.xlu1 %7957, %v8774_v23   ;;  %1347 = vperm.xlu0 %7958, %v8827_v32  }
 0x174   :  { %v9141_v58 = vpop.permute.xlu1 %762  ;;  %v9143_v62 = vpop.permute.xlu0 %771 }
 0x175   :  { %18011 = vst [vmem:[#allocation79_spill] sm:$0xff] %v9141_v58  ;;  %18012 = vst [vmem:[#allocation80_spill] sm:$0xff] %v9143_v62 }
 0x177   :  { %1332 = vperm.xlu1 %7957, %v8786_v25   ;;  %7959 = vset.pattern.permute.xlu0 %v8545_v60 }
 0x178   :  { %v9146_v33 = vpop.permute.xlu1 %768  ;;  %1545 = vperm.xlu0 %7959, %v8649_v2  }
 0x179   :  { %18013 = vst [vmem:[#allocation81_spill] sm:$0xff] %v9146_v33  ;;  %v9149_v36 = vpop.permute.xlu0 %969 }
 0x17a   :  { %18014 = vst [vmem:[#allocation82_spill] sm:$0xff] %v9149_v36 }
 0x17b   :  { %1338 = vperm.xlu1 %7957, %v8798_v27  }
 0x17c   :  { %v9152_v63 = vpop.permute.xlu1 %774  ;;  %1554 = vperm.xlu0 %7959, %v8656_v3  }
 0x17d   :  { %18015 = vst [vmem:[#allocation83_spill] sm:$0xff] %v9152_v63  ;;  %v9155_v0 = vpop.permute.xlu0 %978 }
 0x17e   :  { %18016 = vst [vmem:[#allocation84_spill] sm:$0xff] %v9155_v0 }
 0x17f   :  { %1344 = vperm.xlu1 %7957, %v8810_v29  }
 0x180   :  { %1560 = vperm.xlu0 %7959, %v8668_v5  }
 0x181   :  { %v9159_v62 = vpop.permute.xlu1 %972  ;;  %v9161_v58 = vpop.permute.xlu0 %984 }
 0x182   :  { %18017 = vst [vmem:[#allocation85_spill] sm:$0xff] %v9159_v62  ;;  %18018 = vst [vmem:[#allocation86_spill] sm:$0xff] %v9161_v58 }
 0x183   :  { %1350 = vperm.xlu1 %7957, %v8822_v31  }
 0x184   :  { %1566 = vperm.xlu0 %7959, %v8680_v7  }
 0x185   :  { %v9165_v2 = vpop.permute.xlu1 %975  ;;  %v9167_v36 = vpop.permute.xlu0 %990 }
 0x186   :  { %18019 = vst [vmem:[#allocation87_spill] sm:$0xff] %v9165_v2  ;;  %18020 = vst [vmem:[#allocation88_spill] sm:$0xff] %v9167_v36 }
 0x187   :  { %7960 = vset.pattern.permute.xlu1 %v8545_v60 }
 0x188   :  { %1548 = vperm.xlu1 %7960, %v8661_v4   ;;  %1572 = vperm.xlu0 %7959, %v8690_v9  }
 0x189   :  { %v9171_v3 = vpop.permute.xlu1 %981  ;;  %v9173_v5 = vpop.permute.xlu0 %996 }
 0x18a   :  { %18021 = vst [vmem:[#allocation89_spill] sm:$0xff] %v9171_v3  ;;  %18022 = vst [vmem:[#allocation90_spill] sm:$0xff] %v9173_v5 }
 0x18c   :  { %1551 = vperm.xlu1 %7960, %v8644_v1   ;;  %1578 = vperm.xlu0 %7959, %v8702_v11  }
 0x18d   :  { %v9177_v63 = vpop.permute.xlu1 %987  ;;  %v9179_v7 = vpop.permute.xlu0 %1002 }
 0x18e   :  { %18023 = vst [vmem:[#allocation91_spill] sm:$0xff] %v9177_v63  ;;  %18024 = vst [vmem:[#allocation92_spill] sm:$0xff] %v9179_v7  ;;  %v9347_v7 = vld [vmem:[%s17552_s0 + $0x38] sm:$0xff] }
 0x190   :  { %1557 = vperm.xlu1 %7960, %v8673_v6   ;;  %1584 = vperm.xlu0 %7959, %v8714_v13  }
 0x191   :  { %v9183_v60 = vpop.permute.xlu1 %993  ;;  %v9185_v4 = vpop.permute.xlu0 %1008 }
 0x192   :  { %18025 = vst [vmem:[#allocation93_spill] sm:$0xff] %v9183_v60  ;;  %18026 = vst [vmem:[#allocation94_spill] sm:$0xff] %v9185_v4 }
 0x194   :  { %1563 = vperm.xlu1 %7960, %v8685_v8   ;;  %1590 = vperm.xlu0 %7959, %v8726_v15  }
 0x195   :  { %v9189_v9 = vpop.permute.xlu1 %999  ;;  %v9191_v1 = vpop.permute.xlu0 %1014 }
 0x196   :  { %18027 = vst [vmem:[#allocation95_spill] sm:$0xff] %v9189_v9  ;;  %18028 = vst [vmem:[#allocation96_spill] sm:$0xff] %v9191_v1 }
 0x198   :  { %1569 = vperm.xlu1 %7960, %v8695_v10   ;;  %1596 = vperm.xlu0 %7959, %v8738_v17  }
 0x199   :  { %v9195_v11 = vpop.permute.xlu1 %1005  ;;  %v9197_v6 = vpop.permute.xlu0 %1020 }
 0x19a   :  { %18029 = vst [vmem:[#allocation97_spill] sm:$0xff] %v9195_v11  ;;  %18030 = vst [vmem:[#allocation98_spill] sm:$0xff] %v9197_v6 }
 0x19c   :  { %1575 = vperm.xlu1 %7960, %v8707_v12   ;;  %1602 = vperm.xlu0 %7959, %v8750_v19  }
 0x19d   :  { %v9201_v13 = vpop.permute.xlu1 %1011  ;;  %v9203_v8 = vpop.permute.xlu0 %1026 }
 0x19e   :  { %18031 = vst [vmem:[#allocation99_spill] sm:$0xff] %v9201_v13  ;;  %18032 = vst [vmem:[#allocation100_spill] sm:$0xff] %v9203_v8  ;;  %v9278_v8 = vld [vmem:[%s17552_s0 + $0x40] sm:$0xff] }
 0x1a0   :  { %1581 = vperm.xlu1 %7960, %v8719_v14   ;;  %1608 = vperm.xlu0 %7959, %v8762_v21  }
 0x1a1   :  { %v9207_v15 = vpop.permute.xlu1 %1017  ;;  %v9209_v10 = vpop.permute.xlu0 %1032 }
 0x1a2   :  { %18033 = vst [vmem:[#allocation101_spill] sm:$0xff] %v9207_v15  ;;  %18034 = vst [vmem:[#allocation102_spill] sm:$0xff] %v9209_v10  ;;  %v9267_v15 = vld [vmem:[%s17552_s0 + $0x30] sm:$0xff] }
 0x1a4   :  { %1587 = vperm.xlu1 %7960, %v8731_v16   ;;  %1614 = vperm.xlu0 %7959, %v8774_v23  }
 0x1a5   :  { %v9213_v17 = vpop.permute.xlu1 %1023  ;;  %v9215_v12 = vpop.permute.xlu0 %1038 }
 0x1a6   :  { %18035 = vst [vmem:[#allocation103_spill] sm:$0xff] %v9213_v17  ;;  %18036 = vst [vmem:[#allocation104_spill] sm:$0xff] %v9215_v12 }
 0x1a8   :  { %1593 = vperm.xlu1 %7960, %v8743_v18   ;;  %1620 = vperm.xlu0 %7959, %v8786_v25  }
 0x1a9   :  { %v9219_v19 = vpop.permute.xlu1 %1029  ;;  %v9221_v14 = vpop.permute.xlu0 %1044 }
 0x1aa   :  { %18037 = vst [vmem:[#allocation105_spill] sm:$0xff] %v9219_v19  ;;  %18038 = vst [vmem:[#allocation106_spill] sm:$0xff] %v9221_v14 }
 0x1ac   :  { %1599 = vperm.xlu1 %7960, %v8755_v20   ;;  %1626 = vperm.xlu0 %7959, %v8798_v27  }
 0x1ad   :  { %v9225_v10 = vpop.permute.xlu1 %1035  ;;  %v9227_v16 = vpop.permute.xlu0 %1050 }
 0x1ae   :  { %18039 = vst [vmem:[#allocation107_spill] sm:$0xff] %v9225_v10  ;;  %18040 = vst [vmem:[#allocation108_spill] sm:$0xff] %v9227_v16  ;;  %v8546_v10 = vmov 6  }
 0x1b0   :  { %1605 = vperm.xlu1 %7960, %v8767_v22   ;;  %1632 = vperm.xlu0 %7959, %v8810_v29  }
 0x1b1   :  { %v9231_v12 = vpop.permute.xlu1 %1041  ;;  %v9233_v17 = vpop.permute.xlu0 %1056 }
 0x1b2   :  { %18041 = vst [vmem:[#allocation109_spill] sm:$0xff] %v9231_v12  ;;  %18042 = vst [vmem:[#allocation110_spill] sm:$0xff] %v9233_v17  ;;  %v9247_v12 = vld [vmem:[%s17552_s0 + $0x8] sm:$0xff] }
 0x1b4   :  { %1611 = vperm.xlu1 %7960, %v8779_v24   ;;  %1638 = vperm.xlu0 %7959, %v8822_v31  }
 0x1b5   :  { %v9237_v14 = vpop.permute.xlu1 %1047  ;;  %v9239_v19 = vpop.permute.xlu0 %1062 }
 0x1b6   :  { %18043 = vst [vmem:[#allocation111_spill] sm:$0xff] %v9237_v14  ;;  %18044 = vst [vmem:[#allocation112_spill] sm:$0xff] %v9239_v19  ;;  %v9258_v19 = vld [vmem:[%s17552_s0 + $0x20] sm:$0xff] }
 0x1b8   :  { %1617 = vperm.xlu1 %7960, %v8791_v26   ;;  %7962 = vset.pattern.permute.xlu0 %v8546_v10 }
 0x1b9   :  { %v9242_v16 = vpop.permute.xlu1 %1053  ;;  %1836 = vperm.xlu0 %7962, %v9247_v12  }
 0x1ba   :  { %18045 = vst [vmem:[#allocation113_spill] sm:$0xff] %v9242_v16  ;;  %v9250_v17 = vpop.permute.xlu0 %1260 }
 0x1bb   :  { %18046 = vst [vmem:[#allocation114_spill] sm:$0xff] %v9250_v17 }
 0x1bc   :  { %1623 = vperm.xlu1 %7960, %v8803_v28  }
 0x1bd   :  { %v9253_v14 = vpop.permute.xlu1 %1059  ;;  %1845 = vperm.xlu0 %7962, %v9258_v19  }
 0x1be   :  { %18047 = vst [vmem:[#allocation115_spill] sm:$0xff] %v9253_v14  ;;  %v9261_v16 = vpop.permute.xlu0 %1269 }
 0x1bf   :  { %18048 = vst [vmem:[#allocation116_spill] sm:$0xff] %v9261_v16 }
 0x1c0   :  { %1629 = vperm.xlu1 %7960, %v8815_v30  }
 0x1c1   :  { %1851 = vperm.xlu0 %7962, %v9267_v15  }
 0x1c2   :  { %v9270_v17 = vpop.permute.xlu1 %1257  ;;  %v9272_v14 = vpop.permute.xlu0 %1275 }
 0x1c3   :  { %18049 = vst [vmem:[#allocation117_spill] sm:$0xff] %v9270_v17  ;;  %18050 = vst [vmem:[#allocation118_spill] sm:$0xff] %v9272_v14  ;;  %v9288_v17 = vld [vmem:[%s17552_s0] sm:$0xff]  ;;  %v9294_v14 = vld [vmem:[%s17552_s0 + $0x50] sm:$0xff] }
 0x1c4   :  { %1635 = vperm.xlu1 %7960, %v8827_v32  }
 0x1c5   :  { %1857 = vperm.xlu0 %7962, %v9278_v8  }
 0x1c6   :  { %v9281_v16 = vpop.permute.xlu1 %1263  ;;  %v9283_v13 = vpop.permute.xlu0 %1281 }
 0x1c7   :  { %18051 = vst [vmem:[#allocation119_spill] sm:$0xff] %v9281_v16  ;;  %18052 = vst [vmem:[#allocation120_spill] sm:$0xff] %v9283_v13  ;;  %v9310_v13 = vld [vmem:[%s17552_s0 + $0x60] sm:$0xff] }
 0x1c8   :  { %7961 = vset.pattern.permute.xlu1 %v8546_v10  ;;  %v9304_v10 = vld [vmem:[%s17552_s0 + $0x10] sm:$0xff] }
 0x1c9   :  { %1833 = vperm.xlu1 %7961, %v9288_v17   ;;  %1863 = vperm.xlu0 %7962, %v9294_v14  }
 0x1ca   :  { %v9297_v6 = vpop.permute.xlu1 %1266  ;;  %v9299_v16 = vpop.permute.xlu0 %1287 }
 0x1cb   :  { %18053 = vst [vmem:[#allocation121_spill] sm:$0xff] %v9297_v6  ;;  %18054 = vst [vmem:[#allocation122_spill] sm:$0xff] %v9299_v16  ;;  %v9320_v16 = vld [vmem:[%s17552_s0 + $0x18] sm:$0xff]  ;;  %v9326_v6 = vld [vmem:[%s17552_s0 + $0x70] sm:$0xff] }
 0x1cd   :  { %1839 = vperm.xlu1 %7961, %v9304_v10   ;;  %1869 = vperm.xlu0 %7962, %v9310_v13  }
 0x1ce   :  { %v9313_v11 = vpop.permute.xlu1 %1272  ;;  %v9315_v1 = vpop.permute.xlu0 %1293 }
 0x1cf   :  { %18055 = vst [vmem:[#allocation123_spill] sm:$0xff] %v9313_v11  ;;  %18056 = vst [vmem:[#allocation124_spill] sm:$0xff] %v9315_v1  ;;  %v9336_v1 = vld [vmem:[%s17552_s0 + $0x28] sm:$0xff] }
 0x1d1   :  { %1842 = vperm.xlu1 %7961, %v9320_v16   ;;  %1875 = vperm.xlu0 %7962, %v9326_v6  }
 0x1d2   :  { %v9329_v9 = vpop.permute.xlu1 %1278  ;;  %v9331_v4 = vpop.permute.xlu0 %1299 }
 0x1d3   :  { %18057 = vst [vmem:[#allocation125_spill] sm:$0xff] %v9329_v9  ;;  %18058 = vst [vmem:[#allocation126_spill] sm:$0xff] %v9331_v4 }
 0x1d5   :  { %1848 = vperm.xlu1 %7961, %v9336_v1   ;;  %1881 = vperm.xlu0 %7962, %v8743_v18   ;;  %v9358_v18 = vld [vmem:[%s17552_s0 + $0x48] sm:$0xff] }
 0x1d6   :  { %v9340_v11 = vpop.permute.xlu1 %1284  ;;  %v9342_v60 = vpop.permute.xlu0 %1305 }
 0x1d7   :  { %18059 = vst [vmem:[#allocation127_spill] sm:$0xff] %v9340_v11  ;;  %18060 = vst [vmem:[#allocation128_spill] sm:$0xff] %v9342_v60 }
 0x1d9   :  { %1854 = vperm.xlu1 %7961, %v9347_v7   ;;  %1887 = vperm.xlu0 %7962, %v8755_v20   ;;  %v9369_v20 = vld [vmem:[%s17552_s0 + $0x58] sm:$0xff] }
 0x1da   :  { %v9351_v4 = vpop.permute.xlu1 %1290  ;;  %v9353_v9 = vpop.permute.xlu0 %1311 }
 0x1db   :  { %18061 = vst [vmem:[#allocation129_spill] sm:$0xff] %v9351_v4  ;;  %18062 = vst [vmem:[#allocation130_spill] sm:$0xff] %v9353_v9 }
 0x1dd   :  { %1860 = vperm.xlu1 %7961, %v9358_v18   ;;  %1893 = vperm.xlu0 %7962, %v8767_v22   ;;  %v9380_v22 = vld [vmem:[%s17552_s0 + $0x68] sm:$0xff] }
 0x1de   :  { %v9362_v60 = vpop.permute.xlu1 %1296  ;;  %v9364_v11 = vpop.permute.xlu0 %1317 }
 0x1df   :  { %18063 = vst [vmem:[#allocation131_spill] sm:$0xff] %v9362_v60  ;;  %18064 = vst [vmem:[#allocation132_spill] sm:$0xff] %v9364_v11 }
 0x1e1   :  { %1866 = vperm.xlu1 %7961, %v9369_v20   ;;  %1899 = vperm.xlu0 %7962, %v8779_v24   ;;  %v9391_v24 = vld [vmem:[%s17552_s0 + $0x78] sm:$0xff] }
 0x1e2   :  { %v9373_v9 = vpop.permute.xlu1 %1302  ;;  %v9375_v4 = vpop.permute.xlu0 %1323 }
 0x1e3   :  { %18065 = vst [vmem:[#allocation133_spill] sm:$0xff] %v9373_v9  ;;  %18066 = vst [vmem:[#allocation134_spill] sm:$0xff] %v9375_v4 }
 0x1e5   :  { %1872 = vperm.xlu1 %7961, %v9380_v22   ;;  %1905 = vperm.xlu0 %7962, %v8791_v26   ;;  %v9402_v26 = vld [vmem:[%s17552_s0 + $0x88] sm:$0xff] }
 0x1e6   :  { %v9384_v11 = vpop.permute.xlu1 %1308  ;;  %v9386_v60 = vpop.permute.xlu0 %1329 }
 0x1e7   :  { %18067 = vst [vmem:[#allocation135_spill] sm:$0xff] %v9384_v11  ;;  %18068 = vst [vmem:[#allocation136_spill] sm:$0xff] %v9386_v60 }
 0x1e9   :  { %1878 = vperm.xlu1 %7961, %v9391_v24   ;;  %1911 = vperm.xlu0 %7962, %v8803_v28   ;;  %v9413_v28 = vld [vmem:[%s17552_s0 + $0x98] sm:$0xff] }
 0x1ea   :  { %v9395_v4 = vpop.permute.xlu1 %1314  ;;  %v9397_v9 = vpop.permute.xlu0 %1335 }
 0x1eb   :  { %18069 = vst [vmem:[#allocation137_spill] sm:$0xff] %v9395_v4  ;;  %18070 = vst [vmem:[#allocation138_spill] sm:$0xff] %v9397_v9 }
 0x1ed   :  { %1884 = vperm.xlu1 %7961, %v9402_v26   ;;  %1917 = vperm.xlu0 %7962, %v8815_v30   ;;  %v8547_v30 = vmov 7  }
 0x1ee   :  { %v9406_v60 = vpop.permute.xlu1 %1320  ;;  %v9408_v11 = vpop.permute.xlu0 %1341 }
 0x1ef   :  { %18071 = vst [vmem:[#allocation139_spill] sm:$0xff] %v9406_v60  ;;  %18072 = vst [vmem:[#allocation140_spill] sm:$0xff] %v9408_v11 }
 0x1f1   :  { %1890 = vperm.xlu1 %7961, %v9413_v28   ;;  %1923 = vperm.xlu0 %7962, %v8827_v32  }
 0x1f2   :  { %v9417_v9 = vpop.permute.xlu1 %1326  ;;  %v9419_v4 = vpop.permute.xlu0 %1347 }
 0x1f3   :  { %18073 = vst [vmem:[#allocation141_spill] sm:$0xff] %v9417_v9  ;;  %18074 = vst [vmem:[#allocation142_spill] sm:$0xff] %v9419_v4 }
 0x1f5   :  { %1896 = vperm.xlu1 %7961, %v8762_v21   ;;  %7963 = vset.pattern.permute.xlu0 %v8547_v30 }
 0x1f6   :  { %v9422_v60 = vpop.permute.xlu1 %1332  ;;  %2121 = vperm.xlu0 %7963, %v9288_v17  }
 0x1f7   :  { %18075 = vst [vmem:[#allocation143_spill] sm:$0xff] %v9422_v60  ;;  %v9425_v11 = vpop.permute.xlu0 %1545 }
 0x1f8   :  { %18076 = vst [vmem:[#allocation144_spill] sm:$0xff] %v9425_v11 }
 0x1f9   :  { %1902 = vperm.xlu1 %7961, %v8774_v23  }
 0x1fa   :  { %v9428_v63 = vpop.permute.xlu1 %1338  ;;  %2130 = vperm.xlu0 %7963, %v9320_v16  }
 0x1fb   :  { %18077 = vst [vmem:[#allocation145_spill] sm:$0xff] %v9428_v63  ;;  %v9431_v5 = vpop.permute.xlu0 %1554  ;;  %v9523_v63 = vld [vmem:[%s17552_s0 + $0x80] sm:$0xff] }
 0x1fc   :  { %18078 = vst [vmem:[#allocation146_spill] sm:$0xff] %v9431_v5 }
 0x1fd   :  { %1908 = vperm.xlu1 %7961, %v8786_v25  }
 0x1fe   :  { %v9434_v4 = vpop.permute.xlu1 %1344  ;;  %2136 = vperm.xlu0 %7963, %v9336_v1  }
 0x1ff   :  { %18079 = vst [vmem:[#allocation147_spill] sm:$0xff] %v9434_v4  ;;  %v9437_v21 = vpop.permute.xlu0 %1560 }
 0x200   :  { %18080 = vst [vmem:[#allocation148_spill] sm:$0xff] %v9437_v21 }
 0x201   :  { %1914 = vperm.xlu1 %7961, %v8798_v27  }
 0x202   :  { %v9440_v60 = vpop.permute.xlu1 %1350  ;;  %2142 = vperm.xlu0 %7963, %v9347_v7  }
 0x203   :  { %18081 = vst [vmem:[#allocation149_spill] sm:$0xff] %v9440_v60  ;;  %v9443_v23 = vpop.permute.xlu0 %1566 }
 0x204   :  { %18082 = vst [vmem:[#allocation150_spill] sm:$0xff] %v9443_v23 }
 0x205   :  { %1920 = vperm.xlu1 %7961, %v8810_v29  }
 0x206   :  { %2148 = vperm.xlu0 %7963, %v9358_v18  }
 0x207   :  { %v9447_v5 = vpop.permute.xlu1 %1548  ;;  %v9449_v25 = vpop.permute.xlu0 %1572 }
 0x208   :  { %18083 = vst [vmem:[#allocation151_spill] sm:$0xff] %v9447_v5  ;;  %18084 = vst [vmem:[#allocation152_spill] sm:$0xff] %v9449_v25 }
 0x209   :  { %1926 = vperm.xlu1 %7961, %v8822_v31  }
 0x20a   :  { %2154 = vperm.xlu0 %7963, %v9369_v20  }
 0x20b   :  { %v9453_v21 = vpop.permute.xlu1 %1551  ;;  %v9455_v4 = vpop.permute.xlu0 %1578 }
 0x20c   :  { %18085 = vst [vmem:[#allocation153_spill] sm:$0xff] %v9453_v21  ;;  %18086 = vst [vmem:[#allocation154_spill] sm:$0xff] %v9455_v4 }
 0x20d   :  { %7964 = vset.pattern.permute.xlu1 %v8547_v30 }
 0x20e   :  { %2124 = vperm.xlu1 %7964, %v9247_v12   ;;  %2160 = vperm.xlu0 %7963, %v9380_v22  }
 0x20f   :  { %v9459_v60 = vpop.permute.xlu1 %1557  ;;  %v9461_v23 = vpop.permute.xlu0 %1584 }
 0x210   :  { %18087 = vst [vmem:[#allocation155_spill] sm:$0xff] %v9459_v60  ;;  %18088 = vst [vmem:[#allocation156_spill] sm:$0xff] %v9461_v23 }
 0x212   :  { %2127 = vperm.xlu1 %7964, %v9304_v10   ;;  %2166 = vperm.xlu0 %7963, %v9391_v24  }
 0x213   :  { %v9465_v25 = vpop.permute.xlu1 %1563  ;;  %v9467_v5 = vpop.permute.xlu0 %1590 }
 0x214   :  { %18089 = vst [vmem:[#allocation157_spill] sm:$0xff] %v9465_v25  ;;  %18090 = vst [vmem:[#allocation158_spill] sm:$0xff] %v9467_v5  ;;  %v9485_v5 = vld [vmem:[%s17552_s0 + $0xa8] sm:$0xff] }
 0x216   :  { %2133 = vperm.xlu1 %7964, %v9258_v19   ;;  %2172 = vperm.xlu0 %7963, %v9402_v26  }
 0x217   :  { %v9471_v30 = vpop.permute.xlu1 %1569  ;;  %v9473_v4 = vpop.permute.xlu0 %1596 }
 0x218   :  { %18091 = vst [vmem:[#allocation159_spill] sm:$0xff] %v9471_v30  ;;  %18092 = vst [vmem:[#allocation160_spill] sm:$0xff] %v9473_v4 }
 0x21a   :  { %2139 = vperm.xlu1 %7964, %v9267_v15   ;;  %2178 = vperm.xlu0 %7963, %v9413_v28  }
 0x21b   :  { %v9477_v23 = vpop.permute.xlu1 %1575  ;;  %v9479_v60 = vpop.permute.xlu0 %1602 }
 0x21c   :  { %18093 = vst [vmem:[#allocation161_spill] sm:$0xff] %v9477_v23  ;;  %18094 = vst [vmem:[#allocation162_spill] sm:$0xff] %v9479_v60  ;;  %v9496_v23 = vld [vmem:[%s17552_s0 + $0xb8] sm:$0xff] }
 0x21e   :  { %2145 = vperm.xlu1 %7964, %v9278_v8   ;;  %2184 = vperm.xlu0 %7963, %v9485_v5  }
 0x21f   :  { %v9488_v30 = vpop.permute.xlu1 %1581  ;;  %v9490_v4 = vpop.permute.xlu0 %1608 }
 0x220   :  { %18095 = vst [vmem:[#allocation163_spill] sm:$0xff] %v9488_v30  ;;  %18096 = vst [vmem:[#allocation164_spill] sm:$0xff] %v9490_v4  ;;  %v9507_v30 = vld [vmem:[%s17552_s0 + $0xc8] sm:$0xff] }
 0x222   :  { %2151 = vperm.xlu1 %7964, %v9294_v14   ;;  %2190 = vperm.xlu0 %7963, %v9496_v23  }
 0x223   :  { %v9499_v60 = vpop.permute.xlu1 %1587  ;;  %v9501_v25 = vpop.permute.xlu0 %1614 }
 0x224   :  { %18097 = vst [vmem:[#allocation165_spill] sm:$0xff] %v9499_v60  ;;  %18098 = vst [vmem:[#allocation166_spill] sm:$0xff] %v9501_v25 }
 0x226   :  { %2157 = vperm.xlu1 %7964, %v9310_v13   ;;  %2196 = vperm.xlu0 %7963, %v9507_v30  }
 0x227   :  { %v9510_v4 = vpop.permute.xlu1 %1593  ;;  %v9512_v21 = vpop.permute.xlu0 %1620 }
 0x228   :  { %18099 = vst [vmem:[#allocation167_spill] sm:$0xff] %v9510_v4  ;;  %18100 = vst [vmem:[#allocation168_spill] sm:$0xff] %v9512_v21 }
 0x22a   :  { %2163 = vperm.xlu1 %7964, %v9326_v6   ;;  %2202 = vperm.xlu0 %7963, %v8798_v27   ;;  %v9534_v27 = vld [vmem:[%s17552_s0 + $0x90] sm:$0xff] }
 0x22b   :  { %v9516_v60 = vpop.permute.xlu1 %1599  ;;  %v9518_v25 = vpop.permute.xlu0 %1626 }
 0x22c   :  { %18101 = vst [vmem:[#allocation169_spill] sm:$0xff] %v9516_v60  ;;  %18102 = vst [vmem:[#allocation170_spill] sm:$0xff] %v9518_v25 }
 0x22e   :  { %2169 = vperm.xlu1 %7964, %v9523_v63   ;;  %2208 = vperm.xlu0 %7963, %v8810_v29   ;;  %v9545_v29 = vld [vmem:[%s17552_s0 + $0xa0] sm:$0xff] }
 0x22f   :  { %v9527_v4 = vpop.permute.xlu1 %1605  ;;  %v9529_v21 = vpop.permute.xlu0 %1632 }
 0x230   :  { %18103 = vst [vmem:[#allocation171_spill] sm:$0xff] %v9527_v4  ;;  %18104 = vst [vmem:[#allocation172_spill] sm:$0xff] %v9529_v21  ;;  %v8548_v4 = vmov 8  }
 0x232   :  { %2175 = vperm.xlu1 %7964, %v9534_v27   ;;  %2214 = vperm.xlu0 %7963, %v8822_v31   ;;  %v9556_v31 = vld [vmem:[%s17552_s0 + $0xb0] sm:$0xff] }
 0x233   :  { %v9538_v60 = vpop.permute.xlu1 %1611  ;;  %v9540_v25 = vpop.permute.xlu0 %1638 }
 0x234   :  { %18105 = vst [vmem:[#allocation173_spill] sm:$0xff] %v9538_v60  ;;  %18106 = vst [vmem:[#allocation174_spill] sm:$0xff] %v9540_v25 }
 0x236   :  { %2181 = vperm.xlu1 %7964, %v9545_v29   ;;  %7966 = vset.pattern.permute.xlu0 %v8548_v4 }
 0x237   :  { %v9548_v21 = vpop.permute.xlu1 %1617  ;;  %2412 = vperm.xlu0 %7966, %v9247_v12  }
 0x238   :  { %18107 = vst [vmem:[#allocation175_spill] sm:$0xff] %v9548_v21  ;;  %v9551_v11 = vpop.permute.xlu0 %1836  ;;  %v9567_v21 = vld [vmem:[%s17552_s0 + $0xc0] sm:$0xff] }
 0x239   :  { %18108 = vst [vmem:[#allocation176_spill] sm:$0xff] %v9551_v11 }
 0x23a   :  { %2187 = vperm.xlu1 %7964, %v9556_v31  }
 0x23b   :  { %v9559_v25 = vpop.permute.xlu1 %1623  ;;  %2421 = vperm.xlu0 %7966, %v9258_v19  }
 0x23c   :  { %18109 = vst [vmem:[#allocation177_spill] sm:$0xff] %v9559_v25  ;;  %v9562_v60 = vpop.permute.xlu0 %1845  ;;  %v9578_v25 = vld [vmem:[%s17552_s0 + $0xd0] sm:$0xff] }
 0x23d   :  { %18110 = vst [vmem:[#allocation178_spill] sm:$0xff] %v9562_v60 }
 0x23e   :  { %2193 = vperm.xlu1 %7964, %v9567_v21  }
 0x23f   :  { %v9570_v11 = vpop.permute.xlu1 %1629  ;;  %2427 = vperm.xlu0 %7966, %v9267_v15  }
 0x240   :  { %18111 = vst [vmem:[#allocation179_spill] sm:$0xff] %v9570_v11  ;;  %v9573_v9 = vpop.permute.xlu0 %1851  ;;  %v9589_v11 = vld [vmem:[%s17552_s0 + $0xe0] sm:$0xff] }
 0x241   :  { %18112 = vst [vmem:[#allocation180_spill] sm:$0xff] %v9573_v9 }
 0x242   :  { %2199 = vperm.xlu1 %7964, %v9578_v25  }
 0x243   :  { %v9581_v60 = vpop.permute.xlu1 %1635  ;;  %2433 = vperm.xlu0 %7966, %v9278_v8  }
 0x244   :  { %18113 = vst [vmem:[#allocation181_spill] sm:$0xff] %v9581_v60  ;;  %v9584_v3 = vpop.permute.xlu0 %1857 }
 0x245   :  { %18114 = vst [vmem:[#allocation182_spill] sm:$0xff] %v9584_v3 }
 0x246   :  { %2205 = vperm.xlu1 %7964, %v9589_v11  }
 0x247   :  { %2439 = vperm.xlu0 %7966, %v9294_v14  }
 0x248   :  { %v9593_v9 = vpop.permute.xlu1 %1833  ;;  %v9595_v36 = vpop.permute.xlu0 %1863 }
 0x249   :  { %18115 = vst [vmem:[#allocation183_spill] sm:$0xff] %v9593_v9  ;;  %18116 = vst [vmem:[#allocation184_spill] sm:$0xff] %v9595_v36 }
 0x24a   :  { %2211 = vperm.xlu1 %7964, %v8827_v32  }
 0x24b   :  { %2445 = vperm.xlu0 %7966, %v9310_v13  }
 0x24c   :  { %v9599_v60 = vpop.permute.xlu1 %1839  ;;  %v9601_v3 = vpop.permute.xlu0 %1869 }
 0x24d   :  { %18117 = vst [vmem:[#allocation185_spill] sm:$0xff] %v9599_v60  ;;  %18118 = vst [vmem:[#allocation186_spill] sm:$0xff] %v9601_v3 }
 0x24e   :  { %7965 = vset.pattern.permute.xlu1 %v8548_v4 }
 0x24f   :  { %2409 = vperm.xlu1 %7965, %v9288_v17   ;;  %2451 = vperm.xlu0 %7966, %v9326_v6  }
 0x250   :  { %v9605_v2 = vpop.permute.xlu1 %1842  ;;  %v9607_v58 = vpop.permute.xlu0 %1875 }
 0x251   :  { %18119 = vst [vmem:[#allocation187_spill] sm:$0xff] %v9605_v2  ;;  %18120 = vst [vmem:[#allocation188_spill] sm:$0xff] %v9607_v58 }
 0x253   :  { %2415 = vperm.xlu1 %7965, %v9304_v10   ;;  %2457 = vperm.xlu0 %7966, %v9523_v63  }
 0x254   :  { %v9611_v32 = vpop.permute.xlu1 %1848  ;;  %v9613_v36 = vpop.permute.xlu0 %1881 }
 0x255   :  { %18121 = vst [vmem:[#allocation189_spill] sm:$0xff] %v9611_v32  ;;  %18122 = vst [vmem:[#allocation190_spill] sm:$0xff] %v9613_v36 }
 0x257   :  { %2418 = vperm.xlu1 %7965, %v9320_v16   ;;  %2463 = vperm.xlu0 %7966, %v9534_v27  }
 0x258   :  { %v9617_v4 = vpop.permute.xlu1 %1854  ;;  %v9619_v3 = vpop.permute.xlu0 %1887 }
 0x259   :  { %18123 = vst [vmem:[#allocation191_spill] sm:$0xff] %v9617_v4  ;;  %18124 = vst [vmem:[#allocation192_spill] sm:$0xff] %v9619_v3 }
 0x25b   :  { %2424 = vperm.xlu1 %7965, %v9336_v1   ;;  %2469 = vperm.xlu0 %7966, %v9545_v29  }
 0x25c   :  { %v9623_v58 = vpop.permute.xlu1 %1860  ;;  %v9625_v2 = vpop.permute.xlu0 %1893 }
 0x25d   :  { %18125 = vst [vmem:[#allocation193_spill] sm:$0xff] %v9623_v58  ;;  %18126 = vst [vmem:[#allocation194_spill] sm:$0xff] %v9625_v2 }
 0x25f   :  { %2430 = vperm.xlu1 %7965, %v9347_v7   ;;  %2475 = vperm.xlu0 %7966, %v9556_v31  }
 0x260   :  { %v9629_v36 = vpop.permute.xlu1 %1866  ;;  %v9631_v32 = vpop.permute.xlu0 %1899 }
 0x261   :  { %18127 = vst [vmem:[#allocation195_spill] sm:$0xff] %v9629_v36  ;;  %18128 = vst [vmem:[#allocation196_spill] sm:$0xff] %v9631_v32 }
 0x263   :  { %2436 = vperm.xlu1 %7965, %v9358_v18   ;;  %2481 = vperm.xlu0 %7966, %v9567_v21  }
 0x264   :  { %v9635_v3 = vpop.permute.xlu1 %1872  ;;  %v9637_v4 = vpop.permute.xlu0 %1905 }
 0x265   :  { %18129 = vst [vmem:[#allocation197_spill] sm:$0xff] %v9635_v3  ;;  %18130 = vst [vmem:[#allocation198_spill] sm:$0xff] %v9637_v4  ;;  %v9655_v4 = vld [vmem:[%s17552_s0 + $0xf0] sm:$0xff]  ;;  %v17751_v3 = vmov 10  }
 0x267   :  { %2442 = vperm.xlu1 %7965, %v9369_v20   ;;  %2487 = vperm.xlu0 %7966, %v9578_v25  }
 0x268   :  { %v9641_v2 = vpop.permute.xlu1 %1878  ;;  %v9643_v58 = vpop.permute.xlu0 %1911 }
 0x269   :  { %18131 = vst [vmem:[#allocation199_spill] sm:$0xff] %v9641_v2  ;;  %18132 = vst [vmem:[#allocation200_spill] sm:$0xff] %v9643_v58 }
 0x26b   :  { %2448 = vperm.xlu1 %7965, %v9380_v22   ;;  %2493 = vperm.xlu0 %7966, %v9589_v11  }
 0x26c   :  { %v9647_v32 = vpop.permute.xlu1 %1884  ;;  %v9649_v36 = vpop.permute.xlu0 %1917 }
 0x26d   :  { %18133 = vst [vmem:[#allocation201_spill] sm:$0xff] %v9647_v32  ;;  %18134 = vst [vmem:[#allocation202_spill] sm:$0xff] %v9649_v36 }
 0x26f   :  { %2454 = vperm.xlu1 %7965, %v9391_v24   ;;  %2499 = vperm.xlu0 %7966, %v9655_v4  }
 0x270   :  { %v9658_v2 = vpop.permute.xlu1 %1890  ;;  %v9660_v58 = vpop.permute.xlu0 %1923 }
 0x271   :  { %18135 = vst [vmem:[#allocation203_spill] sm:$0xff] %v9658_v2  ;;  %18136 = vst [vmem:[#allocation204_spill] sm:$0xff] %v9660_v58 }
 0x273   :  { %2460 = vperm.xlu1 %7965, %v9402_v26   ;;  %7968 = vset.pattern.permute.xlu0 %v17751_v3 }
 0x274   :  { %v9664_v32 = vpop.permute.xlu1 %1896  ;;  %2985 = vperm.xlu0 %7968, %v9288_v17  }
 0x275   :  { %18137 = vst [vmem:[#allocation205_spill] sm:$0xff] %v9664_v32  ;;  %v9667_v36 = vpop.permute.xlu0 %2121 }
 0x276   :  { %18138 = vst [vmem:[#allocation206_spill] sm:$0xff] %v9667_v36 }
 0x277   :  { %2466 = vperm.xlu1 %7965, %v9413_v28  }
 0x278   :  { %v9670_v60 = vpop.permute.xlu1 %1902  ;;  %2994 = vperm.xlu0 %7968, %v9320_v16  }
 0x279   :  { %18139 = vst [vmem:[#allocation207_spill] sm:$0xff] %v9670_v60  ;;  %v9673_v2 = vpop.permute.xlu0 %2130 }
 0x27a   :  { %18140 = vst [vmem:[#allocation208_spill] sm:$0xff] %v9673_v2  ;;  %v17758_v2 = vmov 15  }
 0x27b   :  { %2472 = vperm.xlu1 %7965, %v9485_v5  }
 0x27c   :  { %v9676_v58 = vpop.permute.xlu1 %1908  ;;  %3000 = vperm.xlu0 %7968, %v9336_v1  }
 0x27d   :  { %18141 = vst [vmem:[#allocation209_spill] sm:$0xff] %v9676_v58  ;;  %v9679_v3 = vpop.permute.xlu0 %2136 }
 0x27e   :  { %18142 = vst [vmem:[#allocation210_spill] sm:$0xff] %v9679_v3 }
 0x27f   :  { %2478 = vperm.xlu1 %7965, %v9496_v23   ;;  %v8359_v23 = vld [vmem:[%s17552_s0 + $0xd8] sm:$0xff] }
 0x280   :  { %v9682_v32 = vpop.permute.xlu1 %1914  ;;  %3006 = vperm.xlu0 %7968, %v9347_v7  }
 0x281   :  { %18143 = vst [vmem:[#allocation211_spill] sm:$0xff] %v9682_v32  ;;  %v9685_v28 = vpop.permute.xlu0 %2142 }
 0x282   :  { %18144 = vst [vmem:[#allocation212_spill] sm:$0xff] %v9685_v28 }
 0x283   :  { %2484 = vperm.xlu1 %7965, %v9507_v30   ;;  %v8360_v30 = vld [vmem:[%s17552_s0 + $0xe8] sm:$0xff] }
 0x284   :  { %v9688_v60 = vpop.permute.xlu1 %1920  ;;  %7986 = vset.pattern.permute.xlu0 %v17758_v2 }
 0x285   :  { %18145 = vst [vmem:[#allocation213_spill] sm:$0xff] %v9688_v60  ;;  %4428 = vperm.xlu0 %7986, %v9247_v12   ;;  %v9692_v5 = vpop.permute.xlu0 %2148 }
 0x286   :  { %18146 = vst [vmem:[#allocation214_spill] sm:$0xff] %v9692_v5 }
 0x287   :  { %2490 = vperm.xlu1 %7965, %v8359_v23   ;;  %v8361_v23 = vld [vmem:[%s17552_s0 + $0xf8] sm:$0xff] }
 0x288   :  { %v9697_v32 = vpop.permute.xlu1 %1926 }
 0x289   :  { %18147 = vst [vmem:[#allocation215_spill] sm:$0xff] %v9697_v32  ;;  %4434 = vperm.xlu0 %7986, %v9320_v16   ;;  %v9700_v28 = vpop.permute.xlu0 %2154 }
 0x28a   :  { %18148 = vst [vmem:[#allocation216_spill] sm:$0xff] %v9700_v28  ;;  %v17765_v28 = vmov 9  }
 0x28b   :  { %2496 = vperm.xlu1 %7965, %v8360_v30   ;;  %v8074_v30 = vld [vmem:[%s17555_s3 + $0xc] ss:$16 sps:$4 sm:$0xff]  }
 0x28c   :  { %5321 = vmatprep.subr.bf16.mxu1 %v8074_v30 }
 0x28d   :  { %v9705_v2 = vpop.permute.xlu1 %2124  ;;  %4440 = vperm.xlu0 %7986, %v9336_v1   ;;  %v9708_v5 = vpop.permute.xlu0 %2160  ;;  %v8076_v1 = vld [vmem:[%s17555_s3 + $0x8] ss:$16 sps:$4 sm:$0xff]  }
 0x28e   :  { %18149 = vst [vmem:[#allocation217_spill] sm:$0xff] %v9705_v2  ;;  %18150 = vst [vmem:[#allocation218_spill] sm:$0xff] %v9708_v5  ;;  %5322 = vmatpush1.bf16.msra.mxu1 %v8076_v1  ;;  %v8080_v1 = vld [vmem:[%s17555_s3 + $0x4c] ss:$16 sps:$4 sm:$0xff]  }
 0x28f   :  { %2502 = vperm.xlu1 %7965, %v8361_v23   ;;  %v17767_v23 = vlaneseq }
 0x291   :  { %v9713_v32 = vpop.permute.xlu1 %2127  ;;  %4446 = vperm.xlu0 %7986, %v9347_v7   ;;  %v9716_v16 = vpop.permute.xlu0 %2166 }
 0x292   :  { %18151 = vst [vmem:[#allocation219_spill] sm:$0xff] %v9713_v32  ;;  %18152 = vst [vmem:[#allocation220_spill] sm:$0xff] %v9716_v16  ;;  %v8077_v16 = vld [vmem:[%s17555_s3 + $0x2c] ss:$16 sps:$4 sm:$0xff]  }
 0x293   :  { %7967 = vset.pattern.permute.xlu1 %v17765_v28  ;;  %v8079_v28 = vld [vmem:[%s17555_s3 + $0x28] ss:$16 sps:$4 sm:$0xff]   ;;  %5323 = vmatprep.subr.bf16.mxu1 %v8077_v16 }
 0x294   :  { %2700 = vperm.xlu1 %7967, %v9247_v12   ;;  %v9739_v12 = vand.u32 127, %v17767_v23  ;;  %5324 = vmatpush1.bf16.msra.mxu1 %v8079_v28  ;;  %v8083_v28 = vld [vmem:[%s17555_s3 + $0x6c] ss:$16 sps:$4 sm:$0xff]  }
 0x295   :  { %v9726_v5 = vpop.permute.xlu1 %2133  ;;  %4452 = vperm.xlu0 %7986, %v9358_v18   ;;  %v9729_v7 = vpop.permute.xlu0 %2172  ;;  %5325 = vmatprep.subr.bf16.mxu1 %v8080_v1  ;;  %v8086_v1 = vld [vmem:[%s17555_s3 + $0x8c] ss:$16 sps:$4 sm:$0xff]  }
 0x296   :  { %18153 = vst [vmem:[#allocation221_spill] sm:$0xff] %v9726_v5  ;;  %18154 = vst [vmem:[#allocation222_spill] sm:$0xff] %v9729_v7  ;;  %v8082_v7 = vld [vmem:[%s17555_s3 + $0x48] ss:$16 sps:$4 sm:$0xff]   ;;  %v9754_v16 = vadd.s32 128, %v9739_v12  ;;  %vm204_vm0 = vcmp.eq.s32.totalorder %v9739_v12, %v8865_v34  ;;  %vm200_vm2 = vcmp.eq.s32.totalorder %v9739_v12, %v8867_v35  ;;  %vm206_vm4 = vcmp.eq.s32.totalorder %v9739_v12, %v8871_v37 }
 0x297   :  { %vm202_vm6 = vcmp.eq.s32.totalorder %v9739_v12, %v8873_v38  ;;  %vm210_vm8 = vcmp.eq.s32.totalorder %v9739_v12, %v8877_v39  ;;  %vm208_vm10 = vcmp.eq.s32.totalorder %v9739_v12, %v8879_v40  ;;  %vm214_vm12 = vcmp.eq.s32.totalorder %v9739_v12, %v8883_v41 }
 0x298   :  { %2703 = vperm.xlu1 %7967, %v9304_v10   ;;  %5326 = vmatpush1.bf16.msra.mxu1 %v8082_v7  ;;  %vm205_vm1 = vcmp.eq.s32.totalorder %v9754_v16, %v8865_v34  ;;  %vm201_vm3 = vcmp.eq.s32.totalorder %v9754_v16, %v8867_v35  ;;  %vm207_vm5 = vcmp.eq.s32.totalorder %v9754_v16, %v8871_v37 }
 0x299   :  { %v9741_v30 = vpop.permute.xlu1 %2139  ;;  %4458 = vperm.xlu0 %7986, %v9369_v20   ;;  %v9744_v18 = vpop.permute.xlu0 %2178  ;;  %5327 = vmatprep.subr.bf16.mxu1 %v8083_v28  ;;  %vm203_vm7 = vcmp.eq.s32.totalorder %v9754_v16, %v8873_v38  ;;  %vm211_vm9 = vcmp.eq.s32.totalorder %v9754_v16, %v8877_v39  ;;  %vm209_vm11 = vcmp.eq.s32.totalorder %v9754_v16, %v8879_v40  ;;  %v8089_v38 = vld [vmem:[%s17555_s3 + $0xac] ss:$16 sps:$4 sm:$0xff]   ;;  %v8091_v39 = vld [vmem:[%s17555_s3 + $0xa8] ss:$16 sps:$4 sm:$0xff]  }
 0x29a   :  { %18155 = vst [vmem:[#allocation223_spill] sm:$0xff] %v9741_v30  ;;  %18156 = vst [vmem:[#allocation224_spill] sm:$0xff] %v9744_v18  ;;  %v8085_v18 = vld [vmem:[%s17555_s3 + $0x68] ss:$16 sps:$4 sm:$0xff]   ;;  %vm215_vm13 = vcmp.eq.s32.totalorder %v9754_v16, %v8883_v41  ;;  %vm212_vm14 = vcmp.eq.s32.totalorder %v9739_v12, %v8885_v42  ;;  %vm213_vm15 = vcmp.eq.s32.totalorder %v9754_v16, %v8885_v42 }
 0x29c   :  { %2709 = vperm.xlu1 %7967, %v9258_v19   ;;  %5328 = vmatpush1.bf16.msra.mxu1 %v8085_v18  ;;  %v17797_v18 = vmov 0.0  }
 0x29d   :  { %v9756_v23 = vpop.permute.xlu1 %2145  ;;  %4464 = vperm.xlu0 %7986, %v9380_v22   ;;  %v9759_v20 = vpop.permute.xlu0 %2184  ;;  %v9803_v28 = vsel %vm204_vm0, 1.0, %v17797_v18  ;;  %5329 = vmatprep.subr.bf16.mxu1 %v8086_v1  ;;  %v9830_v34 = vsel %vm206_vm4, 1.0, %v17797_v18  ;;  %v9846_v35 = vsel %vm202_vm6, 1.0, %v17797_v18  ;;  %v9852_v30 = vsel %vm203_vm7, 1.0, %v17797_v18 }
 0x29e   :  { %18157 = vst [vmem:[#allocation225_spill] sm:$0xff] %v9756_v23  ;;  %18158 = vst [vmem:[#allocation226_spill] sm:$0xff] %v9759_v20  ;;  %v9809_v20 = vsel %vm205_vm1, 1.0, %v17797_v18  ;;  %v9836_v23 = vsel %vm207_vm5, 1.0, %v17797_v18  ;;  %v9858_v37 = vsel %vm210_vm8, 1.0, %v17797_v18  ;;  %v9876_v5 = vsel %vm208_vm10, 1.0, %v17797_v18 }
 0x29f   :  { %vm218_vm0 = vcmp.eq.s32.totalorder %v9739_v12, %v8889_v43  ;;  %vm219_vm1 = vcmp.eq.s32.totalorder %v9754_v16, %v8889_v43  ;;  %vm222_vm4 = vcmp.eq.s32.totalorder %v9739_v12, %v8895_v45  ;;  %v9906_v41 = vsel %vm214_vm12, 1.0, %v17797_v18 }
 0x2a0   :  { %2715 = vperm.xlu1 %7967, %v9267_v15   ;;  %vm223_vm5 = vcmp.eq.s32.totalorder %v9754_v16, %v8895_v45  ;;  %vm220_vm6 = vcmp.eq.s32.totalorder %v9739_v12, %v8897_v46  ;;  %v9931_v2 = vsel %vm213_vm15, 1.0, %v17797_v18  ;;  %vm221_vm7 = vcmp.eq.s32.totalorder %v9754_v16, %v8897_v46  ;;  %v8095_v46 = vld [vmem:[%s17555_s3 + $0xec] ss:$16 sps:$4 sm:$0xff]  }
 0x2a1   :  { %v9774_v22 = vpop.permute.xlu1 %2151  ;;  %4470 = vperm.xlu0 %7986, %v9391_v24   ;;  %v9783_v7 = vpop.permute.xlu0 %2190  ;;  %v8088_v24 = vld [vmem:[%s17555_s3 + $0x88] ss:$16 sps:$4 sm:$0xff]   ;;  %v9949_v42 = vsel %vm219_vm1, 1.0, %v17797_v18  ;;  %v9967_v3 = vsel %vm222_vm4, 1.0, %v17797_v18  ;;  %v9974_v43 = vsel %vm223_vm5, 1.0, %v17797_v18  ;;  %vm226_vm8 = vcmp.eq.s32.totalorder %v9739_v12, %v8901_v47 }
 0x2a2   :  { %18159 = vst [vmem:[#allocation227_spill] sm:$0xff] %v9774_v22  ;;  %18160 = vst [vmem:[#allocation228_spill] sm:$0xff] %v9783_v7  ;;  %v9815_v22 = vsel %vm200_vm2, 1.0, %v17797_v18  ;;  %v9824_v7 = vsel %vm201_vm3, 1.0, %v17797_v18  ;;  %5330 = vmatpush1.bf16.msra.mxu1 %v8088_v24  ;;  %v9864_v24 = vsel %vm211_vm9, 1.0, %v17797_v18  ;;  %vm216_vm2 = vcmp.eq.s32.totalorder %v9739_v12, %v8891_v44 }
 0x2a3   :  { %5331 = vmatprep.subr.bf16.mxu1 %v8089_v38  ;;  %vm217_vm3 = vcmp.eq.s32.totalorder %v9754_v16, %v8891_v44  ;;  %v9909_v38 = vsel %vm215_vm13, 1.0, %v17797_v18  ;;  %v9955_v60 = vsel %vm216_vm2, 1.0, %v17797_v18  ;;  %v9980_v44 = vsel %vm220_vm6, 1.0, %v17797_v18 }
 0x2a4   :  { %2721 = vperm.xlu1 %7967, %v9278_v8   ;;  %vm227_vm9 = vcmp.eq.s32.totalorder %v9754_v16, %v8901_v47  ;;  %vm224_vm10 = vcmp.eq.s32.totalorder %v9739_v12, %v8903_v48  ;;  %vm230_vm12 = vcmp.eq.s32.totalorder %v9739_v12, %v8907_v49  ;;  %vm231_vm13 = vcmp.eq.s32.totalorder %v9754_v16, %v8907_v49 }
 0x2a5   :  { %v9840_v1 = vpop.permute.xlu1 %2157  ;;  %4476 = vperm.xlu0 %7986, %v9402_v26   ;;  %v9886_v26 = vsel %vm209_vm11, 1.0, %v17797_v18  ;;  %vm225_vm11 = vcmp.eq.s32.totalorder %v9754_v16, %v8903_v48  ;;  %vm229_vm15 = vcmp.eq.s32.totalorder %v9754_v16, %v8909_v50  ;;  %vm235_vm1 = vcmp.eq.s32.totalorder %v9754_v16, %v8913_v51 }
 0x2a6   :  { %18161 = vst [vmem:[#allocation229_spill] sm:$0xff] %v9840_v1  ;;  %v9867_v1 = vpop.permute.xlu0 %2196  ;;  %5332 = vmatpush1.bf16.msra.mxu1 %v8091_v39  ;;  %v8092_v39 = vld [vmem:[%s17555_s3 + $0xcc] ss:$16 sps:$4 sm:$0xff]   ;;  %vm232_vm2 = vcmp.eq.s32.totalorder %v9739_v12, %v8915_v52  ;;  %v10041_v47 = vsel %vm225_vm11, 1.0, %v17797_v18  ;;  %v10047_v36 = vsel %vm230_vm12, 1.0, %v17797_v18  ;;  %v10057_v9 = vsel %vm231_vm13, 1.0, %v17797_v18 }
 0x2a7   :  { %18162 = vst [vmem:[#allocation230_spill] sm:$0xff] %v9867_v1  ;;  %v17780_v1 = vmov 13   ;;  %5333 = vmatprep.subr.bf16.mxu1 %v8092_v39  ;;  %v9989_v39 = vsel %vm221_vm7, 1.0, %v17797_v18  ;;  %v10069_v62 = vsel %vm229_vm15, 1.0, %v17797_v18  ;;  %v10083_v0 = vsel %vm235_vm1, 1.0, %v17797_v18 }
 0x2a8   :  { %2727 = vperm.xlu1 %7967, %v9294_v14   ;;  %vm238_vm4 = vcmp.eq.s32.totalorder %v9739_v12, %v8919_v53  ;;  %vm239_vm5 = vcmp.eq.s32.totalorder %v9754_v16, %v8919_v53  ;;  %vm236_vm6 = vcmp.eq.s32.totalorder %v9739_v12, %v8921_v54  ;;  %vm237_vm7 = vcmp.eq.s32.totalorder %v9754_v16, %v8921_v54 }
 0x2a9   :  { %v9903_v40 = vpop.permute.xlu1 %2163  ;;  %8026 = vset.pattern.permute.xlu0 %v17780_v1  ;;  %v9937_v1 = vsel %vm218_vm0, 1.0, %v17797_v18  ;;  %vm234_vm0 = vcmp.eq.s32.totalorder %v9739_v12, %v8913_v51  ;;  %vm241_vm11 = vcmp.eq.s32.totalorder %v9754_v16, %v8927_v56  ;;  %vm246_vm12 = vcmp.eq.s32.totalorder %v9739_v12, %v8931_v57 }
 0x2aa   :  { %18163 = vst [vmem:[#allocation231_spill] sm:$0xff] %v9903_v40  ;;  %v9916_v32 = vpop.permute.xlu0 %2202  ;;  %v9925_v40 = vsel %vm212_vm14, 1.0, %v17797_v18  ;;  %3849 = vperm.xlu0 %8026, %v9288_v17   ;;  %v9961_v17 = vsel %vm217_vm3, 1.0, %v17797_v18  ;;  %vm228_vm14 = vcmp.eq.s32.totalorder %v9739_v12, %v8909_v50  ;;  %vm233_vm3 = vcmp.eq.s32.totalorder %v9754_v16, %v8915_v52 }
 0x2ab   :  { %18164 = vst [vmem:[#allocation232_spill] sm:$0xff] %v9916_v32  ;;  %v8094_v32 = vld [vmem:[%s17555_s3 + $0xc8] ss:$16 sps:$4 sm:$0xff]   ;;  %v10063_v48 = vsel %vm228_vm14, 1.0, %v17797_v18  ;;  %v10089_v50 = vsel %vm232_vm2, 1.0, %v17797_v18  ;;  %v18170_v52 = vmov 0   ;;  %vm247_vm13 = vcmp.eq.s32.totalorder %v9754_v16, %v8931_v57 }
 0x2ac   :  { %2733 = vperm.xlu1 %7967, %v9310_v13   ;;  %5334 = vmatpush1.bf16.msra.mxu1 %v8094_v32  ;;  %v8097_v32 = vld [vmem:[%s17555_s3 + $0xe8] ss:$16 sps:$4 sm:$0xff]   ;;  %v10118_v53 = vsel %vm238_vm4, 1.0, %v17797_v18  ;;  %v10121_v54 = vsel %vm239_vm5, 1.0, %v17797_v18  ;;  %vm250_vm14 = vcmp.eq.s32.totalorder %v9739_v12, %v8937_v59  ;;  %vm251_vm15 = vcmp.eq.s32.totalorder %v9754_v16, %v8937_v59 }
 0x2ad   :  { %v9986_v58 = vpop.permute.xlu1 %2169  ;;  %5335 = vmatprep.subr.bf16.mxu1 %v8095_v46  ;;  %18171 = vst [vmem:[#allocation238_spill] sm:$0xff] %v10118_v53  ;;  %18172 = vst [vmem:[#allocation239_spill] sm:$0xff] %v10121_v54  ;;  %v10157_v59 = vsel %vm241_vm11, 1.0, %v17797_v18  ;;  %v10179_v57 = vsel %vm251_vm15, 1.0, %v17797_v18  ;;  %vm255_vm2 = vcmp.eq.s32.totalorder %v9754_v16, %v8943_v61 }
 0x2ae   :  { %18165 = vst [vmem:[#allocation233_spill] sm:$0xff] %v9986_v58  ;;  %v9997_v45 = vpop.permute.xlu0 %2208  ;;  %3855 = vperm.xlu0 %8026, %v9304_v10   ;;  %v10018_v58 = vsel %vm226_vm8, 1.0, %v17797_v18  ;;  %v10035_v10 = vsel %vm224_vm10, 1.0, %v17797_v18  ;;  %vm242_vm8 = vcmp.eq.s32.totalorder %v9739_v12, %v8925_v55  ;;  %vm240_vm10 = vcmp.eq.s32.totalorder %v9739_v12, %v8927_v56  ;;  %18178 = vst [vmem:[#allocation245_spill] sm:$0xff] %v10157_v59  ;;  %v18182_v56 = vld [vmem:[#allocation19_spill] sm:$0xff] }
 0x2af   :  { %18166 = vst [vmem:[#allocation234_spill] sm:$0xff] %v9997_v45  ;;  %v10024_v45 = vsel %vm227_vm9, 1.0, %v17797_v18  ;;  %vm243_vm9 = vcmp.eq.s32.totalorder %v9754_v16, %v8925_v55  ;;  %v10151_v53 = vsel %vm240_vm10, 1.0, %v17797_v18  ;;  %v10167_v55 = vsel %vm247_vm13, 1.0, %v17797_v18  ;;  %18184 = vst [vmem:[#allocation249_spill] sm:$0xff] %v10179_v57 }
 0x2b0   :  { %2739 = vperm.xlu1 %7967, %v9326_v6   ;;  %5336 = vmatpush1.bf16.msra.mxu1 %v8097_v32  ;;  %v10075_v32 = vsel %vm234_vm0, 1.0, %v17797_v18  ;;  %v10145_v54 = vsel %vm243_vm9, 1.0, %v17797_v18  ;;  %18177 = vst [vmem:[#allocation244_spill] sm:$0xff] %v10151_v53  ;;  %18180 = vst [vmem:[#allocation247_spill] sm:$0xff] %v10167_v55  ;;  %vm254_vm0 = vcmp.eq.s32.totalorder %v9739_v12, %v8943_v61  ;;  %v18186_v55 = vld [vmem:[#allocation20_spill] sm:$0xff] }
 0x2b1   :  { %v10051_v46 = vpop.permute.xlu1 %2175  ;;  %18176 = vst [vmem:[#allocation243_spill] sm:$0xff] %v10145_v54  ;;  %vm490_vm1 = vcmp.eq.s32.totalorder %v9739_v12, %v18182_v56  ;;  %vm491_vm5 = vcmp.eq.s32.totalorder %v9754_v16, %v18182_v56 }
 0x2b2   :  { %18167 = vst [vmem:[#allocation235_spill] sm:$0xff] %v10051_v46  ;;  %v10077_v49 = vpop.permute.xlu0 %2214  ;;  %v8098_v46 = vld [vmem:[#allocation2] sm:$0xff]   ;;  %3861 = vperm.xlu0 %8026, %v9258_v19   ;;  %v10128_v19 = vsel %vm236_vm6, 1.0, %v17797_v18  ;;  %vm488_vm6 = vcmp.eq.s32.totalorder %v9739_v12, %v18186_v55 }
 0x2b3   :  { %18168 = vst [vmem:[#allocation236_spill] sm:$0xff] %v10077_v49  ;;  %v10097_v49 = vsel %vm233_vm3, 1.0, %v17797_v18  ;;  %5354 = vmatmul.mubr.bf16.vlgmr.msra.gmra.mrb[0].mxu1 %v8098_v46  ;;  %v10131_v46 = vsel %vm237_vm7, 1.0, %v17797_v18  ;;  %vm489_vm7 = vcmp.eq.s32.totalorder %v9754_v16, %v18186_v55 }
 0x2b4   :  { %2745 = vperm.xlu1 %7967, %v9523_v63   ;;  %5363 = vmatprep.mubr.bf16.mxu1 %v18170_v52  ;;  %18173 = vst [vmem:[#allocation240_spill] sm:$0xff] %v10131_v46 }
 0x2b5   :  { %v10114_v51 = vpop.permute.xlu1 %2181 }
 0x2b6   :  { %18169 = vst [vmem:[#allocation237_spill] sm:$0xff] %v10114_v51  ;;  %v10134_v51 = vsel %vm242_vm8, 1.0, %v17797_v18  ;;  %3867 = vperm.xlu0 %8026, %v9267_v15   ;;  %v10139_v33 = vpop.permute.xlu0 %2412  ;;  %v10163_v15 = vsel %vm246_vm12, 1.0, %v17797_v18 }
 0x2b7   :  { %18174 = vst [vmem:[#allocation241_spill] sm:$0xff] %v10134_v51  ;;  %18175 = vst [vmem:[#allocation242_spill] sm:$0xff] %v10139_v33  ;;  %v10170_v33 = vsel %vm250_vm14, 1.0, %v17797_v18  ;;  %v18187_v18 = vld [vmem:[#allocation21_spill] sm:$0xff]  ;;  %v18191_v51 = vld [vmem:[#allocation22_spill] sm:$0xff] }
 0x2b8   :  { %18179 = vst [vmem:[#allocation246_spill] sm:$0xff] %v10163_v15  ;;  %2751 = vperm.xlu1 %7967, %v9534_v27   ;;  %18181 = vst [vmem:[#allocation248_spill] sm:$0xff] %v10170_v33  ;;  %v18185_v15 = vld [vmem:[#allocation15_spill] sm:$0xff]  ;;  %v8099_v33 = vld [vmem:[#allocation2 + $0x8] sm:$0xff]   ;;  %vm492_vm8 = vcmp.eq.s32.totalorder %v9739_v12, %v18187_v18  ;;  %vm493_vm9 = vcmp.eq.s32.totalorder %v9754_v16, %v18187_v18  ;;  %vm494_vm10 = vcmp.eq.s32.totalorder %v9739_v12, %v18191_v51 }
 0x2b9   :  { %v10176_v54 = vpop.permute.xlu1 %2187  ;;  %vm258_vm3 = vcmp.eq.s32.totalorder %v9739_v12, %v18185_v15  ;;  %vm259_vm4 = vcmp.eq.s32.totalorder %v9754_v16, %v18185_v15  ;;  %vm495_vm11 = vcmp.eq.s32.totalorder %v9754_v16, %v18191_v51  ;;  %v18199_v18 = vld [vmem:[#allocation24_spill] sm:$0xff] }
 0x2ba   :  { %18183 = vst [vmem:[#allocation19_spill] sm:$0xff] %v10176_v54  ;;  %3873 = vperm.xlu0 %8026, %v9278_v8   ;;  %v10196_v61 = vpop.permute.xlu0 %2421  ;;  %v18189_v54 = vmov 0.0   ;;  %vm498_vm14 = vcmp.eq.s32.totalorder %v9739_v12, %v18199_v18  ;;  %vm499_vm15 = vcmp.eq.s32.totalorder %v9754_v16, %v18199_v18 }
 0x2bb   :  { %18188 = vst [vmem:[#allocation15_spill] sm:$0xff] %v10196_v61  ;;  %v10199_v57 = vsel %vm254_vm0, 1.0, %v18189_v54  ;;  %v554_v15 = vsel %vm490_vm1, 1.0, %v18189_v54  ;;  %v10208_v59 = vsel %vm255_vm2, 1.0, %v18189_v54  ;;  %v10211_v8 = vsel %vm258_vm3, 1.0, %v18189_v54  ;;  %5364 = vmatmul.mubr.bf16.gmra.mrb[4].mxu1 %v8099_v33 }
 0x2bc   :  { %18190 = vst [vmem:[#allocation20_spill] sm:$0xff] %v10199_v57  ;;  %2757 = vperm.xlu1 %7967, %v9545_v29   ;;  %18192 = vst [vmem:[#allocation21_spill] sm:$0xff] %v10208_v59  ;;  %v10214_v61 = vsel %vm259_vm4, 1.0, %v18189_v54  ;;  %v555_v53 = vsel %vm491_vm5, 1.0, %v18189_v54  ;;  %v552_v59 = vsel %vm488_vm6, 1.0, %v18189_v54  ;;  %v556_v33 = vsel %vm492_vm8, 1.0, %v18189_v54  ;;  %5373 = vmatprep.mubr.bf16.mxu1 %v18170_v52 }
 0x2bd   :  { %18193 = vst [vmem:[#allocation22_spill] sm:$0xff] %v10211_v8  ;;  %18194 = vst [vmem:[#allocation250_spill] sm:$0xff] %v10214_v61  ;;  %v10218_v57 = vpop.permute.xlu1 %2193  ;;  %v553_v61 = vsel %vm489_vm7, 1.0, %v18189_v54  ;;  %v10238_v51 = vadd.f32 %v554_v15, %v9846_v35  ;;  %v557_v56 = vsel %vm493_vm9, 1.0, %v18189_v54  ;;  %v18197_v8 = vld [vmem:[#allocation23_spill] sm:$0xff]  ;;  %v559_v46 = vsel %vm495_vm11, 1.0, %v18189_v54 }
 0x2be   :  { %18195 = vst [vmem:[#allocation251_spill] sm:$0xff] %v10218_v57  ;;  %v558_v57 = vsel %vm494_vm10, 1.0, %v18189_v54  ;;  %vm496_vm12 = vcmp.eq.s32.totalorder %v9739_v12, %v18197_v8  ;;  %3879 = vperm.xlu0 %8026, %v9294_v14   ;;  %v10245_v55 = vpop.permute.xlu0 %2427  ;;  %vm497_vm13 = vcmp.eq.s32.totalorder %v9754_v16, %v18197_v8  ;;  %v10256_v35 = vadd.f32 %v555_v53, %v9852_v30  ;;  %v18201_v53 = vld [vmem:[#allocation25_spill] sm:$0xff] }
 0x2bf   :  { %18196 = vst [vmem:[#allocation252_spill] sm:$0xff] %v10238_v51  ;;  %18198 = vst [vmem:[#allocation23_spill] sm:$0xff] %v10245_v55  ;;  %v10259_v14 = vadd.f32 %v552_v59, %v9815_v22  ;;  %v10262_v15 = vadd.f32 %v553_v61, %v9824_v7  ;;  %v10265_v55 = vadd.f32 %v556_v33, %v9803_v28  ;;  %v560_v30 = vsel %vm496_vm12, 1.0, %v18189_v54  ;;  %v8100_v22 = vld [vmem:[#allocation2 + $0x10] sm:$0xff]  }
 0x2c0   :  { %2763 = vperm.xlu1 %7967, %v9556_v31   ;;  %v10270_v51 = vadd.f32 %v557_v56, %v9809_v20  ;;  %v10273_v18 = vadd.f32 %v558_v57, %v9830_v34  ;;  %vm500_vm0 = vcmp.eq.s32.totalorder %v9739_v12, %v18201_v53  ;;  %v10279_v7 = vadd.f32 %v559_v46, %v9836_v23  ;;  %v18203_v34 = vld [vmem:[#allocation26_spill] sm:$0xff]  ;;  %v18204_v23 = vld [vmem:[#allocation27_spill] sm:$0xff]  ;;  %v18205_v57 = vld [vmem:[#allocation28_spill] sm:$0xff] }
 0x2c1   :  { %v10267_v8 = vpop.permute.xlu1 %2199  ;;  %v561_v28 = vsel %vm497_vm13, 1.0, %v18189_v54  ;;  %v562_v59 = vsel %vm498_vm14, 1.0, %v18189_v54  ;;  %v563_v61 = vsel %vm499_vm15, 1.0, %v18189_v54  ;;  %vm501_vm1 = vcmp.eq.s32.totalorder %v9754_v16, %v18201_v53 }
 0x2c2   :  { %18200 = vst [vmem:[#allocation24_spill] sm:$0xff] %v10267_v8  ;;  %3885 = vperm.xlu0 %8026, %v9310_v13   ;;  %v10285_v20 = vpop.permute.xlu0 %2433  ;;  %vm502_vm2 = vcmp.eq.s32.totalorder %v9739_v12, %v18203_v34  ;;  %vm503_vm3 = vcmp.eq.s32.totalorder %v9754_v16, %v18203_v34  ;;  %vm504_vm4 = vcmp.eq.s32.totalorder %v9739_v12, %v18204_v23  ;;  %v564_v13 = vsel %vm500_vm0, 1.0, %v18189_v54 }
 0x2c3   :  { %18202 = vst [vmem:[#allocation25_spill] sm:$0xff] %v10285_v20  ;;  %v10297_v46 = vadd.f32 %v560_v30, %v9876_v5  ;;  %vm505_vm5 = vcmp.eq.s32.totalorder %v9754_v16, %v18204_v23  ;;  %vm506_vm6 = vcmp.eq.s32.totalorder %v9739_v12, %v18205_v57  ;;  %5374 = vmatmul.mubr.bf16.gmra.mrb[8].mxu1 %v8100_v22  ;;  %v565_v30 = vsel %vm501_vm1, 1.0, %v18189_v54 }
 0x2c4   :  { %2769 = vperm.xlu1 %7967, %v9567_v21   ;;  %v10307_v56 = vadd.f32 %v561_v28, %v9886_v26  ;;  %v10310_v8 = vadd.f32 %v562_v59, %v9858_v37  ;;  %v10313_v5 = vadd.f32 %v563_v61, %v9864_v24  ;;  %vm507_vm7 = vcmp.eq.s32.totalorder %v9754_v16, %v18205_v57  ;;  %v18209_v61 = vld [vmem:[#allocation29_spill] sm:$0xff] }
 0x2c5   :  { %v10304_v33 = vpop.permute.xlu1 %2205  ;;  %5383 = vmatprep.mubr.bf16.mxu1 %v18170_v52  ;;  %v566_v26 = vsel %vm502_vm2, 1.0, %v18189_v54  ;;  %v567_v37 = vsel %vm503_vm3, 1.0, %v18189_v54  ;;  %v568_v24 = vsel %vm504_vm4, 1.0, %v18189_v54  ;;  %v10338_v53 = vadd.f32 %v564_v13, %v9925_v40  ;;  %v18210_v40 = vld [vmem:[#allocation30_spill] sm:$0xff] }
 0x2c6   :  { %18206 = vst [vmem:[#allocation26_spill] sm:$0xff] %v10304_v33  ;;  %18207 = vst [vmem:[#allocation27_spill] sm:$0xff] %v10313_v5  ;;  %3891 = vperm.xlu0 %8026, %v9326_v6   ;;  %v10335_v22 = vpop.permute.xlu0 %2439  ;;  %v569_v28 = vsel %vm505_vm5, 1.0, %v18189_v54  ;;  %v570_v59 = vsel %vm506_vm6, 1.0, %v18189_v54  ;;  %vm508_vm8 = vcmp.eq.s32.totalorder %v9739_v12, %v18209_v61  ;;  %v571_v6 = vsel %vm507_vm7, 1.0, %v18189_v54 }
 0x2c7   :  { %18208 = vst [vmem:[#allocation28_spill] sm:$0xff] %v10335_v22  ;;  %vm509_vm9 = vcmp.eq.s32.totalorder %v9754_v16, %v18209_v61  ;;  %vm510_vm10 = vcmp.eq.s32.totalorder %v9739_v12, %v18210_v40  ;;  %vm511_vm11 = vcmp.eq.s32.totalorder %v9754_v16, %v18210_v40  ;;  %v10361_v23 = vadd.f32 %v565_v30, %v9931_v2  ;;  %v8101_v22 = vld [vmem:[#allocation2 + $0x18] sm:$0xff]  }
 0x2c8   :  { %2775 = vperm.xlu1 %7967, %v9578_v25   ;;  %v10364_v13 = vadd.f32 %v566_v26, %v9906_v41  ;;  %v10367_v57 = vadd.f32 %v567_v37, %v9909_v38  ;;  %v10370_v33 = vadd.f32 %v568_v24, %v9955_v60  ;;  %v10373_v20 = vadd.f32 %v569_v28, %v9961_v17  ;;  %v18212_v2 = vld [vmem:[#allocation31_spill] sm:$0xff]  ;;  %v18215_v17 = vld [vmem:[#allocation33_spill] sm:$0xff] }
 0x2c9   :  { %v10358_v34 = vpop.permute.xlu1 %2211  ;;  %v10376_v5 = vadd.f32 %v570_v59, %v9937_v1  ;;  %vm512_vm12 = vcmp.eq.s32.totalorder %v9739_v12, %v18212_v2  ;;  %v10385_v38 = vadd.f32 %v571_v6, %v9949_v42  ;;  %v573_v60 = vsel %vm509_vm9, 1.0, %v18189_v54  ;;  %v18214_v42 = vld [vmem:[#allocation32_spill] sm:$0xff]  ;;  %v18219_v40 = vld [vmem:[#allocation35_spill] sm:$0xff] }
 0x2ca   :  { %18211 = vst [vmem:[#allocation29_spill] sm:$0xff] %v10358_v34  ;;  %v572_v34 = vsel %vm508_vm8, 1.0, %v18189_v54  ;;  %3897 = vperm.xlu0 %8026, %v9523_v63   ;;  %v10382_v41 = vpop.permute.xlu0 %2445  ;;  %v574_v1 = vsel %vm510_vm10, 1.0, %v18189_v54  ;;  %v575_v63 = vsel %vm511_vm11, 1.0, %v18189_v54  ;;  %vm513_vm13 = vcmp.eq.s32.totalorder %v9754_v16, %v18212_v2  ;;  %v8102_v2 = vld [vmem:[#allocation2 + $0x20] sm:$0xff]  }
 0x2cb   :  { %18213 = vst [vmem:[#allocation30_spill] sm:$0xff] %v10382_v41  ;;  %vm514_vm14 = vcmp.eq.s32.totalorder %v9739_v12, %v18214_v42  ;;  %vm515_vm15 = vcmp.eq.s32.totalorder %v9754_v16, %v18214_v42  ;;  %vm516_vm0 = vcmp.eq.s32.totalorder %v9739_v12, %v18215_v17  ;;  %5384 = vmatmul.mubr.bf16.gmra.mrb[12].mxu1 %v8101_v22  ;;  %v576_v26 = vsel %vm512_vm12, 1.0, %v18189_v54  ;;  %v18235_v41 = vld [vmem:[#allocation44_spill] sm:$0xff] }
 0x2cc   :  { %2781 = vperm.xlu1 %7967, %v9589_v11   ;;  %v10409_v30 = vadd.f32 %v572_v34, %v9980_v44  ;;  %vm517_vm1 = vcmp.eq.s32.totalorder %v9754_v16, %v18215_v17  ;;  %v18216_v11 = vld [vmem:[#allocation34_spill] sm:$0xff]  ;;  %5393 = vmatprep.mubr.bf16.mxu1 %v18170_v52  ;;  %v10420_v24 = vadd.f32 %v573_v60, %v9989_v39  ;;  %v577_v59 = vsel %vm513_vm13, 1.0, %v18189_v54 }
 0x2cd   :  { %vm518_vm2 = vcmp.eq.s32.totalorder %v9739_v12, %v18216_v11  ;;  %v10423_v22 = vadd.f32 %v574_v1, %v9967_v3  ;;  %v10426_v44 = vadd.f32 %v575_v63, %v9974_v43  ;;  %vm519_vm3 = vcmp.eq.s32.totalorder %v9754_v16, %v18216_v11 }
 0x2ce   :  { %v10416_v37 = vpop.permute.xlu1 %2409  ;;  %3903 = vperm.xlu0 %8026, %v9534_v27   ;;  %v10431_v28 = vpop.permute.xlu0 %2451  ;;  %v578_v3 = vsel %vm514_vm14, 1.0, %v18189_v54  ;;  %v579_v43 = vsel %vm515_vm15, 1.0, %v18189_v54  ;;  %v580_v27 = vsel %vm516_vm0, 1.0, %v18189_v54  ;;  %v10451_v39 = vadd.f32 %v576_v26, %v10035_v10 }
 0x2cf   :  { %18217 = vst [vmem:[#allocation31_spill] sm:$0xff] %v10416_v37  ;;  %18218 = vst [vmem:[#allocation32_spill] sm:$0xff] %v10431_v28  ;;  %v581_v61 = vsel %vm517_vm1, 1.0, %v18189_v54  ;;  %v582_v6 = vsel %vm518_vm2, 1.0, %v18189_v54  ;;  %vm520_vm4 = vcmp.eq.s32.totalorder %v9739_v12, %v18219_v40  ;;  %v583_v34 = vsel %vm519_vm3, 1.0, %v18189_v54  ;;  %v8104_v37 = vld [vmem:[#allocation2 + $0x30] sm:$0xff]  }
 0x2d0   :  { %2787 = vperm.xlu1 %7967, %v9655_v4   ;;  %vm521_vm5 = vcmp.eq.s32.totalorder %v9754_v16, %v18219_v40  ;;  %v18220_v4 = vld [vmem:[#allocation36_spill] sm:$0xff]  ;;  %v10473_v60 = vadd.f32 %v577_v59, %v10041_v47  ;;  %v10476_v1 = vadd.f32 %v578_v3, %v10018_v58  ;;  %v10479_v63 = vadd.f32 %v579_v43, %v10024_v45  ;;  %v18223_v58 = vld [vmem:[#allocation37_spill] sm:$0xff]  ;;  %v18225_v59 = vld [vmem:[#allocation38_spill] sm:$0xff] }
 0x2d1   :  { %vm522_vm6 = vcmp.eq.s32.totalorder %v9739_v12, %v18220_v4  ;;  %vm523_vm7 = vcmp.eq.s32.totalorder %v9754_v16, %v18220_v4  ;;  %v10482_v42 = vadd.f32 %v580_v27, %v10063_v48  ;;  %v10488_v26 = vadd.f32 %v581_v61, %v10069_v62  ;;  %v18227_v61 = vld [vmem:[#allocation39_spill] sm:$0xff] }
 0x2d2   :  { %v10470_v10 = vpop.permute.xlu1 %2415  ;;  %3909 = vperm.xlu0 %8026, %v9545_v29   ;;  %v10485_v17 = vpop.permute.xlu0 %2457  ;;  %v10491_v11 = vadd.f32 %v582_v6, %v10047_v36  ;;  %v584_v47 = vsel %vm520_vm4, 1.0, %v18189_v54  ;;  %vm524_vm8 = vcmp.eq.s32.totalorder %v9739_v12, %v18223_v58  ;;  %v18224_v45 = vmov 10  }
 0x2d3   :  { %18221 = vst [vmem:[#allocation33_spill] sm:$0xff] %v10470_v10  ;;  %18222 = vst [vmem:[#allocation34_spill] sm:$0xff] %v10485_v17  ;;  %v10498_v48 = vadd.f32 %v583_v34, %v10057_v9  ;;  %v585_v29 = vsel %vm521_vm5, 1.0, %v18189_v54  ;;  %v586_v62 = vsel %vm522_vm6, 1.0, %v18189_v54  ;;  %v587_v36 = vsel %vm523_vm7, 1.0, %v18189_v54  ;;  %v10515_v9 = vld [vmem:[%s17552_s0 + $0x8] sm:$0xff]  ;;  %5394 = vmatmul.mubr.bf16.gmra.mrb[16].mxu1 %v8102_v2 }
 0x2d4   :  { %7969 = vset.pattern.permute.xlu1 %v18224_v45  ;;  %vm525_vm9 = vcmp.eq.s32.totalorder %v9754_v16, %v18223_v58  ;;  %vm526_vm10 = vcmp.eq.s32.totalorder %v9739_v12, %v18225_v59  ;;  %vm527_vm11 = vcmp.eq.s32.totalorder %v9754_v16, %v18225_v59  ;;  %5403 = vmatprep.mubr.bf16.mxu1 %v18170_v52  ;;  %v588_v27 = vsel %vm524_vm8, 1.0, %v18189_v54  ;;  %v8103_v59 = vld [vmem:[#allocation2 + $0x28] sm:$0xff]   ;;  %v18234_v17 = vld [vmem:[#allocation238_spill] sm:$0xff] }
 0x2d5   :  { %2988 = vperm.xlu1 %7969, %v10515_v9   ;;  %v10528_v43 = vadd.f32 %v584_v47, %v10089_v50  ;;  %vm528_vm12 = vcmp.eq.s32.totalorder %v9739_v12, %v18227_v61  ;;  %vm529_vm13 = vcmp.eq.s32.totalorder %v9754_v16, %v18227_v61  ;;  %v10539_v40 = vadd.f32 %v585_v29, %v10097_v49  ;;  %v18229_v50 = vld [vmem:[#allocation40_spill] sm:$0xff]  ;;  %v18230_v29 = vld [vmem:[#allocation42_spill] sm:$0xff] }
 0x2d6   :  { %v10524_v3 = vpop.permute.xlu1 %2418  ;;  %3915 = vperm.xlu0 %8026, %v9556_v31   ;;  %v10536_v6 = vpop.permute.xlu0 %2463  ;;  %v10542_v34 = vadd.f32 %v586_v62, %v10075_v32  ;;  %vm530_vm14 = vcmp.eq.s32.totalorder %v9739_v12, %v18229_v50  ;;  %vm531_vm15 = vcmp.eq.s32.totalorder %v9754_v16, %v18229_v50  ;;  %v10549_v4 = vadd.f32 %v587_v36, %v10083_v0  ;;  %v10574_v62 = vld [vmem:[%s17552_s0] sm:$0xff]  ;;  %v18236_v50 = vld [vmem:[#allocation239_spill] sm:$0xff] }
 0x2d7   :  { %18226 = vst [vmem:[#allocation35_spill] sm:$0xff] %v10524_v3  ;;  %18228 = vst [vmem:[#allocation36_spill] sm:$0xff] %v10536_v6  ;;  %v589_v31 = vsel %vm525_vm9, 1.0, %v18189_v54  ;;  %v590_v32 = vsel %vm526_vm10, 1.0, %v18189_v54  ;;  %v591_v49 = vsel %vm527_vm11, 1.0, %v18189_v54  ;;  %v17808_v2 = vmov 11  }
 0x2d8   :  { %v10565_v0 = vadd.f32 %v588_v27, %v10128_v19  ;;  %v592_v47 = vsel %vm528_vm12, 1.0, %v18189_v54  ;;  %v593_v58 = vsel %vm529_vm13, 1.0, %v18189_v54  ;;  %vm534_vm0 = vcmp.eq.s32.totalorder %v9739_v12, %v18230_v29  ;;  %v18238_v3 = vld [vmem:[#allocation244_spill] sm:$0xff] }
 0x2d9   :  { %7970 = vset.pattern.permute.xlu1 %v17808_v2  ;;  %v594_v19 = vsel %vm530_vm14, 1.0, %v18189_v54  ;;  %v595_v27 = vsel %vm531_vm15, 1.0, %v18189_v54  ;;  %vm535_vm1 = vcmp.eq.s32.totalorder %v9754_v16, %v18230_v29  ;;  %v18233_v2 = vld [vmem:[#allocation240_spill] sm:$0xff]  ;;  %v10596_v28 = vadd.f32 %v590_v32, %v18234_v17  ;;  %v18240_v17 = vld [vmem:[#allocation245_spill] sm:$0xff] }
 0x2da   :  { %3273 = vperm.xlu1 %7970, %v10574_v62   ;;  %v10577_v36 = vpop.permute.xlu1 %2424  ;;  %3921 = vperm.xlu0 %8026, %v9567_v21   ;;  %v10590_v61 = vpop.permute.xlu0 %2469  ;;  %v10593_v6 = vadd.f32 %v589_v31, %v18233_v2  ;;  %vm538_vm2 = vcmp.eq.s32.totalorder %v9739_v12, %v18235_v41  ;;  %vm539_vm3 = vcmp.eq.s32.totalorder %v9754_v16, %v18235_v41  ;;  %v598_v21 = vsel %vm534_vm0, 1.0, %v18189_v54  ;;  %v18239_v31 = vld [vmem:[#allocation46_spill] sm:$0xff]  ;;  %v18241_v2 = vld [vmem:[#allocation241_spill] sm:$0xff] }
 0x2db   :  { %18231 = vst [vmem:[#allocation37_spill] sm:$0xff] %v10577_v36  ;;  %18232 = vst [vmem:[#allocation38_spill] sm:$0xff] %v10590_v61  ;;  %v10603_v36 = vadd.f32 %v591_v49, %v18236_v50  ;;  %v10606_v10 = vadd.f32 %v592_v47, %v18238_v3  ;;  %vm542_vm4 = vcmp.eq.s32.totalorder %v9739_v12, %v18239_v31  ;;  %5404 = vmatmul.mubr.bf16.gmra.mrb[20].mxu1 %v8103_v59  ;;  %v18243_v49 = vld [vmem:[#allocation243_spill] sm:$0xff]  ;;  %v17817_v47 = vmov 12  }
 0x2dc   :  { %v10615_v32 = vadd.f32 %v593_v58, %v18240_v17  ;;  %v10618_v41 = vadd.f32 %v594_v19, %v18241_v2  ;;  %v10621_v50 = vadd.f32 %v595_v27, %v18243_v49  ;;  %v599_v3 = vsel %vm535_vm1, 1.0, %v18189_v54  ;;  %5413 = vmatprep.mubr.bf16.mxu1 %v18170_v52  ;;  %v18246_v19 = vld [vmem:[#allocation48_spill] sm:$0xff]  ;;  %v18248_v17 = vld [vmem:[#allocation246_spill] sm:$0xff]  ;;  %v18251_v61 = vld [vmem:[#allocation247_spill] sm:$0xff] }
 0x2dd   :  { %18237 = vst [vmem:[#allocation39_spill] sm:$0xff] %v10603_v36  ;;  %v602_v59 = vsel %vm538_vm2, 1.0, %v18189_v54  ;;  %v603_v58 = vsel %vm539_vm3, 1.0, %v18189_v54  ;;  %vm543_vm5 = vcmp.eq.s32.totalorder %v9754_v16, %v18239_v31  ;;  %vm546_vm6 = vcmp.eq.s32.totalorder %v9739_v12, %v18246_v19  ;;  %v18261_v36 = vld [vmem:[#allocation53_spill] sm:$0xff] }
 0x2de   :  { %18242 = vst [vmem:[#allocation40_spill] sm:$0xff] %v10618_v41  ;;  %18244 = vst [vmem:[#allocation42_spill] sm:$0xff] %v10621_v50  ;;  %7971 = vset.pattern.permute.xlu1 %v17817_v47  ;;  %v10625_v29 = vpop.permute.xlu1 %2430  ;;  %3927 = vperm.xlu0 %8026, %v9578_v25   ;;  %v10635_v27 = vpop.permute.xlu0 %2475  ;;  %v10639_v2 = vadd.f32 %v598_v21, %v18248_v17  ;;  %v606_v49 = vsel %vm542_vm4, 1.0, %v18189_v54  ;;  %vm547_vm7 = vcmp.eq.s32.totalorder %v9754_v16, %v18246_v19  ;;  %v18250_v47 = vld [vmem:[#allocation51_spill] sm:$0xff]  ;;  %v18254_v21 = vld [vmem:[#allocation248_spill] sm:$0xff] }
 0x2df   :  { %18245 = vst [vmem:[#allocation240_spill] sm:$0xff] %v10625_v29  ;;  %18247 = vst [vmem:[#allocation238_spill] sm:$0xff] %v10635_v27  ;;  %3561 = vperm.xlu1 %7971, %v10574_v62   ;;  %vm776_vm8 = vcmp.eq.s32.totalorder %v9739_v12, %v18250_v47  ;;  %v10650_v25 = vadd.f32 %v599_v3, %v18251_v61  ;;  %vm777_vm9 = vcmp.eq.s32.totalorder %v9754_v16, %v18250_v47  ;;  %v18253_v27 = vld [vmem:[#allocation52_spill] sm:$0xff]  ;;  %v18256_v17 = vld [vmem:[#allocation249_spill] sm:$0xff] }
 0x2e0   :  { %18249 = vst [vmem:[#allocation44_spill] sm:$0xff] %v10639_v2  ;;  %vm778_vm10 = vcmp.eq.s32.totalorder %v9739_v12, %v18253_v27  ;;  %vm779_vm11 = vcmp.eq.s32.totalorder %v9754_v16, %v18253_v27  ;;  %v10659_v31 = vadd.f32 %v602_v59, %v18254_v21  ;;  %v10662_v19 = vadd.f32 %v603_v58, %v18256_v17  ;;  %v18264_v17 = vld [vmem:[#allocation21_spill] sm:$0xff]  ;;  %v18265_v47 = vld [vmem:[#allocation22_spill] sm:$0xff] }
 0x2e1   :  { %18252 = vst [vmem:[#allocation239_spill] sm:$0xff] %v10650_v25  ;;  %v607_v29 = vsel %vm543_vm5, 1.0, %v18189_v54  ;;  %v610_v61 = vsel %vm546_vm6, 1.0, %v18189_v54  ;;  %v18259_v25 = vld [vmem:[#allocation20_spill] sm:$0xff]  ;;  %v611_v50 = vsel %vm547_vm7, 1.0, %v18189_v54  ;;  %v840_v41 = vsel %vm776_vm8, 1.0, %v18189_v54 }
 0x2e2   :  { %18255 = vst [vmem:[#allocation244_spill] sm:$0xff] %v10659_v31  ;;  %18257 = vst [vmem:[#allocation46_spill] sm:$0xff] %v10662_v19  ;;  %v10666_v3 = vpop.permute.xlu1 %2436  ;;  %v10669_v2 = vadd.f32 %v606_v49, %v18259_v25  ;;  %vm780_vm12 = vcmp.eq.s32.totalorder %v9739_v12, %v18261_v36  ;;  %v18262_v59 = vmov 11   ;;  %v10676_v58 = vpop.permute.xlu0 %2481  ;;  %v841_v21 = vsel %vm777_vm9, 1.0, %v18189_v54  ;;  %v18267_v27 = vld [vmem:[#allocation250_spill] sm:$0xff] }
 0x2e3   :  { %18258 = vst [vmem:[#allocation245_spill] sm:$0xff] %v10666_v3  ;;  %8052 = vset.pattern.permute.xlu0 %v18262_v59  ;;  %18263 = vst [vmem:[#allocation243_spill] sm:$0xff] %v10676_v58  ;;  %3564 = vperm.xlu1 %7971, %v10515_v9   ;;  %v842_v49 = vsel %vm778_vm10, 1.0, %v18189_v54  ;;  %v843_v25 = vsel %vm779_vm11, 1.0, %v18189_v54  ;;  %vm781_vm13 = vcmp.eq.s32.totalorder %v9754_v16, %v18261_v36 }
 0x2e4   :  { %18260 = vst [vmem:[#allocation241_spill] sm:$0xff] %v10669_v2  ;;  %3276 = vperm.xlu0 %8052, %v10515_v9   ;;  %v10695_v58 = vadd.f32 %v607_v29, %v18264_v17  ;;  %v10698_v3 = vadd.f32 %v610_v61, %v18265_v47  ;;  %v18266_v2 = vld [vmem:[#allocation54_spill] sm:$0xff]  ;;  %5414 = vmatmul.mubr.bf16.gmra.mrb[24].mxu1 %v8104_v37  ;;  %v844_v29 = vsel %vm780_vm12, 1.0, %v18189_v54  ;;  %v18268_v61 = vld [vmem:[#allocation55_spill] sm:$0xff] }
 0x2e5   :  { %vm784_vm14 = vcmp.eq.s32.totalorder %v9739_v12, %v18266_v2  ;;  %vm785_vm15 = vcmp.eq.s32.totalorder %v9754_v16, %v18266_v2  ;;  %v10705_v19 = vadd.f32 %v611_v50, %v18267_v27  ;;  %v10708_v31 = vadd.f32 %v840_v41, %v10259_v14  ;;  %5423 = vmatprep.mubr.bf16.mxu1 %v18170_v52  ;;  %v18270_v50 = vld [vmem:[#allocation252_spill] sm:$0xff] }
 0x2e6   :  { %vm782_vm0 = vcmp.eq.s32.totalorder %v9739_v12, %v18268_v61  ;;  %v10716_v17 = vpop.permute.xlu1 %2442  ;;  %v10720_v37 = vadd.f32 %v841_v21, %v10262_v15  ;;  %v10723_v2 = vadd.f32 %v842_v49, %v18270_v50  ;;  %v10726_v14 = vadd.f32 %v843_v25, %v10256_v35  ;;  %v10732_v47 = vpop.permute.xlu0 %2487  ;;  %v18274_v21 = vld [vmem:[#allocation56_spill] sm:$0xff]  ;;  %v10744_v35 = vld [vmem:[%s17552_s0 + $0x10] sm:$0xff]  ;;  %v18276_v25 = vld [vmem:[#allocation57_spill] sm:$0xff] }
 0x2e7   :  { %18269 = vst [vmem:[#allocation48_spill] sm:$0xff] %v10716_v17  ;;  %v845_v41 = vsel %vm781_vm13, 1.0, %v18189_v54  ;;  %18272 = vst [vmem:[#allocation51_spill] sm:$0xff] %v10732_v47  ;;  %v18273_v27 = vmov 13   ;;  %v848_v17 = vsel %vm784_vm14, 1.0, %v18189_v54  ;;  %v849_v15 = vsel %vm785_vm15, 1.0, %v18189_v54 }
 0x2e8   :  { %18271 = vst [vmem:[#allocation246_spill] sm:$0xff] %v10726_v14  ;;  %7972 = vset.pattern.permute.xlu1 %v18273_v27  ;;  %vm783_vm1 = vcmp.eq.s32.totalorder %v9754_v16, %v18268_v61  ;;  %vm788_vm2 = vcmp.eq.s32.totalorder %v9739_v12, %v18274_v21  ;;  %3279 = vperm.xlu0 %8052, %v10744_v35   ;;  %v846_v49 = vsel %vm782_vm0, 1.0, %v18189_v54  ;;  %v18278_v47 = vld [vmem:[#allocation58_spill] sm:$0xff]  ;;  %v10796_v61 = vld [vmem:[%s17552_s0 + $0x20] sm:$0xff] }
 0x2e9   :  { %3852 = vperm.xlu1 %7972, %v10515_v9   ;;  %v10749_v36 = vadd.f32 %v844_v29, %v10265_v55  ;;  %vm789_vm3 = vcmp.eq.s32.totalorder %v9754_v16, %v18274_v21  ;;  %vm786_vm4 = vcmp.eq.s32.totalorder %v9739_v12, %v18276_v25  ;;  %v10760_v50 = vadd.f32 %v845_v41, %v10270_v51  ;;  %v8105_v29 = vld [vmem:[#allocation2 + $0x38] sm:$0xff]  }
 0x2ea   :  { %vm787_vm5 = vcmp.eq.s32.totalorder %v9754_v16, %v18276_v25  ;;  %vm792_vm6 = vcmp.eq.s32.totalorder %v9739_v12, %v18278_v47  ;;  %vm793_vm7 = vcmp.eq.s32.totalorder %v9754_v16, %v18278_v47  ;;  %v10768_v55 = vpop.permute.xlu1 %2448  ;;  %v10774_v14 = vadd.f32 %v849_v15, %v10307_v56 }
 0x2eb   :  { %18275 = vst [vmem:[#allocation247_spill] sm:$0xff] %v10749_v36  ;;  %18277 = vst [vmem:[#allocation52_spill] sm:$0xff] %v10760_v50  ;;  %v10771_v36 = vadd.f32 %v848_v17, %v10297_v46  ;;  %v847_v51 = vsel %vm783_vm1, 1.0, %v18189_v54  ;;  %v852_v41 = vsel %vm788_vm2, 1.0, %v18189_v54  ;;  %v10784_v50 = vpop.permute.xlu0 %2493  ;;  %v853_v46 = vsel %vm789_vm3, 1.0, %v18189_v54  ;;  %v18283_v17 = vld [vmem:[#allocation59_spill] sm:$0xff] }
 0x2ec   :  { %18279 = vst [vmem:[#allocation248_spill] sm:$0xff] %v10768_v55  ;;  %18281 = vst [vmem:[#allocation20_spill] sm:$0xff] %v10774_v14  ;;  %v10787_v55 = vadd.f32 %v846_v49, %v10273_v18  ;;  %v850_v56 = vsel %vm786_vm4, 1.0, %v18189_v54  ;;  %vm790_vm8 = vcmp.eq.s32.totalorder %v9739_v12, %v18283_v17  ;;  %3285 = vperm.xlu0 %8052, %v10796_v61   ;;  %v851_v18 = vsel %vm787_vm5, 1.0, %v18189_v54 }
 0x2ed   :  { %18280 = vst [vmem:[#allocation249_spill] sm:$0xff] %v10771_v36  ;;  %18282 = vst [vmem:[#allocation53_spill] sm:$0xff] %v10784_v50  ;;  %7973 = vset.pattern.permute.xlu1 %v18224_v45  ;;  %v856_v15 = vsel %vm792_vm6, 1.0, %v18189_v54  ;;  %v857_v21 = vsel %vm793_vm7, 1.0, %v18189_v54  ;;  %vm791_vm9 = vcmp.eq.s32.totalorder %v9754_v16, %v18283_v17  ;;  %5424 = vmatmul.mubr.bf16.gmra.mrb[28].mxu1 %v8105_v29  ;;  %v18284_v50 = vld [vmem:[#allocation60_spill] sm:$0xff] }
 0x2ee   :  { %2991 = vperm.xlu1 %7973, %v10744_v35   ;;  %v10816_v49 = vadd.f32 %v847_v51, %v10279_v7  ;;  %v10819_v25 = vadd.f32 %v852_v41, %v10338_v53  ;;  %vm796_vm10 = vcmp.eq.s32.totalorder %v9739_v12, %v18284_v50  ;;  %v10823_v14 = vpop.permute.xlu1 %2454  ;;  %5433 = vmatprep.mubr.bf16.mxu1 %v18170_v52  ;;  %v854_v7 = vsel %vm790_vm8, 1.0, %v18189_v54  ;;  %v18286_v53 = vld [vmem:[#allocation27_spill] sm:$0xff] }
 0x2ef   :  { %18285 = vst [vmem:[#allocation21_spill] sm:$0xff] %v10823_v14  ;;  %v10827_v47 = vadd.f32 %v853_v46, %v10361_v23  ;;  %v10830_v36 = vadd.f32 %v850_v56, %v10310_v8  ;;  %vm797_vm11 = vcmp.eq.s32.totalorder %v9754_v16, %v18284_v50  ;;  %v10839_v29 = vadd.f32 %v851_v18, %v18286_v53  ;;  %v10848_v41 = vpop.permute.xlu0 %2499  ;;  %v10853_v46 = vld [vmem:[%s17552_s0 + $0x30] sm:$0xff]  ;;  %v18290_v56 = vld [vmem:[#allocation61_spill] sm:$0xff]  ;;  %v8106_v53 = vld [vmem:[#allocation2 + $0x40] sm:$0xff]  }
 0x2f0   :  { %v10842_v51 = vadd.f32 %v856_v15, %v10370_v33  ;;  %v10845_v23 = vadd.f32 %v857_v21, %v10373_v20  ;;  %v855_v8 = vsel %vm791_vm9, 1.0, %v18189_v54  ;;  %18288 = vst [vmem:[#allocation54_spill] sm:$0xff] %v10848_v41  ;;  %18289 = vst [vmem:[#allocation250_spill] sm:$0xff] %v10853_v46  ;;  %3291 = vperm.xlu0 %8052, %v10853_v46   ;;  %v860_v50 = vsel %vm796_vm10, 1.0, %v18189_v54  ;;  %v18291_v20 = vld [vmem:[#allocation62_spill] sm:$0xff]  ;;  %v18292_v15 = vld [vmem:[#allocation63_spill] sm:$0xff] }
 0x2f1   :  { %vm794_vm12 = vcmp.eq.s32.totalorder %v9739_v12, %v18290_v56  ;;  %vm795_vm13 = vcmp.eq.s32.totalorder %v9754_v16, %v18290_v56  ;;  %vm800_vm14 = vcmp.eq.s32.totalorder %v9739_v12, %v18291_v20  ;;  %v17831_v33 = vmov 14   ;;  %v8109_v41 = vld [vmem:[#allocation5 + $0x4] ss:$16 sps:$4 sm:$0xff]  }
 0x2f2   :  { %18287 = vst [vmem:[#allocation22_spill] sm:$0xff] %v10845_v23  ;;  %7974 = vset.pattern.permute.xlu1 %v17831_v33  ;;  %v10865_v17 = vadd.f32 %v854_v7, %v10364_v13  ;;  %v861_v18 = vsel %vm797_vm11, 1.0, %v18189_v54  ;;  %vm801_vm15 = vcmp.eq.s32.totalorder %v9754_v16, %v18291_v20  ;;  %vm798_vm0 = vcmp.eq.s32.totalorder %v9739_v12, %v18292_v15  ;;  %v10873_v21 = vpop.permute.xlu1 %2460  ;;  %v18294_v13 = vld [vmem:[#allocation64_spill] sm:$0xff]  ;;  %v18298_v23 = vld [vmem:[#allocation65_spill] sm:$0xff] }
 0x2f3   :  { %4137 = vperm.xlu1 %7974, %v10574_v62   ;;  %18293 = vst [vmem:[#allocation55_spill] sm:$0xff] %v10873_v21  ;;  %v10876_v14 = vadd.f32 %v855_v8, %v10367_v57  ;;  %vm799_vm1 = vcmp.eq.s32.totalorder %v9754_v16, %v18292_v15  ;;  %vm804_vm2 = vcmp.eq.s32.totalorder %v9739_v12, %v18294_v13  ;;  %v8107_v7 = vld [vmem:[#allocation5] ss:$16 sps:$4 sm:$0xff]   ;;  %v858_v21 = vsel %vm794_vm12, 1.0, %v18189_v54  ;;  %v8112_v15 = vld [vmem:[#allocation5 + $0x24] ss:$16 sps:$4 sm:$0xff]  }
 0x2f4   :  { %vm805_vm3 = vcmp.eq.s32.totalorder %v9754_v16, %v18294_v13  ;;  %v10885_v33 = vadd.f32 %v860_v50, %v10409_v30  ;;  %v859_v57 = vsel %vm795_vm13, 1.0, %v18189_v54  ;;  %v864_v8 = vsel %vm800_vm14, 1.0, %v18189_v54  ;;  %v8367_v30 = vld [vmem:[%s17552_s0 + $0x40] sm:$0xff]  ;;  %v10902_v50 = vpop.permute.xlu0 %2985  ;;  %5834 = vmatprep.subr.bf16.mxu1 %v8109_v41  ;;  %v18300_v13 = vld [vmem:[#allocation66_spill] sm:$0xff] }
 0x2f5   :  { %3297 = vperm.xlu0 %8052, %v8367_v30   ;;  %18296 = vst [vmem:[#allocation56_spill] sm:$0xff] %v10902_v50  ;;  %v10905_v46 = vadd.f32 %v861_v18, %v10420_v24  ;;  %v865_v56 = vsel %vm801_vm15, 1.0, %v18189_v54  ;;  %vm802_vm4 = vcmp.eq.s32.totalorder %v9739_v12, %v18298_v23  ;;  %5434 = vmatmul.mubr.bf16.gmra.mrb[32].mxu1 %v8106_v53  ;;  %v863_v24 = vsel %vm799_vm1, 1.0, %v18189_v54 }
 0x2f6   :  { %18295 = vst [vmem:[#allocation252_spill] sm:$0xff] %v10885_v33  ;;  %v862_v33 = vsel %vm798_vm0, 1.0, %v18189_v54  ;;  %v868_v41 = vsel %vm804_vm2, 1.0, %v18189_v54  ;;  %v869_v20 = vsel %vm805_vm3, 1.0, %v18189_v54  ;;  %vm803_vm5 = vcmp.eq.s32.totalorder %v9754_v16, %v18298_v23  ;;  %v10932_v18 = vpop.permute.xlu1 %2466  ;;  %5835 = vmatpush1.bf16.msra.mxu1 %v8107_v7  ;;  %5443 = vmatprep.mubr.bf16.mxu1 %v18170_v52 }
 0x2f7   :  { %18297 = vst [vmem:[#allocation57_spill] sm:$0xff] %v10905_v46  ;;  %4140 = vperm.xlu1 %7974, %v10515_v9   ;;  %18299 = vst [vmem:[#allocation58_spill] sm:$0xff] %v10932_v18  ;;  %v10935_v53 = vadd.f32 %v858_v21, %v10376_v5  ;;  %v10938_v30 = vadd.f32 %v859_v57, %v10385_v38  ;;  %v10941_v50 = vadd.f32 %v864_v8, %v10451_v39  ;;  %v8110_v46 = vld [vmem:[#allocation5 + $0x20] ss:$16 sps:$4 sm:$0xff]   ;;  %v18302_v8 = vld [vmem:[#allocation67_spill] sm:$0xff] }
 0x2f8   :  { %vm808_vm6 = vcmp.eq.s32.totalorder %v9739_v12, %v18300_v13  ;;  %v10947_v9 = vadd.f32 %v865_v56, %v10473_v60  ;;  %v10950_v7 = vadd.f32 %v862_v33, %v10423_v22  ;;  %v866_v5 = vsel %vm802_vm4, 1.0, %v18189_v54  ;;  %v8368_v38 = vld [vmem:[%s17552_s0 + $0x50] sm:$0xff]  ;;  %v10961_v39 = vpop.permute.xlu0 %2994  ;;  %5836 = vmatprep.subr.bf16.mxu1 %v8112_v15  ;;  %v8370_v15 = vld [vmem:[%s17552_s0 + $0x60] sm:$0xff] }
 0x2f9   :  { %vm809_vm7 = vcmp.eq.s32.totalorder %v9754_v16, %v18300_v13  ;;  %3303 = vperm.xlu0 %8052, %v8368_v38   ;;  %18301 = vst [vmem:[#allocation59_spill] sm:$0xff] %v10961_v39  ;;  %v10964_v60 = vadd.f32 %v863_v24, %v10426_v44  ;;  %v10967_v22 = vadd.f32 %v868_v41, %v10482_v42  ;;  %v867_v21 = vsel %vm803_vm5, 1.0, %v18189_v54  ;;  %v18303_v44 = vld [vmem:[#allocation68_spill] sm:$0xff]  ;;  %v18305_v41 = vld [vmem:[#allocation69_spill] sm:$0xff] }
 0x2fa   :  { %v10970_v33 = vadd.f32 %v869_v20, %v10488_v26  ;;  %v872_v57 = vsel %vm808_vm6, 1.0, %v18189_v54  ;;  %vm806_vm8 = vcmp.eq.s32.totalorder %v9739_v12, %v18302_v8  ;;  %vm807_vm9 = vcmp.eq.s32.totalorder %v9754_v16, %v18302_v8  ;;  %v10984_v42 = vpop.permute.xlu1 %2472  ;;  %5837 = vmatpush1.bf16.msra.mxu1 %v8110_v46  ;;  %v8113_v26 = vld [vmem:[#allocation2 + $0x48] sm:$0xff]   ;;  %v8116_v56 = vld [vmem:[#allocation5 + $0x44] ss:$16 sps:$4 sm:$0xff]   ;;  %v11000_v46 = vld [vmem:[%s17552_s0 + $0x18] sm:$0xff] }
 0x2fb   :  { %vm812_vm10 = vcmp.eq.s32.totalorder %v9739_v12, %v18303_v44  ;;  %7975 = vset.pattern.permute.xlu1 %v18262_v59  ;;  %18304 = vst [vmem:[#allocation60_spill] sm:$0xff] %v10984_v42  ;;  %v10987_v23 = vadd.f32 %v866_v5, %v10476_v1  ;;  %v873_v24 = vsel %vm809_vm7, 1.0, %v18189_v54  ;;  %vm813_vm11 = vcmp.eq.s32.totalorder %v9754_v16, %v18303_v44  ;;  %v8114_v1 = vld [vmem:[#allocation5 + $0x40] ss:$16 sps:$4 sm:$0xff]   ;;  %v18311_v44 = vld [vmem:[#allocation71_spill] sm:$0xff] }
 0x2fc   :  { %vm810_vm12 = vcmp.eq.s32.totalorder %v9739_v12, %v18305_v41  ;;  %3282 = vperm.xlu1 %7975, %v11000_v46   ;;  %vm811_vm13 = vcmp.eq.s32.totalorder %v9754_v16, %v18305_v41  ;;  %v18306_v20 = vld [vmem:[#allocation70_spill] sm:$0xff]  ;;  %v11012_v13 = vpop.permute.xlu0 %3000  ;;  %5838 = vmatprep.subr.bf16.mxu1 %v8116_v56  ;;  %v11015_v5 = vadd.f32 %v867_v21, %v10479_v63  ;;  %v870_v38 = vsel %vm806_vm8, 1.0, %v18189_v54 }
 0x2fd   :  { %vm816_vm14 = vcmp.eq.s32.totalorder %v9739_v12, %v18306_v20  ;;  %vm817_vm15 = vcmp.eq.s32.totalorder %v9754_v16, %v18306_v20  ;;  %3309 = vperm.xlu0 %8052, %v8370_v15   ;;  %18307 = vst [vmem:[#allocation27_spill] sm:$0xff] %v11012_v13  ;;  %v871_v42 = vsel %vm807_vm9, 1.0, %v18189_v54  ;;  %v876_v15 = vsel %vm812_vm10, 1.0, %v18189_v54  ;;  %5444 = vmatmul.mubr.bf16.gmra.mrb[36].mxu1 %v8113_v26  ;;  %v8117_v26 = vld [vmem:[#allocation5 + $0x60] ss:$16 sps:$4 sm:$0xff]  }
 0x2fe   :  { %v11030_v56 = vadd.f32 %v872_v57, %v10528_v43  ;;  %v11033_v63 = vadd.f32 %v873_v24, %v10539_v40  ;;  %v877_v21 = vsel %vm813_vm11, 1.0, %v18189_v54  ;;  %v874_v8 = vsel %vm810_vm12, 1.0, %v18189_v54  ;;  %v11043_v18 = vpop.permute.xlu1 %2478  ;;  %5839 = vmatpush1.bf16.msra.mxu1 %v8114_v1  ;;  %v8119_v13 = vld [vmem:[#allocation5 + $0x64] ss:$16 sps:$4 sm:$0xff]   ;;  %5453 = vmatprep.mubr.bf16.mxu1 %v18170_v52 }
 0x2ff   :  { %18310 = vst [vmem:[#allocation63_spill] sm:$0xff] %v11043_v18  ;;  %v875_v43 = vsel %vm811_vm13, 1.0, %v18189_v54  ;;  %v880_v40 = vsel %vm816_vm14, 1.0, %v18189_v54  ;;  %v881_v57 = vsel %vm817_vm15, 1.0, %v18189_v54  ;;  %vm814_vm0 = vcmp.eq.s32.totalorder %v9739_v12, %v18311_v44  ;;  %v8371_v18 = vld [vmem:[%s17552_s0 + $0x70] sm:$0xff]  ;;  %5840 = vmatprep.subr.bf16.mxu1 %v8119_v13 }
 0x300   :  { %18308 = vst [vmem:[#allocation61_spill] sm:$0xff] %v11030_v56  ;;  %18309 = vst [vmem:[#allocation62_spill] sm:$0xff] %v11033_v63  ;;  %v18312_v24 = vmov 15   ;;  %v11062_v1 = vadd.f32 %v870_v38, %v10491_v11  ;;  %v11065_v41 = vadd.f32 %v871_v42, %v10498_v48  ;;  %vm815_vm1 = vcmp.eq.s32.totalorder %v9754_v16, %v18311_v44  ;;  %v11073_v20 = vpop.permute.xlu0 %3006  ;;  %v18316_v42 = vld [vmem:[#allocation73_spill] sm:$0xff]  ;;  %v8123_v13 = vld [vmem:[#allocation5 + $0x84] ss:$16 sps:$4 sm:$0xff]  }
 0x301   :  { %7976 = vset.pattern.permute.xlu1 %v18312_v24  ;;  %3315 = vperm.xlu0 %8052, %v8371_v18   ;;  %18313 = vst [vmem:[#allocation64_spill] sm:$0xff] %v11073_v20  ;;  %v11076_v39 = vadd.f32 %v876_v15, %v10565_v0  ;;  %v11079_v11 = vadd.f32 %v877_v21, %v10593_v6  ;;  %v878_v6 = vsel %vm814_vm0, 1.0, %v18189_v54  ;;  %v8120_v0 = vld [vmem:[#allocation2 + $0x50] sm:$0xff]   ;;  %v18321_v21 = vld [vmem:[#allocation77_spill] sm:$0xff] }
 0x302   :  { %4425 = vperm.xlu1 %7976, %v10574_v62   ;;  %v11082_v48 = vadd.f32 %v874_v8, %v10542_v34  ;;  %vm818_vm2 = vcmp.eq.s32.totalorder %v9739_v12, %v18316_v42  ;;  %v11087_v38 = vadd.f32 %v875_v43, %v10549_v4  ;;  %v11090_v18 = vadd.f32 %v880_v40, %v10606_v10  ;;  %v11099_v34 = vpop.permute.xlu1 %2484  ;;  %v18320_v10 = vld [vmem:[#allocation75_spill] sm:$0xff]  ;;  %v18324_v40 = vld [vmem:[#allocation81_spill] sm:$0xff]  ;;  %v18334_v56 = vld [vmem:[#allocation82_spill] sm:$0xff] }
 0x303   :  { %18314 = vst [vmem:[#allocation65_spill] sm:$0xff] %v11076_v39  ;;  %18315 = vst [vmem:[#allocation66_spill] sm:$0xff] %v11079_v11  ;;  %v11093_v20 = vadd.f32 %v881_v57, %v10615_v32  ;;  %5841 = vmatpush1.bf16.msra.mxu1 %v8117_v26  ;;  %v879_v4 = vsel %vm815_vm1, 1.0, %v18189_v54  ;;  %vm819_vm3 = vcmp.eq.s32.totalorder %v9754_v16, %v18316_v42  ;;  %v8121_v32 = vld [vmem:[#allocation5 + $0x80] ss:$16 sps:$4 sm:$0xff]   ;;  %v882_v15 = vsel %vm818_vm2, 1.0, %v18189_v54 }
 0x304   :  { %18317 = vst [vmem:[#allocation67_spill] sm:$0xff] %v11090_v18  ;;  %18319 = vst [vmem:[#allocation69_spill] sm:$0xff] %v11099_v34  ;;  %vm822_vm4 = vcmp.eq.s32.totalorder %v9739_v12, %v18320_v10  ;;  %vm823_vm5 = vcmp.eq.s32.totalorder %v9754_v16, %v18320_v10  ;;  %vm826_vm6 = vcmp.eq.s32.totalorder %v9739_v12, %v18321_v21  ;;  %v18322_v8 = vld [vmem:[#allocation79_spill] sm:$0xff]  ;;  %v8372_v26 = vld [vmem:[%s17552_s0 + $0x80] sm:$0xff]  ;;  %v18323_v43 = vmov 12   ;;  %v11129_v57 = vpop.permute.xlu0 %4428  ;;  %5842 = vmatprep.subr.bf16.mxu1 %v8123_v13 }
 0x305   :  { %18318 = vst [vmem:[#allocation68_spill] sm:$0xff] %v11093_v20  ;;  %vm827_vm7 = vcmp.eq.s32.totalorder %v9754_v16, %v18321_v21  ;;  %vm830_vm8 = vcmp.eq.s32.totalorder %v9739_v12, %v18322_v8  ;;  %3321 = vperm.xlu0 %8052, %v8372_v26   ;;  %vm831_vm9 = vcmp.eq.s32.totalorder %v9754_v16, %v18322_v8  ;;  %18325 = vst [vmem:[#allocation70_spill] sm:$0xff] %v11129_v57  ;;  %v18329_v42 = vld [vmem:[#allocation40_spill] sm:$0xff]  ;;  %v8373_v21 = vld [vmem:[%s17552_s0 + $0x90] sm:$0xff] }
 0x306   :  { %7977 = vset.pattern.permute.xlu1 %v18323_v43  ;;  %vm834_vm10 = vcmp.eq.s32.totalorder %v9739_v12, %v18324_v40  ;;  %vm835_vm11 = vcmp.eq.s32.totalorder %v9754_v16, %v18324_v40  ;;  %5454 = vmatmul.mubr.bf16.gmra.mrb[40].mxu1 %v8120_v0  ;;  %v11132_v44 = vadd.f32 %v878_v6, %v10596_v28  ;;  %v883_v26 = vsel %vm819_vm3, 1.0, %v18189_v54  ;;  %v11146_v57 = vpop.permute.xlu1 %2490  ;;  %v8126_v28 = vld [vmem:[#allocation5 + $0xa4] ss:$16 sps:$4 sm:$0xff]   ;;  %v18327_v6 = vld [vmem:[#allocation39_spill] sm:$0xff]  ;;  %v8124_v13 = vld [vmem:[#allocation5 + $0xa0] ss:$16 sps:$4 sm:$0xff]  }
 0x307   :  { %3567 = vperm.xlu1 %7977, %v10744_v35   ;;  %v886_v34 = vsel %vm822_vm4, 1.0, %v18189_v54  ;;  %v887_v20 = vsel %vm823_vm5, 1.0, %v18189_v54  ;;  %18326 = vst [vmem:[#allocation71_spill] sm:$0xff] %v11146_v57  ;;  %5463 = vmatprep.mubr.bf16.mxu1 %v18170_v52  ;;  %v11150_v0 = vadd.f32 %v879_v4, %v18327_v6  ;;  %v11153_v18 = vadd.f32 %v882_v15, %v18329_v42  ;;  %v18331_v42 = vld [vmem:[#allocation42_spill] sm:$0xff]  ;;  %v18332_v8 = vld [vmem:[#allocation44_spill] sm:$0xff] }
 0x308   :  { %v890_v11 = vsel %vm826_vm6, 1.0, %v18189_v54  ;;  %v891_v10 = vsel %vm827_vm7, 1.0, %v18189_v54  ;;  %5843 = vmatpush1.bf16.msra.mxu1 %v8121_v32  ;;  %v894_v4 = vsel %vm830_vm8, 1.0, %v18189_v54  ;;  %v895_v15 = vsel %vm831_vm9, 1.0, %v18189_v54  ;;  %v11194_v40 = vpop.permute.xlu0 %4434  ;;  %v18336_v43 = vld [vmem:[#allocation244_spill] sm:$0xff] }
 0x309   :  { %18328 = vst [vmem:[#allocation73_spill] sm:$0xff] %v11150_v0  ;;  %18330 = vst [vmem:[#allocation75_spill] sm:$0xff] %v11153_v18  ;;  %v898_v6 = vsel %vm834_vm10, 1.0, %v18189_v54  ;;  %v899_v32 = vsel %vm835_vm11, 1.0, %v18189_v54  ;;  %3327 = vperm.xlu0 %8052, %v8373_v21   ;;  %5844 = vmatprep.subr.bf16.mxu1 %v8126_v28  ;;  %v11183_v57 = vadd.f32 %v883_v26, %v18331_v42  ;;  %v18333_v18 = vld [vmem:[#allocation239_spill] sm:$0xff]  ;;  %v18337_v28 = vld [vmem:[#allocation46_spill] sm:$0xff] }
 0x30a   :  { %v11186_v39 = vadd.f32 %v886_v34, %v18332_v8  ;;  %v11189_v63 = vadd.f32 %v887_v20, %v18333_v18  ;;  %vm1064_vm12 = vcmp.eq.s32.totalorder %v9739_v12, %v18334_v56  ;;  %18335 = vst [vmem:[#allocation77_spill] sm:$0xff] %v11194_v40  ;;  %v11197_v0 = vadd.f32 %v890_v11, %v18336_v43  ;;  %v18338_v34 = vld [vmem:[#allocation84_spill] sm:$0xff]  ;;  %v11206_v20 = vpop.permute.xlu1 %2496  ;;  %v8127_v18 = vld [vmem:[#allocation2 + $0x58] sm:$0xff]   ;;  %v18340_v42 = vld [vmem:[#allocation241_spill] sm:$0xff] }
 0x30b   :  { %3570 = vperm.xlu1 %7977, %v11000_v46   ;;  %v11200_v21 = vadd.f32 %v891_v10, %v18337_v28  ;;  %vm1065_vm13 = vcmp.eq.s32.totalorder %v9754_v16, %v18334_v56  ;;  %vm1070_vm14 = vcmp.eq.s32.totalorder %v9739_v12, %v18338_v34  ;;  %18339 = vst [vmem:[#allocation79_spill] sm:$0xff] %v11206_v20  ;;  %v8130_v26 = vld [vmem:[#allocation5 + $0xc4] ss:$16 sps:$4 sm:$0xff]   ;;  %v8128_v10 = vld [vmem:[#allocation5 + $0xc0] ss:$16 sps:$4 sm:$0xff]   ;;  %v1128_v28 = vsel %vm1064_vm12, 1.0, %v18189_v54 }
 0x30c   :  { %v11209_v8 = vadd.f32 %v894_v4, %v18340_v42  ;;  %v11212_v40 = vadd.f32 %v895_v15, %v10695_v58  ;;  %v11215_v11 = vadd.f32 %v898_v6, %v10698_v3  ;;  %v11218_v43 = vadd.f32 %v899_v32, %v10705_v19  ;;  %5845 = vmatpush1.bf16.msra.mxu1 %v8124_v13  ;;  %v18341_v4 = vld [vmem:[#allocation85_spill] sm:$0xff]  ;;  %v8374_v19 = vld [vmem:[%s17552_s0 + $0xa0] sm:$0xff]  ;;  %v18342_v13 = vld [vmem:[#allocation86_spill] sm:$0xff]  ;;  %v11246_v15 = vpop.permute.xlu0 %4440 }
 0x30d   :  { %vm1071_vm15 = vcmp.eq.s32.totalorder %v9754_v16, %v18338_v34  ;;  %vm1066_vm0 = vcmp.eq.s32.totalorder %v9739_v12, %v18341_v4  ;;  %vm1067_vm1 = vcmp.eq.s32.totalorder %v9754_v16, %v18341_v4  ;;  %3333 = vperm.xlu0 %8052, %v8374_v19   ;;  %5846 = vmatprep.subr.bf16.mxu1 %v8130_v26  ;;  %v1129_v3 = vsel %vm1065_vm13, 1.0, %v18189_v54  ;;  %v18344_v6 = vld [vmem:[#allocation87_spill] sm:$0xff]  ;;  %v18345_v56 = vld [vmem:[#allocation88_spill] sm:$0xff] }
 0x30e   :  { %v1134_v58 = vsel %vm1070_vm14, 1.0, %v18189_v54  ;;  %vm1074_vm2 = vcmp.eq.s32.totalorder %v9739_v12, %v18342_v13  ;;  %vm1075_vm3 = vcmp.eq.s32.totalorder %v9754_v16, %v18342_v13  ;;  %18343 = vst [vmem:[#allocation81_spill] sm:$0xff] %v11246_v15  ;;  %5464 = vmatmul.mubr.bf16.gmra.mrb[44].mxu1 %v8127_v18  ;;  %vm1068_vm4 = vcmp.eq.s32.totalorder %v9739_v12, %v18344_v6  ;;  %v11255_v32 = vpop.permute.xlu1 %2502  ;;  %v8133_v26 = vld [vmem:[#allocation5 + $0xe4] ss:$16 sps:$4 sm:$0xff]   ;;  %v8131_v20 = vld [vmem:[#allocation5 + $0xe0] ss:$16 sps:$4 sm:$0xff]  }
 0x30f   :  { %7978 = vset.pattern.permute.xlu1 %v18273_v27  ;;  %vm1069_vm5 = vcmp.eq.s32.totalorder %v9754_v16, %v18344_v6  ;;  %vm1078_vm6 = vcmp.eq.s32.totalorder %v9739_v12, %v18345_v56  ;;  %18346 = vst [vmem:[#allocation39_spill] sm:$0xff] %v11255_v32  ;;  %5473 = vmatprep.mubr.bf16.mxu1 %v18170_v52  ;;  %v1135_v18 = vsel %vm1071_vm15, 1.0, %v18189_v54  ;;  %v1130_v19 = vsel %vm1066_vm0, 1.0, %v18189_v54  ;;  %v18352_v6 = vld [vmem:[#allocation89_spill] sm:$0xff] }
 0x310   :  { %3858 = vperm.xlu1 %7978, %v11000_v46   ;;  %v11259_v42 = vadd.f32 %v1128_v28, %v10708_v31  ;;  %v1131_v32 = vsel %vm1067_vm1, 1.0, %v18189_v54  ;;  %5847 = vmatpush1.bf16.msra.mxu1 %v8128_v10  ;;  %v11274_v31 = vadd.f32 %v1129_v3, %v10720_v37  ;;  %v11277_v28 = vadd.f32 %v1134_v58, %v10787_v55  ;;  %v8375_v10 = vld [vmem:[%s17552_s0 + $0xb0] sm:$0xff]  ;;  %v11304_v3 = vpop.permute.xlu0 %4446 }
 0x311   :  { %v1138_v34 = vsel %vm1074_vm2, 1.0, %v18189_v54  ;;  %v1139_v15 = vsel %vm1075_vm3, 1.0, %v18189_v54  ;;  %3339 = vperm.xlu0 %8052, %v8375_v10   ;;  %5848 = vmatprep.subr.bf16.mxu1 %v8133_v26  ;;  %v1132_v37 = vsel %vm1068_vm4, 1.0, %v18189_v54  ;;  %v1133_v55 = vsel %vm1069_vm5, 1.0, %v18189_v54  ;;  %18349 = vst [vmem:[#allocation44_spill] sm:$0xff] %v11304_v3  ;;  %v18351_v26 = vld [vmem:[#allocation246_spill] sm:$0xff] }
 0x312   :  { %18347 = vst [vmem:[#allocation40_spill] sm:$0xff] %v11274_v31  ;;  %18348 = vst [vmem:[#allocation42_spill] sm:$0xff] %v11277_v28  ;;  %vm1079_vm7 = vcmp.eq.s32.totalorder %v9754_v16, %v18345_v56  ;;  %v1142_v4 = vsel %vm1078_vm6, 1.0, %v18189_v54  ;;  %v11307_v58 = vadd.f32 %v1135_v18, %v10816_v49  ;;  %v11310_v13 = vadd.f32 %v1130_v19, %v10723_v2  ;;  %v8134_v28 = vld [vmem:[%s17555_s3 + $0x4] ss:$16 sps:$4 sm:$0xff]   ;;  %v18362_v56 = vld [vmem:[#allocation91_spill] sm:$0xff] }
 0x313   :  { %v11313_v10 = vadd.f32 %v1131_v32, %v18351_v26  ;;  %vm1072_vm8 = vcmp.eq.s32.totalorder %v9739_v12, %v18352_v6  ;;  %v8136_v31 = vld [vmem:[#allocation2 + $0x60] sm:$0xff]   ;;  %v11322_v49 = vadd.f32 %v1138_v34, %v10830_v36  ;;  %v11325_v2 = vadd.f32 %v1139_v15, %v10839_v29  ;;  %v11330_v32 = vpop.permute.xlu1 %2700  ;;  %v18356_v26 = vld [vmem:[#allocation247_spill] sm:$0xff]  ;;  %5128 = vmatprep.subr.bf16.mxu0 %v8134_v28 }
 0x314   :  { %18350 = vst [vmem:[#allocation239_spill] sm:$0xff] %v11307_v58  ;;  %7979 = vset.pattern.permute.xlu1 %v18224_v45  ;;  %v8139_v3 = vld [vmem:[#allocation5 + $0x104] ss:$16 sps:$4 sm:$0xff]   ;;  %vm1073_vm9 = vcmp.eq.s32.totalorder %v9754_v16, %v18352_v6  ;;  %18355 = vst [vmem:[#allocation46_spill] sm:$0xff] %v11330_v32  ;;  %5849 = vmatpush1.bf16.msra.mxu1 %v8131_v20  ;;  %v8137_v18 = vld [vmem:[#allocation5 + $0x100] ss:$16 sps:$4 sm:$0xff]   ;;  %v11336_v58 = vadd.f32 %v1132_v37, %v18356_v26 }
 0x315   :  { %18353 = vst [vmem:[#allocation82_spill] sm:$0xff] %v11322_v49  ;;  %18354 = vst [vmem:[#allocation244_spill] sm:$0xff] %v11325_v2  ;;  %2997 = vperm.xlu1 %7979, %v10796_v61   ;;  %v8140_v19 = vld [vmem:[%s17555_s3] ss:$16 sps:$4 sm:$0xff]   ;;  %v1143_v29 = vsel %vm1079_vm7, 1.0, %v18189_v54  ;;  %v11346_v15 = vadd.f32 %v1142_v4, %v10865_v17  ;;  %v1136_v37 = vsel %vm1072_vm8, 1.0, %v18189_v54  ;;  %vm1076_vm12 = vcmp.eq.s32.totalorder %v9739_v12, %v18362_v56  ;;  %v11361_v17 = vpop.permute.xlu0 %4452 }
 0x316   :  { %18357 = vst [vmem:[#allocation84_spill] sm:$0xff] %v11336_v58  ;;  %v18358_v36 = vld [vmem:[#allocation52_spill] sm:$0xff]  ;;  %18363 = vst [vmem:[#allocation86_spill] sm:$0xff] %v11361_v17  ;;  %5474 = vmatmul.mubr.bf16.gmra.mrb[48].mxu1 %v8136_v31  ;;  %5850 = vmatprep.subr.bf16.mxu1 %v8139_v3  ;;  %v1137_v4 = vsel %vm1073_vm9, 1.0, %v18189_v54  ;;  %vm1077_vm13 = vcmp.eq.s32.totalorder %v9754_v16, %v18362_v56  ;;  %v11377_v3 = vadd.f32 %v1143_v29, %v10876_v14  ;;  %v18367_v6 = vmov 14   ;;  %v18369_v32 = vld [vmem:[#allocation249_spill] sm:$0xff] }
 0x317   :  { %v11339_v34 = vadd.f32 %v1133_v55, %v18358_v36  ;;  %18360 = vst [vmem:[#allocation85_spill] sm:$0xff] %v11346_v15  ;;  %v8376_v20 = vld [vmem:[%s17552_s0 + $0xc0] sm:$0xff]  ;;  %v18361_v55 = vld [vmem:[#allocation90_spill] sm:$0xff]  ;;  %5129 = vmatpush1.bf16.msra.mxu0 %v8140_v19  ;;  %v18366_v36 = vld [vmem:[#allocation93_spill] sm:$0xff]  ;;  %v11390_v15 = vadd.f32 %v1136_v37, %v18369_v32  ;;  %5483 = vmatprep.mubr.bf16.mxu1 %v18170_v52 }
 0x318   :  { %3345 = vperm.xlu0 %8052, %v8376_v20   ;;  %vm1082_vm10 = vcmp.eq.s32.totalorder %v9739_v12, %v18361_v55  ;;  %vm1083_vm11 = vcmp.eq.s32.totalorder %v9754_v16, %v18361_v55  ;;  %v8141_v28 = vld [vmem:[%s17555_s3 + $0x24] ss:$16 sps:$4 sm:$0xff]   ;;  %18365 = vst [vmem:[#allocation87_spill] sm:$0xff] %v11377_v3  ;;  %vm1080_vm0 = vcmp.eq.s32.totalorder %v9739_v12, %v18366_v36  ;;  %v11384_v20 = vpop.permute.xlu1 %2703  ;;  %v8143_v17 = vld [vmem:[#allocation5 + $0x120] ss:$16 sps:$4 sm:$0xff]   ;;  %v1141_v55 = vsel %vm1077_vm13, 1.0, %v18189_v54 }
 0x319   :  { %18359 = vst [vmem:[#allocation241_spill] sm:$0xff] %v11339_v34  ;;  %v18364_v26 = vld [vmem:[#allocation92_spill] sm:$0xff]  ;;  %vm1081_vm1 = vcmp.eq.s32.totalorder %v9754_v16, %v18366_v36  ;;  %7980 = vset.pattern.permute.xlu1 %v18367_v6  ;;  %18368 = vst [vmem:[#allocation88_spill] sm:$0xff] %v11384_v20  ;;  %5851 = vmatpush1.bf16.msra.mxu1 %v8137_v18  ;;  %v1146_v14 = vsel %vm1082_vm10, 1.0, %v18189_v54  ;;  %v1147_v29 = vsel %vm1083_vm11, 1.0, %v18189_v54  ;;  %v1140_v18 = vsel %vm1076_vm12, 1.0, %v18189_v54  ;;  %v11423_v2 = vpop.permute.xlu0 %4458 }
 0x31a   :  { %vm1086_vm14 = vcmp.eq.s32.totalorder %v9739_v12, %v18364_v26  ;;  %vm1087_vm15 = vcmp.eq.s32.totalorder %v9754_v16, %v18364_v26  ;;  %v8145_v31 = vld [vmem:[#allocation5 + $0x124] ss:$16 sps:$4 sm:$0xff]   ;;  %v8146_v19 = vld [vmem:[%s17555_s3 + $0x20] ss:$16 sps:$4 sm:$0xff]   ;;  %4143 = vperm.xlu1 %7980, %v10744_v35   ;;  %18371 = vst [vmem:[#allocation246_spill] sm:$0xff] %v11423_v2  ;;  %5130 = vmatprep.subr.bf16.mxu0 %v8141_v28  ;;  %v1144_v56 = vsel %vm1080_vm0, 1.0, %v18189_v54 }
 0x31b   :  { %v8377_v32 = vld [vmem:[%s17552_s0 + $0xd0] sm:$0xff]  ;;  %v18370_v37 = vld [vmem:[#allocation20_spill] sm:$0xff]  ;;  %v1150_v3 = vsel %vm1086_vm14, 1.0, %v18189_v54  ;;  %5852 = vmatprep.subr.bf16.mxu1 %v8145_v31  ;;  %5131 = vmatpush1.bf16.msra.mxu0 %v8146_v19  ;;  %v8149_v26 = vld [vmem:[#allocation2 + $0x68] sm:$0xff]   ;;  %v11441_v31 = vadd.f32 %v1146_v14, %v10935_v53  ;;  %v11444_v2 = vadd.f32 %v1147_v29, %v10938_v30  ;;  %v11447_v36 = vadd.f32 %v1140_v18, %v10819_v25 }
 0x31c   :  { %3351 = vperm.xlu0 %8052, %v8377_v32   ;;  %v11409_v20 = vadd.f32 %v1137_v4, %v18370_v37  ;;  %v1151_v32 = vsel %vm1087_vm15, 1.0, %v18189_v54  ;;  %v1145_v4 = vsel %vm1081_vm1, 1.0, %v18189_v54  ;;  %v18372_v37 = vld [vmem:[#allocation94_spill] sm:$0xff]  ;;  %v11449_v49 = vpop.permute.xlu1 %2709  ;;  %v11456_v53 = vadd.f32 %v1141_v55, %v10827_v47  ;;  %v18376_v14 = vld [vmem:[#allocation12_spill] sm:$0xff] }
 0x31d   :  { %vm1090_vm2 = vcmp.eq.s32.totalorder %v9739_v12, %v18372_v37  ;;  %vm1091_vm3 = vcmp.eq.s32.totalorder %v9754_v16, %v18372_v37  ;;  %v8147_v28 = vld [vmem:[%s17555_s3 + $0x44] ss:$16 sps:$4 sm:$0xff]   ;;  %18373 = vst [vmem:[#allocation89_spill] sm:$0xff] %v11449_v49  ;;  %5853 = vmatpush1.bf16.msra.mxu1 %v8143_v17  ;;  %v8150_v19 = vld [vmem:[#allocation5 + $0x140] ss:$16 sps:$4 sm:$0xff]   ;;  %v11459_v30 = vadd.f32 %v1150_v3, %v10950_v7  ;;  %v11483_v3 = vpop.permute.xlu0 %4464 }
 0x31e   :  { %v8152_v34 = vld [vmem:[#allocation5 + $0x144] ss:$16 sps:$4 sm:$0xff]   ;;  %v8153_v58 = vld [vmem:[%s17555_s3 + $0x40] ss:$16 sps:$4 sm:$0xff]   ;;  %v11462_v25 = vadd.f32 %v1151_v32, %v10964_v60  ;;  %4146 = vperm.xlu1 %7980, %v11000_v46   ;;  %vm244_vm4 = vcmp.eq.s32.totalorder %v9739_v12, %v18376_v14  ;;  %v11471_v29 = vadd.f32 %v1144_v56, %v10842_v51  ;;  %v1154_v47 = vsel %vm1090_vm2, 1.0, %v18189_v54  ;;  %v18377_v60 = vld [vmem:[#allocation95_spill] sm:$0xff]  ;;  %5132 = vmatprep.subr.bf16.mxu0 %v8147_v28 }
 0x31f   :  { %18374 = vst [vmem:[#allocation247_spill] sm:$0xff] %v11459_v30  ;;  %v8378_v17 = vld [vmem:[%s17552_s0 + $0xe0] sm:$0xff]  ;;  %v1155_v7 = vsel %vm1091_vm3, 1.0, %v18189_v54  ;;  %vm1084_vm5 = vcmp.eq.s32.totalorder %v9739_v12, %v18377_v60  ;;  %18378 = vst [vmem:[#allocation90_spill] sm:$0xff] %v11483_v3  ;;  %5484 = vmatmul.mubr.bf16.gmra.mrb[52].mxu1 %v8149_v26  ;;  %v18379_v18 = vld [vmem:[#allocation22_spill] sm:$0xff]  ;;  %vm1085_vm6 = vcmp.eq.s32.totalorder %v9754_v16, %v18377_v60  ;;  %5854 = vmatprep.subr.bf16.mxu1 %v8152_v34 }
 0x320   :  { %18375 = vst [vmem:[#allocation52_spill] sm:$0xff] %v11462_v25  ;;  %3357 = vperm.xlu0 %8052, %v8378_v17   ;;  %v11486_v51 = vadd.f32 %v1145_v4, %v18379_v18  ;;  %v18380_v55 = vld [vmem:[#allocation96_spill] sm:$0xff]  ;;  %v18381_v56 = vld [vmem:[#allocation97_spill] sm:$0xff]  ;;  %v18382_v4 = vld [vmem:[#allocation98_spill] sm:$0xff]  ;;  %v11503_v37 = vpop.permute.xlu1 %2715  ;;  %5133 = vmatpush1.bf16.msra.mxu0 %v8153_v58  ;;  %v11509_v26 = vadd.f32 %v1154_v47, %v10987_v23  ;;  %v1148_v18 = vsel %vm1084_vm5, 1.0, %v18189_v54  ;;  %v18386_v58 = vmov 9  }
 0x321   :  { %vm1094_vm7 = vcmp.eq.s32.totalorder %v9739_v12, %v18380_v55  ;;  %vm1095_vm8 = vcmp.eq.s32.totalorder %v9754_v16, %v18380_v55  ;;  %v8154_v32 = vld [vmem:[%s17555_s3 + $0x64] ss:$16 sps:$4 sm:$0xff]   ;;  %vm1088_vm9 = vcmp.eq.s32.totalorder %v9739_v12, %v18381_v56  ;;  %vm1089_vm10 = vcmp.eq.s32.totalorder %v9754_v16, %v18381_v56  ;;  %18383 = vst [vmem:[#allocation91_spill] sm:$0xff] %v11503_v37  ;;  %v8159_v34 = vld [vmem:[%s17555_s3 + $0x60] ss:$16 sps:$4 sm:$0xff]   ;;  %v11540_v60 = vld [vmem:[%s17552_s0 + $0x28] sm:$0xff] }
 0x322   :  { %vm1098_vm11 = vcmp.eq.s32.totalorder %v9739_v12, %v18382_v4  ;;  %5855 = vmatpush1.bf16.msra.mxu1 %v8150_v19  ;;  %v8158_v28 = vld [vmem:[#allocation5 + $0x164] ss:$16 sps:$4 sm:$0xff]   ;;  %18384 = vst [vmem:[#allocation92_spill] sm:$0xff] %v11509_v26  ;;  %v11512_v17 = vadd.f32 %v1155_v7, %v11015_v5  ;;  %vm1099_vm12 = vcmp.eq.s32.totalorder %v9754_v16, %v18382_v4  ;;  %v8156_v19 = vld [vmem:[#allocation5 + $0x160] ss:$16 sps:$4 sm:$0xff]   ;;  %v1149_v23 = vsel %vm1085_vm6, 1.0, %v18189_v54 }
 0x323   :  { %7981 = vset.pattern.permute.xlu1 %v18262_v59  ;;  %v1158_v5 = vsel %vm1094_vm7, 1.0, %v18189_v54  ;;  %v1159_v47 = vsel %vm1095_vm8, 1.0, %v18189_v54  ;;  %v18387_v7 = vld [vmem:[#allocation99_spill] sm:$0xff]  ;;  %v1152_v55 = vsel %vm1088_vm9, 1.0, %v18189_v54  ;;  %v1153_v3 = vsel %vm1089_vm10, 1.0, %v18189_v54  ;;  %5134 = vmatprep.subr.bf16.mxu0 %v8154_v32  ;;  %v18390_v25 = vld [vmem:[#allocation100_spill] sm:$0xff] }
 0x324   :  { %18385 = vst [vmem:[#allocation93_spill] sm:$0xff] %v11512_v17  ;;  %8056 = vset.pattern.permute.xlu0 %v18386_v58  ;;  %vm1092_vm13 = vcmp.eq.s32.totalorder %v9739_v12, %v18387_v7  ;;  %3288 = vperm.xlu1 %7981, %v11540_v60   ;;  %v11543_v58 = vpop.permute.xlu0 %4470  ;;  %vm1093_vm14 = vcmp.eq.s32.totalorder %v9754_v16, %v18387_v7  ;;  %v1163_v26 = vsel %vm1099_vm12, 1.0, %v18189_v54  ;;  %v11570_v56 = vpop.permute.xlu1 %2721  ;;  %v8160_v32 = vld [vmem:[%s17555_s3 + $0x84] ss:$16 sps:$4 sm:$0xff]  }
 0x325   :  { %2697 = vperm.xlu0 %8056, %v10574_v62   ;;  %18388 = vst [vmem:[#allocation249_spill] sm:$0xff] %v11543_v58  ;;  %v1162_v62 = vsel %vm1098_vm11, 1.0, %v18189_v54  ;;  %v18389_v58 = vld [vmem:[#allocation252_spill] sm:$0xff]  ;;  %vm1102_vm15 = vcmp.eq.s32.totalorder %v9739_v12, %v18390_v25  ;;  %vm1103_vm0 = vcmp.eq.s32.totalorder %v9754_v16, %v18390_v25  ;;  %18391 = vst [vmem:[#allocation20_spill] sm:$0xff] %v11570_v56  ;;  %5856 = vmatprep.subr.bf16.mxu1 %v8158_v28 }
 0x326   :  { %v11560_v17 = vadd.f32 %v1148_v18, %v18389_v58  ;;  %5135 = vmatpush1.bf16.msra.mxu0 %v8159_v34  ;;  %v8162_v18 = vld [vmem:[#allocation2 + $0x70] sm:$0xff]   ;;  %v18392_v58 = vld [vmem:[#allocation57_spill] sm:$0xff]  ;;  %v11579_v4 = vadd.f32 %v1158_v5, %v11062_v1  ;;  %v11582_v37 = vadd.f32 %v1159_v47, %v11065_v41  ;;  %v1156_v28 = vsel %vm1092_vm13, 1.0, %v18189_v54  ;;  %5857 = vmatpush1.bf16.msra.mxu1 %v8156_v19 }
 0x327   :  { %v11576_v30 = vadd.f32 %v1149_v23, %v18392_v58  ;;  %5493 = vmatprep.mubr.bf16.mxu1 %v18170_v52  ;;  %v8165_v34 = vld [vmem:[#allocation5 + $0x184] ss:$16 sps:$4 sm:$0xff]   ;;  %v8166_v23 = vld [vmem:[%s17555_s3 + $0x80] ss:$16 sps:$4 sm:$0xff]   ;;  %vm245_vm1 = vcmp.eq.s32.totalorder %v9754_v16, %v18376_v14  ;;  %v11595_v1 = vadd.f32 %v1152_v55, %v10941_v50  ;;  %v11598_v41 = vadd.f32 %v1153_v3, %v10947_v9  ;;  %v18397_v50 = vld [vmem:[#allocation13_spill] sm:$0xff] }
 0x328   :  { %18393 = vst [vmem:[#allocation94_spill] sm:$0xff] %v11579_v4  ;;  %18394 = vst [vmem:[#allocation12_spill] sm:$0xff] %v11582_v37  ;;  %v11601_v5 = vadd.f32 %v1162_v62, %v11082_v48  ;;  %v1157_v19 = vsel %vm1093_vm14, 1.0, %v18189_v54  ;;  %7982 = vset.pattern.permute.xlu1 %v18312_v24  ;;  %v11609_v47 = vpop.permute.xlu0 %4476  ;;  %v8163_v58 = vld [vmem:[#allocation5 + $0x180] ss:$16 sps:$4 sm:$0xff]   ;;  %vm248_vm2 = vcmp.eq.s32.totalorder %v9739_v12, %v18397_v50  ;;  %v1166_v48 = vsel %vm1102_vm15, 1.0, %v18189_v54 }
 0x329   :  { %2706 = vperm.xlu0 %8056, %v11000_v46   ;;  %18396 = vst [vmem:[#allocation22_spill] sm:$0xff] %v11609_v47  ;;  %v11614_v9 = vadd.f32 %v1163_v26, %v11087_v38  ;;  %v1167_v46 = vsel %vm1103_vm0, 1.0, %v18189_v54  ;;  %v18399_v3 = vld [vmem:[#allocation101_spill] sm:$0xff]  ;;  %4431 = vperm.xlu1 %7982, %v10744_v35   ;;  %v11628_v7 = vadd.f32 %v1156_v28, %v10967_v22  ;;  %v18400_v38 = vld [vmem:[#allocation102_spill] sm:$0xff]  ;;  %v11634_v26 = vpop.permute.xlu1 %2727  ;;  %v11643_v35 = vsel %vm244_vm4, 1.0, %v18189_v54  ;;  %v18403_v62 = vld [vmem:[#allocation103_spill] sm:$0xff] }
 0x32a   :  { %18395 = vst [vmem:[#allocation95_spill] sm:$0xff] %v11601_v5  ;;  %vm1096_vm3 = vcmp.eq.s32.totalorder %v9739_v12, %v18399_v3  ;;  %vm1097_vm5 = vcmp.eq.s32.totalorder %v9754_v16, %v18399_v3  ;;  %vm1106_vm6 = vcmp.eq.s32.totalorder %v9739_v12, %v18400_v38  ;;  %18401 = vst [vmem:[#allocation97_spill] sm:$0xff] %v11634_v26  ;;  %5136 = vmatprep.subr.bf16.mxu0 %v8160_v32  ;;  %v8167_v25 = vld [vmem:[%s17555_s3 + $0xa4] ss:$16 sps:$4 sm:$0xff]   ;;  %v11730_v5 = vld [vmem:[%s17552_s0 + $0x38] sm:$0xff] }
 0x32b   :  { %18398 = vst [vmem:[#allocation96_spill] sm:$0xff] %v11614_v9  ;;  %5494 = vmatmul.mubr.bf16.gmra.mrb[56].mxu1 %v8162_v18  ;;  %v8171_v55 = vld [vmem:[#allocation5 + $0x1a4] ss:$16 sps:$4 sm:$0xff]   ;;  %18402 = vst [vmem:[#allocation98_spill] sm:$0xff] %v11643_v35  ;;  %v11646_v22 = vadd.f32 %v1157_v19, %v10970_v33  ;;  %vm1107_vm7 = vcmp.eq.s32.totalorder %v9754_v16, %v18400_v38  ;;  %vm1100_vm8 = vcmp.eq.s32.totalorder %v9739_v12, %v18403_v62  ;;  %v18405_v18 = vld [vmem:[#allocation73_spill] sm:$0xff] }
 0x32c   :  { %5858 = vmatprep.subr.bf16.mxu1 %v8165_v34  ;;  %5137 = vmatpush1.bf16.msra.mxu0 %v8166_v23  ;;  %v11653_v32 = vadd.f32 %v1166_v48, %v11132_v44  ;;  %v11656_v28 = vadd.f32 %v1167_v46, %v18405_v18  ;;  %v1160_v33 = vsel %vm1096_vm3, 1.0, %v18189_v54  ;;  %vm1101_vm4 = vcmp.eq.s32.totalorder %v9754_v16, %v18403_v62  ;;  %v8169_v19 = vld [vmem:[#allocation5 + $0x1a0] ss:$16 sps:$4 sm:$0xff]   ;;  %v11681_v46 = vpop.permute.xlu0 %3849  ;;  %v18410_v35 = vld [vmem:[#allocation105_spill] sm:$0xff] }
 0x32d   :  { %2712 = vperm.xlu0 %8056, %v11540_v60   ;;  %5859 = vmatpush1.bf16.msra.mxu1 %v8163_v58  ;;  %v8172_v44 = vld [vmem:[%s17555_s3 + $0xa0] ss:$16 sps:$4 sm:$0xff]   ;;  %v1161_v34 = vsel %vm1097_vm5, 1.0, %v18189_v54  ;;  %v1170_v23 = vsel %vm1106_vm6, 1.0, %v18189_v54  ;;  %v18408_v58 = vmov 12   ;;  %18409 = vst [vmem:[#allocation100_spill] sm:$0xff] %v11681_v46  ;;  %vm1104_vm11 = vcmp.eq.s32.totalorder %v9739_v12, %v18410_v35 }
 0x32e   :  { %18404 = vst [vmem:[#allocation99_spill] sm:$0xff] %v11653_v32  ;;  %18406 = vst [vmem:[#allocation252_spill] sm:$0xff] %v11656_v28  ;;  %v18407_v48 = vld [vmem:[#allocation104_spill] sm:$0xff]  ;;  %7983 = vset.pattern.permute.xlu1 %v18408_v58  ;;  %5138 = vmatprep.subr.bf16.mxu0 %v8167_v25  ;;  %v1171_v3 = vsel %vm1107_vm7, 1.0, %v18189_v54  ;;  %v1164_v18 = vsel %vm1100_vm8, 1.0, %v18189_v54  ;;  %vm1105_vm12 = vcmp.eq.s32.totalorder %v9754_v16, %v18410_v35  ;;  %v11696_v28 = vpop.permute.xlu1 %2733  ;;  %v18412_v25 = vld [vmem:[#allocation61_spill] sm:$0xff] }
 0x32f   :  { %vm1110_vm9 = vcmp.eq.s32.totalorder %v9739_v12, %v18407_v48  ;;  %vm1111_vm10 = vcmp.eq.s32.totalorder %v9754_v16, %v18407_v48  ;;  %3573 = vperm.xlu1 %7983, %v10796_v61   ;;  %18411 = vst [vmem:[#allocation57_spill] sm:$0xff] %v11696_v28  ;;  %5860 = vmatprep.subr.bf16.mxu1 %v8171_v55  ;;  %v1165_v38 = vsel %vm1101_vm4, 1.0, %v18189_v54  ;;  %v18414_v32 = vld [vmem:[#allocation106_spill] sm:$0xff]  ;;  %v8175_v55 = vld [vmem:[#allocation2 + $0x78] sm:$0xff]   ;;  %v1168_v48 = vsel %vm1104_vm11, 1.0, %v18189_v54  ;;  %v8383_v26 = vld [vmem:[#allocation2] sm:$0xff]  }
 0x330   :  { %v11699_v47 = vadd.f32 %v1160_v33, %v18412_v25  ;;  %vm1114_vm13 = vcmp.eq.s32.totalorder %v9739_v12, %v18414_v32  ;;  %vm1115_vm14 = vcmp.eq.s32.totalorder %v9754_v16, %v18414_v32  ;;  %5139 = vmatpush1.bf16.msra.mxu0 %v8172_v44  ;;  %5503 = vmatprep.mubr.bf16.mxu1 %v18170_v52  ;;  %v8173_v61 = vld [vmem:[%s17555_s3 + $0xc4] ss:$16 sps:$4 sm:$0xff]   ;;  %v18417_v28 = vld [vmem:[#allocation75_spill] sm:$0xff]  ;;  %v1174_v9 = vsel %vm1110_vm9, 1.0, %v18189_v54  ;;  %v11749_v37 = vpop.permute.xlu0 %3855 }
 0x331   :  { %v18415_v33 = vld [vmem:[#allocation62_spill] sm:$0xff]  ;;  %v11717_v62 = vadd.f32 %v1170_v23, %v18417_v28  ;;  %v1175_v44 = vsel %vm1111_vm10, 1.0, %v18189_v54  ;;  %2718 = vperm.xlu0 %8056, %v11730_v5   ;;  %5861 = vmatpush1.bf16.msra.mxu1 %v8169_v19  ;;  %vm249_vm15 = vcmp.eq.s32.totalorder %v9754_v16, %v18397_v50  ;;  %v11736_v23 = vadd.f32 %v1171_v3, %v11183_v57 }
 0x332   :  { %18413 = vst [vmem:[#allocation13_spill] sm:$0xff] %v11699_v47  ;;  %v11714_v25 = vadd.f32 %v1161_v34, %v18415_v33  ;;  %v8176_v28 = vld [vmem:[#allocation5 + $0x1c0] ss:$16 sps:$4 sm:$0xff]   ;;  %v8178_v34 = vld [vmem:[#allocation5 + $0x1c4] ss:$16 sps:$4 sm:$0xff]   ;;  %v18420_v33 = vld [vmem:[#allocation65_spill] sm:$0xff]  ;;  %5140 = vmatprep.subr.bf16.mxu0 %v8173_v61  ;;  %v11768_v61 = vpop.permute.xlu1 %2739  ;;  %v11780_v32 = vadd.f32 %v1175_v44, %v11189_v63 }
 0x333   :  { %18418 = vst [vmem:[#allocation102_spill] sm:$0xff] %v11717_v62  ;;  %18419 = vst [vmem:[#allocation103_spill] sm:$0xff] %v11736_v23  ;;  %v11739_v62 = vadd.f32 %v1164_v18, %v18420_v33  ;;  %v1169_v19 = vsel %vm1105_vm12, 1.0, %v18189_v54  ;;  %v8179_v57 = vld [vmem:[%s17555_s3 + $0xc0] ss:$16 sps:$4 sm:$0xff]   ;;  %v1178_v33 = vsel %vm1114_vm13, 1.0, %v18189_v54  ;;  %3576 = vperm.xlu1 %7983, %v11540_v60   ;;  %5504 = vmatmul.mubr.bf16.gmra.mrb[60].mxu1 %v8175_v55 }
 0x334   :  { %18416 = vst [vmem:[#allocation101_spill] sm:$0xff] %v11714_v25  ;;  %18422 = vst [vmem:[#allocation104_spill] sm:$0xff] %v11749_v37  ;;  %v18423_v3 = vld [vmem:[#allocation66_spill] sm:$0xff]  ;;  %v1179_v35 = vsel %vm1115_vm14, 1.0, %v18189_v54  ;;  %v18425_v23 = vld [vmem:[#allocation108_spill] sm:$0xff]  ;;  %5862 = vmatprep.subr.bf16.mxu1 %v8178_v34  ;;  %5141 = vmatpush1.bf16.msra.mxu0 %v8179_v57  ;;  %v11791_v14 = vsel %vm248_vm2, 1.0, %v18189_v54 }
 0x335   :  { %18421 = vst [vmem:[#allocation73_spill] sm:$0xff] %v11739_v62  ;;  %v11755_v18 = vadd.f32 %v1165_v38, %v18423_v3  ;;  %vm1118_vm0 = vcmp.eq.s32.totalorder %v9739_v12, %v18425_v23  ;;  %18426 = vst [vmem:[#allocation61_spill] sm:$0xff] %v11768_v61  ;;  %v11774_v38 = vsel %vm245_vm1, 1.0, %v18189_v54  ;;  %v11777_v3 = vadd.f32 %v1174_v9, %v11186_v39  ;;  %v8180_v55 = vld [vmem:[%s17555_s3 + $0xe4] ss:$16 sps:$4 sm:$0xff]   ;;  %v18429_v39 = vld [vmem:[#allocation67_spill] sm:$0xff] }
 0x336   :  { %18427 = vst [vmem:[#allocation106_spill] sm:$0xff] %v11774_v38  ;;  %vm1119_vm3 = vcmp.eq.s32.totalorder %v9754_v16, %v18425_v23  ;;  %v8184_v61 = vld [vmem:[#allocation5 + $0x1e4] ss:$16 sps:$4 sm:$0xff]   ;;  %18428 = vst [vmem:[#allocation62_spill] sm:$0xff] %v11791_v14  ;;  %v11794_v9 = vadd.f32 %v1168_v48, %v18429_v39  ;;  %v11804_v34 = vld [vmem:[%s17552_s0 + $0x48] sm:$0xff]  ;;  %5863 = vmatpush1.bf16.msra.mxu1 %v8176_v28  ;;  %v11811_v39 = vadd.f32 %v1178_v33, %v11197_v0  ;;  %v11822_v28 = vpop.permute.xlu0 %3861 }
 0x337   :  { %18424 = vst [vmem:[#allocation105_spill] sm:$0xff] %v11755_v18  ;;  %v18431_v63 = vld [vmem:[#allocation68_spill] sm:$0xff]  ;;  %v18433_v38 = vld [vmem:[#allocation110_spill] sm:$0xff]  ;;  %2724 = vperm.xlu0 %8056, %v11804_v34   ;;  %18434 = vst [vmem:[#allocation66_spill] sm:$0xff] %v11822_v28  ;;  %5142 = vmatprep.subr.bf16.mxu0 %v8180_v55  ;;  %v1183_v0 = vsel %vm1119_vm3, 1.0, %v18189_v54 }
 0x338   :  { %18430 = vst [vmem:[#allocation75_spill] sm:$0xff] %v11794_v9  ;;  %v11797_v44 = vadd.f32 %v1169_v19, %v18431_v63  ;;  %vm1122_vm1 = vcmp.eq.s32.totalorder %v9739_v12, %v18433_v38  ;;  %v8182_v57 = vld [vmem:[#allocation5 + $0x1e0] ss:$16 sps:$4 sm:$0xff]   ;;  %v11814_v19 = vadd.f32 %v1179_v35, %v11200_v21  ;;  %v1182_v63 = vsel %vm1118_vm0, 1.0, %v18189_v54  ;;  %5864 = vmatprep.subr.bf16.mxu1 %v8184_v61  ;;  %v11835_v35 = vpop.permute.xlu1 %2745  ;;  %v18438_v23 = vld [vmem:[#allocation117_spill] sm:$0xff]  ;;  %v11862_v9 = vld [vmem:[%s17552_s0 + $0x58] sm:$0xff] }
 0x339   :  { %v8185_v48 = vld [vmem:[%s17555_s3 + $0xe0] ss:$16 sps:$4 sm:$0xff]   ;;  %vm1123_vm2 = vcmp.eq.s32.totalorder %v9754_v16, %v18433_v38  ;;  %7984 = vset.pattern.permute.xlu1 %v18273_v27  ;;  %18437 = vst [vmem:[#allocation108_spill] sm:$0xff] %v11835_v35  ;;  %v1186_v61 = vsel %vm1122_vm1, 1.0, %v18189_v54  ;;  %vm1352_vm4 = vcmp.eq.s32.totalorder %v9739_v12, %v18438_v23  ;;  %vm1353_vm9 = vcmp.eq.s32.totalorder %v9754_v16, %v18438_v23  ;;  %v18442_v18 = vld [vmem:[#allocation119_spill] sm:$0xff]  ;;  %v11932_v23 = vld [vmem:[%s17552_s0 + $0x68] sm:$0xff] }
 0x33a   :  { %18432 = vst [vmem:[#allocation65_spill] sm:$0xff] %v11797_v44  ;;  %v18435_v33 = vld [vmem:[#allocation114_spill] sm:$0xff]  ;;  %v18436_v21 = vld [vmem:[#allocation116_spill] sm:$0xff]  ;;  %3864 = vperm.xlu1 %7984, %v11540_v60   ;;  %5143 = vmatpush1.bf16.msra.mxu0 %v8185_v48  ;;  %v11849_v55 = vadd.f32 %v1182_v63, %v11209_v8  ;;  %v1187_v14 = vsel %vm1123_vm2, 1.0, %v18189_v54  ;;  %v11866_v8 = vadd.f32 %v1183_v0, %v11212_v40  ;;  %v11880_v35 = vpop.permute.xlu0 %3867  ;;  %v1416_v0 = vsel %vm1352_vm4, 1.0, %v18189_v54  ;;  %v8387_v47 = vld [vmem:[#allocation2 + $0x8] sm:$0xff]  }
 0x33b   :  { %vm1354_vm5 = vcmp.eq.s32.totalorder %v9739_v12, %v18435_v33  ;;  %vm1355_vm6 = vcmp.eq.s32.totalorder %v9754_v16, %v18435_v33  ;;  %vm1360_vm7 = vcmp.eq.s32.totalorder %v9739_v12, %v18436_v21  ;;  %vm1361_vm8 = vcmp.eq.s32.totalorder %v9754_v16, %v18436_v21  ;;  %v18439_v44 = vld [vmem:[#allocation118_spill] sm:$0xff]  ;;  %2730 = vperm.xlu0 %8056, %v11862_v9   ;;  %v18461_v28 = vld [vmem:[#allocation239_spill] sm:$0xff] }
 0x33c   :  { %vm1364_vm10 = vcmp.eq.s32.totalorder %v9739_v12, %v18439_v44  ;;  %vm1365_vm11 = vcmp.eq.s32.totalorder %v9754_v16, %v18439_v44  ;;  %5865 = vmatpush1.bf16.msra.mxu1 %v8182_v57  ;;  %v1418_v38 = vsel %vm1354_vm5, 1.0, %v18189_v54  ;;  %v1419_v48 = vsel %vm1355_vm6, 1.0, %v18189_v54  ;;  %18440 = vst [vmem:[#allocation67_spill] sm:$0xff] %v11880_v35  ;;  %v11897_v4 = vpop.permute.xlu1 %2751 }
 0x33d   :  { %v1424_v63 = vsel %vm1360_vm7, 1.0, %v18189_v54  ;;  %v11883_v40 = vadd.f32 %v1186_v61, %v11215_v11  ;;  %v1425_v57 = vsel %vm1361_vm8, 1.0, %v18189_v54  ;;  %v1417_v33 = vsel %vm1353_vm9, 1.0, %v18189_v54  ;;  %18441 = vst [vmem:[#allocation68_spill] sm:$0xff] %v11897_v4  ;;  %5161 = vmatmul.mubr.bf16.vlgmr.msra.gmra.mrb[0].mxu0 %v8383_v26  ;;  %v18444_v4 = vld [vmem:[#allocation250_spill] sm:$0xff] }
 0x33e   :  { %v11900_v11 = vadd.f32 %v1187_v14, %v11218_v43  ;;  %v1428_v21 = vsel %vm1364_vm10, 1.0, %v18189_v54  ;;  %v1429_v61 = vsel %vm1365_vm11, 1.0, %v18189_v54  ;;  %vm1356_vm12 = vcmp.eq.s32.totalorder %v9739_v12, %v18442_v18  ;;  %7985 = vset.pattern.permute.xlu1 %v18224_v45  ;;  %5170 = vmatprep.mubr.bf16.mxu0 %v18170_v52 }
 0x33f   :  { %v11918_v43 = vsel %vm249_vm15, 1.0, %v18189_v54  ;;  %v11921_v26 = vadd.f32 %v1418_v38, %v11310_v13  ;;  %v11924_v14 = vadd.f32 %v1419_v48, %v11313_v10  ;;  %v11927_v44 = vadd.f32 %v1424_v63, %v11390_v15  ;;  %2736 = vperm.xlu0 %8056, %v11932_v23   ;;  %3003 = vperm.xlu1 %7985, %v18444_v4   ;;  %v18445_v10 = vld [vmem:[#allocation40_spill] sm:$0xff]  ;;  %v11947_v15 = vpop.permute.xlu0 %3873 }
 0x340   :  { %18443 = vst [vmem:[#allocation110_spill] sm:$0xff] %v11918_v43  ;;  %v11937_v50 = vadd.f32 %v1425_v57, %v11409_v20  ;;  %v11940_v13 = vadd.f32 %v1416_v0, %v11259_v42  ;;  %v11943_v38 = vadd.f32 %v1417_v33, %v18445_v10  ;;  %vm1357_vm13 = vcmp.eq.s32.totalorder %v9754_v16, %v18442_v18  ;;  %v18447_v20 = vld [vmem:[#allocation120_spill] sm:$0xff]  ;;  %v11961_v4 = vpop.permute.xlu1 %2757  ;;  %v18449_v57 = vld [vmem:[#allocation121_spill] sm:$0xff]  ;;  %v18451_v18 = vld [vmem:[#allocation123_spill] sm:$0xff] }
 0x341   :  { %18446 = vst [vmem:[#allocation114_spill] sm:$0xff] %v11947_v15  ;;  %v11950_v48 = vadd.f32 %v1428_v21, %v11447_v36  ;;  %v11953_v63 = vadd.f32 %v1429_v61, %v11456_v53  ;;  %v1420_v42 = vsel %vm1356_vm12, 1.0, %v18189_v54  ;;  %vm1368_vm14 = vcmp.eq.s32.totalorder %v9739_v12, %v18447_v20  ;;  %18448 = vst [vmem:[#allocation116_spill] sm:$0xff] %v11961_v4  ;;  %v18450_v36 = vld [vmem:[#allocation122_spill] sm:$0xff]  ;;  %v11981_v0 = vld [vmem:[%s17552_s0 + $0x78] sm:$0xff] }
 0x342   :  { %vm1369_vm15 = vcmp.eq.s32.totalorder %v9754_v16, %v18447_v20  ;;  %vm1358_vm0 = vcmp.eq.s32.totalorder %v9739_v12, %v18449_v57  ;;  %vm1359_vm3 = vcmp.eq.s32.totalorder %v9754_v16, %v18449_v57  ;;  %vm1372_vm1 = vcmp.eq.s32.totalorder %v9739_v12, %v18450_v36  ;;  %18452 = vst [vmem:[#allocation117_spill] sm:$0xff] %v11981_v0  ;;  %v18453_v33 = vld [vmem:[#allocation84_spill] sm:$0xff]  ;;  %v18457_v20 = vld [vmem:[#allocation241_spill] sm:$0xff] }
 0x343   :  { %v1421_v53 = vsel %vm1357_vm13, 1.0, %v18189_v54  ;;  %vm1373_vm2 = vcmp.eq.s32.totalorder %v9754_v16, %v18450_v36  ;;  %vm1362_vm5 = vcmp.eq.s32.totalorder %v9739_v12, %v18451_v18  ;;  %vm1363_vm6 = vcmp.eq.s32.totalorder %v9754_v16, %v18451_v18  ;;  %2742 = vperm.xlu0 %8056, %v11981_v0   ;;  %7987 = vset.pattern.permute.xlu1 %v18367_v6  ;;  %v18454_v10 = vld [vmem:[#allocation124_spill] sm:$0xff]  ;;  %v11999_v4 = vpop.permute.xlu0 %3879  ;;  %v12051_v18 = vld [vmem:[%s17552_s0 + $0x88] sm:$0xff] }
 0x344   :  { %v11986_v21 = vadd.f32 %v1420_v42, %v18453_v33  ;;  %v1432_v61 = vsel %vm1368_vm14, 1.0, %v18189_v54  ;;  %vm1376_vm7 = vcmp.eq.s32.totalorder %v9739_v12, %v18454_v10  ;;  %vm1377_vm8 = vcmp.eq.s32.totalorder %v9754_v16, %v18454_v10  ;;  %v11996_v43 = vld [vmem:[%s17552_s0 + $0x20] sm:$0xff]  ;;  %18455 = vst [vmem:[#allocation118_spill] sm:$0xff] %v11999_v4  ;;  %v12017_v25 = vpop.permute.xlu1 %2763  ;;  %18459 = vst [vmem:[#allocation250_spill] sm:$0xff] %v12051_v18 }
 0x345   :  { %4149 = vperm.xlu1 %7987, %v11996_v43   ;;  %v1433_v42 = vsel %vm1369_vm15, 1.0, %v18189_v54  ;;  %v1422_v33 = vsel %vm1358_vm0, 1.0, %v18189_v54  ;;  %v1423_v62 = vsel %vm1359_vm3, 1.0, %v18189_v54  ;;  %v1436_v4 = vsel %vm1372_vm1, 1.0, %v18189_v54  ;;  %18456 = vst [vmem:[#allocation119_spill] sm:$0xff] %v12017_v25  ;;  %5171 = vmatmul.mubr.bf16.gmra.mrb[4].mxu0 %v8387_v47 }
 0x346   :  { %v12020_v15 = vadd.f32 %v1421_v53, %v18457_v20  ;;  %v1437_v56 = vsel %vm1373_vm2, 1.0, %v18189_v54  ;;  %v1426_v57 = vsel %vm1362_vm5, 1.0, %v18189_v54  ;;  %v1427_v25 = vsel %vm1363_vm6, 1.0, %v18189_v54  ;;  %5180 = vmatprep.mubr.bf16.mxu0 %v18170_v52  ;;  %v18458_v20 = vld [vmem:[#allocation125_spill] sm:$0xff] }
 0x347   :  { %v12036_v47 = vadd.f32 %v1432_v61, %v11471_v29  ;;  %v1440_v36 = vsel %vm1376_vm7, 1.0, %v18189_v54  ;;  %v1441_v53 = vsel %vm1377_vm8, 1.0, %v18189_v54  ;;  %vm1366_vm4 = vcmp.eq.s32.totalorder %v9739_v12, %v18458_v20  ;;  %2748 = vperm.xlu0 %8056, %v12051_v18   ;;  %v18460_v61 = vld [vmem:[#allocation42_spill] sm:$0xff]  ;;  %v12067_v46 = vpop.permute.xlu0 %3885 }
 0x348   :  { %v12055_v29 = vadd.f32 %v1433_v42, %v11486_v51  ;;  %v12058_v35 = vadd.f32 %v1422_v33, %v18460_v61  ;;  %v12061_v37 = vadd.f32 %v1423_v62, %v18461_v28  ;;  %v12064_v10 = vadd.f32 %v1436_v4, %v11560_v17  ;;  %18463 = vst [vmem:[#allocation120_spill] sm:$0xff] %v12067_v46  ;;  %v18465_v18 = vld [vmem:[#allocation82_spill] sm:$0xff]  ;;  %v18466_v51 = vld [vmem:[#allocation244_spill] sm:$0xff]  ;;  %v12080_v62 = vpop.permute.xlu1 %2769  ;;  %v18473_v4 = vld [vmem:[#allocation143_spill] sm:$0xff] }
 0x349   :  { %4152 = vperm.xlu1 %7987, %v11540_v60   ;;  %v12070_v49 = vadd.f32 %v1437_v56, %v11576_v30  ;;  %v12073_v0 = vadd.f32 %v1426_v57, %v18465_v18  ;;  %v12076_v42 = vadd.f32 %v1427_v25, %v18466_v51  ;;  %vm1367_vm9 = vcmp.eq.s32.totalorder %v9754_v16, %v18458_v20  ;;  %v18470_v56 = vld [vmem:[#allocation126_spill] sm:$0xff]  ;;  %v18471_v25 = vld [vmem:[#allocation127_spill] sm:$0xff]  ;;  %v18475_v57 = vld [vmem:[#allocation85_spill] sm:$0xff] }
 0x34a   :  { %18462 = vst [vmem:[#allocation40_spill] sm:$0xff] %v12064_v10  ;;  %18467 = vst [vmem:[#allocation122_spill] sm:$0xff] %v12080_v62  ;;  %v12083_v17 = vadd.f32 %v1440_v36, %v11595_v1  ;;  %v12086_v60 = vadd.f32 %v1441_v53, %v11598_v41  ;;  %v1430_v30 = vsel %vm1366_vm4, 1.0, %v18189_v54  ;;  %vm1380_vm10 = vcmp.eq.s32.totalorder %v9739_v12, %v18470_v56  ;;  %v18472_v1 = vld [vmem:[#allocation141_spill] sm:$0xff]  ;;  %v12105_v41 = vld [vmem:[%s17552_s0 + $0x98] sm:$0xff] }
 0x34b   :  { %18464 = vst [vmem:[#allocation121_spill] sm:$0xff] %v12070_v49  ;;  %vm1381_vm11 = vcmp.eq.s32.totalorder %v9754_v16, %v18470_v56  ;;  %vm1370_vm12 = vcmp.eq.s32.totalorder %v9739_v12, %v18471_v25  ;;  %vm1371_vm13 = vcmp.eq.s32.totalorder %v9754_v16, %v18471_v25  ;;  %vm1398_vm14 = vcmp.eq.s32.totalorder %v9739_v12, %v18472_v1  ;;  %v12116_v33 = vpop.permute.xlu0 %3891  ;;  %v18476_v20 = vld [vmem:[#allocation144_spill] sm:$0xff]  ;;  %v8390_v61 = vld [vmem:[#allocation2 + $0x10] sm:$0xff]  }
 0x34c   :  { %18468 = vst [vmem:[#allocation123_spill] sm:$0xff] %v12083_v17  ;;  %18469 = vst [vmem:[#allocation84_spill] sm:$0xff] %v12086_v60  ;;  %2754 = vperm.xlu0 %8056, %v12105_v41   ;;  %v1431_v28 = vsel %vm1367_vm9, 1.0, %v18189_v54  ;;  %vm1399_vm15 = vcmp.eq.s32.totalorder %v9754_v16, %v18472_v1  ;;  %vm1402_vm0 = vcmp.eq.s32.totalorder %v9739_v12, %v18473_v4  ;;  %v1444_v53 = vsel %vm1380_vm10, 1.0, %v18189_v54  ;;  %v12127_v18 = vpop.permute.xlu1 %2775  ;;  %v18481_v60 = vld [vmem:[#allocation145_spill] sm:$0xff] }
 0x34d   :  { %vm1403_vm3 = vcmp.eq.s32.totalorder %v9754_v16, %v18473_v4  ;;  %7988 = vset.pattern.permute.xlu1 %v18262_v59  ;;  %18474 = vst [vmem:[#allocation124_spill] sm:$0xff] %v12116_v33  ;;  %v12119_v36 = vadd.f32 %v1430_v30, %v18475_v57  ;;  %vm1640_vm1 = vcmp.eq.s32.totalorder %v9739_v12, %v18476_v20  ;;  %18477 = vst [vmem:[#allocation241_spill] sm:$0xff] %v12127_v18  ;;  %v18478_v18 = vld [vmem:[#allocation87_spill] sm:$0xff] }
 0x34e   :  { %vm1641_vm2 = vcmp.eq.s32.totalorder %v9754_v16, %v18476_v20  ;;  %3294 = vperm.xlu1 %7988, %v11730_v5   ;;  %5181 = vmatmul.mubr.bf16.gmra.mrb[8].mxu0 %v8390_v61  ;;  %v1445_v51 = vsel %vm1381_vm11, 1.0, %v18189_v54  ;;  %v1434_v30 = vsel %vm1370_vm12, 1.0, %v18189_v54  ;;  %v1435_v57 = vsel %vm1371_vm13, 1.0, %v18189_v54 }
 0x34f   :  { %v1462_v61 = vsel %vm1398_vm14, 1.0, %v18189_v54  ;;  %5190 = vmatprep.mubr.bf16.mxu0 %v18170_v52  ;;  %v12147_v56 = vadd.f32 %v1431_v28, %v18478_v18  ;;  %v1463_v62 = vsel %vm1399_vm15, 1.0, %v18189_v54  ;;  %v1466_v25 = vsel %vm1402_vm0, 1.0, %v18189_v54  ;;  %v12164_v28 = vld [vmem:[%s17552_s0 + $0xa8] sm:$0xff]  ;;  %v18479_v18 = vld [vmem:[#allocation14_spill] sm:$0xff]  ;;  %v12182_v17 = vpop.permute.xlu0 %3897 }
 0x350   :  { %v1467_v33 = vsel %vm1403_vm3, 1.0, %v18189_v54  ;;  %2760 = vperm.xlu0 %8056, %v12164_v28   ;;  %vm252_vm5 = vcmp.eq.s32.totalorder %v9739_v12, %v18479_v18  ;;  %v12170_v1 = vadd.f32 %v1444_v53, %v11628_v7  ;;  %v1704_v46 = vsel %vm1640_vm1, 1.0, %v18189_v54  ;;  %18482 = vst [vmem:[#allocation42_spill] sm:$0xff] %v12182_v17  ;;  %v12197_v20 = vpop.permute.xlu1 %2781 }
 0x351   :  { %v1705_v4 = vsel %vm1641_vm2, 1.0, %v18189_v54  ;;  %vm1406_vm6 = vcmp.eq.s32.totalorder %v9739_v12, %v18481_v60  ;;  %v12185_v49 = vadd.f32 %v1445_v51, %v11646_v22  ;;  %v12188_v7 = vadd.f32 %v1434_v30, %v11441_v31  ;;  %18484 = vst [vmem:[#allocation82_spill] sm:$0xff] %v12197_v20  ;;  %v18491_v30 = vld [vmem:[#allocation151_spill] sm:$0xff] }
 0x352   :  { %18480 = vst [vmem:[#allocation125_spill] sm:$0xff] %v12170_v1  ;;  %v12191_v53 = vadd.f32 %v1435_v57, %v11444_v2  ;;  %v12194_v1 = vadd.f32 %v1462_v61, %v11777_v3  ;;  %7989 = vset.pattern.permute.xlu1 %v18312_v24  ;;  %v12200_v10 = vadd.f32 %v1463_v62, %v11780_v32  ;;  %v1470_v3 = vsel %vm1406_vm6, 1.0, %v18189_v54  ;;  %v18485_v32 = vld [vmem:[#allocation146_spill] sm:$0xff] }
 0x353   :  { %18483 = vst [vmem:[#allocation239_spill] sm:$0xff] %v12185_v49  ;;  %v12203_v17 = vadd.f32 %v1466_v25, %v11811_v39  ;;  %v12206_v22 = vadd.f32 %v1467_v33, %v11814_v19  ;;  %vm1407_vm7 = vcmp.eq.s32.totalorder %v9754_v16, %v18481_v60  ;;  %4437 = vperm.xlu1 %7989, %v11996_v43   ;;  %v12223_v39 = vld [vmem:[%s17552_s0 + $0xb8] sm:$0xff]  ;;  %v18487_v19 = vld [vmem:[#allocation148_spill] sm:$0xff]  ;;  %v12234_v43 = vpop.permute.xlu0 %3903 }
 0x354   :  { %v12212_v2 = vadd.f32 %v1704_v46, %v11940_v13  ;;  %v12215_v31 = vadd.f32 %v1705_v4, %v11943_v38  ;;  %vm1646_vm8 = vcmp.eq.s32.totalorder %v9739_v12, %v18485_v32  ;;  %2766 = vperm.xlu0 %8056, %v12223_v39   ;;  %vm1647_vm4 = vcmp.eq.s32.totalorder %v9754_v16, %v18485_v32  ;;  %v18486_v46 = vld [vmem:[#allocation147_spill] sm:$0xff]  ;;  %v18489_v38 = vld [vmem:[#allocation150_spill] sm:$0xff]  ;;  %v12243_v62 = vpop.permute.xlu1 %2787  ;;  %v12277_v4 = vld [vmem:[%s17552_s0 + $0xc8] sm:$0xff] }
 0x355   :  { %vm1410_vm9 = vcmp.eq.s32.totalorder %v9739_v12, %v18486_v46  ;;  %vm1411_vm10 = vcmp.eq.s32.totalorder %v9754_v16, %v18486_v46  ;;  %vm1650_vm11 = vcmp.eq.s32.totalorder %v9739_v12, %v18487_v19  ;;  %18488 = vst [vmem:[#allocation244_spill] sm:$0xff] %v12234_v43  ;;  %v1471_v13 = vsel %vm1407_vm7, 1.0, %v18189_v54  ;;  %18490 = vst [vmem:[#allocation126_spill] sm:$0xff] %v12243_v62  ;;  %v8393_v60 = vld [vmem:[#allocation2 + $0x18] sm:$0xff]   ;;  %v18494_v43 = vld [vmem:[#allocation152_spill] sm:$0xff] }
 0x356   :  { %vm1651_vm12 = vcmp.eq.s32.totalorder %v9754_v16, %v18487_v19  ;;  %vm1654_vm13 = vcmp.eq.s32.totalorder %v9739_v12, %v18489_v38  ;;  %vm1655_vm14 = vcmp.eq.s32.totalorder %v9754_v16, %v18489_v38  ;;  %5191 = vmatmul.mubr.bf16.gmra.mrb[12].mxu0 %v8393_v60  ;;  %v12246_v33 = vadd.f32 %v1470_v3, %v11849_v55  ;;  %v12283_v3 = vld [vmem:[%s17552_s0 + $0x30] sm:$0xff] }
 0x357   :  { %v1710_v51 = vsel %vm1646_vm8, 1.0, %v18189_v54  ;;  %vm1642_vm15 = vcmp.eq.s32.totalorder %v9739_v12, %v18491_v30  ;;  %vm1643_vm0 = vcmp.eq.s32.totalorder %v9754_v16, %v18491_v30  ;;  %7990 = vset.pattern.permute.xlu1 %v18408_v58  ;;  %5200 = vmatprep.mubr.bf16.mxu0 %v18170_v52  ;;  %v1711_v55 = vsel %vm1647_vm4, 1.0, %v18189_v54  ;;  %18492 = vst [vmem:[#allocation127_spill] sm:$0xff] %v12277_v4  ;;  %v12301_v20 = vpop.permute.xlu0 %3909 }
 0x358   :  { %v1474_v57 = vsel %vm1410_vm9, 1.0, %v18189_v54  ;;  %v1475_v61 = vsel %vm1411_vm10, 1.0, %v18189_v54  ;;  %v1714_v25 = vsel %vm1650_vm11, 1.0, %v18189_v54  ;;  %2772 = vperm.xlu0 %8056, %v12277_v4   ;;  %3579 = vperm.xlu1 %7990, %v12283_v3   ;;  %v12287_v32 = vadd.f32 %v1471_v13, %v11866_v8  ;;  %18493 = vst [vmem:[#allocation141_spill] sm:$0xff] %v12301_v20  ;;  %v12328_v49 = vpop.permute.xlu1 %2988  ;;  %v12461_v4 = vld [vmem:[%s17552_s0 + $0xf8] sm:$0xff] }
 0x359   :  { %v1715_v46 = vsel %vm1651_vm12, 1.0, %v18189_v54  ;;  %v1718_v60 = vsel %vm1654_vm13, 1.0, %v18189_v54  ;;  %v1719_v62 = vsel %vm1655_vm14, 1.0, %v18189_v54  ;;  %v12304_v8 = vadd.f32 %v1710_v51, %v12058_v35  ;;  %18495 = vst [vmem:[#allocation143_spill] sm:$0xff] %v12328_v49  ;;  %18508 = vst [vmem:[#allocation147_spill] sm:$0xff] %v12461_v4 }
 0x35a   :  { %v1706_v19 = vsel %vm1642_vm15, 1.0, %v18189_v54  ;;  %v1707_v13 = vsel %vm1643_vm0, 1.0, %v18189_v54  ;;  %vm1658_vm3 = vcmp.eq.s32.totalorder %v9739_v12, %v18494_v43  ;;  %v12317_v38 = vadd.f32 %v1711_v55, %v12061_v37  ;;  %v18499_v55 = vld [vmem:[#allocation153_spill] sm:$0xff] }
 0x35b   :  { %v12320_v20 = vadd.f32 %v1474_v57, %v11883_v40  ;;  %v12323_v35 = vadd.f32 %v1475_v61, %v11900_v11  ;;  %v12326_v51 = vadd.f32 %v1714_v25, %v12073_v0  ;;  %v12334_v30 = vsel %vm252_vm5, 1.0, %v18189_v54  ;;  %v12348_v0 = vld [vmem:[%s17552_s0 + $0xd8] sm:$0xff]  ;;  %v18501_v57 = vld [vmem:[#allocation157_spill] sm:$0xff] }
 0x35c   :  { %18496 = vst [vmem:[#allocation85_spill] sm:$0xff] %v12334_v30  ;;  %v12337_v37 = vadd.f32 %v1715_v46, %v12076_v42  ;;  %v12340_v40 = vadd.f32 %v1718_v60, %v12119_v36  ;;  %v12343_v11 = vadd.f32 %v1719_v62, %v12147_v56  ;;  %18497 = vst [vmem:[#allocation144_spill] sm:$0xff] %v12348_v0  ;;  %2778 = vperm.xlu0 %8056, %v12348_v0   ;;  %v12366_v62 = vpop.permute.xlu0 %3915  ;;  %v18503_v46 = vld [vmem:[#allocation166_spill] sm:$0xff]  ;;  %v12396_v60 = vld [vmem:[%s17552_s0 + $0xe8] sm:$0xff] }
 0x35d   :  { %3582 = vperm.xlu1 %7990, %v11730_v5   ;;  %vm253_vm1 = vcmp.eq.s32.totalorder %v9754_v16, %v18479_v18  ;;  %v12355_v42 = vadd.f32 %v1706_v19, %v11921_v26  ;;  %v12358_v36 = vadd.f32 %v1707_v13, %v11924_v14  ;;  %vm1659_vm2 = vcmp.eq.s32.totalorder %v9754_v16, %v18494_v43  ;;  %v18500_v26 = vld [vmem:[#allocation155_spill] sm:$0xff]  ;;  %v8397_v14 = vld [vmem:[#allocation2 + $0x20] sm:$0xff]   ;;  %v12400_v19 = vpop.permute.xlu1 %3273 }
 0x35e   :  { %v1722_v56 = vsel %vm1658_vm3, 1.0, %v18189_v54  ;;  %18498 = vst [vmem:[#allocation87_spill] sm:$0xff] %v12366_v62  ;;  %vm1644_vm5 = vcmp.eq.s32.totalorder %v9739_v12, %v18499_v55  ;;  %vm1645_vm6 = vcmp.eq.s32.totalorder %v9754_v16, %v18499_v55  ;;  %vm1648_vm7 = vcmp.eq.s32.totalorder %v9739_v12, %v18500_v26  ;;  %5201 = vmatmul.mubr.bf16.gmra.mrb[16].mxu0 %v8397_v14  ;;  %v18502_v43 = vld [vmem:[#allocation159_spill] sm:$0xff] }
 0x35f   :  { %vm1649_vm8 = vcmp.eq.s32.totalorder %v9754_v16, %v18500_v26  ;;  %vm1652_vm4 = vcmp.eq.s32.totalorder %v9739_v12, %v18501_v57  ;;  %vm1653_vm9 = vcmp.eq.s32.totalorder %v9754_v16, %v18501_v57  ;;  %vm1656_vm10 = vcmp.eq.s32.totalorder %v9739_v12, %v18502_v43  ;;  %5210 = vmatprep.mubr.bf16.mxu0 %v18170_v52 }
 0x360   :  { %vm1657_vm11 = vcmp.eq.s32.totalorder %v9754_v16, %v18502_v43  ;;  %v1723_v61 = vsel %vm1659_vm2, 1.0, %v18189_v54  ;;  %v12387_v25 = vadd.f32 %v1722_v56, %v12188_v7  ;;  %vm1686_vm12 = vcmp.eq.s32.totalorder %v9739_v12, %v18503_v46  ;;  %18504 = vst [vmem:[#allocation14_spill] sm:$0xff] %v12396_v60  ;;  %2784 = vperm.xlu0 %8056, %v12396_v60   ;;  %v12419_v62 = vpop.permute.xlu0 %3921  ;;  %v18507_v60 = vld [vmem:[#allocation168_spill] sm:$0xff] }
 0x361   :  { %vm1687_vm13 = vcmp.eq.s32.totalorder %v9754_v16, %v18503_v46  ;;  %7991 = vset.pattern.permute.xlu1 %v18273_v27  ;;  %18505 = vst [vmem:[#allocation145_spill] sm:$0xff] %v12400_v19  ;;  %v1708_v7 = vsel %vm1644_vm5, 1.0, %v18189_v54  ;;  %v1709_v13 = vsel %vm1645_vm6, 1.0, %v18189_v54  ;;  %v1712_v56 = vsel %vm1648_vm7, 1.0, %v18189_v54  ;;  %18506 = vst [vmem:[#allocation146_spill] sm:$0xff] %v12419_v62 }
 0x362   :  { %v1713_v14 = vsel %vm1649_vm8, 1.0, %v18189_v54  ;;  %3870 = vperm.xlu1 %7991, %v11730_v5   ;;  %v1716_v55 = vsel %vm1652_vm4, 1.0, %v18189_v54  ;;  %v1717_v30 = vsel %vm1653_vm9, 1.0, %v18189_v54  ;;  %v1720_v26 = vsel %vm1656_vm10, 1.0, %v18189_v54 }
 0x363   :  { %v1721_v62 = vsel %vm1657_vm11, 1.0, %v18189_v54  ;;  %v12438_v19 = vadd.f32 %v1723_v61, %v12191_v53  ;;  %v1750_v49 = vsel %vm1686_vm12, 1.0, %v18189_v54  ;;  %v1751_v57 = vsel %vm1687_vm13, 1.0, %v18189_v54 }
 0x364   :  { %vm1690_vm14 = vcmp.eq.s32.totalorder %v9739_v12, %v18507_v60  ;;  %v12451_v0 = vadd.f32 %v1708_v7, %v11986_v21  ;;  %v12454_v43 = vadd.f32 %v1709_v13, %v12020_v15  ;;  %v1776_v53 = vadd.f32 %v1712_v56, %v11927_v44  ;;  %2790 = vperm.xlu0 %8056, %v12461_v4   ;;  %v12475_v44 = vpop.permute.xlu1 %3561  ;;  %v18511_v7 = vld [vmem:[#allocation16_spill] sm:$0xff]  ;;  %v18516_v13 = vld [vmem:[#allocation178_spill] sm:$0xff] }
 0x365   :  { %v1777_v61 = vadd.f32 %v1713_v14, %v11937_v50  ;;  %v1780_v46 = vadd.f32 %v1716_v55, %v11950_v48  ;;  %v12466_v27 = vadd.f32 %v1717_v30, %v11953_v63  ;;  %v12469_v21 = vadd.f32 %v1720_v26, %v12036_v47  ;;  %18509 = vst [vmem:[#allocation148_spill] sm:$0xff] %v12475_v44  ;;  %v12477_v50 = vpop.permute.xlu0 %3927  ;;  %v18517_v14 = vld [vmem:[#allocation180_spill] sm:$0xff]  ;;  %v18519_v4 = vld [vmem:[#allocation182_spill] sm:$0xff] }
 0x366   :  { %v12472_v15 = vadd.f32 %v1721_v62, %v12055_v29  ;;  %7992 = vset.pattern.permute.xlu1 %v18224_v45  ;;  %18510 = vst [vmem:[#allocation150_spill] sm:$0xff] %v12477_v50  ;;  %vm256_vm15 = vcmp.eq.s32.totalorder %v9739_v12, %v18511_v7  ;;  %v12482_v48 = vadd.f32 %v1750_v49, %v12194_v1  ;;  %v1754_v47 = vsel %vm1690_vm14, 1.0, %v18189_v54  ;;  %v12496_v29 = vld [vmem:[%s17552_s0 + $0x40] sm:$0xff]  ;;  %v18512_v49 = vld [vmem:[#allocation170_spill] sm:$0xff]  ;;  %v8401_v1 = vld [vmem:[#allocation2 + $0x28] sm:$0xff]  }
 0x367   :  { %v12485_v63 = vadd.f32 %v1751_v57, %v12200_v10  ;;  %vm1691_vm0 = vcmp.eq.s32.totalorder %v9754_v16, %v18507_v60  ;;  %3009 = vperm.xlu1 %7992, %v12496_v29   ;;  %vm1694_vm3 = vcmp.eq.s32.totalorder %v9739_v12, %v18512_v49  ;;  %vm1695_vm2 = vcmp.eq.s32.totalorder %v9754_v16, %v18512_v49  ;;  %v18513_v10 = vld [vmem:[#allocation172_spill] sm:$0xff] }
 0x368   :  { %vm1698_vm5 = vcmp.eq.s32.totalorder %v9739_v12, %v18513_v10  ;;  %vm1699_vm6 = vcmp.eq.s32.totalorder %v9754_v16, %v18513_v10  ;;  %5211 = vmatmul.mubr.bf16.gmra.mrb[20].mxu0 %v8401_v1  ;;  %v12511_v30 = vsel %vm253_vm1, 1.0, %v18189_v54  ;;  %v18515_v62 = vld [vmem:[#allocation176_spill] sm:$0xff]  ;;  %vm1936_vm4 = vcmp.eq.s32.totalorder %v9739_v12, %v18516_v13  ;;  %8060 = vset.pattern.permute.xlu0 %v18224_v45  ;;  %v12533_v55 = vpop.permute.xlu1 %3564 }
 0x369   :  { %18514 = vst [vmem:[#allocation151_spill] sm:$0xff] %v12511_v30  ;;  %vm1930_vm7 = vcmp.eq.s32.totalorder %v9739_v12, %v18515_v62  ;;  %vm1931_vm8 = vcmp.eq.s32.totalorder %v9754_v16, %v18515_v62  ;;  %5220 = vmatprep.mubr.bf16.mxu0 %v18170_v52  ;;  %v1755_v18 = vsel %vm1691_vm0, 1.0, %v18189_v54  ;;  %v12526_v56 = vadd.f32 %v1754_v47, %v12203_v17  ;;  %v12551_v47 = vpop.permute.xlu0 %3276 }
 0x36a   :  { %vm1937_vm1 = vcmp.eq.s32.totalorder %v9754_v16, %v18516_v13  ;;  %vm1940_vm9 = vcmp.eq.s32.totalorder %v9739_v12, %v18517_v14  ;;  %3012 = vperm.xlu0 %8060, %v11804_v34   ;;  %18518 = vst [vmem:[#allocation152_spill] sm:$0xff] %v12533_v55  ;;  %v1758_v26 = vsel %vm1694_vm3, 1.0, %v18189_v54  ;;  %v1759_v17 = vsel %vm1695_vm2, 1.0, %v18189_v54 }
 0x36b   :  { %v1762_v60 = vsel %vm1698_vm5, 1.0, %v18189_v54  ;;  %v1763_v57 = vsel %vm1699_vm6, 1.0, %v18189_v54  ;;  %7993 = vset.pattern.permute.xlu1 %v18367_v6  ;;  %v1994_v49 = vsel %vm1930_vm7, 1.0, %v18189_v54  ;;  %v1995_v1 = vsel %vm1931_vm8, 1.0, %v18189_v54 }
 0x36c   :  { %v2000_v10 = vsel %vm1936_vm4, 1.0, %v18189_v54  ;;  %vm1941_vm10 = vcmp.eq.s32.totalorder %v9754_v16, %v18517_v14  ;;  %4155 = vperm.xlu1 %7993, %v12283_v3   ;;  %v12570_v50 = vadd.f32 %v1755_v18, %v12206_v22  ;;  %v2001_v30 = vsel %vm1937_vm1, 1.0, %v18189_v54 }
 0x36d   :  { %v2004_v62 = vsel %vm1940_vm9, 1.0, %v18189_v54  ;;  %vm1944_vm11 = vcmp.eq.s32.totalorder %v9739_v12, %v18519_v4  ;;  %v12583_v44 = vadd.f32 %v1758_v26, %v12246_v33  ;;  %v12586_v55 = vadd.f32 %v1759_v17, %v12287_v32  ;;  %v12608_v26 = vpop.permute.xlu0 %3279 }
 0x36e   :  { %v12589_v22 = vadd.f32 %v1762_v60, %v12320_v20  ;;  %v12592_v13 = vadd.f32 %v1763_v57, %v12323_v35  ;;  %3018 = vperm.xlu0 %8060, %v11862_v9   ;;  %vm257_vm12 = vcmp.eq.s32.totalorder %v9754_v16, %v18511_v7  ;;  %v12598_v18 = vadd.f32 %v1994_v49, %v12355_v42  ;;  %v12606_v20 = vpop.permute.xlu1 %3852  ;;  %v18527_v57 = vld [vmem:[#allocation189_spill] sm:$0xff] }
 0x36f   :  { %v12601_v33 = vadd.f32 %v1995_v1, %v12358_v36  ;;  %v12603_v14 = vadd.f32 %v2000_v10, %v1776_v53  ;;  %v2005_v32 = vsel %vm1941_vm10, 1.0, %v18189_v54  ;;  %v12610_v35 = vadd.f32 %v2001_v30, %v1777_v61  ;;  %v18521_v36 = vld [vmem:[#allocation183_spill] sm:$0xff]  ;;  %v18522_v53 = vld [vmem:[#allocation185_spill] sm:$0xff]  ;;  %v8402_v61 = vld [vmem:[#allocation2 + $0x30] sm:$0xff]  }
 0x370   :  { %v12612_v17 = vadd.f32 %v2004_v62, %v1780_v46  ;;  %vm1945_vm13 = vcmp.eq.s32.totalorder %v9754_v16, %v18519_v4  ;;  %v2008_v42 = vsel %vm1944_vm11, 1.0, %v18189_v54  ;;  %4158 = vperm.xlu1 %7993, %v11730_v5   ;;  %vm1928_vm14 = vcmp.eq.s32.totalorder %v9739_v12, %v18521_v36  ;;  %5221 = vmatmul.mubr.bf16.gmra.mrb[24].mxu0 %v8402_v61  ;;  %v18525_v46 = vld [vmem:[#allocation187_spill] sm:$0xff] }
 0x371   :  { %vm1929_vm0 = vcmp.eq.s32.totalorder %v9754_v16, %v18521_v36  ;;  %vm1932_vm3 = vcmp.eq.s32.totalorder %v9739_v12, %v18522_v53  ;;  %vm1933_vm2 = vcmp.eq.s32.totalorder %v9754_v16, %v18522_v53  ;;  %v12633_v4 = vsel %vm256_vm15, 1.0, %v18189_v54  ;;  %5230 = vmatprep.mubr.bf16.mxu0 %v18170_v52 }
 0x372   :  { %18520 = vst [vmem:[#allocation153_spill] sm:$0xff] %v12612_v17  ;;  %18523 = vst [vmem:[#allocation155_spill] sm:$0xff] %v12633_v4  ;;  %v12636_v5 = vadd.f32 %v2005_v32, %v12466_v27  ;;  %vm1934_vm5 = vcmp.eq.s32.totalorder %v9739_v12, %v18525_v46  ;;  %vm1935_vm6 = vcmp.eq.s32.totalorder %v9754_v16, %v18525_v46  ;;  %3024 = vperm.xlu0 %8060, %v11932_v23   ;;  %v12652_v27 = vpop.permute.xlu0 %3285  ;;  %v12671_v10 = vpop.permute.xlu1 %2991  ;;  %v18530_v46 = vld [vmem:[#allocation193_spill] sm:$0xff] }
 0x373   :  { %v2009_v30 = vsel %vm1945_vm13, 1.0, %v18189_v54  ;;  %v12646_v60 = vadd.f32 %v2008_v42, %v12469_v21  ;;  %vm1938_vm15 = vcmp.eq.s32.totalorder %v9739_v12, %v18527_v57  ;;  %vm1939_vm7 = vcmp.eq.s32.totalorder %v9754_v16, %v18527_v57  ;;  %v18528_v42 = vld [vmem:[#allocation191_spill] sm:$0xff]  ;;  %v18531_v57 = vld [vmem:[#allocation117_spill] sm:$0xff] }
 0x374   :  { %18524 = vst [vmem:[#allocation157_spill] sm:$0xff] %v12636_v5  ;;  %v1992_v23 = vsel %vm1928_vm14, 1.0, %v18189_v54  ;;  %v1993_v49 = vsel %vm1929_vm0, 1.0, %v18189_v54  ;;  %v1996_v21 = vsel %vm1932_vm3, 1.0, %v18189_v54  ;;  %v1997_v1 = vsel %vm1933_vm2, 1.0, %v18189_v54  ;;  %7994 = vset.pattern.permute.xlu1 %v18262_v59 }
 0x375   :  { %18526 = vst [vmem:[#allocation159_spill] sm:$0xff] %v12646_v60  ;;  %v1998_v62 = vsel %vm1934_vm5, 1.0, %v18189_v54  ;;  %v1999_v32 = vsel %vm1935_vm6, 1.0, %v18189_v54  ;;  %vm1942_vm8 = vcmp.eq.s32.totalorder %v9739_v12, %v18528_v42  ;;  %vm1943_vm4 = vcmp.eq.s32.totalorder %v9754_v16, %v18528_v42  ;;  %3300 = vperm.xlu1 %7994, %v11804_v34  }
 0x376   :  { %v12681_v36 = vadd.f32 %v2009_v30, %v12472_v15  ;;  %v2002_v53 = vsel %vm1938_vm15, 1.0, %v18189_v54  ;;  %v2003_v61 = vsel %vm1939_vm7, 1.0, %v18189_v54  ;;  %vm1946_vm1 = vcmp.eq.s32.totalorder %v9739_v12, %v18530_v46  ;;  %3030 = vperm.xlu0 %8060, %v18531_v57   ;;  %v12696_v15 = vpop.permute.xlu0 %3291 }
 0x377   :  { %v2056_v4 = vadd.f32 %v1992_v23, %v12212_v2  ;;  %v2057_v60 = vadd.f32 %v1993_v49, %v12215_v31  ;;  %v12691_v42 = vadd.f32 %v1996_v21, %v12451_v0  ;;  %v12694_v5 = vadd.f32 %v1997_v1, %v12454_v43  ;;  %18532 = vst [vmem:[#allocation168_spill] sm:$0xff] %v12696_v15  ;;  %v18534_v43 = vld [vmem:[#allocation206_spill] sm:$0xff]  ;;  %v18537_v21 = vld [vmem:[#allocation208_spill] sm:$0xff] }
 0x378   :  { %18529 = vst [vmem:[#allocation166_spill] sm:$0xff] %v12681_v36  ;;  %v2062_v30 = vadd.f32 %v1998_v62, %v12304_v8  ;;  %v2063_v36 = vadd.f32 %v1999_v32, %v12317_v38  ;;  %v2006_v17 = vsel %vm1942_vm8, 1.0, %v18189_v54  ;;  %v2007_v57 = vsel %vm1943_vm4, 1.0, %v18189_v54  ;;  %v12712_v8 = vpop.permute.xlu1 %4137  ;;  %v8403_v38 = vld [vmem:[#allocation2 + $0x38] sm:$0xff]   ;;  %v18536_v23 = vld [vmem:[#allocation250_spill] sm:$0xff] }
 0x379   :  { %v12703_v2 = vadd.f32 %v2002_v53, %v12326_v51  ;;  %v12706_v31 = vadd.f32 %v2003_v61, %v12337_v37  ;;  %vm1947_vm9 = vcmp.eq.s32.totalorder %v9754_v16, %v18530_v46  ;;  %v2010_v0 = vsel %vm1946_vm1, 1.0, %v18189_v54  ;;  %7995 = vset.pattern.permute.xlu1 %v18312_v24  ;;  %5231 = vmatmul.mubr.bf16.gmra.mrb[28].mxu0 %v8403_v38  ;;  %v18535_v37 = vld [vmem:[#allocation207_spill] sm:$0xff]  ;;  %v18541_v46 = vld [vmem:[#allocation210_spill] sm:$0xff] }
 0x37a   :  { %v12718_v51 = vsel %vm257_vm12, 1.0, %v18189_v54  ;;  %vm2216_vm10 = vcmp.eq.s32.totalorder %v9739_v12, %v18534_v43  ;;  %vm2217_vm11 = vcmp.eq.s32.totalorder %v9754_v16, %v18534_v43  ;;  %vm1974_vm13 = vcmp.eq.s32.totalorder %v9739_v12, %v18535_v37  ;;  %3036 = vperm.xlu0 %8060, %v18536_v23   ;;  %4443 = vperm.xlu1 %7995, %v12283_v3   ;;  %v12738_v1 = vpop.permute.xlu0 %3297  ;;  %v18543_v43 = vld [vmem:[#allocation211_spill] sm:$0xff] }
 0x37b   :  { %18533 = vst [vmem:[#allocation16_spill] sm:$0xff] %v12718_v51  ;;  %v12729_v49 = vadd.f32 %v2006_v17, %v12340_v40  ;;  %v12732_v7 = vadd.f32 %v2007_v57, %v12343_v11  ;;  %vm1975_vm12 = vcmp.eq.s32.totalorder %v9754_v16, %v18535_v37  ;;  %vm2222_vm14 = vcmp.eq.s32.totalorder %v9739_v12, %v18537_v21  ;;  %v18540_v11 = vld [vmem:[#allocation209_spill] sm:$0xff] }
 0x37c   :  { %18538 = vst [vmem:[#allocation170_spill] sm:$0xff] %v12738_v1  ;;  %5240 = vmatprep.mubr.bf16.mxu0 %v18170_v52  ;;  %v2011_v3 = vsel %vm1947_vm9, 1.0, %v18189_v54  ;;  %v12746_v40 = vadd.f32 %v2010_v0, %v12387_v25  ;;  %vm2223_vm0 = vcmp.eq.s32.totalorder %v9754_v16, %v18537_v21  ;;  %vm1978_vm3 = vcmp.eq.s32.totalorder %v9739_v12, %v18540_v11  ;;  %v12757_v53 = vpop.permute.xlu1 %4140 }
 0x37d   :  { %v2280_v17 = vsel %vm2216_vm10, 1.0, %v18189_v54  ;;  %v2281_v62 = vsel %vm2217_vm11, 1.0, %v18189_v54  ;;  %v2038_v32 = vsel %vm1974_vm13, 1.0, %v18189_v54  ;;  %vm1979_vm2 = vcmp.eq.s32.totalorder %v9754_v16, %v18540_v11 }
 0x37e   :  { %18539 = vst [vmem:[#allocation172_spill] sm:$0xff] %v12746_v40  ;;  %v2039_v25 = vsel %vm1975_vm12, 1.0, %v18189_v54  ;;  %v2286_v61 = vsel %vm2222_vm14, 1.0, %v18189_v54  ;;  %vm2226_vm5 = vcmp.eq.s32.totalorder %v9739_v12, %v18541_v46  ;;  %vm2227_vm6 = vcmp.eq.s32.totalorder %v9754_v16, %v18541_v46  ;;  %3042 = vperm.xlu0 %8060, %v12105_v41   ;;  %7996 = vset.pattern.permute.xlu1 %v18408_v58  ;;  %v12775_v37 = vpop.permute.xlu0 %3303 }
 0x37f   :  { %v12768_v57 = vadd.f32 %v2011_v3, %v12438_v19  ;;  %v2287_v0 = vsel %vm2223_vm0, 1.0, %v18189_v54  ;;  %v2042_v38 = vsel %vm1978_vm3, 1.0, %v18189_v54  ;;  %vm1982_vm15 = vcmp.eq.s32.totalorder %v9739_v12, %v18543_v43  ;;  %3585 = vperm.xlu1 %7996, %v12496_v29   ;;  %18544 = vst [vmem:[#allocation178_spill] sm:$0xff] %v12775_v37 }
 0x380   :  { %v12777_v23 = vadd.f32 %v2280_v17, %v2056_v4  ;;  %v12779_v21 = vadd.f32 %v2281_v62, %v2057_v60  ;;  %v12782_v51 = vadd.f32 %v2038_v32, %v12482_v48  ;;  %v2043_v19 = vsel %vm1979_vm2, 1.0, %v18189_v54  ;;  %v8404_v60 = vld [vmem:[#allocation2 + $0x40] sm:$0xff]  }
 0x381   :  { %18542 = vst [vmem:[#allocation176_spill] sm:$0xff] %v12768_v57  ;;  %v12789_v3 = vadd.f32 %v2039_v25, %v12485_v63  ;;  %v12791_v1 = vadd.f32 %v2286_v61, %v2062_v30  ;;  %v2290_v4 = vsel %vm2226_vm5, 1.0, %v18189_v54  ;;  %v2291_v48 = vsel %vm2227_vm6, 1.0, %v18189_v54  ;;  %5241 = vmatmul.mubr.bf16.gmra.mrb[32].mxu0 %v8404_v60  ;;  %v12813_v30 = vpop.permute.xlu1 %3282  ;;  %v18549_v62 = vld [vmem:[#allocation212_spill] sm:$0xff]  ;;  %v18591_v57 = vld [vmem:[#allocation89_spill] sm:$0xff] }
 0x382   :  { %18545 = vst [vmem:[#allocation180_spill] sm:$0xff] %v12782_v51  ;;  %v12801_v17 = vadd.f32 %v2287_v0, %v2063_v36  ;;  %v12804_v11 = vadd.f32 %v2042_v38, %v12526_v56  ;;  %vm1983_vm7 = vcmp.eq.s32.totalorder %v9754_v16, %v18543_v43  ;;  %v2046_v63 = vsel %vm1982_vm15, 1.0, %v18189_v54  ;;  %3048 = vperm.xlu0 %8060, %v12164_v28   ;;  %v18550_v56 = vld [vmem:[#allocation213_spill] sm:$0xff]  ;;  %v12826_v32 = vpop.permute.xlu0 %3309  ;;  %v18554_v38 = vld [vmem:[#allocation219_spill] sm:$0xff] }
 0x383   :  { %18546 = vst [vmem:[#allocation182_spill] sm:$0xff] %v12789_v3  ;;  %5250 = vmatprep.mubr.bf16.mxu0 %v18170_v52  ;;  %v12817_v36 = vadd.f32 %v2043_v19, %v12570_v50  ;;  %vm2230_vm8 = vcmp.eq.s32.totalorder %v9739_v12, %v18549_v62  ;;  %vm2231_vm4 = vcmp.eq.s32.totalorder %v9754_v16, %v18549_v62  ;;  %18551 = vst [vmem:[#allocation187_spill] sm:$0xff] %v12826_v32  ;;  %v18552_v50 = vld [vmem:[#allocation217_spill] sm:$0xff]  ;;  %v18555_v19 = vld [vmem:[#allocation214_spill] sm:$0xff]  ;;  %v18557_v60 = vmov 13  }
 0x384   :  { %18547 = vst [vmem:[#allocation183_spill] sm:$0xff] %v12804_v11  ;;  %vm1986_vm1 = vcmp.eq.s32.totalorder %v9739_v12, %v18550_v56  ;;  %3588 = vperm.xlu1 %7996, %v11804_v34   ;;  %v12829_v25 = vadd.f32 %v2290_v4, %v12703_v2  ;;  %v12832_v61 = vadd.f32 %v2291_v48, %v12706_v31  ;;  %v2047_v46 = vsel %vm1983_vm7, 1.0, %v18189_v54  ;;  %v18556_v48 = vld [vmem:[#allocation221_spill] sm:$0xff] }
 0x385   :  { %18548 = vst [vmem:[#allocation185_spill] sm:$0xff] %v12817_v36  ;;  %vm1987_vm9 = vcmp.eq.s32.totalorder %v9754_v16, %v18550_v56  ;;  %vm2218_vm10 = vcmp.eq.s32.totalorder %v9739_v12, %v18552_v50  ;;  %v12840_v0 = vadd.f32 %v2046_v63, %v12583_v44  ;;  %vm2219_vm11 = vcmp.eq.s32.totalorder %v9754_v16, %v18552_v50  ;;  %v12859_v63 = vpop.permute.xlu1 %4425 }
 0x386   :  { %vm2220_vm13 = vcmp.eq.s32.totalorder %v9739_v12, %v18554_v38  ;;  %v2294_v2 = vsel %vm2230_vm8, 1.0, %v18189_v54  ;;  %v2295_v31 = vsel %vm2231_vm4, 1.0, %v18189_v54  ;;  %v2050_v43 = vsel %vm1986_vm1, 1.0, %v18189_v54  ;;  %3054 = vperm.xlu0 %8060, %v12223_v39   ;;  %v12861_v62 = vpop.permute.xlu0 %3315 }
 0x387   :  { %18553 = vst [vmem:[#allocation189_spill] sm:$0xff] %v12840_v0  ;;  %vm2221_vm12 = vcmp.eq.s32.totalorder %v9754_v16, %v18554_v38  ;;  %v2051_v44 = vsel %vm1987_vm9, 1.0, %v18189_v54  ;;  %vm2234_vm14 = vcmp.eq.s32.totalorder %v9739_v12, %v18555_v19  ;;  %v2282_v4 = vsel %vm2218_vm10, 1.0, %v18189_v54  ;;  %18558 = vst [vmem:[#allocation191_spill] sm:$0xff] %v12861_v62  ;;  %v18565_v38 = vld [vmem:[#allocation127_spill] sm:$0xff] }
 0x388   :  { %vm2224_vm0 = vcmp.eq.s32.totalorder %v9739_v12, %v18556_v48  ;;  %7997 = vset.pattern.permute.xlu1 %v18557_v60  ;;  %v12864_v56 = vadd.f32 %v2047_v46, %v12586_v55  ;;  %v2283_v50 = vsel %vm2219_vm11, 1.0, %v18189_v54  ;;  %v2284_v32 = vsel %vm2220_vm13, 1.0, %v18189_v54  ;;  %v8405_v46 = vld [vmem:[#allocation2 + $0x48] sm:$0xff]  }
 0x389   :  { %vm2225_vm3 = vcmp.eq.s32.totalorder %v9754_v16, %v18556_v48  ;;  %3876 = vperm.xlu1 %7997, %v11804_v34   ;;  %v12872_v37 = vadd.f32 %v2294_v2, %v12729_v49  ;;  %v12875_v15 = vadd.f32 %v2295_v31, %v12732_v7  ;;  %v12878_v62 = vadd.f32 %v2050_v43, %v12589_v22  ;;  %v18566_v31 = vld [vmem:[#allocation242_spill] sm:$0xff] }
 0x38a   :  { %18559 = vst [vmem:[#allocation193_spill] sm:$0xff] %v12864_v56  ;;  %v2285_v55 = vsel %vm2221_vm12, 1.0, %v18189_v54  ;;  %5251 = vmatmul.mubr.bf16.gmra.mrb[36].mxu0 %v8405_v46  ;;  %v12885_v56 = vadd.f32 %v2051_v44, %v12592_v13  ;;  %v12891_v49 = vsel %vm2234_vm14, 1.0, %v18189_v54  ;;  %v2346_v7 = vadd.f32 %v2282_v4, %v12598_v18  ;;  %3060 = vperm.xlu0 %8060, %v18565_v38   ;;  %v12910_v43 = vpop.permute.xlu0 %3321  ;;  %v18568_v4 = vld [vmem:[#allocation15_spill] sm:$0xff]  ;;  %v12932_v48 = vld [vmem:[%s17552_s0 + $0x50] sm:$0xff]  ;;  %v18572_v46 = vld [vmem:[#allocation144_spill] sm:$0xff] }
 0x38b   :  { %18560 = vst [vmem:[#allocation117_spill] sm:$0xff] %v12872_v37  ;;  %18561 = vst [vmem:[#allocation206_spill] sm:$0xff] %v12875_v15  ;;  %v2288_v22 = vsel %vm2224_vm0, 1.0, %v18189_v54  ;;  %5260 = vmatprep.mubr.bf16.mxu0 %v18170_v52  ;;  %vm2235_vm2 = vcmp.eq.s32.totalorder %v9754_v16, %v18555_v19  ;;  %v2347_v13 = vadd.f32 %v2283_v50, %v12601_v33  ;;  %v2289_v18 = vsel %vm2225_vm3, 1.0, %v18189_v54  ;;  %v12920_v33 = vpop.permute.xlu1 %3567  ;;  %v18574_v15 = vld [vmem:[#allocation37_spill] sm:$0xff] }
 0x38c   :  { %18562 = vst [vmem:[#allocation207_spill] sm:$0xff] %v12878_v62  ;;  %18563 = vst [vmem:[#allocation250_spill] sm:$0xff] %v12885_v56  ;;  %v2348_v2 = vadd.f32 %v2284_v32, %v12691_v42  ;;  %vm2506_vm5 = vcmp.eq.s32.totalorder %v9739_v12, %v18566_v31  ;;  %v2349_v44 = vadd.f32 %v2285_v55, %v12694_v5  ;;  %v18569_v32 = vld [vmem:[#allocation31_spill] sm:$0xff]  ;;  %v18570_v5 = vld [vmem:[#allocation33_spill] sm:$0xff] }
 0x38d   :  { %18564 = vst [vmem:[#allocation208_spill] sm:$0xff] %v12891_v49  ;;  %18567 = vst [vmem:[#allocation209_spill] sm:$0xff] %v12910_v43  ;;  %vm2507_vm6 = vcmp.eq.s32.totalorder %v9754_v16, %v18566_v31  ;;  %vm2512_vm15 = vcmp.eq.s32.totalorder %v9739_v12, %v18568_v4  ;;  %vm2513_vm7 = vcmp.eq.s32.totalorder %v9754_v16, %v18568_v4  ;;  %7998 = vset.pattern.permute.xlu1 %v18224_v45  ;;  %v18571_v55 = vld [vmem:[#allocation35_spill] sm:$0xff] }
 0x38e   :  { %v2352_v42 = vadd.f32 %v2288_v22, %v12603_v14  ;;  %vm2504_vm8 = vcmp.eq.s32.totalorder %v9739_v12, %v18569_v32  ;;  %vm2505_vm4 = vcmp.eq.s32.totalorder %v9754_v16, %v18569_v32  ;;  %vm2508_vm1 = vcmp.eq.s32.totalorder %v9739_v12, %v18570_v5  ;;  %3015 = vperm.xlu1 %7998, %v12932_v48   ;;  %v12956_v32 = vpop.permute.xlu0 %3327 }
 0x38f   :  { %v2353_v50 = vadd.f32 %v2289_v18, %v12610_v35  ;;  %v2570_v14 = vsel %vm2506_vm5, 1.0, %v18189_v54  ;;  %vm2509_vm9 = vcmp.eq.s32.totalorder %v9754_v16, %v18570_v5  ;;  %vm2510_vm10 = vcmp.eq.s32.totalorder %v9739_v12, %v18571_v55  ;;  %3066 = vperm.xlu0 %8060, %v18572_v46   ;;  %18573 = vst [vmem:[#allocation210_spill] sm:$0xff] %v12956_v32  ;;  %v12963_v37 = vpop.permute.xlu1 %3570  ;;  %v8407_v32 = vld [vmem:[#allocation2 + $0x50] sm:$0xff]  }
 0x390   :  { %v2571_v22 = vsel %vm2507_vm6, 1.0, %v18189_v54  ;;  %v2576_v35 = vsel %vm2512_vm15, 1.0, %v18189_v54  ;;  %v2577_v18 = vsel %vm2513_vm7, 1.0, %v18189_v54  ;;  %vm2511_vm11 = vcmp.eq.s32.totalorder %v9754_v16, %v18571_v55 }
 0x391   :  { %v2568_v5 = vsel %vm2504_vm8, 1.0, %v18189_v54  ;;  %v2569_v31 = vsel %vm2505_vm4, 1.0, %v18189_v54  ;;  %v2572_v43 = vsel %vm2508_vm1, 1.0, %v18189_v54  ;;  %vm2514_vm13 = vcmp.eq.s32.totalorder %v9739_v12, %v18574_v15 }
 0x392   :  { %v12965_v56 = vadd.f32 %v2570_v14, %v2346_v7  ;;  %v2573_v4 = vsel %vm2509_vm9, 1.0, %v18189_v54  ;;  %v2574_v62 = vsel %vm2510_vm10, 1.0, %v18189_v54  ;;  %vm2515_vm12 = vcmp.eq.s32.totalorder %v9754_v16, %v18574_v15  ;;  %7999 = vset.pattern.permute.xlu1 %v18367_v6  ;;  %5261 = vmatmul.mubr.bf16.gmra.mrb[40].mxu0 %v8407_v32  ;;  %v18575_v14 = vld [vmem:[#allocation14_spill] sm:$0xff] }
 0x393   :  { %v12972_v0 = vadd.f32 %v2571_v22, %v2347_v13  ;;  %v12974_v36 = vadd.f32 %v2576_v35, %v2352_v42  ;;  %v12976_v11 = vadd.f32 %v2577_v18, %v2353_v50  ;;  %v2575_v7 = vsel %vm2511_vm11, 1.0, %v18189_v54  ;;  %3072 = vperm.xlu0 %8060, %v18575_v14   ;;  %4161 = vperm.xlu1 %7999, %v12496_v29   ;;  %v12996_v50 = vpop.permute.xlu0 %3333  ;;  %v18581_v35 = vld [vmem:[#allocation70_spill] sm:$0xff] }
 0x394   :  { %v12985_v3 = vadd.f32 %v2568_v5, %v12777_v23  ;;  %v12988_v32 = vadd.f32 %v2569_v31, %v12779_v21  ;;  %v12990_v13 = vadd.f32 %v2572_v43, %v2348_v2  ;;  %v2578_v42 = vsel %vm2514_vm13, 1.0, %v18189_v54  ;;  %18576 = vst [vmem:[#allocation211_spill] sm:$0xff] %v12996_v50  ;;  %5270 = vmatprep.mubr.bf16.mxu0 %v18170_v52  ;;  %v18577_v21 = vld [vmem:[#allocation56_spill] sm:$0xff]  ;;  %v18578_v43 = vld [vmem:[#allocation59_spill] sm:$0xff]  ;;  %v18583_v31 = vld [vmem:[#allocation46_spill] sm:$0xff] }
 0x395   :  { %v12999_v55 = vadd.f32 %v2573_v4, %v2349_v44  ;;  %v13002_v22 = vadd.f32 %v2574_v62, %v12791_v1  ;;  %v2579_v23 = vsel %vm2515_vm12, 1.0, %v18189_v54  ;;  %vm3080_vm14 = vcmp.eq.s32.totalorder %v9739_v12, %v18577_v21  ;;  %v13019_v1 = vpop.permute.xlu1 %3858  ;;  %v18580_v62 = vld [vmem:[#allocation27_spill] sm:$0xff]  ;;  %v13037_v44 = vld [vmem:[%s17552_s0 + $0xf0] sm:$0xff] }
 0x396   :  { %v13011_v2 = vadd.f32 %v2575_v7, %v12801_v17  ;;  %vm3081_vm0 = vcmp.eq.s32.totalorder %v9754_v16, %v18577_v21  ;;  %vm3086_vm3 = vcmp.eq.s32.totalorder %v9739_v12, %v18578_v43  ;;  %vm3087_vm5 = vcmp.eq.s32.totalorder %v9754_v16, %v18578_v43 }
 0x397   :  { %v13025_v15 = vsel %vm2235_vm2, 1.0, %v18189_v54  ;;  %v13028_v17 = vadd.f32 %v2578_v42, %v12829_v25  ;;  %vm3090_vm6 = vcmp.eq.s32.totalorder %v9739_v12, %v18580_v62  ;;  %vm3091_vm15 = vcmp.eq.s32.totalorder %v9754_v16, %v18580_v62  ;;  %3075 = vperm.xlu0 %8060, %v13037_v44   ;;  %4164 = vperm.xlu1 %7999, %v11804_v34   ;;  %v13051_v18 = vpop.permute.xlu0 %3339  ;;  %v18586_v42 = vld [vmem:[#allocation77_spill] sm:$0xff]  ;;  %v18587_v62 = vld [vmem:[#allocation88_spill] sm:$0xff] }
 0x398   :  { %18579 = vst [vmem:[#allocation212_spill] sm:$0xff] %v13025_v15  ;;  %v13042_v19 = vadd.f32 %v2579_v23, %v12832_v61  ;;  %v13045_v25 = vsel %vm3080_vm14, 1.0, %v18189_v54  ;;  %vm4522_vm2 = vcmp.eq.s32.totalorder %v9739_v12, %v18581_v35  ;;  %vm4523_vm7 = vcmp.eq.s32.totalorder %v9754_v16, %v18581_v35  ;;  %18582 = vst [vmem:[#allocation213_spill] sm:$0xff] %v13051_v18  ;;  %v8409_v23 = vld [vmem:[#allocation2 + $0x58] sm:$0xff]  }
 0x399   :  { %v13057_v5 = vsel %vm3081_vm0, 1.0, %v18189_v54  ;;  %v13063_v34 = vsel %vm3086_vm3, 1.0, %v18189_v54  ;;  %v13069_v61 = vsel %vm3087_vm5, 1.0, %v18189_v54  ;;  %vm2794_vm8 = vcmp.eq.s32.totalorder %v9739_v12, %v18583_v31  ;;  %v13094_v35 = vpop.permute.xlu1 %2997  ;;  %v18588_v18 = vld [vmem:[#allocation143_spill] sm:$0xff] }
 0x39a   :  { %v13074_v4 = vsel %vm3090_vm6, 1.0, %v18189_v54  ;;  %v13077_v7 = vsel %vm3091_vm15, 1.0, %v18189_v54  ;;  %vm4526_vm4 = vcmp.eq.s32.totalorder %v9739_v12, %v18586_v42  ;;  %vm2795_vm1 = vcmp.eq.s32.totalorder %v9754_v16, %v18583_v31  ;;  %5271 = vmatmul.mubr.bf16.gmra.mrb[44].mxu0 %v8409_v23 }
 0x39b   :  { %18584 = vst [vmem:[#allocation217_spill] sm:$0xff] %v13074_v4  ;;  %18585 = vst [vmem:[#allocation219_spill] sm:$0xff] %v13077_v7  ;;  %v13084_v21 = vsel %vm4522_vm2, 1.0, %v18189_v54  ;;  %v13087_v43 = vsel %vm4523_vm7, 1.0, %v18189_v54  ;;  %vm2796_vm9 = vcmp.eq.s32.totalorder %v9739_v12, %v18587_v62  ;;  %vm2797_vm10 = vcmp.eq.s32.totalorder %v9754_v16, %v18587_v62  ;;  %8000 = vset.pattern.permute.xlu1 %v18262_v59  ;;  %v13105_v50 = vpop.permute.xlu0 %3345 }
 0x39c   :  { %8062 = vset.pattern.permute.xlu0 %v18312_v24  ;;  %vm4527_vm11 = vcmp.eq.s32.totalorder %v9754_v16, %v18586_v42  ;;  %v2858_v23 = vsel %vm2794_vm8, 1.0, %v18189_v54  ;;  %vm3082_vm13 = vcmp.eq.s32.totalorder %v9739_v12, %v18588_v18  ;;  %vm3083_vm12 = vcmp.eq.s32.totalorder %v9754_v16, %v18588_v18  ;;  %3306 = vperm.xlu1 %8000, %v11862_v9  }
 0x39d   :  { %18589 = vst [vmem:[#allocation214_spill] sm:$0xff] %v13105_v50  ;;  %4482 = vperm.xlu0 %8062, %v12105_v41   ;;  %v13112_v51 = vsel %vm4526_vm4, 1.0, %v18189_v54  ;;  %v2859_v15 = vsel %vm2795_vm1, 1.0, %v18189_v54  ;;  %vm2800_vm14 = vcmp.eq.s32.totalorder %v9739_v12, %v18591_v57  ;;  %vm2801_vm0 = vcmp.eq.s32.totalorder %v9754_v16, %v18591_v57  ;;  %5280 = vmatprep.mubr.bf16.mxu0 %v18170_v52 }
 0x39e   :  { %18590 = vst [vmem:[#allocation221_spill] sm:$0xff] %v13112_v51  ;;  %v2860_v9 = vsel %vm2796_vm9, 1.0, %v18189_v54  ;;  %v2861_v41 = vsel %vm2797_vm10, 1.0, %v18189_v54  ;;  %vm3370_vm3 = vcmp.eq.s32.totalorder %v9739_v12, %v12551_v47  ;;  %vm3371_vm5 = vcmp.eq.s32.totalorder %v9754_v16, %v12551_v47  ;;  %v18593_v51 = vld [vmem:[#allocation100_spill] sm:$0xff] }
 0x39f   :  { %v13139_v57 = vsel %vm4527_vm11, 1.0, %v18189_v54  ;;  %v2922_v31 = vadd.f32 %v2858_v23, %v12965_v56  ;;  %v3146_v62 = vsel %vm3082_vm13, 1.0, %v18189_v54  ;;  %v3147_v50 = vsel %vm3083_vm12, 1.0, %v18189_v54  ;;  %v13156_v56 = vpop.permute.xlu1 %4143  ;;  %v13158_v23 = vpop.permute.xlu0 %3351  ;;  %v18598_v47 = vld [vmem:[#allocation152_spill] sm:$0xff] }
 0x3a0   :  { %18592 = vst [vmem:[#allocation127_spill] sm:$0xff] %v13139_v57  ;;  %v2923_v49 = vadd.f32 %v2859_v15, %v12972_v0  ;;  %v2864_v40 = vsel %vm2800_vm14, 1.0, %v18189_v54  ;;  %v2865_v42 = vsel %vm2801_vm0, 1.0, %v18189_v54  ;;  %vm3944_vm6 = vcmp.eq.s32.totalorder %v9739_v12, %v18593_v51  ;;  %8001 = vset.pattern.permute.xlu1 %v18312_v24  ;;  %18594 = vst [vmem:[#allocation242_spill] sm:$0xff] %v13158_v23 }
 0x3a1   :  { %4488 = vperm.xlu0 %8062, %v12164_v28   ;;  %v13162_v18 = vadd.f32 %v2860_v9, %v12990_v13  ;;  %v13165_v0 = vadd.f32 %v2861_v41, %v12999_v55  ;;  %v3434_v15 = vsel %vm3370_vm3, 1.0, %v18189_v54  ;;  %v3435_v7 = vsel %vm3371_vm5, 1.0, %v18189_v54  ;;  %4449 = vperm.xlu1 %8001, %v12496_v29   ;;  %v18595_v28 = vld [vmem:[#allocation104_spill] sm:$0xff] }
 0x3a2   :  { %vm3945_vm15 = vcmp.eq.s32.totalorder %v9754_v16, %v18593_v51  ;;  %vm3948_vm2 = vcmp.eq.s32.totalorder %v9739_v12, %v18595_v28  ;;  %v3210_v13 = vadd.f32 %v3146_v62, %v2922_v31  ;;  %v3211_v55 = vadd.f32 %v3147_v50, %v2923_v49  ;;  %v8410_v9 = vld [vmem:[#allocation2 + $0x60] sm:$0xff]   ;;  %v18600_v62 = vld [vmem:[#allocation145_spill] sm:$0xff] }
 0x3a3   :  { %5281 = vmatmul.mubr.bf16.gmra.mrb[48].mxu0 %v8410_v9  ;;  %v13181_v41 = vadd.f32 %v2864_v40, %v12974_v36  ;;  %v13184_v23 = vadd.f32 %v2865_v42, %v12976_v11  ;;  %v13190_v29 = vsel %vm3944_vm6, 1.0, %v18189_v54  ;;  %vm3949_vm7 = vcmp.eq.s32.totalorder %v9754_v16, %v18595_v28  ;;  %v13199_v36 = vpop.permute.xlu1 %4146  ;;  %v13201_v49 = vpop.permute.xlu0 %3357  ;;  %v18601_v51 = vld [vmem:[#allocation148_spill] sm:$0xff] }
 0x3a4   :  { %5290 = vmatprep.mubr.bf16.mxu0 %v18170_v52  ;;  %vm3658_vm8 = vcmp.eq.s32.totalorder %v9739_v12, %v18598_v47  ;;  %vm3659_vm4 = vcmp.eq.s32.totalorder %v9754_v16, %v18598_v47  ;;  %v3498_v40 = vadd.f32 %v3434_v15, %v3210_v13  ;;  %v3499_v11 = vadd.f32 %v3435_v7, %v3211_v55 }
 0x3a5   :  { %18596 = vst [vmem:[#allocation15_spill] sm:$0xff] %v13181_v41  ;;  %18597 = vst [vmem:[#allocation31_spill] sm:$0xff] %v13184_v23  ;;  %4494 = vperm.xlu0 %8062, %v12223_v39   ;;  %v13208_v50 = vsel %vm3945_vm15, 1.0, %v18189_v54  ;;  %v13214_v31 = vsel %vm3948_vm2, 1.0, %v18189_v54  ;;  %vm3368_vm1 = vcmp.eq.s32.totalorder %v9739_v12, %v18600_v62  ;;  %vm3369_vm9 = vcmp.eq.s32.totalorder %v9754_v16, %v18600_v62 }
 0x3a6   :  { %18599 = vst [vmem:[#allocation33_spill] sm:$0xff] %v13201_v49  ;;  %8002 = vset.pattern.permute.xlu1 %v18408_v58  ;;  %v13222_v39 = vsel %vm3949_vm7, 1.0, %v18189_v54  ;;  %vm3656_vm10 = vcmp.eq.s32.totalorder %v9739_v12, %v18601_v51  ;;  %vm3946_vm11 = vcmp.eq.s32.totalorder %v9739_v12, %v12606_v20  ;;  %vm3947_vm13 = vcmp.eq.s32.totalorder %v9754_v16, %v12606_v20 }
 0x3a7   :  { %3591 = vperm.xlu1 %8002, %v12932_v48   ;;  %v3722_v7 = vsel %vm3658_vm8, 1.0, %v18189_v54  ;;  %v3723_v42 = vsel %vm3659_vm4, 1.0, %v18189_v54  ;;  %vm3084_vm12 = vcmp.eq.s32.totalorder %v9739_v12, %v12671_v10  ;;  %vm3085_vm14 = vcmp.eq.s32.totalorder %v9754_v16, %v12671_v10  ;;  %v2698_v62 = vpop.permute.xlu0 %2697  ;;  %v13253_v10 = vpop.permute.xlu1 %3288 }
 0x3a8   :  { %v3432_v20 = vsel %vm3368_vm1, 1.0, %v18189_v54  ;;  %v13245_v15 = vsel %vm3369_vm9, 1.0, %v18189_v54  ;;  %v3786_v28 = vadd.f32 %v3722_v7, %v3498_v40  ;;  %v3787_v13 = vadd.f32 %v3723_v42, %v3499_v11  ;;  %18602 = vst [vmem:[#allocation35_spill] sm:$0xff] %v13253_v10  ;;  %v8412_v7 = vld [vmem:[#allocation2 + $0x68] sm:$0xff]  }
 0x3a9   :  { %4500 = vperm.xlu0 %8062, %v18565_v38   ;;  %vm3657_vm0 = vcmp.eq.s32.totalorder %v9754_v16, %v18601_v51  ;;  %v3720_v55 = vsel %vm3656_vm10, 1.0, %v18189_v54  ;;  %v4010_v9 = vsel %vm3946_vm11, 1.0, %v18189_v54  ;;  %v4011_v47 = vsel %vm3947_vm13, 1.0, %v18189_v54  ;;  %v13262_v38 = vld [vmem:[%s17552_s0 + $0x58] sm:$0xff] }
 0x3aa   :  { %v3148_v49 = vsel %vm3084_vm12, 1.0, %v18189_v54  ;;  %v3149_v23 = vsel %vm3085_vm14, 1.0, %v18189_v54  ;;  %vm2792_vm3 = vcmp.eq.s32.totalorder %v9739_v12, %v2698_v62  ;;  %vm2793_vm5 = vcmp.eq.s32.totalorder %v9754_v16, %v2698_v62 }
 0x3ab   :  { %3594 = vperm.xlu1 %8002, %v13262_v38   ;;  %vm3372_vm6 = vcmp.eq.s32.totalorder %v9739_v12, %v12608_v26  ;;  %vm3373_vm15 = vcmp.eq.s32.totalorder %v9754_v16, %v12608_v26  ;;  %v2856_v40 = vsel %vm2792_vm3, 1.0, %v18189_v54  ;;  %v2857_v11 = vsel %vm2793_vm5, 1.0, %v18189_v54  ;;  %5291 = vmatmul.mubr.bf16.gmra.mrb[52].mxu0 %v8412_v7  ;;  %v2707_v51 = vpop.permute.xlu0 %2706  ;;  %v8413_v26 = vld [vmem:[%s17552_s0 + $0xe0] sm:$0xff] }
 0x3ac   :  { %v13275_v42 = vsel %vm3657_vm0, 1.0, %v18189_v54  ;;  %v4074_v62 = vadd.f32 %v4010_v9, %v3786_v28  ;;  %v4075_v4 = vadd.f32 %v4011_v47, %v3787_v13  ;;  %v2920_v10 = vadd.f32 %v2856_v40, %v12985_v3  ;;  %5300 = vmatprep.mubr.bf16.mxu0 %v18170_v52 }
 0x3ad   :  { %4506 = vperm.xlu0 %8062, %v18572_v46   ;;  %vm3376_vm2 = vcmp.eq.s32.totalorder %v9739_v12, %v12652_v27  ;;  %v3212_v57 = vadd.f32 %v3148_v49, %v13162_v18  ;;  %v3213_v7 = vadd.f32 %v3149_v23, %v13165_v0  ;;  %v2921_v41 = vadd.f32 %v2857_v11, %v12988_v32  ;;  %v13292_v46 = vpop.permute.xlu1 %4431 }
 0x3ae   :  { %vm4234_vm7 = vcmp.eq.s32.totalorder %v9739_v12, %v12757_v53  ;;  %vm4235_vm8 = vcmp.eq.s32.totalorder %v9754_v16, %v12757_v53  ;;  %v3208_v3 = vadd.f32 %v13045_v25, %v2920_v10  ;;  %vm2799_vm4 = vcmp.eq.s32.totalorder %v9754_v16, %v2707_v51 }
 0x3af   :  { %8003 = vset.pattern.permute.xlu1 %v18557_v60  ;;  %v3436_v32 = vsel %vm3372_vm6, 1.0, %v18189_v54  ;;  %v3437_v23 = vsel %vm3373_vm15, 1.0, %v18189_v54  ;;  %vm2798_vm1 = vcmp.eq.s32.totalorder %v9739_v12, %v2707_v51  ;;  %v2863_v25 = vsel %vm2799_vm4, 1.0, %v18189_v54  ;;  %v13351_v51 = vld [vmem:[%s17552_s0 + $0x60] sm:$0xff] }
 0x3b0   :  { %3882 = vperm.xlu1 %8003, %v13262_v38   ;;  %v13309_v18 = vsel %vm3376_vm2, 1.0, %v18189_v54  ;;  %vm3660_vm9 = vcmp.eq.s32.totalorder %v9739_v12, %v12920_v33  ;;  %v3496_v0 = vadd.f32 %v3432_v20, %v3208_v3  ;;  %v2927_v49 = vadd.f32 %v2863_v25, %v13011_v2  ;;  %v13328_v20 = vpop.permute.xlu0 %2712 }
 0x3b1   :  { %4509 = vperm.xlu0 %8062, %v8413_v26   ;;  %v4298_v28 = vsel %vm4234_vm7, 1.0, %v18189_v54  ;;  %v4299_v13 = vsel %vm4235_vm8, 1.0, %v18189_v54  ;;  %vm3661_vm10 = vcmp.eq.s32.totalorder %v9754_v16, %v12920_v33  ;;  %v3209_v2 = vadd.f32 %v13057_v5, %v2921_v41  ;;  %v8415_v33 = vld [vmem:[#allocation2 + $0x70] sm:$0xff]  }
 0x3b2   :  { %vm4232_vm11 = vcmp.eq.s32.totalorder %v9739_v12, %v12712_v8  ;;  %v3500_v9 = vadd.f32 %v3436_v32, %v3212_v57  ;;  %v3501_v47 = vadd.f32 %v3437_v23, %v3213_v7  ;;  %v2862_v10 = vsel %vm2798_vm1, 1.0, %v18189_v54  ;;  %v13344_v57 = vpop.permute.xlu1 %3573  ;;  %v18603_v32 = vld [vmem:[#allocation147_spill] sm:$0xff] }
 0x3b3   :  { %vm4233_vm13 = vcmp.eq.s32.totalorder %v9754_v16, %v12712_v8  ;;  %vm3375_vm12 = vcmp.eq.s32.totalorder %v9754_v16, %v12813_v30  ;;  %v3724_v53 = vsel %vm3660_vm9, 1.0, %v18189_v54  ;;  %v3784_v5 = vadd.f32 %v3720_v55, %v3496_v0  ;;  %5301 = vmatmul.mubr.bf16.gmra.mrb[56].mxu0 %v8415_v33 }
 0x3b4   :  { %8004 = vset.pattern.permute.xlu1 %v18224_v45  ;;  %v4362_v41 = vadd.f32 %v4298_v28, %v4074_v62  ;;  %v4363_v40 = vadd.f32 %v4299_v13, %v4075_v4  ;;  %v3725_v11 = vsel %vm3661_vm10, 1.0, %v18189_v54  ;;  %v3215_v7 = vadd.f32 %v13069_v61, %v2927_v49  ;;  %v13362_v62 = vpop.permute.xlu0 %2718  ;;  %5310 = vmatprep.mubr.bf16.mxu0 %v18170_v52 }
 0x3b5   :  { %3021 = vperm.xlu1 %8004, %v13351_v51   ;;  %v4296_v55 = vsel %vm4232_vm11, 1.0, %v18189_v54  ;;  %vm3374_vm14 = vcmp.eq.s32.totalorder %v9739_v12, %v12813_v30  ;;  %v3497_v4 = vadd.f32 %v13245_v15, %v3209_v2  ;;  %v2926_v61 = vadd.f32 %v2862_v10, %v13002_v22  ;;  %8068 = vset.pattern.permute.xlu0 %v18408_v58  ;;  %v8416_v10 = vld [vmem:[#allocation2 + $0x78] sm:$0xff]  }
 0x3b6   :  { %v3439_v3 = vsel %vm3375_vm12, 1.0, %v18189_v54  ;;  %vm4520_vm0 = vcmp.eq.s32.totalorder %v9739_v12, %v12859_v63  ;;  %vm4521_vm3 = vcmp.eq.s32.totalorder %v9754_v16, %v12859_v63  ;;  %v3788_v15 = vadd.f32 %v3724_v53, %v3500_v9  ;;  %3654 = vperm.xlu0 %8068, %v18603_v32   ;;  %v13380_v23 = vpop.permute.xlu1 %3576 }
 0x3b7   :  { %v3789_v22 = vadd.f32 %v3725_v11, %v3501_v47  ;;  %vm3662_vm5 = vcmp.eq.s32.totalorder %v9739_v12, %v12963_v37  ;;  %vm3663_vm6 = vcmp.eq.s32.totalorder %v9754_v16, %v12963_v37  ;;  %v4072_v52 = vadd.f32 %v13190_v29, %v3784_v5 }
 0x3b8   :  { %v4297_v25 = vsel %vm4233_vm13, 1.0, %v18189_v54  ;;  %v4650_v0 = vadd.f32 %v13084_v21, %v4362_v41  ;;  %v3503_v49 = vadd.f32 %v3439_v3, %v3215_v7  ;;  %v4651_v26 = vadd.f32 %v13087_v43, %v4363_v40  ;;  %v13397_v13 = vpop.permute.xlu0 %2724 }
 0x3b9   :  { %8005 = vset.pattern.permute.xlu1 %v18367_v6  ;;  %v3438_v28 = vsel %vm3374_vm14, 1.0, %v18189_v54  ;;  %vm3950_vm15 = vcmp.eq.s32.totalorder %v9739_v12, %v13019_v1  ;;  %v3785_v29 = vadd.f32 %v13275_v42, %v3497_v4  ;;  %v3214_v8 = vadd.f32 %v13063_v34, %v2926_v61 }
 0x3ba   :  { %4167 = vperm.xlu1 %8005, %v12932_v48   ;;  %v4584_v21 = vsel %vm4520_vm0, 1.0, %v18189_v54  ;;  %v4585_v30 = vsel %vm4521_vm3, 1.0, %v18189_v54  ;;  %v3726_v43 = vsel %vm3662_vm5, 1.0, %v18189_v54  ;;  %v3727_v34 = vsel %vm3663_vm6, 1.0, %v18189_v54  ;;  %8069 = vset.pattern.permute.xlu0 %v18367_v6  ;;  %v13429_v47 = vpop.permute.xlu1 %3864 }
 0x3bb   :  { %vm3951_vm2 = vcmp.eq.s32.totalorder %v9754_v16, %v13019_v1  ;;  %v13420_v42 = vadd.f32 %v13214_v31, %v3788_v15  ;;  %v4077_v63 = vadd.f32 %v13222_v39, %v3789_v22  ;;  %v4360_v2 = vadd.f32 %v4296_v55, %v4072_v52  ;;  %4224 = vperm.xlu0 %8069, %v18575_v14   ;;  %v13478_v22 = vld [vmem:[%s17552_s0 + $0x68] sm:$0xff] }
 0x3bc   :  { %v4014_v9 = vsel %vm3950_vm15, 1.0, %v18189_v54  ;;  %vm3088_vm7 = vcmp.eq.s32.totalorder %v9739_v12, %v13094_v35  ;;  %vm4237_vm8 = vcmp.eq.s32.totalorder %v9754_v16, %v13156_v56  ;;  %v3791_v37 = vadd.f32 %v3727_v34, %v3503_v49  ;;  %5311 = vmatmul.mubr.bf16.gmra.mrb[60].mxu0 %v8416_v10  ;;  %v13438_v39 = vpop.permute.xlu0 %2730  ;;  %v18610_v34 = vld [vmem:[#allocation223_spill] sm:$0xff] }
 0x3bd   :  { %vm3377_vm4 = vcmp.eq.s32.totalorder %v9754_v16, %v12652_v27  ;;  %v3502_v31 = vadd.f32 %v3438_v28, %v3214_v8  ;;  %vm2802_vm1 = vcmp.eq.s32.totalorder %v9739_v12, %v13328_v20  ;;  %vm2803_vm9 = vcmp.eq.s32.totalorder %v9754_v16, %v13328_v20  ;;  %v18606_v28 = vld [vmem:[#allocation15_spill] sm:$0xff]  ;;  %v18615_v27 = vld [vmem:[#allocation221_spill] sm:$0xff] }
 0x3be   :  { %v4073_v14 = vadd.f32 %v13208_v50, %v3785_v29  ;;  %4170 = vperm.xlu1 %8005, %v13262_v38   ;;  %v4015_v53 = vsel %vm3951_vm2, 1.0, %v18189_v54  ;;  %vm3089_vm10 = vcmp.eq.s32.totalorder %v9754_v16, %v13094_v35  ;;  %vm4239_vm11 = vcmp.eq.s32.totalorder %v9754_v16, %v13199_v36  ;;  %v13469_v61 = vpop.permute.xlu1 %3003 }
 0x3bf   :  { %vm4525_vm13 = vcmp.eq.s32.totalorder %v9754_v16, %v13292_v46  ;;  %v3152_v50 = vsel %vm3088_vm7, 1.0, %v18189_v54  ;;  %v4301_v1 = vsel %vm4237_vm8, 1.0, %v18189_v54  ;;  %v4648_v20 = vadd.f32 %v4584_v21, %v4360_v2  ;;  %4227 = vperm.xlu0 %8069, %v13037_v44   ;;  %v18607_v21 = vld [vmem:[#allocation127_spill] sm:$0xff] }
 0x3c0   :  { %v4361_v38 = vadd.f32 %v4297_v25, %v4073_v14  ;;  %vm4236_vm12 = vcmp.eq.s32.totalorder %v9739_v12, %v13156_v56  ;;  %v2866_v5 = vsel %vm2802_vm1, 1.0, %v18189_v54  ;;  %v2867_v41 = vsel %vm2803_vm9, 1.0, %v18189_v54  ;;  %v13466_v4 = vpop.permute.xlu0 %2736 }
 0x3c1   :  { %v4079_v40 = vadd.f32 %v4015_v53, %v3791_v37  ;;  %v4303_v11 = vsel %vm4239_vm11, 1.0, %v18189_v54  ;;  %v3790_v7 = vadd.f32 %v3726_v43, %v3502_v31  ;;  %v4589_v33 = vsel %vm4525_vm13, 1.0, %v18189_v54  ;;  %v18613_v31 = vld [vmem:[#allocation31_spill] sm:$0xff] }
 0x3c2   :  { %v4649_v55 = vadd.f32 %v4585_v30, %v4361_v38  ;;  %8006 = vset.pattern.permute.xlu1 %v18262_v59  ;;  %v4365_v44 = vadd.f32 %v4301_v1, %v4077_v63  ;;  %vm4238_vm14 = vcmp.eq.s32.totalorder %v9739_v12, %v13199_v36  ;;  %v13473_v3 = vpack.c.bf16 %v4650_v0, %v4648_v20  ;;  %v18611_v63 = vld [vmem:[#allocation217_spill] sm:$0xff] }
 0x3c3   :  { %v4367_v15 = vadd.f32 %v4303_v11, %v4079_v40  ;;  %3312 = vperm.xlu1 %8006, %v13478_v22   ;;  %vm4524_vm0 = vcmp.eq.s32.totalorder %v9739_v12, %v13292_v46  ;;  %v2930_v52 = vadd.f32 %v2866_v5, %v13028_v17  ;;  %v2931_v25 = vadd.f32 %v2867_v41, %v13042_v19  ;;  %v18614_v1 = vld [vmem:[#allocation225_spill] sm:$0xff] }
 0x3c4   :  { %18604 = vst [vmem:[#allocation144_spill] sm:$0xff] %v13473_v3  ;;  %v13485_v49 = vpack.c.bf16 %v4651_v26, %v4649_v55  ;;  %8073 = vset.pattern.permute.xlu0 %v18312_v24  ;;  %v3153_v0 = vsel %vm3089_vm10, 1.0, %v18189_v54  ;;  %v3216_v29 = vadd.f32 %v3152_v50, %v18606_v28  ;;  %v4653_v8 = vadd.f32 %v4589_v33, %v4365_v44  ;;  %v18608_v26 = vld [vmem:[#allocation35_spill] sm:$0xff]  ;;  %v13506_v43 = vpop.permute.xlu0 %2742 }
 0x3c5   :  { %v4655_v30 = vadd.f32 %v18607_v21, %v4367_v15  ;;  %4518 = vperm.xlu0 %8073, %v18603_v32   ;;  %v4300_v17 = vsel %vm4236_vm12, 1.0, %v18189_v54  ;;  %v4302_v19 = vsel %vm4238_vm14, 1.0, %v18189_v54  ;;  %vm3378_vm3 = vcmp.eq.s32.totalorder %v9739_v12, %v18608_v26  ;;  %v13519_v32 = vpop.permute.xlu1 %4149  ;;  %v18618_v21 = vld [vmem:[#allocation128_spill] sm:$0xff] }
 0x3c6   :  { %18605 = vst [vmem:[#allocation37_spill] sm:$0xff] %v13485_v49  ;;  %5866 = vmatprep.mubr.bf16.mxu1 %v13485_v49  ;;  %v4078_v35 = vadd.f32 %v4014_v9, %v3790_v7  ;;  %vm3379_vm5 = vcmp.eq.s32.totalorder %v9754_v16, %v18608_v26  ;;  %v4588_v56 = vsel %vm4524_vm0, 1.0, %v18189_v54  ;;  %vm3664_vm6 = vcmp.eq.s32.totalorder %v9739_v12, %v13344_v57  ;;  %v18612_v9 = vld [vmem:[#allocation219_spill] sm:$0xff] }
 0x3c7   :  { %5867 = vmatmul.mubr.bf16.vlgmr.msra.gmra.mrb[64].mxu1 %v13473_v3  ;;  %v13517_v36 = vpack.c.bf16 %v4655_v30, %v4653_v8  ;;  %vm2228_vm15 = vcmp.eq.s32.totalorder %v9739_v12, %v18610_v34  ;;  %vm2229_vm2 = vcmp.eq.s32.totalorder %v9754_v16, %v18610_v34  ;;  %v3218_v2 = vadd.f32 %v18611_v63, %v2930_v52  ;;  %v8197_v49 = vld [vmem:[#allocation7 + $0x34] ss:$8 sps:$4 sm:$0xff]  }
 0x3c8   :  { %v3219_v46 = vadd.f32 %v18612_v9, %v2931_v25  ;;  %vm3665_vm7 = vcmp.eq.s32.totalorder %v9754_v16, %v13344_v57  ;;  %v4366_v37 = vadd.f32 %v4302_v19, %v4078_v35  ;;  %8007 = vset.pattern.permute.xlu1 %v18312_v24  ;;  %v3441_v10 = vsel %vm3377_vm4, 1.0, %v18189_v54  ;;  %v18617_v57 = vld [vmem:[#allocation66_spill] sm:$0xff]  ;;  %v18619_v35 = vld [vmem:[#allocation81_spill] sm:$0xff] }
 0x3c9   :  { %18609 = vst [vmem:[#allocation14_spill] sm:$0xff] %v13517_v36  ;;  %v3217_v14 = vadd.f32 %v3153_v0, %v18613_v31  ;;  %v4364_v53 = vadd.f32 %v4300_v17, %v13420_v42  ;;  %v3504_v50 = vadd.f32 %v13309_v18, %v3216_v29  ;;  %5876 = vmatprep.mubr.bf16.mxu1 %v13517_v36  ;;  %v3442_v38 = vsel %vm3378_vm3, 1.0, %v18189_v54  ;;  %v13550_v42 = vpop.permute.xlu0 %2748  ;;  %v4153_v41 = vpop.permute.xlu1 %4152 }
 0x3ca   :  { %4455 = vperm.xlu1 %8007, %v12932_v48   ;;  %vm2232_vm8 = vcmp.eq.s32.totalorder %v9739_v12, %v18614_v1  ;;  %vm3666_vm4 = vcmp.eq.s32.totalorder %v9739_v12, %v13380_v23  ;;  %vm3667_vm1 = vcmp.eq.s32.totalorder %v9754_v16, %v13380_v23  ;;  %v4654_v18 = vadd.f32 %v18615_v27, %v4366_v37 }
 0x3cb   :  { %v3443_v48 = vsel %vm3379_vm5, 1.0, %v18189_v54  ;;  %v4652_v20 = vadd.f32 %v4588_v56, %v4364_v53  ;;  %v3728_v5 = vsel %vm3664_vm6, 1.0, %v18189_v54  ;;  %v3729_v23 = vsel %vm3665_vm7, 1.0, %v18189_v54 }
 0x3cc   :  { %v3506_v40 = vadd.f32 %v3442_v38, %v3218_v2  ;;  %v3507_v11 = vadd.f32 %v3443_v48, %v3219_v46  ;;  %vm3954_vm9 = vcmp.eq.s32.totalorder %v9739_v12, %v13429_v47  ;;  %vm3955_vm10 = vcmp.eq.s32.totalorder %v9754_v16, %v13429_v47 }
 0x3cd   :  { %v3505_v7 = vadd.f32 %v3441_v10, %v3217_v14  ;;  %v3730_v33 = vsel %vm3666_vm4, 1.0, %v18189_v54  ;;  %v3731_v55 = vsel %vm3667_vm1, 1.0, %v18189_v54  ;;  %v13570_v44 = vpack.c.bf16 %v4654_v18, %v4652_v20  ;;  %v13580_v47 = vpop.permute.xlu0 %2754  ;;  %v13589_v8 = vpop.permute.xlu1 %3294 }
 0x3ce   :  { %8008 = vset.pattern.permute.xlu1 %v18408_v58  ;;  %vm3952_vm11 = vcmp.eq.s32.totalorder %v9739_v12, %v18617_v57  ;;  %vm3953_vm13 = vcmp.eq.s32.totalorder %v9754_v16, %v18617_v57  ;;  %vm4242_vm12 = vcmp.eq.s32.totalorder %v9739_v12, %v4153_v41  ;;  %vm4243_vm14 = vcmp.eq.s32.totalorder %v9754_v16, %v4153_v41  ;;  %v18623_v57 = vld [vmem:[#allocation208_spill] sm:$0xff] }
 0x3cf   :  { %18616 = vst [vmem:[#allocation56_spill] sm:$0xff] %v13570_v44  ;;  %3597 = vperm.xlu1 %8008, %v13351_v51   ;;  %v3792_v15 = vadd.f32 %v3728_v5, %v3504_v50  ;;  %v3793_v52 = vadd.f32 %v3729_v23, %v3505_v7  ;;  %v4018_v25 = vsel %vm3954_vm9, 1.0, %v18189_v54  ;;  %v4019_v0 = vsel %vm3955_vm10, 1.0, %v18189_v54  ;;  %5877 = vmatmul.mubr.bf16.gmra.mrb[68].mxu1 %v13570_v44  ;;  %v18621_v5 = vld [vmem:[#allocation228_spill] sm:$0xff] }
 0x3d0   :  { %v3794_v28 = vadd.f32 %v3730_v33, %v3506_v40  ;;  %v3795_v29 = vadd.f32 %v3731_v55, %v3507_v11  ;;  %vm4240_vm0 = vcmp.eq.s32.totalorder %v9739_v12, %v13519_v32  ;;  %vm4241_vm3 = vcmp.eq.s32.totalorder %v9754_v16, %v13519_v32  ;;  %v18622_v55 = vld [vmem:[#allocation172_spill] sm:$0xff] }
 0x3d1   :  { %vm1384_vm5 = vcmp.eq.s32.totalorder %v9739_v12, %v18618_v21  ;;  %v4016_v30 = vsel %vm3952_vm11, 1.0, %v18189_v54  ;;  %v4017_v17 = vsel %vm3953_vm13, 1.0, %v18189_v54  ;;  %v4306_v19 = vsel %vm4242_vm12, 1.0, %v18189_v54  ;;  %v13612_v2 = vpop.permute.xlu0 %2760 }
 0x3d2   :  { %v4307_v26 = vsel %vm4243_vm14, 1.0, %v18189_v54  ;;  %vm4530_vm6 = vcmp.eq.s32.totalorder %v9739_v12, %v18619_v35  ;;  %vm4531_vm7 = vcmp.eq.s32.totalorder %v9754_v16, %v18619_v35  ;;  %v4082_v56 = vadd.f32 %v4018_v25, %v3794_v28  ;;  %18620 = vst [vmem:[#allocation59_spill] sm:$0xff] %v13612_v2  ;;  %v4438_v27 = vpop.permute.xlu1 %4437  ;;  %v18625_v25 = vld [vmem:[#allocation212_spill] sm:$0xff]  ;;  %v18626_v28 = vld [vmem:[#allocation153_spill] sm:$0xff] }
 0x3d3   :  { %v4083_v63 = vadd.f32 %v4019_v0, %v3795_v29  ;;  %3600 = vperm.xlu1 %8008, %v13478_v22   ;;  %v2292_v9 = vsel %vm2228_vm15, 1.0, %v18189_v54  ;;  %v2293_v46 = vsel %vm2229_vm2, 1.0, %v18189_v54  ;;  %v4304_v37 = vsel %vm4240_vm0, 1.0, %v18189_v54 }
 0x3d4   :  { %v4305_v10 = vsel %vm4241_vm3, 1.0, %v18189_v54  ;;  %v4080_v31 = vadd.f32 %v4016_v30, %v3792_v15  ;;  %v4081_v14 = vadd.f32 %v4017_v17, %v3793_v52  ;;  %v4370_v53 = vadd.f32 %v4306_v19, %v4082_v56  ;;  %v18624_v52 = vld [vmem:[#allocation176_spill] sm:$0xff]  ;;  %v18627_v19 = vld [vmem:[#allocation230_spill] sm:$0xff] }
 0x3d5   :  { %v4371_v50 = vadd.f32 %v4307_v26, %v4083_v63  ;;  %vm2233_vm15 = vcmp.eq.s32.totalorder %v9754_v16, %v18614_v1  ;;  %v2296_v34 = vsel %vm2232_vm8, 1.0, %v18189_v54  ;;  %v4594_v38 = vsel %vm4530_vm6, 1.0, %v18189_v54  ;;  %v13647_v20 = vpop.permute.xlu0 %2766  ;;  %v18631_v1 = vld [vmem:[#allocation159_spill] sm:$0xff] }
 0x3d6   :  { %v4595_v32 = vsel %vm4531_vm7, 1.0, %v18189_v54  ;;  %v4368_v18 = vadd.f32 %v4304_v37, %v4080_v31  ;;  %v4369_v48 = vadd.f32 %v4305_v10, %v4081_v14  ;;  %vm4528_vm2 = vcmp.eq.s32.totalorder %v9739_v12, %v4438_v27 }
 0x3d7   :  { %8009 = vset.pattern.permute.xlu1 %v18557_v60  ;;  %vm4529_vm4 = vcmp.eq.s32.totalorder %v9754_v16, %v4438_v27  ;;  %vm2262_vm8 = vcmp.eq.s32.totalorder %v9739_v12, %v18621_v5  ;;  %vm2263_vm1 = vcmp.eq.s32.totalorder %v9754_v16, %v18621_v5  ;;  %v4592_v23 = vsel %vm4528_vm2, 1.0, %v18189_v54  ;;  %v13676_v35 = vpop.permute.xlu1 %3579 }
 0x3d8   :  { %v4593_v41 = vsel %vm4529_vm4, 1.0, %v18189_v54  ;;  %3888 = vperm.xlu1 %8009, %v13478_v22   ;;  %v4656_v40 = vadd.f32 %v4592_v23, %v4368_v18  ;;  %v4659_v7 = vadd.f32 %v4595_v32, %v4371_v50  ;;  %v4658_v33 = vadd.f32 %v4594_v38, %v4370_v53  ;;  %v18632_v53 = vld [vmem:[#allocation166_spill] sm:$0xff]  ;;  %v18633_v50 = vld [vmem:[#allocation232_spill] sm:$0xff] }
 0x3d9   :  { %v4657_v11 = vadd.f32 %v4593_v41, %v4369_v48  ;;  %v13658_v15 = vadd.f32 %v18623_v57, %v18622_v55  ;;  %v13662_v0 = vadd.f32 %v18625_v25, %v18624_v52  ;;  %v2356_v29 = vadd.f32 %v2292_v9, %v18626_v28  ;;  %v13674_v26 = vpop.permute.xlu0 %2772  ;;  %v18630_v9 = vld [vmem:[#allocation157_spill] sm:$0xff]  ;;  %v18634_v38 = vld [vmem:[#allocation180_spill] sm:$0xff]  ;;  %v18635_v18 = vld [vmem:[#allocation234_spill] sm:$0xff] }
 0x3da   :  { %v2297_v30 = vsel %vm2233_vm15, 1.0, %v18189_v54  ;;  %vm1385_vm9 = vcmp.eq.s32.totalorder %v9754_v16, %v18618_v21  ;;  %v2326_v17 = vsel %vm2262_vm8, 1.0, %v18189_v54  ;;  %vm2266_vm10 = vcmp.eq.s32.totalorder %v9739_v12, %v18627_v19  ;;  %v18636_v48 = vld [vmem:[#allocation182_spill] sm:$0xff]  ;;  %v18637_v41 = vld [vmem:[#allocation23_spill] sm:$0xff]  ;;  %v18638_v52 = vld [vmem:[#allocation25_spill] sm:$0xff] }
 0x3db   :  { %v13678_v56 = vpack.c.bf16 %v4659_v7, %v4657_v11  ;;  %v13680_v63 = vpack.c.bf16 %v4658_v33, %v4656_v40  ;;  %v2357_v37 = vadd.f32 %v2293_v46, %v18630_v9  ;;  %v2360_v10 = vadd.f32 %v2296_v34, %v18631_v1  ;;  %v13705_v34 = vld [vmem:[%s17552_s0 + $0x70] sm:$0xff]  ;;  %v8186_v7 = vld [vmem:[#allocation7] ss:$8 sps:$4 sm:$0xff]   ;;  %v8188_v33 = vld [vmem:[#allocation7 + $0x4] ss:$8 sps:$4 sm:$0xff]  }
 0x3dc   :  { %v2327_v31 = vsel %vm2263_vm1, 1.0, %v18189_v54  ;;  %vm2267_vm11 = vcmp.eq.s32.totalorder %v9754_v16, %v18627_v19  ;;  %8010 = vset.pattern.permute.xlu1 %v18224_v45  ;;  %v13695_v14 = vsel %vm1384_vm5, 1.0, %v18189_v54  ;;  %v2361_v46 = vadd.f32 %v2297_v30, %v18632_v53  ;;  %v13731_v11 = vpop.permute.xlu1 %3582  ;;  %v18639_v25 = vld [vmem:[#allocation183_spill] sm:$0xff]  ;;  %v18640_v19 = vld [vmem:[#allocation240_spill] sm:$0xff]  ;;  %6958 = vmatprep.subr.bf16.mxu0 %v8188_v33  ;;  %v18641_v9 = vld [vmem:[#allocation185_spill] sm:$0xff] }
 0x3dd   :  { %18628 = vst [vmem:[#allocation27_spill] sm:$0xff] %v13678_v56  ;;  %18629 = vst [vmem:[#allocation70_spill] sm:$0xff] %v13680_v63  ;;  %vm2270_vm13 = vcmp.eq.s32.totalorder %v9739_v12, %v18633_v50  ;;  %vm2271_vm12 = vcmp.eq.s32.totalorder %v9754_v16, %v18633_v50  ;;  %3027 = vperm.xlu1 %8010, %v13705_v34   ;;  %5886 = vmatprep.mubr.bf16.mxu1 %v13678_v56  ;;  %v2330_v27 = vsel %vm2266_vm10, 1.0, %v18189_v54  ;;  %v13729_v40 = vpop.permute.xlu0 %2778  ;;  %v18642_v50 = vld [vmem:[#allocation189_spill] sm:$0xff] }
 0x3de   :  { %v13710_v32 = vadd.f32 %v2326_v17, %v18634_v38  ;;  %vm2274_vm14 = vcmp.eq.s32.totalorder %v9739_v12, %v18635_v18  ;;  %vm2275_vm0 = vcmp.eq.s32.totalorder %v9754_v16, %v18635_v18  ;;  %5887 = vmatmul.mubr.bf16.gmra.mrb[72].mxu1 %v13680_v63  ;;  %v13722_v5 = vadd.f32 %v2327_v31, %v18636_v48  ;;  %v8191_v63 = vld [vmem:[#allocation7 + $0x14] ss:$8 sps:$4 sm:$0xff]  }
 0x3df   :  { %v2331_v23 = vsel %vm2267_vm11, 1.0, %v18189_v54  ;;  %vm2516_vm3 = vcmp.eq.s32.totalorder %v9739_v12, %v18637_v41  ;;  %vm2517_vm5 = vcmp.eq.s32.totalorder %v9754_v16, %v18637_v41  ;;  %v2334_v55 = vsel %vm2270_vm13, 1.0, %v18189_v54  ;;  %6959 = vmatpush1.bf16.msra.mxu0 %v8186_v7  ;;  %v18644_v41 = vld [vmem:[#allocation207_spill] sm:$0xff] }
 0x3e0   :  { %v2335_v57 = vsel %vm2271_vm12, 1.0, %v18189_v54  ;;  %vm2520_vm6 = vcmp.eq.s32.totalorder %v9739_v12, %v18638_v52  ;;  %vm2521_vm7 = vcmp.eq.s32.totalorder %v9754_v16, %v18638_v52  ;;  %v13746_v28 = vadd.f32 %v2330_v27, %v18639_v25  ;;  %v18643_v27 = vld [vmem:[#allocation193_spill] sm:$0xff]  ;;  %v18645_v25 = vld [vmem:[#allocation250_spill] sm:$0xff]  ;;  %6960 = vmatprep.subr.bf16.mxu0 %v8191_v63 }
 0x3e1   :  { %v2338_v30 = vsel %vm2274_vm14, 1.0, %v18189_v54  ;;  %v2339_v17 = vsel %vm2275_vm0, 1.0, %v18189_v54  ;;  %vm2518_vm15 = vcmp.eq.s32.totalorder %v9739_v12, %v18640_v19  ;;  %8011 = vset.pattern.permute.xlu1 %v18367_v6  ;;  %v13760_v1 = vadd.f32 %v2331_v23, %v18641_v9  ;;  %v13781_v33 = vpop.permute.xlu0 %2784  ;;  %v8194_v63 = vld [vmem:[#allocation7 + $0x24] ss:$8 sps:$4 sm:$0xff]  }
 0x3e2   :  { %v2580_v31 = vsel %vm2516_vm3, 1.0, %v18189_v54  ;;  %v2581_v53 = vsel %vm2517_vm5, 1.0, %v18189_v54  ;;  %vm2519_vm2 = vcmp.eq.s32.totalorder %v9754_v16, %v18640_v19  ;;  %4173 = vperm.xlu1 %8011, %v13351_v51   ;;  %v13774_v38 = vadd.f32 %v2334_v55, %v18642_v50  ;;  %v13795_v50 = vpop.permute.xlu1 %3870 }
 0x3e3   :  { %v13777_v18 = vadd.f32 %v2335_v57, %v18643_v27  ;;  %v2584_v48 = vsel %vm2520_vm6, 1.0, %v18189_v54  ;;  %v2585_v23 = vsel %vm2521_vm7, 1.0, %v18189_v54  ;;  %v13784_v52 = vadd.f32 %v2338_v30, %v18644_v41  ;;  %v18646_v57 = vld [vmem:[#allocation245_spill] sm:$0xff]  ;;  %v8189_v27 = vld [vmem:[#allocation7 + $0x10] ss:$8 sps:$4 sm:$0xff]  }
 0x3e4   :  { %v13787_v9 = vadd.f32 %v2339_v17, %v18645_v25  ;;  %v2582_v55 = vsel %vm2518_vm15, 1.0, %v18189_v54  ;;  %vm2522_vm4 = vcmp.eq.s32.totalorder %v9739_v12, %v18646_v57  ;;  %v2644_v56 = vadd.f32 %v2580_v31, %v2356_v29  ;;  %v18647_v29 = vld [vmem:[#allocation63_spill] sm:$0xff]  ;;  %6961 = vmatpush1.bf16.msra.mxu0 %v8189_v27 }
 0x3e5   :  { %v2645_v7 = vadd.f32 %v2581_v53, %v2357_v37  ;;  %v2583_v30 = vsel %vm2519_vm2, 1.0, %v18189_v54  ;;  %vm2523_vm8 = vcmp.eq.s32.totalorder %v9754_v16, %v18646_v57  ;;  %v13807_v17 = vsel %vm1385_vm9, 1.0, %v18189_v54  ;;  %v18648_v37 = vld [vmem:[#allocation117_spill] sm:$0xff]  ;;  %v18649_v53 = vld [vmem:[#allocation91_spill] sm:$0xff]  ;;  %v13822_v21 = vpop.permute.xlu0 %2790  ;;  %6962 = vmatprep.subr.bf16.mxu0 %v8194_v63 }
 0x3e6   :  { %v13809_v41 = vadd.f32 %v2584_v48, %v2360_v10  ;;  %v13811_v25 = vadd.f32 %v2585_v23, %v2361_v46  ;;  %vm2550_vm1 = vcmp.eq.s32.totalorder %v9739_v12, %v18647_v29  ;;  %4176 = vperm.xlu1 %8011, %v13478_v22   ;;  %v2646_v19 = vadd.f32 %v2582_v55, %v18648_v37  ;;  %v18651_v10 = vld [vmem:[#allocation206_spill] sm:$0xff]  ;;  %v8192_v22 = vld [vmem:[#allocation7 + $0x20] ss:$8 sps:$4 sm:$0xff]   ;;  %v13837_v57 = vpop.permute.xlu1 %3009 }
 0x3e7   :  { %v2586_v31 = vsel %vm2522_vm4, 1.0, %v18189_v54  ;;  %vm2804_vm10 = vcmp.eq.s32.totalorder %v9739_v12, %v18649_v53  ;;  %vm2805_vm9 = vcmp.eq.s32.totalorder %v9754_v16, %v18649_v53  ;;  %18650 = vst [vmem:[#allocation46_spill] sm:$0xff] %v13822_v21  ;;  %v2647_v46 = vadd.f32 %v2583_v30, %v18651_v10  ;;  %v18652_v55 = vld [vmem:[#allocation64_spill] sm:$0xff]  ;;  %v13869_v53 = vld [vmem:[%s17552_s0 + $0x78] sm:$0xff] }
 0x3e8   :  { %v2587_v48 = vsel %vm2523_vm8, 1.0, %v18189_v54  ;;  %vm2806_vm11 = vcmp.eq.s32.totalorder %v9739_v12, %v13362_v62  ;;  %vm2807_vm13 = vcmp.eq.s32.totalorder %v9754_v16, %v13362_v62  ;;  %v2614_v23 = vsel %vm2550_vm1, 1.0, %v18189_v54  ;;  %6963 = vmatpush1.bf16.msra.mxu0 %v8192_v22  ;;  %v18654_v21 = vld [vmem:[#allocation168_spill] sm:$0xff] }
 0x3e9   :  { %vm3094_vm12 = vcmp.eq.s32.totalorder %v9739_v12, %v18652_v55  ;;  %vm3095_vm14 = vcmp.eq.s32.totalorder %v9754_v16, %v18652_v55  ;;  %vm3092_vm0 = vcmp.eq.s32.totalorder %v9739_v12, %v13469_v61  ;;  %v13840_v27 = vadd.f32 %v2586_v31, %v13658_v15  ;;  %v13887_v36 = vpop.permute.xlu0 %3012  ;;  %v8195_v55 = vld [vmem:[#allocation7 + $0x30] ss:$8 sps:$4 sm:$0xff]   ;;  %6964 = vmatprep.subr.bf16.mxu0 %v8197_v49 }
 0x3ea   :  { %v2868_v30 = vsel %vm2804_vm10, 1.0, %v18189_v54  ;;  %v2869_v37 = vsel %vm2805_vm9, 1.0, %v18189_v54  ;;  %vm3093_vm3 = vcmp.eq.s32.totalorder %v9754_v16, %v13469_v61  ;;  %8012 = vset.pattern.permute.xlu1 %v18262_v59  ;;  %v13854_v10 = vadd.f32 %v2587_v48, %v13662_v0 }
 0x3eb   :  { %vm2551_vm5 = vcmp.eq.s32.totalorder %v9754_v16, %v18647_v29  ;;  %v2870_v15 = vsel %vm2806_vm11, 1.0, %v18189_v54  ;;  %v2871_v31 = vsel %vm2807_vm13, 1.0, %v18189_v54  ;;  %3318 = vperm.xlu1 %8012, %v13869_v53   ;;  %v13873_v0 = vadd.f32 %v2614_v23, %v13710_v32  ;;  %v18653_v23 = vld [vmem:[#allocation67_spill] sm:$0xff] }
 0x3ec   :  { %v3158_v48 = vsel %vm3094_vm12, 1.0, %v18189_v54  ;;  %v3159_v62 = vsel %vm3095_vm14, 1.0, %v18189_v54  ;;  %v3156_v44 = vsel %vm3092_vm0, 1.0, %v18189_v54  ;;  %v2932_v32 = vadd.f32 %v2868_v30, %v2644_v56  ;;  %v13899_v56 = vpop.permute.xlu1 %4155  ;;  %6965 = vmatpush1.bf16.msra.mxu0 %v8195_v55 }
 0x3ed   :  { %v2933_v63 = vadd.f32 %v2869_v37, %v2645_v7  ;;  %vm3956_vm6 = vcmp.eq.s32.totalorder %v9739_v12, %v18653_v23  ;;  %v3157_v3 = vsel %vm3093_vm3, 1.0, %v18189_v54  ;;  %vm3380_vm7 = vcmp.eq.s32.totalorder %v9739_v12, %v18654_v21  ;;  %v8200_v7 = vld [vmem:[#allocation7 + $0x44] ss:$8 sps:$4 sm:$0xff]  }
 0x3ee   :  { %vm3381_vm15 = vcmp.eq.s32.totalorder %v9754_v16, %v18654_v21  ;;  %v2934_v2 = vadd.f32 %v2870_v15, %v2646_v19  ;;  %v2935_v22 = vadd.f32 %v2871_v31, %v2647_v46  ;;  %vm3957_vm2 = vcmp.eq.s32.totalorder %v9754_v16, %v18653_v23  ;;  %v18655_v46 = vld [vmem:[#allocation69_spill] sm:$0xff]  ;;  %6966 = vmatprep.subr.bf16.mxu0 %v8200_v7 }
 0x3ef   :  { %v3220_v30 = vadd.f32 %v3156_v44, %v2932_v32  ;;  %vm3382_vm4 = vcmp.eq.s32.totalorder %v9739_v12, %v13589_v8  ;;  %vm3383_vm8 = vcmp.eq.s32.totalorder %v9754_v16, %v13589_v8  ;;  %8013 = vset.pattern.permute.xlu1 %v18312_v24  ;;  %v2615_v61 = vsel %vm2551_vm5, 1.0, %v18189_v54  ;;  %v13917_v44 = vpop.permute.xlu0 %3018  ;;  %v8198_v31 = vld [vmem:[#allocation7 + $0x40] ss:$8 sps:$4 sm:$0xff]   ;;  %v8203_v8 = vld [vmem:[#allocation7 + $0x54] ss:$8 sps:$4 sm:$0xff]  }
 0x3f0   :  { %v3221_v19 = vadd.f32 %v3157_v3, %v2933_v63  ;;  %vm3668_vm1 = vcmp.eq.s32.totalorder %v9739_v12, %v13676_v35  ;;  %vm3669_vm10 = vcmp.eq.s32.totalorder %v9754_v16, %v13676_v35  ;;  %4461 = vperm.xlu1 %8013, %v13351_v51   ;;  %vm2554_vm9 = vcmp.eq.s32.totalorder %v9739_v12, %v18655_v46  ;;  %v4159_v15 = vpop.permute.xlu1 %4158 }
 0x3f1   :  { %v3444_v29 = vsel %vm3380_vm7, 1.0, %v18189_v54  ;;  %v3445_v3 = vsel %vm3381_vm15, 1.0, %v18189_v54  ;;  %vm3670_vm11 = vcmp.eq.s32.totalorder %v9739_v12, %v13731_v11  ;;  %vm3671_vm13 = vcmp.eq.s32.totalorder %v9754_v16, %v13731_v11  ;;  %6967 = vmatpush1.bf16.msra.mxu0 %v8198_v31 }
 0x3f2   :  { %v3222_v51 = vadd.f32 %v3158_v48, %v2934_v2  ;;  %v3223_v49 = vadd.f32 %v3159_v62, %v2935_v22  ;;  %v3446_v37 = vsel %vm3382_vm4, 1.0, %v18189_v54  ;;  %v3447_v21 = vsel %vm3383_vm8, 1.0, %v18189_v54  ;;  %6968 = vmatprep.subr.bf16.mxu0 %v8203_v8 }
 0x3f3   :  { %v3732_v32 = vsel %vm3668_vm1, 1.0, %v18189_v54  ;;  %v3733_v2 = vsel %vm3669_vm10, 1.0, %v18189_v54  ;;  %vm3958_vm12 = vcmp.eq.s32.totalorder %v9739_v12, %v13795_v50  ;;  %vm3959_vm14 = vcmp.eq.s32.totalorder %v9754_v16, %v13795_v50  ;;  %v13962_v55 = vpop.permute.xlu0 %3024 }
 0x3f4   :  { %v3508_v48 = vadd.f32 %v3444_v29, %v3220_v30  ;;  %v3509_v62 = vadd.f32 %v3445_v3, %v3221_v19  ;;  %v3734_v63 = vsel %vm3670_vm11, 1.0, %v18189_v54  ;;  %v3735_v35 = vsel %vm3671_vm13, 1.0, %v18189_v54  ;;  %8014 = vset.pattern.permute.xlu1 %v18408_v58  ;;  %v8201_v3 = vld [vmem:[#allocation7 + $0x50] ss:$8 sps:$4 sm:$0xff]  }
 0x3f5   :  { %v3510_v22 = vadd.f32 %v3446_v37, %v3222_v51  ;;  %v3511_v7 = vadd.f32 %v3447_v21, %v3223_v49  ;;  %vm4246_vm0 = vcmp.eq.s32.totalorder %v9739_v12, %v4159_v15  ;;  %vm4247_vm3 = vcmp.eq.s32.totalorder %v9754_v16, %v4159_v15  ;;  %3603 = vperm.xlu1 %8014, %v13705_v34   ;;  %v13979_v37 = vpop.permute.xlu1 %3300  ;;  %v8206_v21 = vld [vmem:[#allocation7 + $0x64] ss:$8 sps:$4 sm:$0xff]  }
 0x3f6   :  { %v3796_v30 = vadd.f32 %v3732_v32, %v3508_v48  ;;  %v3797_v19 = vadd.f32 %v3733_v2, %v3509_v62  ;;  %v4022_v11 = vsel %vm3958_vm12, 1.0, %v18189_v54  ;;  %v4023_v29 = vsel %vm3959_vm14, 1.0, %v18189_v54  ;;  %v18656_v48 = vld [vmem:[#allocation44_spill] sm:$0xff]  ;;  %6969 = vmatpush1.bf16.msra.mxu0 %v8201_v3 }
 0x3f7   :  { %v3798_v51 = vadd.f32 %v3734_v63, %v3510_v22  ;;  %v3799_v49 = vadd.f32 %v3735_v35, %v3511_v7  ;;  %vm4244_vm5 = vcmp.eq.s32.totalorder %v9739_v12, %v13899_v56  ;;  %vm4245_vm7 = vcmp.eq.s32.totalorder %v9754_v16, %v13899_v56  ;;  %v13995_v8 = vpop.permute.xlu0 %3030  ;;  %v8204_v22 = vld [vmem:[#allocation7 + $0x60] ss:$8 sps:$4 sm:$0xff]   ;;  %6970 = vmatprep.subr.bf16.mxu0 %v8206_v21 }
 0x3f8   :  { %v4020_v50 = vsel %vm3956_vm6, 1.0, %v18189_v54  ;;  %v4021_v31 = vsel %vm3957_vm2, 1.0, %v18189_v54  ;;  %v4310_v32 = vsel %vm4246_vm0, 1.0, %v18189_v54  ;;  %v4311_v2 = vsel %vm4247_vm3, 1.0, %v18189_v54 }
 0x3f9   :  { %vm4534_vm15 = vcmp.eq.s32.totalorder %v9739_v12, %v18656_v48  ;;  %vm4535_vm6 = vcmp.eq.s32.totalorder %v9754_v16, %v18656_v48  ;;  %v4086_v62 = vadd.f32 %v4022_v11, %v3798_v51  ;;  %v4087_v63 = vadd.f32 %v4023_v29, %v3799_v49  ;;  %3606 = vperm.xlu1 %8014, %v13869_v53   ;;  %v18657_v49 = vld [vmem:[#allocation71_spill] sm:$0xff]  ;;  %v4444_v3 = vpop.permute.xlu1 %4443 }
 0x3fa   :  { %v14003_v23 = vadd.f32 %v2615_v61, %v13722_v5  ;;  %vm2555_vm2 = vcmp.eq.s32.totalorder %v9754_v16, %v18655_v46  ;;  %v4308_v15 = vsel %vm4244_vm5, 1.0, %v18189_v54  ;;  %v4309_v35 = vsel %vm4245_vm7, 1.0, %v18189_v54  ;;  %v8209_v61 = vld [vmem:[#allocation7 + $0x74] ss:$8 sps:$4 sm:$0xff]   ;;  %6971 = vmatpush1.bf16.msra.mxu0 %v8204_v22  ;;  %v8207_v48 = vld [vmem:[#allocation7 + $0x70] ss:$8 sps:$4 sm:$0xff]  }
 0x3fb   :  { %v4084_v7 = vadd.f32 %v4020_v50, %v3796_v30  ;;  %v4085_v11 = vadd.f32 %v4021_v31, %v3797_v19  ;;  %v4374_v29 = vadd.f32 %v4310_v32, %v4086_v62  ;;  %v4375_v5 = vadd.f32 %v4311_v2, %v4087_v63  ;;  %v14029_v19 = vpop.permute.xlu0 %3036  ;;  %6972 = vmatprep.subr.bf16.mxu0 %v8209_v61 }
 0x3fc   :  { %v2618_v51 = vsel %vm2554_vm9, 1.0, %v18189_v54  ;;  %vm2558_vm4 = vcmp.eq.s32.totalorder %v9739_v12, %v18657_v49  ;;  %v4598_v56 = vsel %vm4534_vm15, 1.0, %v18189_v54  ;;  %v4599_v30 = vsel %vm4535_vm6, 1.0, %v18189_v54 }
 0x3fd   :  { %v4372_v21 = vadd.f32 %v4308_v15, %v4084_v7  ;;  %v4373_v50 = vadd.f32 %v4309_v35, %v4085_v11  ;;  %8015 = vset.pattern.permute.xlu1 %v18557_v60  ;;  %vm4532_vm8 = vcmp.eq.s32.totalorder %v9739_v12, %v4444_v3  ;;  %vm4533_vm1 = vcmp.eq.s32.totalorder %v9754_v16, %v4444_v3  ;;  %v18658_v7 = vld [vmem:[#allocation79_spill] sm:$0xff]  ;;  %v18659_v11 = vld [vmem:[#allocation20_spill] sm:$0xff] }
 0x3fe   :  { %v2619_v31 = vsel %vm2555_vm2, 1.0, %v18189_v54  ;;  %vm2559_vm10 = vcmp.eq.s32.totalorder %v9754_v16, %v18657_v49  ;;  %v4596_v32 = vsel %vm4532_vm8, 1.0, %v18189_v54  ;;  %v4597_v2 = vsel %vm4533_vm1, 1.0, %v18189_v54  ;;  %3894 = vperm.xlu1 %8015, %v13869_v53   ;;  %v8212_v3 = vld [vmem:[#allocation7 + $0x84] ss:$8 sps:$4 sm:$0xff]   ;;  %6973 = vmatpush1.bf16.msra.mxu0 %v8207_v48 }
 0x3ff   :  { %v4660_v62 = vadd.f32 %v4596_v32, %v4372_v21  ;;  %v4661_v63 = vadd.f32 %v4597_v2, %v4373_v50  ;;  %v4663_v15 = vadd.f32 %v4599_v30, %v4375_v5  ;;  %v4662_v35 = vadd.f32 %v4598_v56, %v4374_v29  ;;  %v14053_v22 = vpop.permute.xlu0 %3042  ;;  %v14058_v5 = vpop.permute.xlu1 %3585  ;;  %v18663_v32 = vld [vmem:[#allocation114_spill] sm:$0xff]  ;;  %6974 = vmatprep.subr.bf16.mxu0 %v8212_v3 }
 0x400   :  { %v2622_v46 = vsel %vm2558_vm4, 1.0, %v18189_v54  ;;  %vm2562_vm9 = vcmp.eq.s32.totalorder %v9739_v12, %v18658_v7  ;;  %vm2563_vm11 = vcmp.eq.s32.totalorder %v9754_v16, %v18658_v7  ;;  %vm2808_vm13 = vcmp.eq.s32.totalorder %v9739_v12, %v18659_v11  ;;  %18660 = vst [vmem:[#allocation77_spill] sm:$0xff] %v14053_v22  ;;  %v18664_v2 = vld [vmem:[#allocation170_spill] sm:$0xff] }
 0x401   :  { %v2682_v29 = vadd.f32 %v2618_v51, %v13746_v28  ;;  %vm2809_vm12 = vcmp.eq.s32.totalorder %v9754_v16, %v18659_v11  ;;  %v14060_v61 = vpack.c.bf16 %v4663_v15, %v4661_v63  ;;  %v14062_v56 = vpack.c.bf16 %v4662_v35, %v4660_v62  ;;  %v8210_v28 = vld [vmem:[#allocation7 + $0x80] ss:$8 sps:$4 sm:$0xff]   ;;  %v8215_v35 = vld [vmem:[#allocation7 + $0x94] ss:$8 sps:$4 sm:$0xff]   ;;  %v8213_v3 = vld [vmem:[#allocation7 + $0x90] ss:$8 sps:$4 sm:$0xff]  }
 0x402   :  { %v2683_v30 = vadd.f32 %v2619_v31, %v13760_v1  ;;  %v2623_v21 = vsel %vm2559_vm10, 1.0, %v18189_v54  ;;  %vm2838_vm14 = vcmp.eq.s32.totalorder %v9739_v12, %v13647_v20  ;;  %vm2839_vm0 = vcmp.eq.s32.totalorder %v9754_v16, %v13647_v20  ;;  %8016 = vset.pattern.permute.xlu1 %v18224_v45  ;;  %6975 = vmatpush1.bf16.msra.mxu0 %v8210_v28 }
 0x403   :  { %18661 = vst [vmem:[#allocation88_spill] sm:$0xff] %v14060_v61  ;;  %18662 = vst [vmem:[#allocation143_spill] sm:$0xff] %v14062_v56  ;;  %v14075_v51 = vadd.f32 %v2622_v46, %v13774_v38  ;;  %v2626_v1 = vsel %vm2562_vm9, 1.0, %v18189_v54  ;;  %v2627_v49 = vsel %vm2563_vm11, 1.0, %v18189_v54  ;;  %v2872_v50 = vsel %vm2808_vm13, 1.0, %v18189_v54  ;;  %v14092_v38 = vld [vmem:[%s17552_s0 + $0x80] sm:$0xff]  ;;  %5896 = vmatprep.mubr.bf16.mxu1 %v14060_v61  ;;  %v14106_v48 = vpop.permute.xlu0 %3048  ;;  %v14121_v15 = vpop.permute.xlu1 %3588  ;;  %6976 = vmatprep.subr.bf16.mxu0 %v8215_v35 }
 0x404   :  { %3033 = vperm.xlu1 %8016, %v14092_v38   ;;  %v2873_v31 = vsel %vm2809_vm12, 1.0, %v18189_v54  ;;  %vm3960_vm3 = vcmp.eq.s32.totalorder %v9739_v12, %v18663_v32  ;;  %vm3384_vm5 = vcmp.eq.s32.totalorder %v9739_v12, %v18664_v2  ;;  %vm3385_vm7 = vcmp.eq.s32.totalorder %v9754_v16, %v18664_v2  ;;  %18665 = vst [vmem:[#allocation89_spill] sm:$0xff] %v14106_v48 }
 0x405   :  { %5897 = vmatmul.mubr.bf16.gmra.mrb[76].mxu1 %v14062_v56  ;;  %v2902_v62 = vsel %vm2838_vm14, 1.0, %v18189_v54  ;;  %v2903_v63 = vsel %vm2839_vm0, 1.0, %v18189_v54  ;;  %vm2842_vm15 = vcmp.eq.s32.totalorder %v9739_v12, %v13674_v26  ;;  %vm2843_vm6 = vcmp.eq.s32.totalorder %v9754_v16, %v13674_v26 }
 0x406   :  { %v2687_v46 = vadd.f32 %v2623_v21, %v13777_v18  ;;  %v14125_v7 = vadd.f32 %v2626_v1, %v13784_v52  ;;  %v14128_v11 = vadd.f32 %v2627_v49, %v13787_v9  ;;  %v14131_v20 = vadd.f32 %v2872_v50, %v13809_v41  ;;  %v8218_v9 = vld [vmem:[#allocation7 + $0xa4] ss:$8 sps:$4 sm:$0xff]   ;;  %6977 = vmatpush1.bf16.msra.mxu0 %v8213_v3  ;;  %v8216_v49 = vld [vmem:[#allocation7 + $0xa0] ss:$8 sps:$4 sm:$0xff]  }
 0x407   :  { %v14134_v56 = vadd.f32 %v2873_v31, %v13811_v25  ;;  %v14140_v61 = vsel %vm3960_vm3, 1.0, %v18189_v54  ;;  %v14146_v18 = vsel %vm3384_vm5, 1.0, %v18189_v54  ;;  %v14152_v52 = vsel %vm3385_vm7, 1.0, %v18189_v54  ;;  %v3055_v1 = vpop.permute.xlu0 %3054  ;;  %6978 = vmatprep.subr.bf16.mxu0 %v8218_v9  ;;  %v8219_v9 = vld [vmem:[#allocation7 + $0xb0] ss:$8 sps:$4 sm:$0xff]  }
 0x408   :  { %8017 = vset.pattern.permute.xlu1 %v18367_v6  ;;  %v2966_v41 = vadd.f32 %v2902_v62, %v13873_v0  ;;  %v2967_v25 = vadd.f32 %v2903_v63, %v14003_v23  ;;  %v2906_v21 = vsel %vm2842_vm15, 1.0, %v18189_v54  ;;  %v2907_v28 = vsel %vm2843_vm6, 1.0, %v18189_v54  ;;  %v14178_v23 = vpop.permute.xlu1 %3876  ;;  %v8221_v63 = vld [vmem:[#allocation7 + $0xb4] ss:$8 sps:$4 sm:$0xff]  }
 0x409   :  { %4179 = vperm.xlu1 %8017, %v13705_v34   ;;  %vm2846_vm2 = vcmp.eq.s32.totalorder %v9739_v12, %v13729_v40  ;;  %vm2847_vm4 = vcmp.eq.s32.totalorder %v9754_v16, %v13729_v40  ;;  %vm3126_vm8 = vcmp.eq.s32.totalorder %v9739_v12, %v3055_v1  ;;  %vm3127_vm1 = vcmp.eq.s32.totalorder %v9754_v16, %v3055_v1 }
 0x40a   :  { %vm2810_vm10 = vcmp.eq.s32.totalorder %v9739_v12, %v13397_v13  ;;  %vm2811_vm9 = vcmp.eq.s32.totalorder %v9754_v16, %v13397_v13  ;;  %v3190_v26 = vsel %vm3126_vm8, 1.0, %v18189_v54  ;;  %v3191_v0 = vsel %vm3127_vm1, 1.0, %v18189_v54  ;;  %6979 = vmatpush1.bf16.msra.mxu0 %v8216_v49 }
 0x40b   :  { %v2970_v50 = vadd.f32 %v2906_v21, %v2682_v29  ;;  %v2971_v31 = vadd.f32 %v2907_v28, %v2683_v30  ;;  %v14180_v2 = vadd.f32 %v3190_v26, %v2966_v41  ;;  %v14182_v62 = vadd.f32 %v3191_v0, %v2967_v25  ;;  %v3061_v29 = vpop.permute.xlu0 %3060  ;;  %6980 = vmatprep.subr.bf16.mxu0 %v8221_v63  ;;  %v8224_v0 = vld [vmem:[#allocation7 + $0xc4] ss:$8 sps:$4 sm:$0xff]  }
 0x40c   :  { %v2910_v35 = vsel %vm2846_vm2, 1.0, %v18189_v54  ;;  %v2911_v1 = vsel %vm2847_vm4, 1.0, %v18189_v54  ;;  %vm2850_vm11 = vcmp.eq.s32.totalorder %v9739_v12, %v13781_v33  ;;  %vm2851_vm13 = vcmp.eq.s32.totalorder %v9754_v16, %v13781_v33  ;;  %v14246_v33 = vld [vmem:[%s17552_s0 + $0x88] sm:$0xff] }
 0x40d   :  { %18666 = vst [vmem:[#allocation100_spill] sm:$0xff] %v14180_v2  ;;  %18667 = vst [vmem:[#allocation104_spill] sm:$0xff] %v14182_v62  ;;  %4182 = vperm.xlu1 %8017, %v13869_v53   ;;  %vm3096_vm12 = vcmp.eq.s32.totalorder %v9739_v12, %v13837_v57  ;;  %vm3097_vm14 = vcmp.eq.s32.totalorder %v9754_v16, %v13837_v57  ;;  %vm3130_vm0 = vcmp.eq.s32.totalorder %v9739_v12, %v3061_v29  ;;  %v14218_v26 = vpop.permute.xlu1 %3015 }
 0x40e   :  { %vm3131_vm3 = vcmp.eq.s32.totalorder %v9754_v16, %v3061_v29  ;;  %v2874_v40 = vsel %vm2810_vm10, 1.0, %v18189_v54  ;;  %v2875_v53 = vsel %vm2811_vm9, 1.0, %v18189_v54  ;;  %v3194_v30 = vsel %vm3130_vm0, 1.0, %v18189_v54  ;;  %6981 = vmatpush1.bf16.msra.mxu0 %v8219_v9  ;;  %v18672_v9 = vld [vmem:[#allocation129_spill] sm:$0xff] }
 0x40f   :  { %v3195_v3 = vsel %vm3131_vm3, 1.0, %v18189_v54  ;;  %v2974_v41 = vadd.f32 %v2910_v35, %v14075_v51  ;;  %v2975_v25 = vadd.f32 %v2911_v1, %v2687_v46  ;;  %v14214_v21 = vadd.f32 %v3194_v30, %v2970_v50  ;;  %v3067_v50 = vpop.permute.xlu0 %3066  ;;  %v8222_v1 = vld [vmem:[#allocation7 + $0xc0] ss:$8 sps:$4 sm:$0xff]   ;;  %6982 = vmatprep.subr.bf16.mxu0 %v8224_v0 }
 0x410   :  { %v14216_v28 = vadd.f32 %v3195_v3, %v2971_v31  ;;  %v2914_v13 = vsel %vm2850_vm11, 1.0, %v18189_v54  ;;  %v2915_v49 = vsel %vm2851_vm13, 1.0, %v18189_v54  ;;  %v3160_v51 = vsel %vm3096_vm12, 1.0, %v18189_v54 }
 0x411   :  { %18668 = vst [vmem:[#allocation152_spill] sm:$0xff] %v14214_v21  ;;  %v3161_v46 = vsel %vm3097_vm14, 1.0, %v18189_v54  ;;  %8018 = vset.pattern.permute.xlu1 %v18262_v59  ;;  %vm3098_vm5 = vcmp.eq.s32.totalorder %v9739_v12, %v13887_v36  ;;  %vm3099_vm7 = vcmp.eq.s32.totalorder %v9754_v16, %v13887_v36  ;;  %vm3134_vm15 = vcmp.eq.s32.totalorder %v9739_v12, %v3067_v50  ;;  %v14282_v36 = vpop.f32.mrb[0].mxu0 }
 0x412   :  { %18669 = vst [vmem:[#allocation145_spill] sm:$0xff] %v14216_v28  ;;  %vm3135_vm6 = vcmp.eq.s32.totalorder %v9754_v16, %v3067_v50  ;;  %3324 = vperm.xlu1 %8018, %v14246_v33   ;;  %v2938_v57 = vadd.f32 %v2874_v40, %v13840_v27  ;;  %v2939_v31 = vadd.f32 %v2875_v53, %v13854_v10  ;;  %v3198_v63 = vsel %vm3134_vm15, 1.0, %v18189_v54  ;;  %v14271_v53 = vpop.permute.xlu1 %4161 }
 0x413   :  { %v3199_v35 = vsel %vm3135_vm6, 1.0, %v18189_v54  ;;  %vm3961_vm2 = vcmp.eq.s32.totalorder %v9754_v16, %v18663_v32  ;;  %v2978_v29 = vadd.f32 %v2914_v13, %v14125_v7  ;;  %v2979_v30 = vadd.f32 %v2915_v49, %v14128_v11  ;;  %v3073_v11 = vpop.permute.xlu0 %3072  ;;  %6983 = vmatpush1.bf16.msra.mxu0 %v8222_v1 }
 0x414   :  { %v14257_v3 = vadd.f32 %v3198_v63, %v2974_v41  ;;  %v14259_v50 = vadd.f32 %v3199_v35, %v2975_v25  ;;  %v3224_v27 = vadd.f32 %v3160_v51, %v14131_v20  ;;  %v3225_v10 = vadd.f32 %v3161_v46, %v14134_v56  ;;  %v18673_v41 = vld [vmem:[#allocation130_spill] sm:$0xff] }
 0x415   :  { %v3162_v40 = vsel %vm3098_vm5, 1.0, %v18189_v54  ;;  %v3163_v7 = vsel %vm3099_vm7, 1.0, %v18189_v54  ;;  %vm1374_vm4 = vcmp.eq.s32.totalorder %v9739_v12, %v18672_v9  ;;  %vm3386_vm8 = vcmp.eq.s32.totalorder %v9739_v12, %v13979_v37 }
 0x416   :  { %18670 = vst [vmem:[#allocation148_spill] sm:$0xff] %v14257_v3  ;;  %18671 = vst [vmem:[#allocation147_spill] sm:$0xff] %v14259_v50  ;;  %vm3387_vm1 = vcmp.eq.s32.totalorder %v9754_v16, %v13979_v37  ;;  %vm3138_vm10 = vcmp.eq.s32.totalorder %v9739_v12, %v3073_v11  ;;  %vm3139_vm9 = vcmp.eq.s32.totalorder %v9754_v16, %v3073_v11  ;;  %8019 = vset.pattern.permute.xlu1 %v18312_v24  ;;  %v4165_v46 = vpop.permute.xlu1 %4164  ;;  %v18683_v3 = vld [vmem:[#allocation73_spill] sm:$0xff] }
 0x417   :  { %vm1375_vm11 = vcmp.eq.s32.totalorder %v9754_v16, %v18672_v9  ;;  %vm3672_vm13 = vcmp.eq.s32.totalorder %v9739_v12, %v14058_v5  ;;  %vm3673_vm12 = vcmp.eq.s32.totalorder %v9754_v16, %v14058_v5  ;;  %v3202_v56 = vsel %vm3138_vm10, 1.0, %v18189_v54  ;;  %4467 = vperm.xlu1 %8019, %v13705_v34  }
 0x418   :  { %v3203_v20 = vsel %vm3139_vm9, 1.0, %v18189_v54  ;;  %vm1388_vm14 = vcmp.eq.s32.totalorder %v9739_v12, %v18673_v41  ;;  %vm3674_vm0 = vcmp.eq.s32.totalorder %v9739_v12, %v14121_v15  ;;  %vm3675_vm3 = vcmp.eq.s32.totalorder %v9754_v16, %v14121_v15 }
 0x419   :  { %v14299_v25 = vadd.f32 %v3202_v56, %v2978_v29  ;;  %v14301_v0 = vadd.f32 %v3203_v20, %v2979_v30  ;;  %v3226_v13 = vadd.f32 %v3162_v40, %v2938_v57  ;;  %v3450_v34 = vsel %vm3386_vm8, 1.0, %v18189_v54  ;;  %v18676_v40 = vld [vmem:[#allocation41_spill] sm:$0xff] }
 0x41a   :  { %v3451_v49 = vsel %vm3387_vm1, 1.0, %v18189_v54  ;;  %v3512_v51 = vadd.f32 %v14146_v18, %v3224_v27  ;;  %v3227_v63 = vadd.f32 %v3163_v7, %v2939_v31  ;;  %v3736_v15 = vsel %vm3672_vm13, 1.0, %v18189_v54  ;;  %v18677_v7 = vld [vmem:[#allocation86_spill] sm:$0xff] }
 0x41b   :  { %18674 = vst [vmem:[#allocation15_spill] sm:$0xff] %v14299_v25  ;;  %18675 = vst [vmem:[#allocation127_spill] sm:$0xff] %v14301_v0  ;;  %vm3962_vm5 = vcmp.eq.s32.totalorder %v9739_v12, %v14178_v23  ;;  %vm3963_vm7 = vcmp.eq.s32.totalorder %v9754_v16, %v14178_v23  ;;  %v3513_v57 = vadd.f32 %v14152_v52, %v3225_v10  ;;  %v3737_v37 = vsel %vm3673_vm12, 1.0, %v18189_v54  ;;  %v14337_v10 = vpop.permute.xlu1 %3306  ;;  %v18682_v25 = vld [vmem:[#allocation52_spill] sm:$0xff] }
 0x41c   :  { %v3738_v18 = vsel %vm3674_vm0, 1.0, %v18189_v54  ;;  %v3739_v31 = vsel %vm3675_vm3, 1.0, %v18189_v54  ;;  %8020 = vset.pattern.permute.xlu1 %v18408_v58  ;;  %v3514_v35 = vadd.f32 %v3450_v34, %v3226_v13  ;;  %v3515_v1 = vadd.f32 %v3451_v49, %v3227_v63  ;;  %v14366_v63 = vpop.f32.mrb[1].mxu0 }
 0x41d   :  { %vm4250_vm15 = vcmp.eq.s32.totalorder %v9739_v12, %v4165_v46  ;;  %vm4251_vm6 = vcmp.eq.s32.totalorder %v9754_v16, %v4165_v46  ;;  %3609 = vperm.xlu1 %8020, %v14092_v38   ;;  %v3800_v52 = vadd.f32 %v3736_v15, %v3512_v51  ;;  %v4026_v23 = vsel %vm3962_vm5, 1.0, %v18189_v54  ;;  %v8227_v15 = vld [vmem:[#allocation7 + $0xd4] ss:$8 sps:$4 sm:$0xff]  }
 0x41e   :  { %v4027_v5 = vsel %vm3963_vm7, 1.0, %v18189_v54  ;;  %vm4248_vm8 = vcmp.eq.s32.totalorder %v9739_v12, %v14271_v53  ;;  %v3801_v29 = vadd.f32 %v3737_v37, %v3513_v57  ;;  %v3802_v30 = vadd.f32 %v3738_v18, %v3514_v35  ;;  %v8225_v35 = vld [vmem:[#allocation7 + $0xd0] ss:$8 sps:$4 sm:$0xff]   ;;  %6984 = vmatprep.subr.bf16.mxu0 %v8227_v15 }
 0x41f   :  { %v3803_v27 = vadd.f32 %v3739_v31, %v3515_v1  ;;  %vm4249_vm1 = vcmp.eq.s32.totalorder %v9754_v16, %v14271_v53  ;;  %vm532_vm10 = vcmp.eq.s32.totalorder %v9739_v12, %v18676_v40  ;;  %vm4538_vm9 = vcmp.eq.s32.totalorder %v9739_v12, %v18677_v7  ;;  %v14372_v1 = vpop.f32.mrb[2].mxu0  ;;  %6985 = vmatpush1.bf16.msra.mxu0 %v8225_v35 }
 0x420   :  { %v4025_v11 = vsel %vm3961_vm2, 1.0, %v18189_v54  ;;  %v4314_v56 = vsel %vm4250_vm15, 1.0, %v18189_v54  ;;  %v4315_v20 = vsel %vm4251_vm6, 1.0, %v18189_v54  ;;  %vm533_vm13 = vcmp.eq.s32.totalorder %v9754_v16, %v18676_v40  ;;  %v18694_v40 = vld [vmem:[#allocation93_spill] sm:$0xff] }
 0x421   :  { %vm4539_vm12 = vcmp.eq.s32.totalorder %v9754_v16, %v18677_v7  ;;  %v4090_v13 = vadd.f32 %v4026_v23, %v3802_v30  ;;  %v4091_v34 = vadd.f32 %v4027_v5, %v3803_v27  ;;  %v4312_v49 = vsel %vm4248_vm8, 1.0, %v18189_v54  ;;  %3612 = vperm.xlu1 %8020, %v14246_v33   ;;  %v4450_v23 = vpop.permute.xlu1 %4449  ;;  %v18678_v30 = vld [vmem:[#allocation131_spill] sm:$0xff] }
 0x422   :  { %v1438_v32 = vsel %vm1374_vm4, 1.0, %v18189_v54  ;;  %vm1389_vm2 = vcmp.eq.s32.totalorder %v9754_v16, %v18673_v41  ;;  %v4088_v51 = vadd.f32 %v14140_v61, %v3800_v52  ;;  %v4313_v46 = vsel %vm4249_vm1, 1.0, %v18189_v54  ;;  %v14400_v41 = vpop.f32.mrb[3].mxu0 }
 0x423   :  { %v1439_v57 = vsel %vm1375_vm11, 1.0, %v18189_v54  ;;  %v4089_v37 = vadd.f32 %v4025_v11, %v3801_v29  ;;  %v4378_v18 = vadd.f32 %v4314_v56, %v4090_v13  ;;  %v4379_v31 = vadd.f32 %v4315_v20, %v4091_v34  ;;  %v8228_v11 = vld [vmem:[#allocation7 + $0xe0] ss:$8 sps:$4 sm:$0xff]  }
 0x424   :  { %v1452_v61 = vsel %vm1388_vm14, 1.0, %v18189_v54  ;;  %v4602_v53 = vsel %vm4538_vm9, 1.0, %v18189_v54  ;;  %v4603_v9 = vsel %vm4539_vm12, 1.0, %v18189_v54  ;;  %v4376_v52 = vadd.f32 %v4312_v49, %v4088_v51  ;;  %v8230_v49 = vld [vmem:[#allocation7 + $0xe4] ss:$8 sps:$4 sm:$0xff]   ;;  %v14402_v51 = vpop.f32.mrb[4].mxu0 }
 0x425   :  { %v1453_v5 = vsel %vm1389_vm2, 1.0, %v18189_v54  ;;  %v4377_v29 = vadd.f32 %v4313_v46, %v4089_v37  ;;  %8021 = vset.pattern.permute.xlu1 %v18557_v60  ;;  %vm4536_vm4 = vcmp.eq.s32.totalorder %v9739_v12, %v4450_v23  ;;  %vm4537_vm11 = vcmp.eq.s32.totalorder %v9754_v16, %v4450_v23  ;;  %v18679_v46 = vld [vmem:[#allocation13_spill] sm:$0xff]  ;;  %v18681_v23 = vld [vmem:[#allocation247_spill] sm:$0xff]  ;;  %6986 = vmatprep.subr.bf16.mxu0 %v8230_v49 }
 0x426   :  { %vm1378_vm14 = vcmp.eq.s32.totalorder %v9739_v12, %v18678_v30  ;;  %vm1379_vm0 = vcmp.eq.s32.totalorder %v9754_v16, %v18678_v30  ;;  %v4600_v27 = vsel %vm4536_vm4, 1.0, %v18189_v54  ;;  %v4601_v7 = vsel %vm4537_vm11, 1.0, %v18189_v54  ;;  %3900 = vperm.xlu1 %8021, %v14246_v33   ;;  %v18680_v37 = vld [vmem:[#allocation101_spill] sm:$0xff]  ;;  %6987 = vmatpush1.bf16.msra.mxu0 %v8228_v11  ;;  %v18690_v30 = vld [vmem:[#allocation154_spill] sm:$0xff] }
 0x427   :  { %v4664_v56 = vadd.f32 %v4600_v27, %v4376_v52  ;;  %v4665_v20 = vadd.f32 %v4601_v7, %v4377_v29  ;;  %v4667_v13 = vadd.f32 %v4603_v9, %v4379_v31  ;;  %v4666_v34 = vadd.f32 %v4602_v53, %v4378_v18  ;;  %v14421_v31 = vpop.permute.xlu1 %3591  ;;  %v18689_v29 = vld [vmem:[#allocation133_spill] sm:$0xff]  ;;  %v14456_v27 = vld [vmem:[%s17552_s0 + $0x90] sm:$0xff] }
 0x428   :  { %v14406_v15 = vadd.f32 %v13695_v14, %v18679_v46  ;;  %v14410_v35 = vadd.f32 %v13807_v17, %v18680_v37  ;;  %v1502_v0 = vadd.f32 %v1438_v32, %v18681_v23  ;;  %v1503_v50 = vadd.f32 %v1439_v57, %v18682_v25  ;;  %v18686_v17 = vld [vmem:[#allocation105_spill] sm:$0xff]  ;;  %v14439_v32 = vpop.f32.mrb[5].mxu0  ;;  %v8231_v57 = vld [vmem:[#allocation7 + $0xf0] ss:$8 sps:$4 sm:$0xff]  }
 0x429   :  { %v14415_v52 = vadd.f32 %v1452_v61, %v18683_v3  ;;  %v1442_v18 = vsel %vm1378_vm14, 1.0, %v18189_v54  ;;  %v14423_v14 = vpack.c.bf16 %v4667_v13, %v4665_v20  ;;  %v14425_v53 = vpack.c.bf16 %v4666_v34, %v4664_v56  ;;  %v18687_v25 = vld [vmem:[#allocation161_spill] sm:$0xff]  ;;  %v8233_v61 = vld [vmem:[#allocation7 + $0xf4] ss:$8 sps:$4 sm:$0xff]   ;;  %v14460_v7 = vpop.f32.mrb[6].mxu0  ;;  %v18692_v56 = vld [vmem:[#allocation184_spill] sm:$0xff] }
 0x42a   :  { %v14428_v9 = vadd.f32 %v1453_v5, %v18686_v17  ;;  %v1443_v3 = vsel %vm1379_vm0, 1.0, %v18189_v54  ;;  %vm1660_vm3 = vcmp.eq.s32.totalorder %v9739_v12, %v18687_v25  ;;  %vm1661_vm5 = vcmp.eq.s32.totalorder %v9754_v16, %v18687_v25  ;;  %8022 = vset.pattern.permute.xlu1 %v18224_v45  ;;  %6988 = vmatprep.subr.bf16.mxu0 %v8233_v61  ;;  %v14475_v20 = vpop.f32.mrb[7].mxu0  ;;  %v18693_v13 = vld [vmem:[#allocation92_spill] sm:$0xff] }
 0x42b   :  { %18684 = vst [vmem:[#allocation35_spill] sm:$0xff] %v14423_v14  ;;  %18685 = vst [vmem:[#allocation223_spill] sm:$0xff] %v14425_v53  ;;  %v14445_v5 = vsel %vm532_vm10, 1.0, %v18189_v54  ;;  %vm1382_vm7 = vcmp.eq.s32.totalorder %v9739_v12, %v18689_v29  ;;  %vm1662_vm15 = vcmp.eq.s32.totalorder %v9739_v12, %v18690_v30  ;;  %vm1663_vm6 = vcmp.eq.s32.totalorder %v9754_v16, %v18690_v30  ;;  %v14491_v23 = vpop.permute.xlu1 %3594 }
 0x42c   :  { %18688 = vst [vmem:[#allocation217_spill] sm:$0xff] %v14445_v5  ;;  %3039 = vperm.xlu1 %8022, %v14456_v27   ;;  %5906 = vmatprep.mubr.bf16.mxu1 %v14423_v14  ;;  %v14466_v11 = vsel %vm533_vm13, 1.0, %v18189_v54  ;;  %vm1383_vm8 = vcmp.eq.s32.totalorder %v9754_v16, %v18689_v29  ;;  %vm1948_vm1 = vcmp.eq.s32.totalorder %v9739_v12, %v18692_v56  ;;  %v1724_v46 = vsel %vm1660_vm3, 1.0, %v18189_v54  ;;  %v18698_v14 = vld [vmem:[#allocation227_spill] sm:$0xff] }
 0x42d   :  { %18691 = vst [vmem:[#allocation219_spill] sm:$0xff] %v14466_v11  ;;  %vm1949_vm10 = vcmp.eq.s32.totalorder %v9754_v16, %v18692_v56  ;;  %5907 = vmatmul.mubr.bf16.gmra.mrb[80].mxu1 %v14425_v53  ;;  %v14478_v34 = vadd.f32 %v1442_v18, %v18693_v13  ;;  %v14481_v49 = vadd.f32 %v1443_v3, %v18694_v40  ;;  %v1725_v37 = vsel %vm1661_vm5, 1.0, %v18189_v54  ;;  %v18695_v3 = vld [vmem:[#allocation195_spill] sm:$0xff]  ;;  %v18696_v13 = vld [vmem:[#allocation40_spill] sm:$0xff] }
 0x42e   :  { %v1726_v18 = vsel %vm1662_vm15, 1.0, %v18189_v54  ;;  %v1727_v17 = vsel %vm1663_vm6, 1.0, %v18189_v54  ;;  %vm1950_vm9 = vcmp.eq.s32.totalorder %v9739_v12, %v18695_v3  ;;  %vm1951_vm13 = vcmp.eq.s32.totalorder %v9754_v16, %v18695_v3  ;;  %6989 = vmatpush1.bf16.msra.mxu0 %v8231_v57  ;;  %v18697_v3 = vld [vmem:[#allocation121_spill] sm:$0xff]  ;;  %v18699_v11 = vld [vmem:[#allocation216_spill] sm:$0xff] }
 0x42f   :  { %v14509_v25 = vsel %vm1382_vm7, 1.0, %v18189_v54  ;;  %v14515_v61 = vsel %vm1383_vm8, 1.0, %v18189_v54  ;;  %v2012_v30 = vsel %vm1948_vm1, 1.0, %v18189_v54  ;;  %v2013_v57 = vsel %vm1949_vm10, 1.0, %v18189_v54 }
 0x430   :  { %8023 = vset.pattern.permute.xlu1 %v18367_v6  ;;  %v1788_v40 = vadd.f32 %v1724_v46, %v18696_v13  ;;  %v1789_v53 = vadd.f32 %v1725_v37, %v18697_v3  ;;  %vm2236_vm12 = vcmp.eq.s32.totalorder %v9739_v12, %v18698_v14  ;;  %vm2237_vm2 = vcmp.eq.s32.totalorder %v9754_v16, %v18698_v14  ;;  %v14539_v46 = vpop.permute.xlu1 %3882 }
 0x431   :  { %4185 = vperm.xlu1 %8023, %v14092_v38   ;;  %v1790_v29 = vadd.f32 %v1726_v18, %v1502_v0  ;;  %v1791_v28 = vadd.f32 %v1727_v17, %v1503_v50  ;;  %v2014_v21 = vsel %vm1950_vm9, 1.0, %v18189_v54  ;;  %v2015_v56 = vsel %vm1951_vm13, 1.0, %v18189_v54  ;;  %v18700_v0 = vld [vmem:[#allocation28_spill] sm:$0xff] }
 0x432   :  { %v2076_v62 = vadd.f32 %v2012_v30, %v1788_v40  ;;  %v2077_v2 = vadd.f32 %v2013_v57, %v1789_v53  ;;  %vm2238_vm4 = vcmp.eq.s32.totalorder %v9739_v12, %v18699_v11  ;;  %vm2239_vm11 = vcmp.eq.s32.totalorder %v9754_v16, %v18699_v11  ;;  %v18701_v18 = vld [vmem:[#allocation48_spill] sm:$0xff]  ;;  %v18702_v30 = vld [vmem:[#allocation97_spill] sm:$0xff]  ;;  %v14560_v40 = vpop.f32.mrb[8].mxu0 }
 0x433   :  { %v2300_v14 = vsel %vm2236_vm12, 1.0, %v18189_v54  ;;  %v2301_v37 = vsel %vm2237_vm2, 1.0, %v18189_v54  ;;  %vm2524_vm14 = vcmp.eq.s32.totalorder %v9739_v12, %v18700_v0  ;;  %vm2525_vm0 = vcmp.eq.s32.totalorder %v9754_v16, %v18700_v0 }
 0x434   :  { %v2078_v50 = vadd.f32 %v2014_v21, %v1790_v29  ;;  %v2079_v53 = vadd.f32 %v2015_v56, %v1791_v28  ;;  %vm2526_vm3 = vcmp.eq.s32.totalorder %v9739_v12, %v18701_v18  ;;  %vm2527_vm5 = vcmp.eq.s32.totalorder %v9754_v16, %v18701_v18  ;;  %v14568_v29 = vpop.permute.xlu1 %3021 }
 0x435   :  { %4188 = vperm.xlu1 %8023, %v14246_v33   ;;  %v2302_v11 = vsel %vm2238_vm4, 1.0, %v18189_v54  ;;  %v2303_v17 = vsel %vm2239_vm11, 1.0, %v18189_v54  ;;  %vm2812_vm7 = vcmp.eq.s32.totalorder %v9739_v12, %v18702_v30  ;;  %vm2813_vm15 = vcmp.eq.s32.totalorder %v9754_v16, %v18702_v30 }
 0x436   :  { %v2364_v21 = vadd.f32 %v2300_v14, %v2076_v62  ;;  %v2365_v28 = vadd.f32 %v2301_v37, %v2077_v2  ;;  %v2588_v57 = vsel %vm2524_vm14, 1.0, %v18189_v54  ;;  %v2589_v13 = vsel %vm2525_vm0, 1.0, %v18189_v54  ;;  %v14573_v37 = vpop.f32.mrb[9].mxu0 }
 0x437   :  { %v2590_v33 = vsel %vm2526_vm3, 1.0, %v18189_v54  ;;  %v2591_v3 = vsel %vm2527_vm5, 1.0, %v18189_v54  ;;  %vm2814_vm6 = vcmp.eq.s32.totalorder %v9739_v12, %v13438_v39  ;;  %vm2815_vm8 = vcmp.eq.s32.totalorder %v9754_v16, %v13438_v39 }
 0x438   :  { %v2366_v62 = vadd.f32 %v2302_v11, %v2078_v50  ;;  %v2367_v2 = vadd.f32 %v2303_v17, %v2079_v53  ;;  %v2876_v56 = vsel %vm2812_vm7, 1.0, %v18189_v54  ;;  %v2877_v14 = vsel %vm2813_vm15, 1.0, %v18189_v54  ;;  %v14582_v50 = vld [vmem:[%s17552_s0 + $0x98] sm:$0xff]  ;;  %v14585_v53 = vpop.f32.mrb[10].mxu0 }
 0x439   :  { %8024 = vset.pattern.permute.xlu1 %v18262_v59  ;;  %v2652_v0 = vadd.f32 %v2588_v57, %v2364_v21  ;;  %v2653_v18 = vadd.f32 %v2589_v13, %v2365_v28  ;;  %vm3100_vm1 = vcmp.eq.s32.totalorder %v9739_v12, %v14218_v26  ;;  %vm3101_vm10 = vcmp.eq.s32.totalorder %v9754_v16, %v14218_v26  ;;  %v14595_v28 = vpop.f32.mrb[11].mxu0 }
 0x43a   :  { %3330 = vperm.xlu1 %8024, %v14582_v50   ;;  %v2654_v11 = vadd.f32 %v2590_v33, %v2366_v62  ;;  %v2655_v17 = vadd.f32 %v2591_v3, %v2367_v2  ;;  %v2878_v30 = vsel %vm2814_vm6, 1.0, %v18189_v54  ;;  %v2879_v21 = vsel %vm2815_vm8, 1.0, %v18189_v54  ;;  %v18703_v33 = vld [vmem:[#allocation118_spill] sm:$0xff]  ;;  %v4168_v62 = vpop.permute.xlu1 %4167 }
 0x43b   :  { %v2940_v57 = vadd.f32 %v2876_v56, %v2652_v0  ;;  %v2941_v13 = vadd.f32 %v2877_v14, %v2653_v18  ;;  %vm3102_vm9 = vcmp.eq.s32.totalorder %v9739_v12, %v13917_v44  ;;  %vm3103_vm13 = vcmp.eq.s32.totalorder %v9754_v16, %v13917_v44  ;;  %v18704_v2 = vld [vmem:[#allocation178_spill] sm:$0xff] }
 0x43c   :  { %vm3964_vm12 = vcmp.eq.s32.totalorder %v9739_v12, %v18703_v33  ;;  %vm3965_vm2 = vcmp.eq.s32.totalorder %v9754_v16, %v18703_v33  ;;  %v3164_v39 = vsel %vm3100_vm1, 1.0, %v18189_v54  ;;  %v3165_v3 = vsel %vm3101_vm10, 1.0, %v18189_v54 }
 0x43d   :  { %vm3388_vm4 = vcmp.eq.s32.totalorder %v9739_v12, %v18704_v2  ;;  %vm3389_vm11 = vcmp.eq.s32.totalorder %v9754_v16, %v18704_v2  ;;  %v2942_v44 = vadd.f32 %v2878_v30, %v2654_v11  ;;  %v2943_v56 = vadd.f32 %v2879_v21, %v2655_v17 }
 0x43e   :  { %8025 = vset.pattern.permute.xlu1 %v18312_v24  ;;  %v3166_v14 = vsel %vm3102_vm9, 1.0, %v18189_v54  ;;  %v3167_v0 = vsel %vm3103_vm13, 1.0, %v18189_v54  ;;  %vm3390_vm14 = vcmp.eq.s32.totalorder %v9739_v12, %v14337_v10  ;;  %vm3391_vm0 = vcmp.eq.s32.totalorder %v9754_v16, %v14337_v10  ;;  %v4171_v10 = vpop.permute.xlu1 %4170 }
 0x43f   :  { %4473 = vperm.xlu1 %8025, %v14092_v38   ;;  %v3228_v26 = vadd.f32 %v3164_v39, %v2940_v57  ;;  %v3229_v18 = vadd.f32 %v3165_v3, %v2941_v13  ;;  %vm3676_vm3 = vcmp.eq.s32.totalorder %v9739_v12, %v14421_v31  ;;  %vm3677_vm5 = vcmp.eq.s32.totalorder %v9754_v16, %v14421_v31 }
 0x440   :  { %v3452_v11 = vsel %vm3388_vm4, 1.0, %v18189_v54  ;;  %v3453_v17 = vsel %vm3389_vm11, 1.0, %v18189_v54  ;;  %vm3678_vm7 = vcmp.eq.s32.totalorder %v9739_v12, %v14491_v23  ;;  %vm3679_vm15 = vcmp.eq.s32.totalorder %v9754_v16, %v14491_v23 }
 0x441   :  { %v3230_v38 = vadd.f32 %v3166_v14, %v2942_v44  ;;  %v3231_v30 = vadd.f32 %v3167_v0, %v2943_v56  ;;  %v3454_v21 = vsel %vm3390_vm14, 1.0, %v18189_v54  ;;  %v3455_v57 = vsel %vm3391_vm0, 1.0, %v18189_v54 }
 0x442   :  { %v3740_v13 = vsel %vm3676_vm3, 1.0, %v18189_v54  ;;  %v3741_v31 = vsel %vm3677_vm5, 1.0, %v18189_v54  ;;  %vm3966_vm6 = vcmp.eq.s32.totalorder %v9739_v12, %v14539_v46  ;;  %vm3967_vm8 = vcmp.eq.s32.totalorder %v9754_v16, %v14539_v46 }
 0x443   :  { %8027 = vset.pattern.permute.xlu1 %v18408_v58  ;;  %v3516_v23 = vadd.f32 %v3452_v11, %v3228_v26  ;;  %v3517_v39 = vadd.f32 %v3453_v17, %v3229_v18  ;;  %v3742_v3 = vsel %vm3678_vm7, 1.0, %v18189_v54  ;;  %v3743_v2 = vsel %vm3679_vm15, 1.0, %v18189_v54  ;;  %v14651_v26 = vpop.permute.xlu1 %3312 }
 0x444   :  { %3615 = vperm.xlu1 %8027, %v14456_v27   ;;  %v3518_v44 = vadd.f32 %v3454_v21, %v3230_v38  ;;  %v3519_v56 = vadd.f32 %v3455_v57, %v3231_v30  ;;  %vm4254_vm1 = vcmp.eq.s32.totalorder %v9739_v12, %v4171_v10  ;;  %vm4255_vm10 = vcmp.eq.s32.totalorder %v9754_v16, %v4171_v10  ;;  %v18705_v21 = vld [vmem:[#allocation246_spill] sm:$0xff] }
 0x445   :  { %v3804_v14 = vadd.f32 %v3740_v13, %v3516_v23  ;;  %v3805_v0 = vadd.f32 %v3741_v31, %v3517_v39  ;;  %v4030_v46 = vsel %vm3966_vm6, 1.0, %v18189_v54  ;;  %v4031_v5 = vsel %vm3967_vm8, 1.0, %v18189_v54  ;;  %v18706_v13 = vld [vmem:[#allocation135_spill] sm:$0xff] }
 0x446   :  { %v3806_v18 = vadd.f32 %v3742_v3, %v3518_v44  ;;  %v3807_v11 = vadd.f32 %v3743_v2, %v3519_v56  ;;  %vm4252_vm9 = vcmp.eq.s32.totalorder %v9739_v12, %v4168_v62  ;;  %vm4253_vm13 = vcmp.eq.s32.totalorder %v9754_v16, %v4168_v62  ;;  %v18707_v44 = vld [vmem:[#allocation94_spill] sm:$0xff] }
 0x447   :  { %v4028_v17 = vsel %vm3964_vm12, 1.0, %v18189_v54  ;;  %v4029_v10 = vsel %vm3965_vm2, 1.0, %v18189_v54  ;;  %v4318_v38 = vsel %vm4254_vm1, 1.0, %v18189_v54  ;;  %v4319_v30 = vsel %vm4255_vm10, 1.0, %v18189_v54 }
 0x448   :  { %3618 = vperm.xlu1 %8027, %v14582_v50   ;;  %vm4542_vm4 = vcmp.eq.s32.totalorder %v9739_v12, %v18705_v21  ;;  %vm4543_vm11 = vcmp.eq.s32.totalorder %v9754_v16, %v18705_v21  ;;  %v4094_v62 = vadd.f32 %v4030_v46, %v3806_v18  ;;  %v4095_v57 = vadd.f32 %v4031_v5, %v3807_v11  ;;  %v18708_v21 = vld [vmem:[#allocation137_spill] sm:$0xff] }
 0x449   :  { %vm1386_vm12 = vcmp.eq.s32.totalorder %v9739_v12, %v18706_v13  ;;  %vm1387_vm2 = vcmp.eq.s32.totalorder %v9754_v16, %v18706_v13  ;;  %v4316_v33 = vsel %vm4252_vm9, 1.0, %v18189_v54  ;;  %v4317_v31 = vsel %vm4253_vm13, 1.0, %v18189_v54  ;;  %v4456_v18 = vpop.permute.xlu1 %4455  ;;  %v18710_v13 = vld [vmem:[#allocation163_spill] sm:$0xff] }
 0x44a   :  { %v4092_v23 = vadd.f32 %v4028_v17, %v3804_v14  ;;  %v4093_v39 = vadd.f32 %v4029_v10, %v3805_v0  ;;  %v4382_v3 = vadd.f32 %v4318_v38, %v4094_v62  ;;  %v4383_v2 = vadd.f32 %v4319_v30, %v4095_v57 }
 0x44b   :  { %v1510_v56 = vadd.f32 %v14509_v25, %v18707_v44  ;;  %vm1390_vm14 = vcmp.eq.s32.totalorder %v9739_v12, %v18708_v21  ;;  %v4606_v5 = vsel %vm4542_vm4, 1.0, %v18189_v54  ;;  %v4607_v46 = vsel %vm4543_vm11, 1.0, %v18189_v54 }
 0x44c   :  { %8028 = vset.pattern.permute.xlu1 %v18557_v60  ;;  %v4380_v11 = vadd.f32 %v4316_v33, %v4092_v23  ;;  %v4381_v48 = vadd.f32 %v4317_v31, %v4093_v39  ;;  %vm4540_vm0 = vcmp.eq.s32.totalorder %v9739_v12, %v4456_v18  ;;  %vm4541_vm3 = vcmp.eq.s32.totalorder %v9754_v16, %v4456_v18  ;;  %v18709_v33 = vld [vmem:[#allocation156_spill] sm:$0xff]  ;;  %v18716_v18 = vld [vmem:[#allocation158_spill] sm:$0xff] }
 0x44d   :  { %3906 = vperm.xlu1 %8028, %v14582_v50   ;;  %v1450_v25 = vsel %vm1386_vm12, 1.0, %v18189_v54  ;;  %v1451_v14 = vsel %vm1387_vm2, 1.0, %v18189_v54  ;;  %v4604_v0 = vsel %vm4540_vm0, 1.0, %v18189_v54  ;;  %v4605_v17 = vsel %vm4541_vm3, 1.0, %v18189_v54  ;;  %v18713_v39 = vld [vmem:[#allocation12_spill] sm:$0xff] }
 0x44e   :  { %v4668_v10 = vadd.f32 %v4604_v0, %v4380_v11  ;;  %v4669_v38 = vadd.f32 %v4605_v17, %v4381_v48  ;;  %v4671_v30 = vadd.f32 %v4607_v46, %v4383_v2  ;;  %v4670_v62 = vadd.f32 %v4606_v5, %v4382_v3  ;;  %v14711_v48 = vpop.permute.xlu1 %3597  ;;  %v18714_v2 = vld [vmem:[#allocation95_spill] sm:$0xff]  ;;  %v18715_v5 = vld [vmem:[#allocation96_spill] sm:$0xff]  ;;  %v18717_v17 = vld [vmem:[#allocation186_spill] sm:$0xff] }
 0x44f   :  { %vm1391_vm5 = vcmp.eq.s32.totalorder %v9754_v16, %v18708_v21  ;;  %v1454_v57 = vsel %vm1390_vm14, 1.0, %v18189_v54  ;;  %vm1666_vm7 = vcmp.eq.s32.totalorder %v9739_v12, %v18709_v33  ;;  %vm1667_vm15 = vcmp.eq.s32.totalorder %v9754_v16, %v18709_v33  ;;  %v14732_v11 = vld [vmem:[%s17552_s0 + $0xa0] sm:$0xff] }
 0x450   :  { %vm1664_vm6 = vcmp.eq.s32.totalorder %v9739_v12, %v18710_v13  ;;  %vm1665_vm8 = vcmp.eq.s32.totalorder %v9754_v16, %v18710_v13  ;;  %v14713_v31 = vpack.c.bf16 %v4671_v30, %v4669_v38  ;;  %v14715_v23 = vpack.c.bf16 %v4670_v62, %v4668_v10  ;;  %v18719_v62 = vld [vmem:[#allocation197_spill] sm:$0xff] }
 0x451   :  { %8029 = vset.pattern.permute.xlu1 %v18224_v45  ;;  %v14719_v3 = vadd.f32 %v14515_v61, %v18713_v39  ;;  %v14722_v44 = vadd.f32 %v1450_v25, %v18714_v2  ;;  %v14725_v46 = vadd.f32 %v1451_v14, %v18715_v5  ;;  %vm1670_vm1 = vcmp.eq.s32.totalorder %v9739_v12, %v18716_v18  ;;  %v18718_v14 = vld [vmem:[#allocation99_spill] sm:$0xff] }
 0x452   :  { %18711 = vst [vmem:[#allocation31_spill] sm:$0xff] %v14713_v31  ;;  %18712 = vst [vmem:[#allocation225_spill] sm:$0xff] %v14715_v23  ;;  %3045 = vperm.xlu1 %8029, %v14732_v11   ;;  %v1730_v0 = vsel %vm1666_vm7, 1.0, %v18189_v54  ;;  %v1731_v61 = vsel %vm1667_vm15, 1.0, %v18189_v54  ;;  %vm1952_vm10 = vcmp.eq.s32.totalorder %v9739_v12, %v18717_v17  ;;  %vm1953_vm9 = vcmp.eq.s32.totalorder %v9754_v16, %v18717_v17  ;;  %v18720_v5 = vld [vmem:[#allocation123_spill] sm:$0xff]  ;;  %v18721_v17 = vld [vmem:[#allocation84_spill] sm:$0xff] }
 0x453   :  { %5916 = vmatprep.mubr.bf16.mxu1 %v14713_v31  ;;  %v14746_v25 = vsel %vm1391_vm5, 1.0, %v18189_v54  ;;  %v14749_v10 = vadd.f32 %v1454_v57, %v18718_v14  ;;  %v1728_v38 = vsel %vm1664_vm6, 1.0, %v18189_v54  ;;  %v1729_v30 = vsel %vm1665_vm8, 1.0, %v18189_v54  ;;  %v14767_v57 = vpop.permute.xlu1 %3600 }
 0x454   :  { %5917 = vmatmul.mubr.bf16.gmra.mrb[84].mxu1 %v14715_v23  ;;  %vm1671_vm13 = vcmp.eq.s32.totalorder %v9754_v16, %v18716_v18  ;;  %v1734_v21 = vsel %vm1670_vm1, 1.0, %v18189_v54  ;;  %vm1954_vm4 = vcmp.eq.s32.totalorder %v9739_v12, %v18719_v62  ;;  %vm1955_vm11 = vcmp.eq.s32.totalorder %v9754_v16, %v18719_v62  ;;  %v18722_v23 = vld [vmem:[#allocation229_spill] sm:$0xff] }
 0x455   :  { %v1794_v33 = vadd.f32 %v1730_v0, %v14478_v34  ;;  %v1795_v13 = vadd.f32 %v1731_v61, %v14481_v49  ;;  %v2016_v39 = vsel %vm1952_vm10, 1.0, %v18189_v54  ;;  %v2017_v2 = vsel %vm1953_vm9, 1.0, %v18189_v54 }
 0x456   :  { %8030 = vset.pattern.permute.xlu1 %v18367_v6  ;;  %v1792_v18 = vadd.f32 %v1728_v38, %v18720_v5  ;;  %v1793_v14 = vadd.f32 %v1729_v30, %v18721_v17  ;;  %vm2240_vm12 = vcmp.eq.s32.totalorder %v9739_v12, %v18722_v23  ;;  %vm2241_vm2 = vcmp.eq.s32.totalorder %v9754_v16, %v18722_v23  ;;  %v18723_v30 = vld [vmem:[#allocation218_spill] sm:$0xff] }
 0x457   :  { %4191 = vperm.xlu1 %8030, %v14456_v27   ;;  %v14782_v34 = vsel %vm1671_vm13, 1.0, %v18189_v54  ;;  %v14784_v49 = vadd.f32 %v1734_v21, %v1510_v56  ;;  %v2018_v0 = vsel %vm1954_vm4, 1.0, %v18189_v54  ;;  %v2019_v61 = vsel %vm1955_vm11, 1.0, %v18189_v54  ;;  %v18724_v17 = vld [vmem:[#allocation30_spill] sm:$0xff]  ;;  %v14798_v56 = vpop.permute.xlu1 %3888 }
 0x458   :  { %v2080_v38 = vadd.f32 %v2016_v39, %v1792_v18  ;;  %v2081_v62 = vadd.f32 %v2017_v2, %v1793_v14  ;;  %vm2242_vm14 = vcmp.eq.s32.totalorder %v9739_v12, %v18723_v30  ;;  %vm2243_vm0 = vcmp.eq.s32.totalorder %v9754_v16, %v18723_v30  ;;  %v18725_v2 = vld [vmem:[#allocation248_spill] sm:$0xff]  ;;  %v18726_v30 = vld [vmem:[#allocation57_spill] sm:$0xff] }
 0x459   :  { %v2304_v23 = vsel %vm2240_vm12, 1.0, %v18189_v54  ;;  %v2305_v5 = vsel %vm2241_vm2, 1.0, %v18189_v54  ;;  %vm2528_vm3 = vcmp.eq.s32.totalorder %v9739_v12, %v18724_v17  ;;  %vm2529_vm5 = vcmp.eq.s32.totalorder %v9754_v16, %v18724_v17  ;;  %v14813_v17 = vpop.f32.mrb[12].mxu0 }
 0x45a   :  { %v2082_v21 = vadd.f32 %v2018_v0, %v1794_v33  ;;  %v2083_v39 = vadd.f32 %v2019_v61, %v1795_v13  ;;  %vm2530_vm7 = vcmp.eq.s32.totalorder %v9739_v12, %v18725_v2  ;;  %vm2531_vm15 = vcmp.eq.s32.totalorder %v9754_v16, %v18725_v2  ;;  %18727 = vst [vmem:[#allocation221_spill] sm:$0xff] %v14813_v17 }
 0x45b   :  { %4194 = vperm.xlu1 %8030, %v14582_v50   ;;  %v2306_v18 = vsel %vm2242_vm14, 1.0, %v18189_v54  ;;  %v2307_v14 = vsel %vm2243_vm0, 1.0, %v18189_v54  ;;  %vm2816_vm6 = vcmp.eq.s32.totalorder %v9739_v12, %v18726_v30  ;;  %vm2817_vm8 = vcmp.eq.s32.totalorder %v9754_v16, %v18726_v30 }
 0x45c   :  { %v2368_v33 = vadd.f32 %v2304_v23, %v2080_v38  ;;  %v2369_v13 = vadd.f32 %v2305_v5, %v2081_v62  ;;  %v2592_v0 = vsel %vm2528_vm3, 1.0, %v18189_v54  ;;  %v2593_v61 = vsel %vm2529_vm5, 1.0, %v18189_v54  ;;  %v14824_v23 = vpop.permute.xlu1 %3027  ;;  %v14826_v5 = vpop.f32.mrb[13].mxu0 }
 0x45d   :  { %v2594_v50 = vsel %vm2530_vm7, 1.0, %v18189_v54  ;;  %v2595_v2 = vsel %vm2531_vm15, 1.0, %v18189_v54  ;;  %vm2818_vm1 = vcmp.eq.s32.totalorder %v9739_v12, %v13466_v4  ;;  %vm2819_vm10 = vcmp.eq.s32.totalorder %v9754_v16, %v13466_v4  ;;  %18728 = vst [vmem:[#allocation66_spill] sm:$0xff] %v14826_v5 }
 0x45e   :  { %v2370_v31 = vadd.f32 %v2306_v18, %v2082_v21  ;;  %v2371_v30 = vadd.f32 %v2307_v14, %v2083_v39  ;;  %v2880_v38 = vsel %vm2816_vm6, 1.0, %v18189_v54  ;;  %v2881_v62 = vsel %vm2817_vm8, 1.0, %v18189_v54  ;;  %v14835_v21 = vld [vmem:[%s17552_s0 + $0xa8] sm:$0xff]  ;;  %v14838_v39 = vpop.f32.mrb[14].mxu0 }
 0x45f   :  { %8031 = vset.pattern.permute.xlu1 %v18262_v59  ;;  %v2656_v17 = vadd.f32 %v2592_v0, %v2368_v33  ;;  %v2657_v22 = vadd.f32 %v2593_v61, %v2369_v13  ;;  %vm3104_vm9 = vcmp.eq.s32.totalorder %v9739_v12, %v14568_v29  ;;  %vm3105_vm13 = vcmp.eq.s32.totalorder %v9754_v16, %v14568_v29  ;;  %v14848_v0 = vpop.f32.mrb[15].mxu0 }
 0x460   :  { %3336 = vperm.xlu1 %8031, %v14835_v21   ;;  %18729 = vst [vmem:[#allocation128_spill] sm:$0xff] %v14838_v39  ;;  %v2658_v18 = vadd.f32 %v2594_v50, %v2370_v31  ;;  %v2659_v14 = vadd.f32 %v2595_v2, %v2371_v30  ;;  %v2882_v33 = vsel %vm2818_vm1, 1.0, %v18189_v54  ;;  %v2883_v13 = vsel %vm2819_vm10, 1.0, %v18189_v54  ;;  %18730 = vst [vmem:[#allocation81_spill] sm:$0xff] %v14848_v0  ;;  %v18731_v31 = vld [vmem:[#allocation120_spill] sm:$0xff] }
 0x461   :  { %v2944_v61 = vadd.f32 %v2880_v38, %v2656_v17  ;;  %v2945_v5 = vadd.f32 %v2881_v62, %v2657_v22  ;;  %vm3106_vm4 = vcmp.eq.s32.totalorder %v9739_v12, %v13962_v55  ;;  %vm3107_vm11 = vcmp.eq.s32.totalorder %v9754_v16, %v13962_v55  ;;  %v18732_v17 = vld [vmem:[#allocation187_spill] sm:$0xff]  ;;  %v4174_v2 = vpop.permute.xlu1 %4173 }
 0x462   :  { %vm3968_vm12 = vcmp.eq.s32.totalorder %v9739_v12, %v18731_v31  ;;  %vm3969_vm2 = vcmp.eq.s32.totalorder %v9754_v16, %v18731_v31  ;;  %v3168_v4 = vsel %vm3104_vm9, 1.0, %v18189_v54  ;;  %v3169_v22 = vsel %vm3105_vm13, 1.0, %v18189_v54 }
 0x463   :  { %vm3392_vm14 = vcmp.eq.s32.totalorder %v9739_v12, %v18732_v17  ;;  %vm3393_vm0 = vcmp.eq.s32.totalorder %v9754_v16, %v18732_v17  ;;  %v2946_v55 = vadd.f32 %v2882_v33, %v2658_v18  ;;  %v2947_v50 = vadd.f32 %v2883_v13, %v2659_v14  ;;  %v18733_v18 = vld [vmem:[#allocation160_spill] sm:$0xff] }
 0x464   :  { %8032 = vset.pattern.permute.xlu1 %v18312_v24  ;;  %v3170_v30 = vsel %vm3106_vm4, 1.0, %v18189_v54  ;;  %v3171_v38 = vsel %vm3107_vm11, 1.0, %v18189_v54  ;;  %vm3394_vm3 = vcmp.eq.s32.totalorder %v9739_v12, %v14651_v26  ;;  %vm3395_vm5 = vcmp.eq.s32.totalorder %v9754_v16, %v14651_v26 }
 0x465   :  { %4479 = vperm.xlu1 %8032, %v14456_v27   ;;  %v3232_v29 = vadd.f32 %v3168_v4, %v2944_v61  ;;  %v3233_v62 = vadd.f32 %v3169_v22, %v2945_v5  ;;  %vm3680_vm7 = vcmp.eq.s32.totalorder %v9739_v12, %v14711_v48  ;;  %vm3681_vm15 = vcmp.eq.s32.totalorder %v9754_v16, %v14711_v48  ;;  %v4177_v13 = vpop.permute.xlu1 %4176 }
 0x466   :  { %vm1674_vm6 = vcmp.eq.s32.totalorder %v9739_v12, %v18733_v18  ;;  %v3456_v14 = vsel %vm3392_vm14, 1.0, %v18189_v54  ;;  %v3457_v27 = vsel %vm3393_vm0, 1.0, %v18189_v54  ;;  %vm3682_vm8 = vcmp.eq.s32.totalorder %v9739_v12, %v14767_v57 }
 0x467   :  { %vm3683_vm1 = vcmp.eq.s32.totalorder %v9754_v16, %v14767_v57  ;;  %v3234_v26 = vadd.f32 %v3170_v30, %v2946_v55  ;;  %v3235_v48 = vadd.f32 %v3171_v38, %v2947_v50  ;;  %v3458_v5 = vsel %vm3394_vm3, 1.0, %v18189_v54 }
 0x468   :  { %v3459_v33 = vsel %vm3395_vm5, 1.0, %v18189_v54  ;;  %v3744_v61 = vsel %vm3680_vm7, 1.0, %v18189_v54  ;;  %v3745_v4 = vsel %vm3681_vm15, 1.0, %v18189_v54  ;;  %vm3970_vm10 = vcmp.eq.s32.totalorder %v9739_v12, %v14798_v56 }
 0x469   :  { %vm3971_vm9 = vcmp.eq.s32.totalorder %v9754_v16, %v14798_v56  ;;  %8033 = vset.pattern.permute.xlu1 %v18408_v58  ;;  %v3520_v57 = vadd.f32 %v3456_v14, %v3232_v29  ;;  %v3521_v22 = vadd.f32 %v3457_v27, %v3233_v62  ;;  %v3746_v17 = vsel %vm3682_vm8, 1.0, %v18189_v54 }
 0x46a   :  { %v3747_v55 = vsel %vm3683_vm1, 1.0, %v18189_v54  ;;  %3621 = vperm.xlu1 %8033, %v14732_v11   ;;  %v3522_v50 = vadd.f32 %v3458_v5, %v3234_v26  ;;  %v3523_v30 = vadd.f32 %v3459_v33, %v3235_v48  ;;  %vm4258_vm13 = vcmp.eq.s32.totalorder %v9739_v12, %v4177_v13  ;;  %v14914_v14 = vpop.permute.xlu1 %3318  ;;  %v18734_v33 = vld [vmem:[#allocation90_spill] sm:$0xff] }
 0x46b   :  { %vm4259_vm4 = vcmp.eq.s32.totalorder %v9754_v16, %v4177_v13  ;;  %v3808_v38 = vadd.f32 %v3744_v61, %v3520_v57  ;;  %v3809_v0 = vadd.f32 %v3745_v4, %v3521_v22  ;;  %v4034_v56 = vsel %vm3970_vm10, 1.0, %v18189_v54 }
 0x46c   :  { %v4035_v39 = vsel %vm3971_vm9, 1.0, %v18189_v54  ;;  %v3810_v29 = vadd.f32 %v3746_v17, %v3522_v50  ;;  %v3811_v62 = vadd.f32 %v3747_v55, %v3523_v30  ;;  %vm4256_vm11 = vcmp.eq.s32.totalorder %v9739_v12, %v4174_v2  ;;  %v18735_v50 = vld [vmem:[#allocation165_spill] sm:$0xff] }
 0x46d   :  { %vm4257_vm14 = vcmp.eq.s32.totalorder %v9754_v16, %v4174_v2  ;;  %v4032_v27 = vsel %vm3968_vm12, 1.0, %v18189_v54  ;;  %v4033_v26 = vsel %vm3969_vm2, 1.0, %v18189_v54  ;;  %v4322_v48 = vsel %vm4258_vm13, 1.0, %v18189_v54 }
 0x46e   :  { %v4323_v5 = vsel %vm4259_vm4, 1.0, %v18189_v54  ;;  %3624 = vperm.xlu1 %8033, %v14835_v21   ;;  %vm4546_vm0 = vcmp.eq.s32.totalorder %v9739_v12, %v18734_v33  ;;  %vm4547_vm3 = vcmp.eq.s32.totalorder %v9754_v16, %v18734_v33  ;;  %v4098_v2 = vadd.f32 %v4034_v56, %v3810_v29 }
 0x46f   :  { %v4099_v13 = vadd.f32 %v4035_v39, %v3811_v62  ;;  %v14933_v61 = vadd.f32 %v14782_v34, %v14719_v3  ;;  %vm1675_vm12 = vcmp.eq.s32.totalorder %v9754_v16, %v18733_v18  ;;  %v4320_v31 = vsel %vm4256_vm11, 1.0, %v18189_v54  ;;  %v4462_v30 = vpop.permute.xlu1 %4461 }
 0x470   :  { %v4321_v4 = vsel %vm4257_vm14, 1.0, %v18189_v54  ;;  %v4096_v57 = vadd.f32 %v4032_v27, %v3808_v38  ;;  %v4097_v22 = vadd.f32 %v4033_v26, %v3809_v0  ;;  %v4386_v17 = vadd.f32 %v4322_v48, %v4098_v2  ;;  %v18736_v0 = vld [vmem:[#allocation167_spill] sm:$0xff] }
 0x471   :  { %v4387_v55 = vadd.f32 %v4323_v5, %v4099_v13  ;;  %v1738_v39 = vsel %vm1674_vm6, 1.0, %v18189_v54  ;;  %vm1668_vm2 = vcmp.eq.s32.totalorder %v9739_v12, %v18735_v50  ;;  %v4610_v3 = vsel %vm4546_vm0, 1.0, %v18189_v54  ;;  %v18737_v13 = vld [vmem:[#allocation188_spill] sm:$0xff] }
 0x472   :  { %v4611_v34 = vsel %vm4547_vm3, 1.0, %v18189_v54  ;;  %8034 = vset.pattern.permute.xlu1 %v18557_v60  ;;  %v4384_v56 = vadd.f32 %v4320_v31, %v4096_v57  ;;  %v4385_v38 = vadd.f32 %v4321_v4, %v4097_v22  ;;  %vm4544_vm5 = vcmp.eq.s32.totalorder %v9739_v12, %v4462_v30 }
 0x473   :  { %vm4545_vm7 = vcmp.eq.s32.totalorder %v9754_v16, %v4462_v30  ;;  %3912 = vperm.xlu1 %8034, %v14835_v21   ;;  %vm1669_vm15 = vcmp.eq.s32.totalorder %v9754_v16, %v18735_v50  ;;  %vm1672_vm6 = vcmp.eq.s32.totalorder %v9739_v12, %v18736_v0  ;;  %v4608_v29 = vsel %vm4544_vm5, 1.0, %v18189_v54  ;;  %v14991_v50 = vld [vmem:[%s17552_s0 + $0xb0] sm:$0xff]  ;;  %v18742_v30 = vld [vmem:[#allocation125_spill] sm:$0xff] }
 0x474   :  { %v4609_v62 = vsel %vm4545_vm7, 1.0, %v18189_v54  ;;  %v4672_v27 = vadd.f32 %v4608_v29, %v4384_v56  ;;  %v4675_v48 = vadd.f32 %v4611_v34, %v4387_v55  ;;  %v4674_v5 = vadd.f32 %v4610_v3, %v4386_v17  ;;  %v14973_v18 = vpop.permute.xlu1 %3603  ;;  %v18740_v55 = vld [vmem:[#allocation190_spill] sm:$0xff]  ;;  %v18741_v3 = vld [vmem:[#allocation199_spill] sm:$0xff] }
 0x475   :  { %v4673_v26 = vadd.f32 %v4609_v62, %v4385_v38  ;;  %v1739_v33 = vsel %vm1675_vm12, 1.0, %v18189_v54  ;;  %v1732_v2 = vsel %vm1668_vm2, 1.0, %v18189_v54  ;;  %vm1673_vm8 = vcmp.eq.s32.totalorder %v9754_v16, %v18736_v0  ;;  %v18743_v38 = vld [vmem:[#allocation239_spill] sm:$0xff] }
 0x476   :  { %vm1956_vm1 = vcmp.eq.s32.totalorder %v9739_v12, %v18737_v13  ;;  %v1733_v31 = vsel %vm1669_vm15, 1.0, %v18189_v54  ;;  %vm1957_vm10 = vcmp.eq.s32.totalorder %v9754_v16, %v18737_v13  ;;  %v14977_v57 = vpack.c.bf16 %v4674_v5, %v4672_v27 }
 0x477   :  { %8035 = vset.pattern.permute.xlu1 %v18224_v45  ;;  %v14975_v4 = vpack.c.bf16 %v4675_v48, %v4673_v26  ;;  %v1802_v22 = vadd.f32 %v1738_v39, %v14722_v44  ;;  %v1736_v17 = vsel %vm1672_vm6, 1.0, %v18189_v54  ;;  %vm1960_vm9 = vcmp.eq.s32.totalorder %v9739_v12, %v18740_v55  ;;  %v18744_v48 = vld [vmem:[#allocation201_spill] sm:$0xff] }
 0x478   :  { %18739 = vst [vmem:[#allocation172_spill] sm:$0xff] %v14977_v57  ;;  %vm1961_vm13 = vcmp.eq.s32.totalorder %v9754_v16, %v18740_v55  ;;  %3051 = vperm.xlu1 %8035, %v14991_v50   ;;  %v1737_v44 = vsel %vm1673_vm8, 1.0, %v18189_v54  ;;  %v2020_v39 = vsel %vm1956_vm1, 1.0, %v18189_v54  ;;  %vm1958_vm4 = vcmp.eq.s32.totalorder %v9739_v12, %v18741_v3 }
 0x479   :  { %18738 = vst [vmem:[#allocation228_spill] sm:$0xff] %v14975_v4  ;;  %vm1959_vm11 = vcmp.eq.s32.totalorder %v9754_v16, %v18741_v3  ;;  %5926 = vmatprep.mubr.bf16.mxu1 %v14975_v4  ;;  %v15002_v34 = vadd.f32 %v1739_v33, %v14725_v46  ;;  %v1796_v56 = vadd.f32 %v1732_v2, %v18742_v30  ;;  %v2021_v29 = vsel %vm1957_vm10, 1.0, %v18189_v54  ;;  %v15016_v46 = vpop.permute.xlu1 %3606  ;;  %v18747_v30 = vld [vmem:[#allocation32_spill] sm:$0xff] }
 0x47a   :  { %v1797_v0 = vadd.f32 %v1733_v31, %v18743_v38  ;;  %5927 = vmatmul.mubr.bf16.gmra.mrb[88].mxu1 %v14977_v57  ;;  %v1800_v62 = vadd.f32 %v1736_v17, %v14406_v15  ;;  %v2024_v27 = vsel %vm1960_vm9, 1.0, %v18189_v54  ;;  %v2025_v26 = vsel %vm1961_vm13, 1.0, %v18189_v54  ;;  %v18745_v15 = vld [vmem:[#allocation220_spill] sm:$0xff]  ;;  %v18746_v17 = vld [vmem:[#allocation231_spill] sm:$0xff] }
 0x47b   :  { %vm1962_vm14 = vcmp.eq.s32.totalorder %v9739_v12, %v18744_v48  ;;  %v1801_v5 = vadd.f32 %v1737_v44, %v14410_v35  ;;  %v2084_v33 = vadd.f32 %v2020_v39, %v1796_v56  ;;  %v2022_v2 = vsel %vm1958_vm4, 1.0, %v18189_v54 }
 0x47c   :  { %v2023_v13 = vsel %vm1959_vm11, 1.0, %v18189_v54  ;;  %8036 = vset.pattern.permute.xlu1 %v18367_v6  ;;  %v2085_v31 = vadd.f32 %v2021_v29, %v1797_v0  ;;  %vm2246_vm0 = vcmp.eq.s32.totalorder %v9739_v12, %v18745_v15  ;;  %vm2244_vm3 = vcmp.eq.s32.totalorder %v9739_v12, %v18746_v17 }
 0x47d   :  { %vm2245_vm12 = vcmp.eq.s32.totalorder %v9754_v16, %v18746_v17  ;;  %4197 = vperm.xlu1 %8036, %v14732_v11   ;;  %v15029_v35 = vadd.f32 %v2024_v27, %v1800_v62  ;;  %v15031_v55 = vadd.f32 %v2025_v26, %v1801_v5  ;;  %vm1963_vm2 = vcmp.eq.s32.totalorder %v9754_v16, %v18744_v48  ;;  %v15047_v29 = vpop.permute.xlu1 %3894  ;;  %v18748_v62 = vld [vmem:[#allocation21_spill] sm:$0xff] }
 0x47e   :  { %v2026_v44 = vsel %vm1962_vm14, 1.0, %v18189_v54  ;;  %v2086_v39 = vadd.f32 %v2022_v2, %v14784_v49  ;;  %v2087_v3 = vadd.f32 %v2023_v13, %v14933_v61  ;;  %vm2247_vm5 = vcmp.eq.s32.totalorder %v9754_v16, %v18745_v15  ;;  %v18749_v48 = vld [vmem:[#allocation61_spill] sm:$0xff]  ;;  %v15066_v15 = vpop.f32.mrb[16].mxu0 }
 0x47f   :  { %vm2532_vm7 = vcmp.eq.s32.totalorder %v9739_v12, %v18747_v30  ;;  %v2310_v56 = vsel %vm2246_vm0, 1.0, %v18189_v54  ;;  %v2308_v38 = vsel %vm2244_vm3, 1.0, %v18189_v54  ;;  %v2309_v0 = vsel %vm2245_vm12, 1.0, %v18189_v54 }
 0x480   :  { %vm2533_vm15 = vcmp.eq.s32.totalorder %v9754_v16, %v18747_v30  ;;  %v15050_v49 = vsel %vm1963_vm2, 1.0, %v18189_v54  ;;  %v15052_v61 = vadd.f32 %v2026_v44, %v1802_v22  ;;  %vm2534_vm6 = vcmp.eq.s32.totalorder %v9739_v12, %v18748_v62 }
 0x481   :  { %vm2535_vm8 = vcmp.eq.s32.totalorder %v9754_v16, %v18748_v62  ;;  %4200 = vperm.xlu1 %8036, %v14835_v21   ;;  %v2311_v27 = vsel %vm2247_vm5, 1.0, %v18189_v54  ;;  %v2596_v26 = vsel %vm2532_vm7, 1.0, %v18189_v54  ;;  %vm2820_vm1 = vcmp.eq.s32.totalorder %v9739_v12, %v18749_v48 }
 0x482   :  { %vm2821_vm10 = vcmp.eq.s32.totalorder %v9754_v16, %v18749_v48  ;;  %v2374_v22 = vadd.f32 %v2310_v56, %v2086_v39  ;;  %v2372_v5 = vadd.f32 %v2308_v38, %v2084_v33  ;;  %v2373_v2 = vadd.f32 %v2309_v0, %v2085_v31  ;;  %v15079_v56 = vpop.f32.mrb[17].mxu0  ;;  %v18750_v0 = vld [vmem:[#allocation124_spill] sm:$0xff] }
 0x483   :  { %v2597_v13 = vsel %vm2533_vm15, 1.0, %v18189_v54  ;;  %v2598_v17 = vsel %vm2534_vm6, 1.0, %v18189_v54  ;;  %v2599_v21 = vsel %vm2535_vm8, 1.0, %v18189_v54  ;;  %vm2822_vm9 = vcmp.eq.s32.totalorder %v9739_v12, %v13506_v43  ;;  %v15077_v31 = vpop.permute.xlu1 %3033  ;;  %v15093_v62 = vpop.f32.mrb[18].mxu0 }
 0x484   :  { %vm2823_vm13 = vcmp.eq.s32.totalorder %v9754_v16, %v13506_v43  ;;  %v2375_v44 = vadd.f32 %v2311_v27, %v2087_v3  ;;  %v2660_v30 = vadd.f32 %v2596_v26, %v2372_v5  ;;  %v2884_v39 = vsel %vm2820_vm1, 1.0, %v18189_v54  ;;  %v15090_v3 = vld [vmem:[%s17552_s0 + $0xb8] sm:$0xff] }
 0x485   :  { %v2885_v33 = vsel %vm2821_vm10, 1.0, %v18189_v54  ;;  %8037 = vset.pattern.permute.xlu1 %v18262_v59  ;;  %v2661_v38 = vadd.f32 %v2597_v13, %v2373_v2  ;;  %vm3972_vm4 = vcmp.eq.s32.totalorder %v9739_v12, %v18750_v0  ;;  %vm3108_vm11 = vcmp.eq.s32.totalorder %v9739_v12, %v14824_v23  ;;  %v15103_v2 = vpop.f32.mrb[19].mxu0 }
 0x486   :  { %vm3109_vm14 = vcmp.eq.s32.totalorder %v9754_v16, %v14824_v23  ;;  %3342 = vperm.xlu1 %8037, %v15090_v3   ;;  %v2662_v27 = vadd.f32 %v2598_v17, %v2374_v22  ;;  %v2663_v26 = vadd.f32 %v2599_v21, %v2375_v44  ;;  %v2886_v48 = vsel %vm2822_vm9, 1.0, %v18189_v54  ;;  %18751 = vst [vmem:[#allocation208_spill] sm:$0xff] %v15103_v2 }
 0x487   :  { %v2887_v5 = vsel %vm2823_vm13, 1.0, %v18189_v54  ;;  %v2948_v13 = vadd.f32 %v2884_v39, %v2660_v30  ;;  %v2949_v57 = vadd.f32 %v2885_v33, %v2661_v38  ;;  %vm3110_vm0 = vcmp.eq.s32.totalorder %v9739_v12, %v13995_v8 }
 0x488   :  { %vm3111_vm3 = vcmp.eq.s32.totalorder %v9754_v16, %v13995_v8  ;;  %vm3973_vm12 = vcmp.eq.s32.totalorder %v9754_v16, %v18750_v0  ;;  %v15115_v22 = vsel %vm3972_vm4, 1.0, %v18189_v54  ;;  %v3172_v43 = vsel %vm3108_vm11, 1.0, %v18189_v54  ;;  %v18752_v8 = vld [vmem:[#allocation191_spill] sm:$0xff]  ;;  %v4180_v30 = vpop.permute.xlu1 %4179 }
 0x489   :  { %v3173_v17 = vsel %vm3109_vm14, 1.0, %v18189_v54  ;;  %vm3396_vm2 = vcmp.eq.s32.totalorder %v9739_v12, %v18752_v8  ;;  %vm3397_vm5 = vcmp.eq.s32.totalorder %v9754_v16, %v18752_v8  ;;  %v2950_v21 = vadd.f32 %v2886_v48, %v2662_v27 }
 0x48a   :  { %v2951_v44 = vadd.f32 %v2887_v5, %v2663_v26  ;;  %8038 = vset.pattern.permute.xlu1 %v18312_v24  ;;  %v3174_v39 = vsel %vm3110_vm0, 1.0, %v18189_v54  ;;  %v3175_v33 = vsel %vm3111_vm3, 1.0, %v18189_v54  ;;  %vm3398_vm7 = vcmp.eq.s32.totalorder %v9739_v12, %v14914_v14 }
 0x48b   :  { %vm3399_vm15 = vcmp.eq.s32.totalorder %v9754_v16, %v14914_v14  ;;  %4485 = vperm.xlu1 %8038, %v14732_v11   ;;  %v3236_v23 = vadd.f32 %v3172_v43, %v2948_v13  ;;  %v3237_v38 = vadd.f32 %v3173_v17, %v2949_v57  ;;  %vm3684_vm6 = vcmp.eq.s32.totalorder %v9739_v12, %v14973_v18 }
 0x48c   :  { %vm3685_vm8 = vcmp.eq.s32.totalorder %v9754_v16, %v14973_v18  ;;  %v3460_v27 = vsel %vm3396_vm2, 1.0, %v18189_v54  ;;  %v3461_v26 = vsel %vm3397_vm5, 1.0, %v18189_v54  ;;  %vm3686_vm1 = vcmp.eq.s32.totalorder %v9739_v12, %v15016_v46  ;;  %v4183_v5 = vpop.permute.xlu1 %4182 }
 0x48d   :  { %vm3687_vm10 = vcmp.eq.s32.totalorder %v9754_v16, %v15016_v46  ;;  %v3238_v14 = vadd.f32 %v3174_v39, %v2950_v21  ;;  %v3239_v11 = vadd.f32 %v3175_v33, %v2951_v44  ;;  %v3462_v57 = vsel %vm3398_vm7, 1.0, %v18189_v54 }
 0x48e   :  { %v3463_v48 = vsel %vm3399_vm15, 1.0, %v18189_v54  ;;  %v3748_v13 = vsel %vm3684_vm6, 1.0, %v18189_v54  ;;  %v3749_v18 = vsel %vm3685_vm8, 1.0, %v18189_v54  ;;  %vm3974_vm9 = vcmp.eq.s32.totalorder %v9739_v12, %v15047_v29 }
 0x48f   :  { %vm3975_vm13 = vcmp.eq.s32.totalorder %v9754_v16, %v15047_v29  ;;  %8039 = vset.pattern.permute.xlu1 %v18408_v58  ;;  %v3524_v46 = vadd.f32 %v3460_v27, %v3236_v23  ;;  %v3525_v43 = vadd.f32 %v3461_v26, %v3237_v38  ;;  %v3750_v17 = vsel %vm3686_vm1, 1.0, %v18189_v54 }
 0x490   :  { %v3751_v8 = vsel %vm3687_vm10, 1.0, %v18189_v54  ;;  %3627 = vperm.xlu1 %8039, %v14991_v50   ;;  %v3526_v21 = vadd.f32 %v3462_v57, %v3238_v14  ;;  %v3527_v44 = vadd.f32 %v3463_v48, %v3239_v11  ;;  %vm4262_vm4 = vcmp.eq.s32.totalorder %v9739_v12, %v4183_v5 }
 0x491   :  { %vm4263_vm11 = vcmp.eq.s32.totalorder %v9754_v16, %v4183_v5  ;;  %v3812_v39 = vadd.f32 %v3748_v13, %v3524_v46  ;;  %v3813_v33 = vadd.f32 %v3749_v18, %v3525_v43  ;;  %v4038_v29 = vsel %vm3974_vm9, 1.0, %v18189_v54  ;;  %v15165_v27 = vpop.permute.xlu1 %3324  ;;  %v18755_v5 = vld [vmem:[#allocation222_spill] sm:$0xff] }
 0x492   :  { %v4039_v4 = vsel %vm3975_vm13, 1.0, %v18189_v54  ;;  %v3814_v23 = vadd.f32 %v3750_v17, %v3526_v21  ;;  %v3815_v38 = vadd.f32 %v3751_v8, %v3527_v44  ;;  %vm4260_vm14 = vcmp.eq.s32.totalorder %v9739_v12, %v4180_v30 }
 0x493   :  { %vm4261_vm0 = vcmp.eq.s32.totalorder %v9754_v16, %v4180_v30  ;;  %v4037_v26 = vsel %vm3973_vm12, 1.0, %v18189_v54  ;;  %v4326_v14 = vsel %vm4262_vm4, 1.0, %v18189_v54  ;;  %v4327_v11 = vsel %vm4263_vm11, 1.0, %v18189_v54  ;;  %v18756_v30 = vld [vmem:[#allocation249_spill] sm:$0xff] }
 0x494   :  { %3630 = vperm.xlu1 %8039, %v15090_v3   ;;  %v18753_v57 = vlaneseq  ;;  %vm2250_vm3 = vcmp.eq.s32.totalorder %v9739_v12, %v18755_v5  ;;  %vm4550_vm2 = vcmp.eq.s32.totalorder %v9739_v12, %v18756_v30  ;;  %v4102_v13 = vadd.f32 %v4038_v29, %v3814_v23 }
 0x495   :  { %v4103_v18 = vadd.f32 %v4039_v4, %v3815_v38  ;;  %vm2251_vm12 = vcmp.eq.s32.totalorder %v9754_v16, %v18755_v5  ;;  %vm4551_vm5 = vcmp.eq.s32.totalorder %v9754_v16, %v18756_v30  ;;  %v4324_v0 = vsel %vm4260_vm14, 1.0, %v18189_v54 }
 0x496   :  { %v15175_v48 = vshrl.u32 %v18753_v57, 7  ;;  %v4325_v46 = vsel %vm4261_vm0, 1.0, %v18189_v54  ;;  %v4100_v43 = vadd.f32 %v15115_v22, %v3812_v39  ;;  %v4101_v17 = vadd.f32 %v4037_v26, %v3813_v33  ;;  %v18757_v57 = vld [vmem:[#allocation233_spill] sm:$0xff]  ;;  %v4468_v23 = vpop.permute.xlu1 %4467  ;;  %v6220_v39 = vld [vmem:[%s17556_s4] sm:$0xf] }
 0x497   :  { %v4390_v8 = vadd.f32 %v4326_v14, %v4102_v13  ;;  %v4391_v21 = vadd.f32 %v4327_v11, %v4103_v18  ;;  %v2314_v44 = vsel %vm2250_vm3, 1.0, %v18189_v54  ;;  %vm2248_vm7 = vcmp.eq.s32.totalorder %v9739_v12, %v18757_v57 }
 0x498   :  { %18754 = vst [vmem:[#allocation176_spill] sm:$0xff] %v15175_v48  ;;  %v4614_v4 = vsel %vm4550_vm2, 1.0, %v18189_v54  ;;  %v17932_v29 = vsub.s32 0, %v15175_v48  ;;  %8040 = vset.pattern.permute.xlu1 %v18557_v60  ;;  %v4388_v38 = vadd.f32 %v4324_v0, %v4100_v43  ;;  %v4389_v2 = vadd.f32 %v4325_v46, %v4101_v17  ;;  %v18758_v43 = vld [vmem:[#allocation34_spill] sm:$0xff] }
 0x499   :  { %vm4548_vm15 = vcmp.eq.s32.totalorder %v9739_v12, %v4468_v23  ;;  %vm4549_vm6 = vcmp.eq.s32.totalorder %v9754_v16, %v4468_v23  ;;  %3918 = vperm.xlu1 %8040, %v15090_v3   ;;  %v4615_v22 = vsel %vm4551_vm5, 1.0, %v18189_v54  ;;  %v17931_v33 = vsub.s32 1, %v15175_v48 }
 0x49a   :  { %v4612_v26 = vsel %vm4548_vm15, 1.0, %v18189_v54  ;;  %v4613_v14 = vsel %vm4549_vm6, 1.0, %v18189_v54  ;;  %v4679_v18 = vadd.f32 %v4615_v22, %v4391_v21  ;;  %v4678_v0 = vadd.f32 %v4614_v4, %v4390_v8  ;;  %v18761_v4 = vld [vmem:[#allocation55_spill] sm:$0xff]  ;;  %v5868_v23 = vpop.f32.mrb[64].mxu1  ;;  %v15244_v22 = vld [vmem:[%s17552_s0 + $0xc0] sm:$0xff] }
 0x49b   :  { %v4676_v11 = vadd.f32 %v4612_v26, %v4388_v38  ;;  %v4677_v13 = vadd.f32 %v4613_v14, %v4389_v2  ;;  %v2091_v46 = vadd.f32 %v15050_v49, %v15002_v34  ;;  %vm2249_vm8 = vcmp.eq.s32.totalorder %v9754_v16, %v18757_v57  ;;  %v18762_v14 = vld [vmem:[#allocation108_spill] sm:$0xff] }
 0x49c   :  { %v2312_v30 = vsel %vm2248_vm7, 1.0, %v18189_v54  ;;  %vm2536_vm1 = vcmp.eq.s32.totalorder %v9739_v12, %v18758_v43  ;;  %vm2537_vm10 = vcmp.eq.s32.totalorder %v9754_v16, %v18758_v43  ;;  %v15221_v2 = vrot.slane %v6220_v39, %v17932_v29  ;;  %v15224_v34 = vpop.permute.xlu1 %3609 }
 0x49d   :  { %8041 = vset.pattern.permute.xlu1 %v18224_v45  ;;  %v15226_v49 = vpack.c.bf16 %v4679_v18, %v4677_v13  ;;  %v15228_v17 = vpack.c.bf16 %v4678_v0, %v4676_v11  ;;  %v2315_v8 = vsel %vm2251_vm12, 1.0, %v18189_v54  ;;  %v2378_v21 = vadd.f32 %v2314_v44, %v15052_v61 }
 0x49e   :  { %vm2538_vm9 = vcmp.eq.s32.totalorder %v9739_v12, %v18761_v4  ;;  %v15239_v38 = vrot.slane %v6220_v39, %v17931_v33  ;;  %3057 = vperm.xlu1 %8041, %v15244_v22   ;;  %v2313_v61 = vsel %vm2249_vm8, 1.0, %v18189_v54  ;;  %v2376_v5 = vadd.f32 %v2312_v30, %v15029_v35  ;;  %v5870_v39 = vpop.f32.mrb[65].mxu1 }
 0x49f   :  { %18759 = vst [vmem:[#allocation212_spill] sm:$0xff] %v15226_v49  ;;  %18760 = vst [vmem:[#allocation153_spill] sm:$0xff] %v15228_v17  ;;  %vm2539_vm13 = vcmp.eq.s32.totalorder %v9754_v16, %v18761_v4  ;;  %v5869_v44 = vadd.f32 %v5868_v23, %v14282_v36  ;;  %5936 = vmatprep.mubr.bf16.mxu1 %v15226_v49  ;;  %v2600_v26 = vsel %vm2536_vm1, 1.0, %v18189_v54  ;;  %v2601_v57 = vsel %vm2537_vm10, 1.0, %v18189_v54  ;;  %v5872_v11 = vpop.f32.mrb[66].mxu1 }
 0x4a0   :  { %vm2824_vm4 = vcmp.eq.s32.totalorder %v9739_v12, %v18762_v14  ;;  %v5871_v35 = vadd.f32 %v5870_v39, %v14366_v63  ;;  %5937 = vmatmul.mubr.bf16.gmra.mrb[92].mxu1 %v15228_v17  ;;  %v2602_v36 = vsel %vm2538_vm9, 1.0, %v18189_v54  ;;  %vm2825_vm11 = vcmp.eq.s32.totalorder %v9754_v16, %v18762_v14  ;;  %v5874_v0 = vpop.f32.mrb[67].mxu1  ;;  %v15276_v30 = vpop.permute.xlu1 %3612  ;;  %v18763_v14 = vld [vmem:[#allocation42_spill] sm:$0xff] }
 0x4a1   :  { %v6242_v13 = vadd.f32 %v15221_v2, %v5869_v44  ;;  %v5873_v18 = vadd.f32 %v5872_v11, %v14372_v1  ;;  %v2377_v63 = vadd.f32 %v2313_v61, %v15031_v55  ;;  %v2603_v43 = vsel %vm2539_vm13, 1.0, %v18189_v54 }
 0x4a2   :  { %v6243_v23 = vadd.f32 %v15239_v38, %v5871_v35  ;;  %v5875_v39 = vadd.f32 %v5874_v0, %v14400_v41  ;;  %8042 = vset.pattern.permute.xlu1 %v18367_v6  ;;  %v2379_v33 = vadd.f32 %v2315_v8, %v2091_v46  ;;  %v2664_v44 = vadd.f32 %v2600_v26, %v2376_v5 }
 0x4a3   :  { %v2888_v1 = vsel %vm2824_vm4, 1.0, %v18189_v54  ;;  %v6246_v55 = vadd.f32 %v15221_v2, %v5873_v18  ;;  %4203 = vperm.xlu1 %8042, %v14991_v50   ;;  %v2665_v61 = vadd.f32 %v2601_v57, %v2377_v63  ;;  %v2666_v4 = vadd.f32 %v2602_v36, %v2378_v21  ;;  %v5878_v21 = vpop.f32.mrb[68].mxu1 }
 0x4a4   :  { %v2889_v41 = vsel %vm2825_vm11, 1.0, %v18189_v54  ;;  %v6247_v35 = vadd.f32 %v15239_v38, %v5875_v39  ;;  %v2667_v46 = vadd.f32 %v2603_v43, %v2379_v33  ;;  %vm2826_vm14 = vcmp.eq.s32.totalorder %v9739_v12, %v13550_v42  ;;  %v5880_v63 = vpop.f32.mrb[69].mxu1 }
 0x4a5   :  { %v6370_v8 = vmax.f32 %v6242_v13, 0.0  ;;  %v6374_v5 = vmax.f32 %v6246_v55, 0.0  ;;  %v2952_v26 = vadd.f32 %v2888_v1, %v2664_v44  ;;  %vm2827_vm0 = vcmp.eq.s32.totalorder %v9754_v16, %v13550_v42  ;;  %v15301_v36 = vpop.permute.xlu1 %3900  ;;  %v18764_v13 = vld [vmem:[#allocation209_spill] sm:$0xff]  ;;  %v5882_v39 = vpop.f32.mrb[70].mxu1 }
 0x4a6   :  { %v6371_v11 = vmax.f32 %v6243_v23, 0.0  ;;  %v6375_v57 = vmax.f32 %v6247_v35, 0.0  ;;  %v2953_v18 = vadd.f32 %v2889_v41, %v2665_v61  ;;  %vm3976_vm3 = vcmp.eq.s32.totalorder %v9739_v12, %v18763_v14  ;;  %v5884_v55 = vpop.f32.mrb[71].mxu1  ;;  %v15322_v61 = vpop.f32.mrb[20].mxu0 }
 0x4a7   :  { %v6498_v0 = vpack.c.bf16 %v6374_v5, %v6370_v8  ;;  %v5879_v33 = vadd.f32 %v5878_v21, %v14402_v51  ;;  %4206 = vperm.xlu1 %8042, %v15090_v3   ;;  %vm3400_vm2 = vcmp.eq.s32.totalorder %v9739_v12, %v18764_v13  ;;  %v2890_v43 = vsel %vm2826_vm14, 1.0, %v18189_v54 }
 0x4a8   :  { %v5881_v23 = vadd.f32 %v5880_v63, %v14439_v32  ;;  %v6499_v44 = vpack.c.bf16 %v6375_v57, %v6371_v11  ;;  %v2891_v51 = vsel %vm2827_vm0, 1.0, %v18189_v54  ;;  %vm3112_vm12 = vcmp.eq.s32.totalorder %v9739_v12, %v15077_v31  ;;  %v15353_v57 = vpop.f32.mrb[21].mxu0 }
 0x4a9   :  { %v6250_v3 = vadd.f32 %v15221_v2, %v5879_v33  ;;  %v5883_v1 = vadd.f32 %v5882_v39, %v14460_v7  ;;  %vm3114_vm5 = vcmp.eq.s32.totalorder %v9739_v12, %v14029_v19  ;;  %vm3113_vm7 = vcmp.eq.s32.totalorder %v9754_v16, %v15077_v31  ;;  %v15363_v63 = vpop.f32.mrb[22].mxu0 }
 0x4aa   :  { %v6251_v32 = vadd.f32 %v15239_v38, %v5881_v23  ;;  %v5885_v42 = vadd.f32 %v5884_v55, %v14475_v20  ;;  %6990 = vmatprep.mubr.bf16.mxu0 %v6499_v44  ;;  %vm3401_vm15 = vcmp.eq.s32.totalorder %v9754_v16, %v18764_v13  ;;  %v3464_v7 = vsel %vm3400_vm2, 1.0, %v18189_v54  ;;  %v15369_v39 = vpop.f32.mrb[23].mxu0 }
 0x4ab   :  { %v2954_v41 = vadd.f32 %v2890_v43, %v2666_v4  ;;  %v6254_v35 = vadd.f32 %v15221_v2, %v5883_v1  ;;  %6991 = vmatmul.mubr.bf16.vlgmr.msra.gmra.mrb[64].mxu0 %v6498_v0  ;;  %8043 = vset.pattern.permute.xlu1 %v18262_v59  ;;  %v15338_v8 = vpop.permute.xlu1 %3039  ;;  %v2955_v5 = vadd.f32 %v2891_v51, %v2667_v46  ;;  %v3176_v20 = vsel %vm3112_vm12, 1.0, %v18189_v54  ;;  %v15350_v4 = vld [vmem:[%s17552_s0 + $0xc8] sm:$0xff] }
 0x4ac   :  { %vm3115_vm6 = vcmp.eq.s32.totalorder %v9754_v16, %v14029_v19  ;;  %v6255_v11 = vadd.f32 %v15239_v38, %v5885_v42  ;;  %3348 = vperm.xlu1 %8043, %v15350_v4   ;;  %v3178_v46 = vsel %vm3114_vm5, 1.0, %v18189_v54  ;;  %v3177_v21 = vsel %vm3113_vm7, 1.0, %v18189_v54 }
 0x4ad   :  { %v6378_v0 = vmax.f32 %v6250_v3, 0.0  ;;  %v6382_v33 = vmax.f32 %v6254_v35, 0.0  ;;  %vm3402_vm8 = vcmp.eq.s32.totalorder %v9739_v12, %v15165_v27  ;;  %vm3403_vm1 = vcmp.eq.s32.totalorder %v9754_v16, %v15165_v27 }
 0x4ae   :  { %v6379_v43 = vmax.f32 %v6251_v32, 0.0  ;;  %v6383_v23 = vmax.f32 %v6255_v11, 0.0  ;;  %v3179_v31 = vsel %vm3115_vm6, 1.0, %v18189_v54  ;;  %v3240_v44 = vadd.f32 %v3176_v20, %v2952_v26 }
 0x4af   :  { %vm3688_vm10 = vcmp.eq.s32.totalorder %v9739_v12, %v15224_v34  ;;  %v6502_v51 = vpack.c.bf16 %v6382_v33, %v6378_v0  ;;  %v3241_v3 = vadd.f32 %v3177_v21, %v2953_v18  ;;  %vm3689_vm9 = vcmp.eq.s32.totalorder %v9754_v16, %v15224_v34  ;;  %v18765_v21 = vld [vmem:[#allocation22_spill] sm:$0xff] }
 0x4b0   :  { %vm3690_vm13 = vcmp.eq.s32.totalorder %v9739_v12, %v15276_v30  ;;  %v6503_v1 = vpack.c.bf16 %v6383_v23, %v6379_v43  ;;  %8044 = vset.pattern.permute.xlu1 %v18312_v24  ;;  %v15382_v55 = vpop.permute.xlu1 %4185  ;;  %vm3977_vm4 = vcmp.eq.s32.totalorder %v9754_v16, %v18763_v14  ;;  %v3465_v19 = vsel %vm3401_vm15, 1.0, %v18189_v54 }
 0x4b1   :  { %v3466_v26 = vsel %vm3402_vm8, 1.0, %v18189_v54  ;;  %v3467_v18 = vsel %vm3403_vm1, 1.0, %v18189_v54  ;;  %4491 = vperm.xlu1 %8044, %v14991_v50   ;;  %v4040_v32 = vsel %vm3976_vm3, 1.0, %v18189_v54  ;;  %v3242_v42 = vadd.f32 %v3178_v46, %v2954_v41  ;;  %v5888_v46 = vpop.f32.mrb[72].mxu1 }
 0x4b2   :  { %v3243_v13 = vadd.f32 %v3179_v31, %v2955_v5  ;;  %v3752_v35 = vsel %vm3688_vm10, 1.0, %v18189_v54  ;;  %7000 = vmatprep.mubr.bf16.mxu0 %v6503_v1  ;;  %v3528_v20 = vadd.f32 %v3464_v7, %v3240_v44  ;;  %v3753_v27 = vsel %vm3689_vm9, 1.0, %v18189_v54  ;;  %v5890_v33 = vpop.f32.mrb[73].mxu1 }
 0x4b3   :  { %vm3691_vm11 = vcmp.eq.s32.totalorder %v9754_v16, %v15276_v30  ;;  %v3754_v50 = vsel %vm3690_vm13, 1.0, %v18189_v54  ;;  %7001 = vmatmul.mubr.bf16.gmra.mrb[68].mxu0 %v6502_v51  ;;  %v4041_v14 = vsel %vm3977_vm4, 1.0, %v18189_v54  ;;  %v3530_v41 = vadd.f32 %v3466_v26, %v3242_v42  ;;  %v5892_v51 = vpop.f32.mrb[74].mxu1  ;;  %v18767_v42 = vld [vmem:[#allocation132_spill] sm:$0xff] }
 0x4b4   :  { %v3531_v5 = vadd.f32 %v3467_v18, %v3243_v13  ;;  %v3529_v11 = vadd.f32 %v3465_v19, %v3241_v3  ;;  %v4189_v7 = vpop.permute.xlu1 %4188  ;;  %vm4554_vm14 = vcmp.eq.s32.totalorder %v9739_v12, %v18765_v21  ;;  %vm4555_vm0 = vcmp.eq.s32.totalorder %v9754_v16, %v18765_v21  ;;  %v18766_v3 = vld [vmem:[#allocation162_spill] sm:$0xff]  ;;  %v5894_v19 = vpop.f32.mrb[75].mxu1 }
 0x4b5   :  { %v3816_v34 = vadd.f32 %v3752_v35, %v3528_v20  ;;  %vm3978_vm3 = vcmp.eq.s32.totalorder %v9739_v12, %v15301_v36  ;;  %vm3979_vm2 = vcmp.eq.s32.totalorder %v9754_v16, %v15301_v36  ;;  %8045 = vset.pattern.permute.xlu1 %v18408_v58  ;;  %v5889_v0 = vadd.f32 %v5888_v46, %v14560_v40 }
 0x4b6   :  { %v3817_v43 = vadd.f32 %v3753_v27, %v3529_v11  ;;  %v3755_v23 = vsel %vm3691_vm11, 1.0, %v18189_v54  ;;  %v3818_v31 = vadd.f32 %v3754_v50, %v3530_v41  ;;  %3633 = vperm.xlu1 %8045, %v15244_v22   ;;  %v5891_v44 = vadd.f32 %v5890_v33, %v14573_v37 }
 0x4b7   :  { %vm1678_vm12 = vcmp.eq.s32.totalorder %v9739_v12, %v18766_v3  ;;  %vm4266_vm5 = vcmp.eq.s32.totalorder %v9739_v12, %v4189_v7  ;;  %vm4267_vm7 = vcmp.eq.s32.totalorder %v9754_v16, %v4189_v7  ;;  %v6258_v40 = vadd.f32 %v15221_v2, %v5889_v0  ;;  %v18768_v7 = vld [vmem:[#allocation169_spill] sm:$0xff] }
 0x4b8   :  { %v5893_v1 = vadd.f32 %v5892_v51, %v14585_v53  ;;  %v4042_v30 = vsel %vm3978_vm3, 1.0, %v18189_v54  ;;  %v4043_v37 = vsel %vm3979_vm2, 1.0, %v18189_v54  ;;  %v6259_v26 = vadd.f32 %v15239_v38, %v5891_v44 }
 0x4b9   :  { %v5895_v18 = vadd.f32 %v5894_v19, %v14595_v28  ;;  %vm1392_vm15 = vcmp.eq.s32.totalorder %v9739_v12, %v18767_v42  ;;  %v3819_v13 = vadd.f32 %v3755_v23, %v3531_v5  ;;  %vm4264_vm6 = vcmp.eq.s32.totalorder %v9739_v12, %v15382_v55  ;;  %v15457_v35 = vpop.permute.xlu1 %3330 }
 0x4ba   :  { %vm4265_vm8 = vcmp.eq.s32.totalorder %v9754_v16, %v15382_v55  ;;  %v6262_v53 = vadd.f32 %v15221_v2, %v5893_v1  ;;  %v4104_v36 = vadd.f32 %v4040_v32, %v3816_v34  ;;  %v4330_v20 = vsel %vm4266_vm5, 1.0, %v18189_v54  ;;  %3636 = vperm.xlu1 %8045, %v15350_v4  }
 0x4bb   :  { %v4331_v28 = vsel %vm4267_vm7, 1.0, %v18189_v54  ;;  %v6263_v27 = vadd.f32 %v15239_v38, %v5895_v18  ;;  %v4106_v50 = vadd.f32 %v4042_v30, %v3818_v31  ;;  %v4107_v41 = vadd.f32 %v4043_v37, %v3819_v13 }
 0x4bc   :  { %v6386_v55 = vmax.f32 %v6258_v40, 0.0  ;;  %v6390_v5 = vmax.f32 %v6262_v53, 0.0  ;;  %v4328_v11 = vsel %vm4264_vm6, 1.0, %v18189_v54  ;;  %v4329_v32 = vsel %vm4265_vm8, 1.0, %v18189_v54 }
 0x4bd   :  { %v6387_v46 = vmax.f32 %v6259_v26, 0.0  ;;  %v6391_v34 = vmax.f32 %v6263_v27, 0.0  ;;  %v4105_v0 = vadd.f32 %v4041_v14, %v3817_v43  ;;  %v4394_v33 = vadd.f32 %v4330_v20, %v4106_v50 }
 0x4be   :  { %v4395_v23 = vadd.f32 %v4331_v28, %v4107_v41  ;;  %v6506_v44 = vpack.c.bf16 %v6390_v5, %v6386_v55  ;;  %vm1679_vm1 = vcmp.eq.s32.totalorder %v9754_v16, %v18766_v3  ;;  %vm1676_vm10 = vcmp.eq.s32.totalorder %v9739_v12, %v18768_v7  ;;  %8046 = vset.pattern.permute.xlu1 %v18557_v60  ;;  %v4474_v31 = vpop.permute.xlu1 %4473  ;;  %v18770_v28 = vld [vmem:[#allocation203_spill] sm:$0xff]  ;;  %v18773_v5 = vld [vmem:[#allocation252_spill] sm:$0xff] }
 0x4bf   :  { %vm1677_vm9 = vcmp.eq.s32.totalorder %v9754_v16, %v18768_v7  ;;  %v6507_v51 = vpack.c.bf16 %v6391_v34, %v6387_v46  ;;  %v4392_v40 = vadd.f32 %v4328_v11, %v4104_v36  ;;  %v4393_v1 = vadd.f32 %v4329_v32, %v4105_v0  ;;  %3924 = vperm.xlu1 %8046, %v15350_v4   ;;  %v18769_v36 = vld [vmem:[#allocation192_spill] sm:$0xff]  ;;  %v15531_v46 = vld [vmem:[%s17552_s0 + $0xd0] sm:$0xff] }
 0x4c0   :  { %vm4552_vm13 = vcmp.eq.s32.totalorder %v9739_v12, %v4474_v31  ;;  %vm4553_vm4 = vcmp.eq.s32.totalorder %v9754_v16, %v4474_v31  ;;  %v4618_v14 = vsel %vm4554_vm14, 1.0, %v18189_v54  ;;  %v4619_v43 = vsel %vm4555_vm0, 1.0, %v18189_v54  ;;  %v18775_v7 = vld [vmem:[#allocation224_spill] sm:$0xff] }
 0x4c1   :  { %v4616_v19 = vsel %vm4552_vm13, 1.0, %v18189_v54  ;;  %v4617_v30 = vsel %vm4553_vm4, 1.0, %v18189_v54  ;;  %7010 = vmatprep.mubr.bf16.mxu0 %v6507_v51  ;;  %v4683_v18 = vadd.f32 %v4619_v43, %v4395_v23  ;;  %v4682_v13 = vadd.f32 %v4618_v14, %v4394_v33  ;;  %v18777_v43 = vld [vmem:[#allocation58_spill] sm:$0xff] }
 0x4c2   :  { %v4680_v37 = vadd.f32 %v4616_v19, %v4392_v40  ;;  %v4681_v26 = vadd.f32 %v4617_v30, %v4393_v1  ;;  %7011 = vmatmul.mubr.bf16.gmra.mrb[72].mxu0 %v6506_v44  ;;  %v1742_v53 = vsel %vm1678_vm12, 1.0, %v18189_v54  ;;  %v1740_v21 = vsel %vm1676_vm10, 1.0, %v18189_v54  ;;  %v18774_v44 = vld [vmem:[#allocation235_spill] sm:$0xff]  ;;  %v18776_v40 = vld [vmem:[#allocation36_spill] sm:$0xff] }
 0x4c3   :  { %vm1964_vm11 = vcmp.eq.s32.totalorder %v9739_v12, %v18769_v36  ;;  %vm1965_vm14 = vcmp.eq.s32.totalorder %v9754_v16, %v18769_v36  ;;  %v1741_v20 = vsel %vm1677_vm9, 1.0, %v18189_v54  ;;  %vm1966_vm0 = vcmp.eq.s32.totalorder %v9739_v12, %v18770_v28  ;;  %8047 = vset.pattern.permute.xlu1 %v18224_v45  ;;  %v15508_v27 = vpop.permute.xlu1 %3615 }
 0x4c4   :  { %v15510_v50 = vpack.c.bf16 %v4683_v18, %v4681_v26  ;;  %v15512_v41 = vpack.c.bf16 %v4682_v13, %v4680_v37  ;;  %vm1393_vm3 = vcmp.eq.s32.totalorder %v9754_v16, %v18767_v42  ;;  %v15520_v55 = vsel %vm1392_vm15, 1.0, %v18189_v54  ;;  %3063 = vperm.xlu1 %8047, %v15531_v46   ;;  %v18778_v13 = vld [vmem:[#allocation68_spill] sm:$0xff] }
 0x4c5   :  { %v1519_v11 = vadd.f32 %v14746_v25, %v18773_v5  ;;  %v1743_v32 = vsel %vm1679_vm1, 1.0, %v18189_v54  ;;  %v1806_v34 = vadd.f32 %v1742_v53, %v14749_v10  ;;  %v2028_v0 = vsel %vm1964_vm11, 1.0, %v18189_v54 }
 0x4c6   :  { %18771 = vst [vmem:[#allocation230_spill] sm:$0xff] %v15510_v50  ;;  %18772 = vst [vmem:[#allocation157_spill] sm:$0xff] %v15512_v41  ;;  %v2029_v33 = vsel %vm1965_vm14, 1.0, %v18189_v54  ;;  %vm1967_vm2 = vcmp.eq.s32.totalorder %v9754_v16, %v18770_v28  ;;  %5946 = vmatprep.mubr.bf16.mxu1 %v15510_v50  ;;  %v1804_v25 = vadd.f32 %v1740_v21, %v14415_v52  ;;  %v2030_v23 = vsel %vm1966_vm0, 1.0, %v18189_v54 }
 0x4c7   :  { %v1805_v3 = vadd.f32 %v1741_v20, %v14428_v9  ;;  %vm2252_vm12 = vcmp.eq.s32.totalorder %v9739_v12, %v18774_v44  ;;  %5947 = vmatmul.mubr.bf16.gmra.mrb[96].mxu1 %v15512_v41  ;;  %v1807_v10 = vadd.f32 %v1743_v32, %v1519_v11  ;;  %vm2254_vm5 = vcmp.eq.s32.totalorder %v9739_v12, %v18775_v7  ;;  %v15555_v52 = vpop.permute.xlu1 %3618 }
 0x4c8   :  { %vm2255_vm7 = vcmp.eq.s32.totalorder %v9754_v16, %v18775_v7  ;;  %vm2253_vm15 = vcmp.eq.s32.totalorder %v9754_v16, %v18774_v44  ;;  %v2092_v9 = vadd.f32 %v2028_v0, %v1804_v25  ;;  %v2031_v51 = vsel %vm1967_vm2, 1.0, %v18189_v54  ;;  %8048 = vset.pattern.permute.xlu1 %v18367_v6 }
 0x4c9   :  { %v2093_v31 = vadd.f32 %v2029_v33, %v1805_v3  ;;  %vm2540_vm6 = vcmp.eq.s32.totalorder %v9739_v12, %v18776_v40  ;;  %v2094_v1 = vadd.f32 %v2030_v23, %v1806_v34  ;;  %v2316_v14 = vsel %vm2252_vm12, 1.0, %v18189_v54  ;;  %4209 = vperm.xlu1 %8048, %v15244_v22   ;;  %v15597_v23 = vpop.f32.mrb[24].mxu0 }
 0x4ca   :  { %vm2541_vm8 = vcmp.eq.s32.totalorder %v9754_v16, %v18776_v40  ;;  %vm2542_vm1 = vcmp.eq.s32.totalorder %v9739_v12, %v18777_v43  ;;  %v2318_v19 = vsel %vm2254_vm5, 1.0, %v18189_v54  ;;  %v2319_v30 = vsel %vm2255_vm7, 1.0, %v18189_v54 }
 0x4cb   :  { %v2317_v37 = vsel %vm2253_vm15, 1.0, %v18189_v54  ;;  %vm2543_vm10 = vcmp.eq.s32.totalorder %v9754_v16, %v18777_v43  ;;  %v2095_v26 = vadd.f32 %v2031_v51, %v1807_v10  ;;  %v2604_v18 = vsel %vm2540_vm6, 1.0, %v18189_v54  ;;  %v18780_v10 = vld [vmem:[#allocation77_spill] sm:$0xff]  ;;  %v18781_v51 = vld [vmem:[#allocation244_spill] sm:$0xff]  ;;  %v15623_v43 = vpop.f32.mrb[25].mxu0 }
 0x4cc   :  { %vm2828_vm9 = vcmp.eq.s32.totalorder %v9739_v12, %v18778_v13  ;;  %vm2829_vm13 = vcmp.eq.s32.totalorder %v9754_v16, %v18778_v13  ;;  %v15581_v53 = vsel %vm1393_vm3, 1.0, %v18189_v54  ;;  %v2380_v21 = vadd.f32 %v2316_v14, %v2092_v9  ;;  %v15585_v28 = vpop.permute.xlu1 %3906  ;;  %v15620_v14 = vld [vmem:[%s17552_s0 + $0xd8] sm:$0xff] }
 0x4cd   :  { %v2605_v36 = vsel %vm2541_vm8, 1.0, %v18189_v54  ;;  %v2606_v20 = vsel %vm2542_vm1, 1.0, %v18189_v54  ;;  %v2382_v5 = vadd.f32 %v2318_v19, %v2094_v1  ;;  %v2383_v11 = vadd.f32 %v2319_v30, %v2095_v26  ;;  %4212 = vperm.xlu1 %8048, %v15350_v4   ;;  %v18779_v4 = vld [vmem:[#allocation210_spill] sm:$0xff] }
 0x4ce   :  { %v2381_v32 = vadd.f32 %v2317_v37, %v2093_v31  ;;  %v2607_v34 = vsel %vm2543_vm10, 1.0, %v18189_v54  ;;  %v2668_v0 = vadd.f32 %v2604_v18, %v2380_v21  ;;  %v2892_v33 = vsel %vm2828_vm9, 1.0, %v18189_v54  ;;  %v15633_v37 = vpop.permute.xlu0 %3075  ;;  %v15641_v18 = vpop.f32.mrb[26].mxu0 }
 0x4cf   :  { %v2893_v42 = vsel %vm2829_vm13, 1.0, %v18189_v54  ;;  %vm3116_vm4 = vcmp.eq.s32.totalorder %v9739_v12, %v15338_v8  ;;  %v2670_v3 = vadd.f32 %v2606_v20, %v2382_v5  ;;  %vm2830_vm11 = vcmp.eq.s32.totalorder %v9739_v12, %v13580_v47  ;;  %18782 = vst [vmem:[#allocation159_spill] sm:$0xff] %v15633_v37  ;;  %v15651_v20 = vpop.f32.mrb[27].mxu0 }
 0x4d0   :  { %v2669_v25 = vadd.f32 %v2605_v36, %v2381_v32  ;;  %vm2831_vm14 = vcmp.eq.s32.totalorder %v9754_v16, %v13580_v47  ;;  %v2671_v44 = vadd.f32 %v2607_v34, %v2383_v11  ;;  %vm3404_vm0 = vcmp.eq.s32.totalorder %v9739_v12, %v18779_v4  ;;  %v8234_v36 = vld [vmem:[#allocation5 + $0x8] ss:$16 sps:$4 sm:$0xff]  }
 0x4d1   :  { %vm3118_vm3 = vcmp.eq.s32.totalorder %v9739_v12, %v18780_v10  ;;  %vm3117_vm2 = vcmp.eq.s32.totalorder %v9754_v16, %v15338_v8  ;;  %v2956_v7 = vadd.f32 %v2892_v33, %v2668_v0  ;;  %vm3119_vm12 = vcmp.eq.s32.totalorder %v9754_v16, %v18780_v10  ;;  %8049 = vset.pattern.permute.xlu1 %v18262_v59  ;;  %v15609_v47 = vpop.permute.xlu1 %3045  ;;  %v8236_v8 = vld [vmem:[#allocation5 + $0xc] ss:$16 sps:$4 sm:$0xff]  }
 0x4d2   :  { %v2957_v9 = vadd.f32 %v2893_v42, %v2669_v25  ;;  %v3180_v31 = vsel %vm3116_vm4, 1.0, %v18189_v54  ;;  %vm3980_vm5 = vcmp.eq.s32.totalorder %v9739_v12, %v18781_v51  ;;  %vm3981_vm7 = vcmp.eq.s32.totalorder %v9754_v16, %v18781_v51  ;;  %3354 = vperm.xlu1 %8049, %v15620_v14   ;;  %6027 = vmatprep.subr.bf16.mxu1 %v8236_v8  ;;  %v15678_v10 = vpop.permute.xlu0 %4482 }
 0x4d3   :  { %v2894_v40 = vsel %vm2830_vm11, 1.0, %v18189_v54  ;;  %v2895_v1 = vsel %vm2831_vm14, 1.0, %v18189_v54  ;;  %v3468_v19 = vsel %vm3404_vm0, 1.0, %v18189_v54  ;;  %v3182_v30 = vsel %vm3118_vm3, 1.0, %v18189_v54  ;;  %6028 = vmatpush1.bf16.msra.mxu1 %v8234_v36 }
 0x4d4   :  { %v3181_v26 = vsel %vm3117_vm2, 1.0, %v18189_v54  ;;  %vm3406_vm15 = vcmp.eq.s32.totalorder %v9739_v12, %v15457_v35  ;;  %vm3405_vm6 = vcmp.eq.s32.totalorder %v9754_v16, %v18779_v4  ;;  %v3183_v13 = vsel %vm3119_vm12, 1.0, %v18189_v54 }
 0x4d5   :  { %v3244_v21 = vadd.f32 %v3180_v31, %v2956_v7  ;;  %vm3407_vm8 = vcmp.eq.s32.totalorder %v9754_v16, %v15457_v35  ;;  %v2958_v5 = vadd.f32 %v2894_v40, %v2670_v3  ;;  %v2959_v11 = vadd.f32 %v2895_v1, %v2671_v44  ;;  %v8237_v31 = vld [vmem:[#allocation5 + $0x28] ss:$16 sps:$4 sm:$0xff]   ;;  %v8239_v40 = vld [vmem:[#allocation5 + $0x2c] ss:$16 sps:$4 sm:$0xff]  }
 0x4d6   :  { %vm3692_vm1 = vcmp.eq.s32.totalorder %v9739_v12, %v15508_v27  ;;  %vm3694_vm10 = vcmp.eq.s32.totalorder %v9739_v12, %v15555_v52  ;;  %v15661_v32 = vsel %vm3980_vm5, 1.0, %v18189_v54  ;;  %v3245_v34 = vadd.f32 %v3181_v26, %v2957_v9  ;;  %8050 = vset.pattern.permute.xlu1 %v18312_v24  ;;  %v15667_v33 = vpop.permute.xlu1 %4191  ;;  %v18783_v1 = vld [vmem:[#allocation139_spill] sm:$0xff]  ;;  %6029 = vmatprep.subr.bf16.mxu1 %v8239_v40 }
 0x4d7   :  { %v3470_v0 = vsel %vm3406_vm15, 1.0, %v18189_v54  ;;  %vm3695_vm9 = vcmp.eq.s32.totalorder %v9754_v16, %v15555_v52  ;;  %v3469_v42 = vsel %vm3405_vm6, 1.0, %v18189_v54  ;;  %v3246_v25 = vadd.f32 %v3182_v30, %v2958_v5  ;;  %4497 = vperm.xlu1 %8050, %v15244_v22   ;;  %v18784_v5 = vld [vmem:[#allocation221_spill] sm:$0xff]  ;;  %6030 = vmatpush1.bf16.msra.mxu1 %v8237_v31 }
 0x4d8   :  { %v3247_v3 = vadd.f32 %v3183_v13, %v2959_v11  ;;  %v3471_v44 = vsel %vm3407_vm8, 1.0, %v18189_v54  ;;  %v3532_v7 = vadd.f32 %v3468_v19, %v3244_v21  ;;  %vm3693_vm13 = vcmp.eq.s32.totalorder %v9754_v16, %v15508_v27  ;;  %v5898_v13 = vpop.f32.mrb[76].mxu1 }
 0x4d9   :  { %v3756_v4 = vsel %vm3692_vm1, 1.0, %v18189_v54  ;;  %v3758_v35 = vsel %vm3694_vm10, 1.0, %v18189_v54  ;;  %v3534_v9 = vadd.f32 %v3470_v0, %v3246_v25  ;;  %v3759_v22 = vsel %vm3695_vm9, 1.0, %v18189_v54  ;;  %v5900_v51 = vpop.f32.mrb[77].mxu1 }
 0x4da   :  { %vm3982_vm4 = vcmp.eq.s32.totalorder %v9739_v12, %v15585_v28  ;;  %vm3983_vm11 = vcmp.eq.s32.totalorder %v9754_v16, %v15585_v28  ;;  %vm1394_vm14 = vcmp.eq.s32.totalorder %v9739_v12, %v18783_v1  ;;  %v4045_v19 = vsel %vm3981_vm7, 1.0, %v18189_v54  ;;  %v4195_v52 = vpop.permute.xlu1 %4194  ;;  %v18787_v28 = vld [vmem:[#allocation164_spill] sm:$0xff] }
 0x4db   :  { %v3535_v30 = vadd.f32 %v3471_v44, %v3247_v3  ;;  %v3533_v26 = vadd.f32 %v3469_v42, %v3245_v34  ;;  %vm4558_vm0 = vcmp.eq.s32.totalorder %v9739_v12, %v15678_v10  ;;  %v3757_v21 = vsel %vm3693_vm13, 1.0, %v18189_v54  ;;  %8051 = vset.pattern.permute.xlu1 %v18408_v58  ;;  %v18785_v42 = vld [vmem:[#allocation66_spill] sm:$0xff]  ;;  %v5902_v3 = vpop.f32.mrb[78].mxu1 }
 0x4dc   :  { %v3820_v36 = vadd.f32 %v3756_v4, %v3532_v7  ;;  %v3822_v8 = vadd.f32 %v3758_v35, %v3534_v9  ;;  %v5899_v11 = vadd.f32 %v5898_v13, %v18784_v5  ;;  %v4046_v34 = vsel %vm3982_vm4, 1.0, %v18189_v54  ;;  %3639 = vperm.xlu1 %8051, %v15531_v46   ;;  %v18786_v7 = vld [vmem:[#allocation128_spill] sm:$0xff]  ;;  %v5904_v35 = vpop.f32.mrb[79].mxu1 }
 0x4dd   :  { %v3823_v0 = vadd.f32 %v3759_v22, %v3535_v30  ;;  %v4047_v27 = vsel %vm3983_vm11, 1.0, %v18189_v54  ;;  %v5901_v25 = vadd.f32 %v5900_v51, %v18785_v42  ;;  %vm1395_vm3 = vcmp.eq.s32.totalorder %v9754_v16, %v18783_v1  ;;  %v18788_v22 = vld [vmem:[#allocation81_spill] sm:$0xff] }
 0x4de   :  { %vm4270_vm2 = vcmp.eq.s32.totalorder %v9739_v12, %v4195_v52  ;;  %vm4271_vm12 = vcmp.eq.s32.totalorder %v9754_v16, %v4195_v52  ;;  %v6266_v44 = vadd.f32 %v15221_v2, %v5899_v11  ;;  %v5903_v4 = vadd.f32 %v5902_v3, %v18786_v7  ;;  %v8240_v7 = vld [vmem:[#allocation5 + $0x48] ss:$16 sps:$4 sm:$0xff]   ;;  %v8242_v52 = vld [vmem:[#allocation5 + $0x4c] ss:$16 sps:$4 sm:$0xff]  }
 0x4df   :  { %vm1682_vm5 = vcmp.eq.s32.totalorder %v9739_v12, %v18787_v28  ;;  %vm4268_vm7 = vcmp.eq.s32.totalorder %v9739_v12, %v15667_v33  ;;  %vm4269_vm15 = vcmp.eq.s32.totalorder %v9754_v16, %v15667_v33  ;;  %v6267_v9 = vadd.f32 %v15239_v38, %v5901_v25  ;;  %v15741_v5 = vpop.permute.xlu1 %3336  ;;  %v18789_v25 = vld [vmem:[#allocation171_spill] sm:$0xff]  ;;  %6031 = vmatprep.subr.bf16.mxu1 %v8242_v52  ;;  %v18794_v52 = vld [vmem:[#allocation65_spill] sm:$0xff] }
 0x4e0   :  { %v5905_v31 = vadd.f32 %v5904_v35, %v18788_v22  ;;  %vm1683_vm6 = vcmp.eq.s32.totalorder %v9754_v16, %v18787_v28  ;;  %v3821_v40 = vadd.f32 %v3757_v21, %v3533_v26  ;;  %v4110_v30 = vadd.f32 %v4046_v34, %v3822_v8  ;;  %3642 = vperm.xlu1 %8051, %v15620_v14  }
 0x4e1   :  { %vm4559_vm8 = vcmp.eq.s32.totalorder %v9754_v16, %v15678_v10  ;;  %v6270_v13 = vadd.f32 %v15221_v2, %v5903_v4  ;;  %v4111_v11 = vadd.f32 %v4047_v27, %v3823_v0  ;;  %v4334_v33 = vsel %vm4270_vm2, 1.0, %v18189_v54  ;;  %6032 = vmatpush1.bf16.msra.mxu1 %v8240_v7  ;;  %v18790_v10 = vld [vmem:[#allocation194_spill] sm:$0xff] }
 0x4e2   :  { %v4335_v51 = vsel %vm4271_vm12, 1.0, %v18189_v54  ;;  %v6271_v42 = vadd.f32 %v15239_v38, %v5905_v31  ;;  %v4332_v26 = vsel %vm4268_vm7, 1.0, %v18189_v54  ;;  %v4333_v21 = vsel %vm4269_vm15, 1.0, %v18189_v54 }
 0x4e3   :  { %v6394_v8 = vmax.f32 %v6266_v44, 0.0  ;;  %v6398_v34 = vmax.f32 %v6270_v13, 0.0  ;;  %vm1680_vm1 = vcmp.eq.s32.totalorder %v9739_v12, %v18789_v25  ;;  %v4108_v0 = vadd.f32 %v15661_v32, %v3820_v36 }
 0x4e4   :  { %v6395_v27 = vmax.f32 %v6267_v9, 0.0  ;;  %v6399_v3 = vmax.f32 %v6271_v42, 0.0  ;;  %v4109_v4 = vadd.f32 %v4045_v19, %v3821_v40  ;;  %v4398_v35 = vadd.f32 %v4334_v33, %v4110_v30  ;;  %8053 = vset.pattern.permute.xlu1 %v18557_v60  ;;  %v4480_v32 = vpop.permute.xlu1 %4479 }
 0x4e5   :  { %v4399_v22 = vadd.f32 %v4335_v51, %v4111_v11  ;;  %v6510_v31 = vpack.c.bf16 %v6398_v34, %v6394_v8  ;;  %v4396_v29 = vadd.f32 %v4332_v26, %v4108_v0  ;;  %v4622_v44 = vsel %vm4558_vm0, 1.0, %v18189_v54  ;;  %3930 = vperm.xlu1 %8053, %v15620_v14   ;;  %v8243_v26 = vld [vmem:[#allocation5 + $0x68] ss:$16 sps:$4 sm:$0xff]  }
 0x4e6   :  { %v4623_v13 = vsel %vm4559_vm8, 1.0, %v18189_v54  ;;  %v6511_v36 = vpack.c.bf16 %v6399_v3, %v6395_v27  ;;  %v1458_v19 = vsel %vm1394_vm14, 1.0, %v18189_v54  ;;  %v4397_v9 = vadd.f32 %v4333_v21, %v4109_v4  ;;  %v8245_v21 = vld [vmem:[#allocation5 + $0x6c] ss:$16 sps:$4 sm:$0xff]  }
 0x4e7   :  { %vm4556_vm10 = vcmp.eq.s32.totalorder %v9739_v12, %v4480_v32  ;;  %vm4557_vm9 = vcmp.eq.s32.totalorder %v9754_v16, %v4480_v32  ;;  %vm1681_vm13 = vcmp.eq.s32.totalorder %v9754_v16, %v18789_v25  ;;  %vm1968_vm4 = vcmp.eq.s32.totalorder %v9739_v12, %v18790_v10  ;;  %v18791_v8 = vld [vmem:[#allocation75_spill] sm:$0xff]  ;;  %6033 = vmatprep.subr.bf16.mxu1 %v8245_v21 }
 0x4e8   :  { %v4620_v40 = vsel %vm4556_vm10, 1.0, %v18189_v54  ;;  %v4621_v30 = vsel %vm4557_vm9, 1.0, %v18189_v54  ;;  %7020 = vmatprep.mubr.bf16.mxu0 %v6511_v36  ;;  %v4686_v11 = vadd.f32 %v4622_v44, %v4398_v35  ;;  %v4687_v33 = vadd.f32 %v4623_v13, %v4399_v22  ;;  %v18795_v35 = vld [vmem:[#allocation102_spill] sm:$0xff]  ;;  %v15819_v44 = vld [vmem:[%s17552_s0 + $0xe0] sm:$0xff]  ;;  %6034 = vmatpush1.bf16.msra.mxu1 %v8243_v26  ;;  %v18797_v36 = vld [vmem:[#allocation205_spill] sm:$0xff] }
 0x4e9   :  { %v4684_v51 = vadd.f32 %v4620_v40, %v4396_v29  ;;  %v4685_v42 = vadd.f32 %v4621_v30, %v4397_v9  ;;  %7021 = vmatmul.mubr.bf16.gmra.mrb[76].mxu0 %v6510_v31  ;;  %v1520_v34 = vadd.f32 %v15520_v55, %v18791_v8  ;;  %v1459_v0 = vsel %vm1395_vm3, 1.0, %v18189_v54  ;;  %8054 = vset.pattern.permute.xlu1 %v18224_v45  ;;  %v15799_v1 = vpop.permute.xlu1 %3621  ;;  %v18798_v40 = vld [vmem:[#allocation237_spill] sm:$0xff]  ;;  %v18800_v26 = vld [vmem:[#allocation38_spill] sm:$0xff] }
 0x4ea   :  { %v1744_v27 = vsel %vm1680_vm1, 1.0, %v18189_v54  ;;  %vm1969_vm11 = vcmp.eq.s32.totalorder %v9754_v16, %v18790_v10  ;;  %v1746_v29 = vsel %vm1682_vm5, 1.0, %v18189_v54  ;;  %v1745_v55 = vsel %vm1681_vm13, 1.0, %v18189_v54  ;;  %3069 = vperm.xlu1 %8054, %v15819_v44  }
 0x4eb   :  { %v15801_v3 = vpack.c.bf16 %v4687_v33, %v4685_v42  ;;  %v15803_v7 = vpack.c.bf16 %v4686_v11, %v4684_v51  ;;  %v1521_v4 = vadd.f32 %v15581_v53, %v18794_v52  ;;  %v1522_v22 = vadd.f32 %v1458_v19, %v18795_v35  ;;  %v18796_v53 = vld [vmem:[#allocation103_spill] sm:$0xff]  ;;  %v18799_v33 = vld [vmem:[#allocation226_spill] sm:$0xff] }
 0x4ec   :  { %v1747_v25 = vsel %vm1683_vm6, 1.0, %v18189_v54  ;;  %v2032_v31 = vsel %vm1968_vm4, 1.0, %v18189_v54  ;;  %v1523_v13 = vadd.f32 %v1459_v0, %v18796_v53  ;;  %v1808_v32 = vadd.f32 %v1744_v27, %v1520_v34  ;;  %v18801_v34 = vld [vmem:[#allocation60_spill] sm:$0xff]  ;;  %v8246_v35 = vld [vmem:[#allocation5 + $0x88] ss:$16 sps:$4 sm:$0xff]  }
 0x4ed   :  { %18792 = vst [vmem:[#allocation166_spill] sm:$0xff] %v15801_v3  ;;  %18793 = vst [vmem:[#allocation232_spill] sm:$0xff] %v15803_v7  ;;  %v2033_v28 = vsel %vm1969_vm11, 1.0, %v18189_v54  ;;  %vm1970_vm14 = vcmp.eq.s32.totalorder %v9739_v12, %v18797_v36  ;;  %5956 = vmatprep.mubr.bf16.mxu1 %v15801_v3  ;;  %v1810_v19 = vadd.f32 %v1746_v29, %v1522_v22  ;;  %v15839_v10 = vpop.permute.xlu1 %3624  ;;  %v18802_v29 = vld [vmem:[#allocation116_spill] sm:$0xff]  ;;  %v8248_v22 = vld [vmem:[#allocation5 + $0x8c] ss:$16 sps:$4 sm:$0xff]  }
 0x4ee   :  { %v1809_v9 = vadd.f32 %v1745_v55, %v1521_v4  ;;  %vm1971_vm0 = vcmp.eq.s32.totalorder %v9754_v16, %v18797_v36  ;;  %vm2256_vm3 = vcmp.eq.s32.totalorder %v9739_v12, %v18798_v40  ;;  %5957 = vmatmul.mubr.bf16.gmra.mrb[100].mxu1 %v15803_v7  ;;  %v1811_v30 = vadd.f32 %v1747_v25, %v1523_v13 }
 0x4ef   :  { %v2096_v11 = vadd.f32 %v2032_v31, %v1808_v32  ;;  %vm2258_vm2 = vcmp.eq.s32.totalorder %v9739_v12, %v18799_v33  ;;  %vm2257_vm12 = vcmp.eq.s32.totalorder %v9754_v16, %v18798_v40  ;;  %v2034_v42 = vsel %vm1970_vm14, 1.0, %v18189_v54  ;;  %8055 = vset.pattern.permute.xlu1 %v18367_v6  ;;  %6035 = vmatprep.subr.bf16.mxu1 %v8248_v22 }
 0x4f0   :  { %v2097_v51 = vadd.f32 %v2033_v28, %v1809_v9  ;;  %vm2259_vm5 = vcmp.eq.s32.totalorder %v9754_v16, %v18799_v33  ;;  %vm2544_vm7 = vcmp.eq.s32.totalorder %v9739_v12, %v18800_v26  ;;  %v2035_v21 = vsel %vm1971_vm0, 1.0, %v18189_v54  ;;  %4215 = vperm.xlu1 %8055, %v15531_v46   ;;  %6036 = vmatpush1.bf16.msra.mxu1 %v8246_v35  ;;  %v15904_v35 = vld [vmem:[%s17552_s0 + $0xe8] sm:$0xff] }
 0x4f1   :  { %v2320_v8 = vsel %vm2256_vm3, 1.0, %v18189_v54  ;;  %vm2545_vm15 = vcmp.eq.s32.totalorder %v9754_v16, %v18800_v26  ;;  %vm2546_vm6 = vcmp.eq.s32.totalorder %v9739_v12, %v18801_v34  ;;  %v2322_v0 = vsel %vm2258_vm2, 1.0, %v18189_v54 }
 0x4f2   :  { %v2321_v27 = vsel %vm2257_vm12, 1.0, %v18189_v54  ;;  %vm2547_vm8 = vcmp.eq.s32.totalorder %v9754_v16, %v18801_v34  ;;  %vm2832_vm1 = vcmp.eq.s32.totalorder %v9739_v12, %v18802_v29  ;;  %v2098_v55 = vadd.f32 %v2034_v42, %v1810_v19  ;;  %v15866_v32 = vpop.permute.xlu1 %3912  ;;  %v18803_v42 = vld [vmem:[#allocation59_spill] sm:$0xff] }
 0x4f3   :  { %v2323_v52 = vsel %vm2259_vm5, 1.0, %v18189_v54  ;;  %v2608_v4 = vsel %vm2544_vm7, 1.0, %v18189_v54  ;;  %vm2833_vm10 = vcmp.eq.s32.totalorder %v9754_v16, %v18802_v29  ;;  %v2099_v25 = vadd.f32 %v2035_v21, %v1811_v30 }
 0x4f4   :  { %v2384_v31 = vadd.f32 %v2320_v8, %v2096_v11  ;;  %v2609_v53 = vsel %vm2545_vm15, 1.0, %v18189_v54  ;;  %v2610_v13 = vsel %vm2546_vm6, 1.0, %v18189_v54  ;;  %v2386_v28 = vadd.f32 %v2322_v0, %v2098_v55  ;;  %4218 = vperm.xlu1 %8055, %v15620_v14   ;;  %v15881_v14 = vpop.f32.mrb[28].mxu0  ;;  %v18804_v8 = vld [vmem:[#allocation211_spill] sm:$0xff]  ;;  %v18805_v0 = vld [vmem:[#allocation89_spill] sm:$0xff] }
 0x4f5   :  { %v2385_v36 = vadd.f32 %v2321_v27, %v2097_v51  ;;  %v2611_v19 = vsel %vm2547_vm8, 1.0, %v18189_v54  ;;  %v2896_v9 = vsel %vm2832_vm1, 1.0, %v18189_v54  ;;  %v2387_v40 = vadd.f32 %v2323_v52, %v2099_v25  ;;  %v18806_v55 = vld [vmem:[#allocation141_spill] sm:$0xff]  ;;  %v15907_v22 = vpop.f32.mrb[29].mxu0 }
 0x4f6   :  { %v2672_v33 = vadd.f32 %v2608_v4, %v2384_v31  ;;  %v2897_v30 = vsel %vm2833_vm10, 1.0, %v18189_v54  ;;  %vm3120_vm9 = vcmp.eq.s32.totalorder %v9739_v12, %v15609_v47  ;;  %v2674_v51 = vadd.f32 %v2610_v13, %v2386_v28 }
 0x4f7   :  { %v2673_v11 = vadd.f32 %v2609_v53, %v2385_v36  ;;  %vm2834_vm13 = vcmp.eq.s32.totalorder %v9739_v12, %v18803_v42  ;;  %vm2835_vm4 = vcmp.eq.s32.totalorder %v9754_v16, %v18803_v42  ;;  %v2675_v26 = vadd.f32 %v2611_v19, %v2387_v40  ;;  %v15893_v29 = vpop.permute.xlu1 %3051  ;;  %v15921_v53 = vpop.f32.mrb[30].mxu0  ;;  %v8249_v40 = vld [vmem:[#allocation5 + $0xa8] ss:$16 sps:$4 sm:$0xff]  }
 0x4f8   :  { %v2960_v21 = vadd.f32 %v2896_v9, %v2672_v33  ;;  %vm3408_vm11 = vcmp.eq.s32.totalorder %v9739_v12, %v18804_v8  ;;  %vm3121_vm14 = vcmp.eq.s32.totalorder %v9754_v16, %v15609_v47  ;;  %vm3122_vm0 = vcmp.eq.s32.totalorder %v9739_v12, %v18805_v0  ;;  %8057 = vset.pattern.permute.xlu1 %v18262_v59  ;;  %v15933_v47 = vpop.f32.mrb[31].mxu0  ;;  %v8251_v33 = vld [vmem:[#allocation5 + $0xac] ss:$16 sps:$4 sm:$0xff]  }
 0x4f9   :  { %v2961_v34 = vadd.f32 %v2897_v30, %v2673_v11  ;;  %vm3123_vm3 = vcmp.eq.s32.totalorder %v9754_v16, %v18805_v0  ;;  %v3184_v27 = vsel %vm3120_vm9, 1.0, %v18189_v54  ;;  %vm3984_vm2 = vcmp.eq.s32.totalorder %v9739_v12, %v18806_v55  ;;  %3360 = vperm.xlu1 %8057, %v15904_v35   ;;  %6037 = vmatprep.subr.bf16.mxu1 %v8251_v33 }
 0x4fa   :  { %vm3985_vm12 = vcmp.eq.s32.totalorder %v9754_v16, %v18806_v55  ;;  %v2898_v52 = vsel %vm2834_vm13, 1.0, %v18189_v54  ;;  %v2899_v4 = vsel %vm2835_vm4, 1.0, %v18189_v54  ;;  %vm3409_vm5 = vcmp.eq.s32.totalorder %v9754_v16, %v18804_v8  ;;  %6038 = vmatpush1.bf16.msra.mxu1 %v8249_v40 }
 0x4fb   :  { %v3472_v25 = vsel %vm3408_vm11, 1.0, %v18189_v54  ;;  %v3185_v31 = vsel %vm3121_vm14, 1.0, %v18189_v54  ;;  %vm3410_vm7 = vcmp.eq.s32.totalorder %v9739_v12, %v15741_v5  ;;  %v3186_v13 = vsel %vm3122_vm0, 1.0, %v18189_v54 }
 0x4fc   :  { %v3187_v28 = vsel %vm3123_vm3, 1.0, %v18189_v54  ;;  %v3248_v36 = vadd.f32 %v3184_v27, %v2960_v21  ;;  %vm3411_vm15 = vcmp.eq.s32.totalorder %v9754_v16, %v15741_v5  ;;  %v2962_v19 = vadd.f32 %v2898_v52, %v2674_v51  ;;  %v15949_v51 = vpop.permute.xlu1 %4197  ;;  %v15960_v27 = vpop.permute.xlu0 %4488 }
 0x4fd   :  { %v2963_v9 = vadd.f32 %v2899_v4, %v2675_v26  ;;  %vm3696_vm6 = vcmp.eq.s32.totalorder %v9739_v12, %v15799_v1  ;;  %vm3698_vm8 = vcmp.eq.s32.totalorder %v9739_v12, %v15839_v10  ;;  %v15943_v30 = vsel %vm3984_vm2, 1.0, %v18189_v54  ;;  %8058 = vset.pattern.permute.xlu1 %v18312_v24 }
 0x4fe   :  { %v3249_v11 = vadd.f32 %v3185_v31, %v2961_v34  ;;  %v3474_v42 = vsel %vm3410_vm7, 1.0, %v18189_v54  ;;  %vm3699_vm1 = vcmp.eq.s32.totalorder %v9754_v16, %v15839_v10  ;;  %v3473_v26 = vsel %vm3409_vm5, 1.0, %v18189_v54  ;;  %4503 = vperm.xlu1 %8058, %v15531_v46   ;;  %v8254_v31 = vld [vmem:[#allocation5 + $0xcc] ss:$16 sps:$4 sm:$0xff]  }
 0x4ff   :  { %v3250_v21 = vadd.f32 %v3186_v13, %v2962_v19  ;;  %v3251_v0 = vadd.f32 %v3187_v28, %v2963_v9  ;;  %v3475_v34 = vsel %vm3411_vm15, 1.0, %v18189_v54  ;;  %v3536_v52 = vadd.f32 %v3472_v25, %v3248_v36  ;;  %v8252_v25 = vld [vmem:[#allocation5 + $0xc8] ss:$16 sps:$4 sm:$0xff]   ;;  %v18807_v13 = vld [vmem:[#allocation72_spill] sm:$0xff]  ;;  %6039 = vmatprep.subr.bf16.mxu1 %v8254_v31 }
 0x500   :  { %vm3697_vm10 = vcmp.eq.s32.totalorder %v9754_v16, %v15799_v1  ;;  %v3760_v8 = vsel %vm3696_vm6, 1.0, %v18189_v54  ;;  %v3762_v5 = vsel %vm3698_vm8, 1.0, %v18189_v54  ;;  %v3763_v46 = vsel %vm3699_vm1, 1.0, %v18189_v54  ;;  %v4201_v10 = vpop.permute.xlu1 %4200  ;;  %v5908_v9 = vpop.f32.mrb[80].mxu1  ;;  %6040 = vmatpush1.bf16.msra.mxu1 %v8252_v25 }
 0x501   :  { %v3538_v4 = vadd.f32 %v3474_v42, %v3250_v21  ;;  %vm3986_vm9 = vcmp.eq.s32.totalorder %v9739_v12, %v15866_v32  ;;  %vm3987_vm13 = vcmp.eq.s32.totalorder %v9754_v16, %v15866_v32  ;;  %vm820_vm4 = vcmp.eq.s32.totalorder %v9739_v12, %v18807_v13  ;;  %v5910_v55 = vpop.f32.mrb[81].mxu1 }
 0x502   :  { %v4049_v28 = vsel %vm3985_vm12, 1.0, %v18189_v54  ;;  %v3539_v36 = vadd.f32 %v3475_v34, %v3251_v0  ;;  %v3537_v19 = vadd.f32 %v3473_v26, %v3249_v11  ;;  %vm4562_vm11 = vcmp.eq.s32.totalorder %v9739_v12, %v15960_v27  ;;  %8059 = vset.pattern.permute.xlu1 %v18408_v58  ;;  %v5912_v34 = vpop.f32.mrb[82].mxu1 }
 0x503   :  { %v3761_v40 = vsel %vm3697_vm10, 1.0, %v18189_v54  ;;  %v3824_v33 = vadd.f32 %v3760_v8, %v3536_v52  ;;  %v3826_v42 = vadd.f32 %v3762_v5, %v3538_v4  ;;  %v5909_v21 = vadd.f32 %v5908_v9, %v15066_v15  ;;  %3645 = vperm.xlu1 %8059, %v15819_v44   ;;  %v5914_v8 = vpop.f32.mrb[83].mxu1 }
 0x504   :  { %v3827_v0 = vadd.f32 %v3763_v46, %v3539_v36  ;;  %v4050_v11 = vsel %vm3986_vm9, 1.0, %v18189_v54  ;;  %v4051_v1 = vsel %vm3987_vm13, 1.0, %v18189_v54  ;;  %v5911_v26 = vadd.f32 %v5910_v55, %v15079_v56  ;;  %v18808_v56 = vld [vmem:[#allocation208_spill] sm:$0xff] }
 0x505   :  { %vm4274_vm14 = vcmp.eq.s32.totalorder %v9739_v12, %v4201_v10  ;;  %vm4275_vm0 = vcmp.eq.s32.totalorder %v9754_v16, %v4201_v10  ;;  %v6274_v15 = vadd.f32 %v15221_v2, %v5909_v21  ;;  %v5913_v52 = vadd.f32 %v5912_v34, %v15093_v62  ;;  %v16017_v31 = vpop.permute.xlu1 %3342  ;;  %v18809_v62 = vld [vmem:[#allocation17_spill] sm:$0xff] }
 0x506   :  { %vm4272_vm3 = vcmp.eq.s32.totalorder %v9739_v12, %v15949_v51  ;;  %vm4273_vm2 = vcmp.eq.s32.totalorder %v9754_v16, %v15949_v51  ;;  %v6275_v32 = vadd.f32 %v15239_v38, %v5911_v26  ;;  %v5915_v5 = vadd.f32 %v5914_v8, %v18808_v56  ;;  %v8255_v26 = vld [vmem:[#allocation5 + $0xe8] ss:$16 sps:$4 sm:$0xff]   ;;  %v8257_v34 = vld [vmem:[#allocation5 + $0xec] ss:$16 sps:$4 sm:$0xff]  }
 0x507   :  { %v3825_v4 = vadd.f32 %v3761_v40, %v3537_v19  ;;  %v4114_v46 = vadd.f32 %v4050_v11, %v3826_v42  ;;  %vm4563_vm12 = vcmp.eq.s32.totalorder %v9754_v16, %v15960_v27  ;;  %v6278_v25 = vadd.f32 %v15221_v2, %v5913_v52  ;;  %3648 = vperm.xlu1 %8059, %v15904_v35   ;;  %v18810_v27 = vld [vmem:[#allocation107_spill] sm:$0xff] }
 0x508   :  { %vm262_vm5 = vcmp.eq.s32.totalorder %v9739_v12, %v18809_v62  ;;  %v4115_v36 = vadd.f32 %v4051_v1, %v3827_v0  ;;  %v4338_v9 = vsel %vm4274_vm14, 1.0, %v18189_v54  ;;  %v4339_v19 = vsel %vm4275_vm0, 1.0, %v18189_v54  ;;  %6041 = vmatprep.subr.bf16.mxu1 %v8257_v34 }
 0x509   :  { %v6279_v40 = vadd.f32 %v15239_v38, %v5915_v5  ;;  %vm263_vm7 = vcmp.eq.s32.totalorder %v9754_v16, %v18809_v62  ;;  %v4336_v42 = vsel %vm4272_vm3, 1.0, %v18189_v54  ;;  %v4337_v21 = vsel %vm4273_vm2, 1.0, %v18189_v54  ;;  %6042 = vmatpush1.bf16.msra.mxu1 %v8255_v26 }
 0x50a   :  { %v6402_v55 = vmax.f32 %v6274_v15, 0.0  ;;  %v6406_v10 = vmax.f32 %v6278_v25, 0.0  ;;  %vm821_vm15 = vcmp.eq.s32.totalorder %v9754_v16, %v18807_v13  ;;  %v4112_v0 = vadd.f32 %v15943_v30, %v3824_v33  ;;  %v4486_v30 = vpop.permute.xlu1 %4485 }
 0x50b   :  { %v6403_v11 = vmax.f32 %v6275_v32, 0.0  ;;  %v6407_v1 = vmax.f32 %v6279_v40, 0.0  ;;  %v4113_v52 = vadd.f32 %v4049_v28, %v3825_v4  ;;  %v4402_v8 = vadd.f32 %v4338_v9, %v4114_v46  ;;  %8061 = vset.pattern.permute.xlu1 %v18557_v60  ;;  %v18811_v40 = vld [vmem:[#allocation98_spill] sm:$0xff] }
 0x50c   :  { %v4403_v56 = vadd.f32 %v4339_v19, %v4115_v36  ;;  %v6514_v5 = vpack.c.bf16 %v6406_v10, %v6402_v55  ;;  %v4400_v48 = vadd.f32 %v4336_v42, %v4112_v0  ;;  %v4626_v51 = vsel %vm4562_vm11, 1.0, %v18189_v54  ;;  %3933 = vperm.xlu1 %8061, %v15819_v44   ;;  %v18812_v42 = vld [vmem:[#allocation217_spill] sm:$0xff]  ;;  %v18813_v55 = vld [vmem:[#allocation106_spill] sm:$0xff]  ;;  %v18814_v10 = vld [vmem:[#allocation219_spill] sm:$0xff] }
 0x50d   :  { %v4627_v15 = vsel %vm4563_vm12, 1.0, %v18189_v54  ;;  %v6515_v33 = vpack.c.bf16 %v6407_v1, %v6403_v11  ;;  %v884_v28 = vsel %vm820_vm4, 1.0, %v18189_v54  ;;  %v4401_v32 = vadd.f32 %v4337_v21, %v4113_v52  ;;  %v18815_v1 = vld [vmem:[#allocation134_spill] sm:$0xff] }
 0x50e   :  { %vm4560_vm6 = vcmp.eq.s32.totalorder %v9739_v12, %v4486_v30  ;;  %vm4561_vm8 = vcmp.eq.s32.totalorder %v9754_v16, %v4486_v30  ;;  %vm1108_vm1 = vcmp.eq.s32.totalorder %v9739_v12, %v18810_v27  ;;  %vm1109_vm10 = vcmp.eq.s32.totalorder %v9754_v16, %v18810_v27 }
 0x50f   :  { %v4624_v4 = vsel %vm4560_vm6, 1.0, %v18189_v54  ;;  %v4625_v46 = vsel %vm4561_vm8, 1.0, %v18189_v54  ;;  %7030 = vmatprep.mubr.bf16.mxu0 %v6515_v33  ;;  %v4690_v25 = vadd.f32 %v4626_v51, %v4402_v8  ;;  %v4691_v36 = vadd.f32 %v4627_v15, %v4403_v56  ;;  %v18818_v8 = vld [vmem:[#allocation18_spill] sm:$0xff]  ;;  %v8258_v33 = vld [vmem:[#allocation5 + $0x108] ss:$16 sps:$4 sm:$0xff]  }
 0x510   :  { %v4688_v9 = vadd.f32 %v4624_v4, %v4400_v48  ;;  %v4689_v19 = vadd.f32 %v4625_v46, %v4401_v32  ;;  %7031 = vmatmul.mubr.bf16.gmra.mrb[80].mxu0 %v6514_v5  ;;  %v660_v21 = vadd.f32 %v18812_v42, %v18811_v40  ;;  %v661_v0 = vadd.f32 %v18814_v10, %v18813_v55  ;;  %v16078_v48 = vpop.permute.xlu1 %3627  ;;  %v18819_v5 = vld [vmem:[#allocation173_spill] sm:$0xff]  ;;  %v18820_v46 = vld [vmem:[#allocation196_spill] sm:$0xff] }
 0x511   :  { %v885_v11 = vsel %vm821_vm15, 1.0, %v18189_v54  ;;  %vm1396_vm9 = vcmp.eq.s32.totalorder %v9739_v12, %v18815_v1  ;;  %v1172_v26 = vsel %vm1108_vm1, 1.0, %v18189_v54  ;;  %vm1397_vm13 = vcmp.eq.s32.totalorder %v9754_v16, %v18815_v1  ;;  %3936 = vperm.xlu1 %8061, %v15904_v35  }
 0x512   :  { %v16080_v34 = vpack.c.bf16 %v4691_v36, %v4689_v19  ;;  %v16082_v52 = vpack.c.bf16 %v4690_v25, %v4688_v9  ;;  %vm260_vm4 = vcmp.eq.s32.totalorder %v9739_v12, %v18818_v8  ;;  %v948_v13 = vadd.f32 %v884_v28, %v660_v21  ;;  %v8260_v28 = vld [vmem:[#allocation5 + $0x10c] ss:$16 sps:$4 sm:$0xff]  }
 0x513   :  { %v1173_v56 = vsel %vm1109_vm10, 1.0, %v18189_v54  ;;  %vm1684_vm11 = vcmp.eq.s32.totalorder %v9739_v12, %v18819_v5  ;;  %v16096_v51 = vsel %vm262_vm5, 1.0, %v18189_v54  ;;  %v949_v15 = vadd.f32 %v885_v11, %v661_v0  ;;  %v18821_v25 = vld [vmem:[#allocation43_spill] sm:$0xff]  ;;  %6043 = vmatprep.subr.bf16.mxu1 %v8260_v28 }
 0x514   :  { %18816 = vst [vmem:[#allocation180_spill] sm:$0xff] %v16080_v34  ;;  %18817 = vst [vmem:[#allocation234_spill] sm:$0xff] %v16082_v52  ;;  %v1460_v30 = vsel %vm1396_vm9, 1.0, %v18189_v54  ;;  %vm1685_vm14 = vcmp.eq.s32.totalorder %v9754_v16, %v18819_v5  ;;  %5966 = vmatprep.mubr.bf16.mxu1 %v16080_v34  ;;  %v16106_v32 = vsel %vm263_vm7, 1.0, %v18189_v54  ;;  %v1236_v27 = vadd.f32 %v1172_v26, %v948_v13  ;;  %v16121_v62 = vpop.permute.xlu1 %3630  ;;  %v18822_v21 = vld [vmem:[#allocation19_spill] sm:$0xff]  ;;  %v18823_v26 = vld [vmem:[#allocation238_spill] sm:$0xff] }
 0x515   :  { %v1461_v4 = vsel %vm1397_vm13, 1.0, %v18189_v54  ;;  %vm1972_vm0 = vcmp.eq.s32.totalorder %v9739_v12, %v18820_v46  ;;  %5967 = vmatmul.mubr.bf16.gmra.mrb[104].mxu1 %v16082_v52  ;;  %vm536_vm3 = vcmp.eq.s32.totalorder %v9739_v12, %v18821_v25  ;;  %v1237_v36 = vadd.f32 %v1173_v56, %v949_v15  ;;  %8063 = vset.pattern.permute.xlu1 %v18224_v45  ;;  %v16138_v45 = vld [vmem:[%s17552_s0 + $0xf8] sm:$0xff]  ;;  %v18824_v5 = vld [vmem:[#allocation45_spill] sm:$0xff] }
 0x516   :  { %v1748_v9 = vsel %vm1684_vm11, 1.0, %v18189_v54  ;;  %vm1973_vm2 = vcmp.eq.s32.totalorder %v9754_v16, %v18820_v46  ;;  %v16127_v19 = vsel %vm260_vm4, 1.0, %v18189_v54  ;;  %v1524_v40 = vadd.f32 %v1460_v30, %v1236_v27  ;;  %3078 = vperm.xlu1 %8063, %v16138_v45   ;;  %6044 = vmatpush1.bf16.msra.mxu1 %v8258_v33  ;;  %v8261_v13 = vld [vmem:[#allocation5 + $0x128] ss:$16 sps:$4 sm:$0xff]   ;;  %v8263_v56 = vld [vmem:[#allocation5 + $0x12c] ss:$16 sps:$4 sm:$0xff]  }
 0x517   :  { %v1749_v42 = vsel %vm1685_vm14, 1.0, %v18189_v54  ;;  %vm2260_vm12 = vcmp.eq.s32.totalorder %v9739_v12, %v18822_v21  ;;  %vm537_vm5 = vcmp.eq.s32.totalorder %v9754_v16, %v18821_v25  ;;  %v1525_v55 = vadd.f32 %v1461_v4, %v1237_v36  ;;  %v18825_v27 = vld [vmem:[#allocation119_spill] sm:$0xff]  ;;  %6045 = vmatprep.subr.bf16.mxu1 %v8263_v56  ;;  %v18828_v56 = vld [vmem:[#allocation110_spill] sm:$0xff] }
 0x518   :  { %v2036_v10 = vsel %vm1972_vm0, 1.0, %v18189_v54  ;;  %vm2261_vm7 = vcmp.eq.s32.totalorder %v9754_v16, %v18822_v21  ;;  %v600_v0 = vsel %vm536_vm3, 1.0, %v18189_v54  ;;  %v1812_v11 = vadd.f32 %v1748_v9, %v1524_v40  ;;  %v16173_v4 = vpop.permute.xlu1 %3918 }
 0x519   :  { %v2037_v1 = vsel %vm1973_vm2, 1.0, %v18189_v54  ;;  %vm2548_vm15 = vcmp.eq.s32.totalorder %v9739_v12, %v18823_v26  ;;  %vm540_vm6 = vcmp.eq.s32.totalorder %v9739_v12, %v18824_v5  ;;  %v1813_v15 = vadd.f32 %v1749_v42, %v1525_v55 }
 0x51a   :  { %v2324_v30 = vsel %vm2260_vm12, 1.0, %v18189_v54  ;;  %vm2549_vm8 = vcmp.eq.s32.totalorder %v9754_v16, %v18823_v26  ;;  %vm541_vm1 = vcmp.eq.s32.totalorder %v9754_v16, %v18824_v5  ;;  %v2100_v33 = vadd.f32 %v2036_v10, %v1812_v11  ;;  %8064 = vset.pattern.permute.xlu1 %v18367_v6  ;;  %6046 = vmatpush1.bf16.msra.mxu1 %v8261_v13  ;;  %v18826_v10 = vld [vmem:[#allocation47_spill] sm:$0xff]  ;;  %v18827_v26 = vld [vmem:[#allocation62_spill] sm:$0xff] }
 0x51b   :  { %v2325_v28 = vsel %vm2261_vm7, 1.0, %v18189_v54  ;;  %vm2836_vm10 = vcmp.eq.s32.totalorder %v9739_v12, %v18825_v27  ;;  %v601_v46 = vsel %vm537_vm5, 1.0, %v18189_v54  ;;  %v2101_v36 = vadd.f32 %v2037_v1, %v1813_v15  ;;  %4221 = vperm.xlu1 %8064, %v15819_v44  }
 0x51c   :  { %v2612_v9 = vsel %vm2548_vm15, 1.0, %v18189_v54  ;;  %vm2837_vm9 = vcmp.eq.s32.totalorder %v9754_v16, %v18825_v27  ;;  %v604_v40 = vsel %vm540_vm6, 1.0, %v18189_v54  ;;  %v2388_v42 = vadd.f32 %v2324_v30, %v2100_v33  ;;  %v16221_v33 = vpop.f32.mrb[32].mxu0 }
 0x51d   :  { %v2613_v25 = vsel %vm2549_vm8, 1.0, %v18189_v54  ;;  %vm3124_vm13 = vcmp.eq.s32.totalorder %v9739_v12, %v15893_v29  ;;  %v605_v44 = vsel %vm541_vm1, 1.0, %v18189_v54  ;;  %v2389_v21 = vadd.f32 %v2325_v28, %v2101_v36  ;;  %18829 = vst [vmem:[#allocation182_spill] sm:$0xff] %v16221_v33  ;;  %v18830_v28 = vld [vmem:[#allocation85_spill] sm:$0xff]  ;;  %v18831_v36 = vld [vmem:[#allocation151_spill] sm:$0xff] }
 0x51e   :  { %v2900_v55 = vsel %vm2836_vm10, 1.0, %v18189_v54  ;;  %vm3125_vm4 = vcmp.eq.s32.totalorder %v9754_v16, %v15893_v29  ;;  %vm544_vm11 = vcmp.eq.s32.totalorder %v9739_v12, %v18826_v10  ;;  %vm545_vm14 = vcmp.eq.s32.totalorder %v9754_v16, %v18826_v10  ;;  %v16219_v29 = vpop.permute.xlu1 %3057 }
 0x51f   :  { %v2676_v11 = vadd.f32 %v2612_v9, %v2388_v42  ;;  %v2901_v1 = vsel %vm2837_vm9, 1.0, %v18189_v54  ;;  %v16212_v13 = vadd.f32 %v600_v0, %v18827_v26  ;;  %v16215_v5 = vadd.f32 %v601_v46, %v18828_v56  ;;  %8065 = vset.pattern.permute.xlu1 %v18262_v59  ;;  %v16233_v46 = vld [vmem:[%s17552_s0 + $0xf0] sm:$0xff]  ;;  %v16236_v59 = vpop.f32.mrb[33].mxu0 }
 0x520   :  { %v2677_v15 = vadd.f32 %v2613_v25, %v2389_v21  ;;  %v3188_v30 = vsel %vm3124_vm13, 1.0, %v18189_v54  ;;  %v16224_v27 = vadd.f32 %v604_v40, %v18830_v28  ;;  %v16227_v9 = vadd.f32 %v605_v44, %v18831_v36  ;;  %3363 = vperm.xlu1 %8065, %v16233_v46   ;;  %18832 = vst [vmem:[#allocation23_spill] sm:$0xff] %v16236_v59  ;;  %v18833_v21 = vld [vmem:[#allocation87_spill] sm:$0xff] }
 0x521   :  { %v2964_v0 = vadd.f32 %v2900_v55, %v2676_v11  ;;  %v3189_v42 = vsel %vm3125_vm4, 1.0, %v18189_v54  ;;  %v608_v40 = vsel %vm544_vm11, 1.0, %v18189_v54  ;;  %v609_v25 = vsel %vm545_vm14, 1.0, %v18189_v54  ;;  %v16248_v55 = vpop.f32.mrb[34].mxu0  ;;  %v18835_v11 = vld [vmem:[#allocation213_spill] sm:$0xff]  ;;  %v18837_v28 = vld [vmem:[#allocation155_spill] sm:$0xff] }
 0x522   :  { %v2965_v44 = vadd.f32 %v2901_v1, %v2677_v15  ;;  %vm3988_vm0 = vcmp.eq.s32.totalorder %v9739_v12, %v18833_v21  ;;  %18834 = vst [vmem:[#allocation25_spill] sm:$0xff] %v16248_v55  ;;  %vm3412_vm3 = vcmp.eq.s32.totalorder %v9739_v12, %v18835_v11  ;;  %vm3413_vm2 = vcmp.eq.s32.totalorder %v9754_v16, %v18835_v11  ;;  %v16256_v56 = vpop.f32.mrb[35].mxu0  ;;  %v8264_v1 = vld [vmem:[#allocation5 + $0x148] ss:$16 sps:$4 sm:$0xff]   ;;  %v8266_v15 = vld [vmem:[#allocation5 + $0x14c] ss:$16 sps:$4 sm:$0xff]  }
 0x523   :  { %v3252_v26 = vadd.f32 %v3188_v30, %v2964_v0  ;;  %vm3414_vm12 = vcmp.eq.s32.totalorder %v9739_v12, %v16017_v31  ;;  %18836 = vst [vmem:[#allocation183_spill] sm:$0xff] %v16256_v56  ;;  %vm3415_vm5 = vcmp.eq.s32.totalorder %v9754_v16, %v16017_v31  ;;  %vm3700_vm7 = vcmp.eq.s32.totalorder %v9739_v12, %v16078_v48  ;;  %v18838_v30 = vld [vmem:[#allocation16_spill] sm:$0xff] }
 0x524   :  { %v3253_v10 = vadd.f32 %v3189_v42, %v2965_v44  ;;  %vm3701_vm15 = vcmp.eq.s32.totalorder %v9754_v16, %v16078_v48  ;;  %v16265_v36 = vadd.f32 %v608_v40, %v18837_v28  ;;  %v16268_v0 = vadd.f32 %v609_v25, %v18838_v30  ;;  %3366 = vperm.xlu1 %8065, %v16138_v45   ;;  %v16275_v42 = vpop.permute.xlu1 %4203  ;;  %v16295_v30 = vpop.permute.xlu0 %4494 }
 0x525   :  { %vm3989_vm6 = vcmp.eq.s32.totalorder %v9754_v16, %v18833_v21  ;;  %vm3702_vm8 = vcmp.eq.s32.totalorder %v9739_v12, %v16121_v62  ;;  %v16281_v44 = vsel %vm3988_vm0, 1.0, %v18189_v54  ;;  %v3476_v40 = vsel %vm3412_vm3, 1.0, %v18189_v54  ;;  %6047 = vmatprep.subr.bf16.mxu1 %v8266_v15  ;;  %v18840_v15 = vld [vmem:[#allocation74_spill] sm:$0xff] }
 0x526   :  { %v3477_v25 = vsel %vm3413_vm2, 1.0, %v18189_v54  ;;  %v3478_v28 = vsel %vm3414_vm12, 1.0, %v18189_v54  ;;  %v3479_v52 = vsel %vm3415_vm5, 1.0, %v18189_v54  ;;  %v3540_v34 = vadd.f32 %v3476_v40, %v3252_v26  ;;  %6048 = vmatpush1.bf16.msra.mxu1 %v8264_v1  ;;  %v18839_v26 = vld [vmem:[#allocation100_spill] sm:$0xff] }
 0x527   :  { %v3764_v11 = vsel %vm3700_vm7, 1.0, %v18189_v54  ;;  %v3765_v7 = vsel %vm3701_vm15, 1.0, %v18189_v54  ;;  %v3541_v3 = vadd.f32 %v3477_v25, %v3253_v10  ;;  %vm3703_vm1 = vcmp.eq.s32.totalorder %v9754_v16, %v16121_v62  ;;  %v18841_v40 = vld [vmem:[#allocation104_spill] sm:$0xff]  ;;  %v5918_v21 = vpop.f32.mrb[84].mxu1 }
 0x528   :  { %v3766_v31 = vsel %vm3702_vm8, 1.0, %v18189_v54  ;;  %vm3990_vm10 = vcmp.eq.s32.totalorder %v9739_v12, %v16173_v4  ;;  %vm261_vm9 = vcmp.eq.s32.totalorder %v9754_v16, %v18818_v8  ;;  %v4053_v48 = vsel %vm3989_vm6, 1.0, %v18189_v54  ;;  %8066 = vset.pattern.permute.xlu1 %v18312_v24  ;;  %v4207_v1 = vpop.permute.xlu1 %4206 }
 0x529   :  { %v3542_v10 = vadd.f32 %v3478_v28, %v18839_v26  ;;  %vm3991_vm13 = vcmp.eq.s32.totalorder %v9754_v16, %v16173_v4  ;;  %vm4566_vm4 = vcmp.eq.s32.totalorder %v9739_v12, %v16295_v30  ;;  %vm824_vm11 = vcmp.eq.s32.totalorder %v9739_v12, %v18840_v15  ;;  %4512 = vperm.xlu1 %8066, %v15904_v35  }
 0x52a   :  { %v3543_v25 = vadd.f32 %v3479_v52, %v18841_v40  ;;  %v3828_v41 = vadd.f32 %v3764_v11, %v3540_v34  ;;  %v3829_v50 = vadd.f32 %v3765_v7, %v3541_v3  ;;  %vm4567_vm14 = vcmp.eq.s32.totalorder %v9754_v16, %v16295_v30  ;;  %v5920_v3 = vpop.f32.mrb[85].mxu1  ;;  %v18842_v7 = vld [vmem:[#allocation109_spill] sm:$0xff] }
 0x52b   :  { %v3767_v28 = vsel %vm3703_vm1, 1.0, %v18189_v54  ;;  %v3830_v26 = vadd.f32 %v3766_v31, %v3542_v10  ;;  %v4054_v17 = vsel %vm3990_vm10, 1.0, %v18189_v54  ;;  %v5919_v34 = vadd.f32 %v5918_v21, %v15322_v61  ;;  %v5922_v62 = vpop.f32.mrb[86].mxu1  ;;  %v8267_v61 = vld [vmem:[#allocation5 + $0x168] ss:$16 sps:$4 sm:$0xff]  }
 0x52c   :  { %vm825_vm0 = vcmp.eq.s32.totalorder %v9754_v16, %v18840_v15  ;;  %vm1112_vm3 = vcmp.eq.s32.totalorder %v9739_v12, %v18842_v7  ;;  %v4055_v35 = vsel %vm3991_vm13, 1.0, %v18189_v54  ;;  %vm4278_vm2 = vcmp.eq.s32.totalorder %v9739_v12, %v4207_v1  ;;  %v8269_v11 = vld [vmem:[#allocation5 + $0x16c] ss:$16 sps:$4 sm:$0xff]   ;;  %v5924_v10 = vpop.f32.mrb[87].mxu1  ;;  %v16370_v37 = vpop.permute.xlu1 %3348 }
 0x52d   :  { %vm4279_vm12 = vcmp.eq.s32.totalorder %v9754_v16, %v4207_v1  ;;  %v5921_v52 = vadd.f32 %v5920_v3, %v15353_v57  ;;  %vm4276_vm5 = vcmp.eq.s32.totalorder %v9739_v12, %v16275_v42  ;;  %vm4277_vm7 = vcmp.eq.s32.totalorder %v9754_v16, %v16275_v42  ;;  %v18843_v40 = vld [vmem:[#allocation49_spill] sm:$0xff]  ;;  %8067 = vset.pattern.permute.xlu1 %v18408_v58 }
 0x52e   :  { %v6282_v31 = vadd.f32 %v15221_v2, %v5919_v34  ;;  %v5923_v4 = vadd.f32 %v5922_v62, %v15363_v63  ;;  %vm548_vm15 = vcmp.eq.s32.totalorder %v9739_v12, %v18843_v40  ;;  %v3831_v21 = vadd.f32 %v3767_v28, %v3543_v25  ;;  %3651 = vperm.xlu1 %8067, %v16233_v46  }
 0x52f   :  { %v6283_v57 = vadd.f32 %v15239_v38, %v5921_v52  ;;  %v4630_v3 = vsel %vm4566_vm4, 1.0, %v18189_v54  ;;  %v5925_v49 = vadd.f32 %v5924_v10, %v15369_v39  ;;  %v4118_v34 = vadd.f32 %v4054_v17, %v3830_v26  ;;  %6049 = vmatprep.subr.bf16.mxu1 %v8269_v11  ;;  %v8270_v11 = vld [vmem:[#allocation5 + $0x188] ss:$16 sps:$4 sm:$0xff]  }
 0x530   :  { %v4342_v63 = vsel %vm4278_vm2, 1.0, %v18189_v54  ;;  %v4343_v25 = vsel %vm4279_vm12, 1.0, %v18189_v54  ;;  %v6286_v28 = vadd.f32 %v15221_v2, %v5923_v4  ;;  %v4119_v52 = vadd.f32 %v4055_v35, %v3831_v21  ;;  %6050 = vmatpush1.bf16.msra.mxu1 %v8267_v61  ;;  %v8272_v35 = vld [vmem:[#allocation5 + $0x18c] ss:$16 sps:$4 sm:$0xff]  }
 0x531   :  { %v4340_v58 = vsel %vm4276_vm5, 1.0, %v18189_v54  ;;  %v4341_v17 = vsel %vm4277_vm7, 1.0, %v18189_v54  ;;  %v6287_v39 = vadd.f32 %v15239_v38, %v5925_v49  ;;  %v4116_v1 = vadd.f32 %v16281_v44, %v3828_v41  ;;  %v4492_v49 = vpop.permute.xlu1 %4491  ;;  %6051 = vmatprep.subr.bf16.mxu1 %v8272_v35 }
 0x532   :  { %v4117_v26 = vadd.f32 %v4053_v48, %v3829_v50  ;;  %v6410_v62 = vmax.f32 %v6282_v31, 0.0  ;;  %v6414_v4 = vmax.f32 %v6286_v28, 0.0  ;;  %v4406_v10 = vadd.f32 %v4342_v63, %v4118_v34  ;;  %8070 = vset.pattern.permute.xlu1 %v18557_v60 }
 0x533   :  { %v4407_v21 = vadd.f32 %v4343_v25, %v4119_v52  ;;  %v6411_v56 = vmax.f32 %v6283_v57, 0.0  ;;  %v6415_v55 = vmax.f32 %v6287_v39, 0.0  ;;  %v4404_v59 = vadd.f32 %v4340_v58, %v4116_v1  ;;  %3939 = vperm.xlu1 %8070, %v16233_v46   ;;  %v8275_v39 = vld [vmem:[#allocation5 + $0x1ac] ss:$16 sps:$4 sm:$0xff]  }
 0x534   :  { %v4405_v33 = vadd.f32 %v4341_v17, %v4117_v26  ;;  %v4631_v42 = vsel %vm4567_vm14, 1.0, %v18189_v54  ;;  %v6518_v41 = vpack.c.bf16 %v6414_v4, %v6410_v62  ;;  %v325_v50 = vsel %vm261_vm9, 1.0, %v18189_v54  ;;  %6052 = vmatpush1.bf16.msra.mxu1 %v8270_v11  ;;  %v18846_v17 = vld [vmem:[#allocation175_spill] sm:$0xff]  ;;  %v18847_v4 = vld [vmem:[#allocation198_spill] sm:$0xff] }
 0x535   :  { %vm4564_vm6 = vcmp.eq.s32.totalorder %v9739_v12, %v4492_v49  ;;  %vm4565_vm8 = vcmp.eq.s32.totalorder %v9754_v16, %v4492_v49  ;;  %v6519_v44 = vpack.c.bf16 %v6415_v55, %v6411_v56  ;;  %v888_v60 = vsel %vm824_vm11, 1.0, %v18189_v54  ;;  %v18844_v55 = vld [vmem:[#allocation50_spill] sm:$0xff]  ;;  %6053 = vmatprep.subr.bf16.mxu1 %v8275_v39 }
 0x536   :  { %vm1113_vm1 = vcmp.eq.s32.totalorder %v9754_v16, %v18842_v7  ;;  %v4628_v30 = vsel %vm4564_vm6, 1.0, %v18189_v54  ;;  %v4629_v8 = vsel %vm4565_vm8, 1.0, %v18189_v54  ;;  %v4694_v48 = vadd.f32 %v4630_v3, %v4406_v10  ;;  %v18848_v10 = vld [vmem:[#allocation76_spill] sm:$0xff] }
 0x537   :  { %v4695_v61 = vadd.f32 %v4631_v42, %v4407_v21  ;;  %v4692_v31 = vadd.f32 %v4628_v30, %v4404_v59  ;;  %v4693_v57 = vadd.f32 %v4629_v8, %v4405_v33  ;;  %7040 = vmatprep.mubr.bf16.mxu0 %v6519_v44  ;;  %vm549_vm10 = vcmp.eq.s32.totalorder %v9754_v16, %v18843_v40  ;;  %v18845_v59 = vld [vmem:[#allocation136_spill] sm:$0xff]  ;;  %v16427_v33 = vpop.permute.xlu1 %3633  ;;  %v8273_v40 = vld [vmem:[#allocation5 + $0x1a8] ss:$16 sps:$4 sm:$0xff]  }
 0x538   :  { %vm550_vm9 = vcmp.eq.s32.totalorder %v9739_v12, %v18844_v55  ;;  %v889_v56 = vsel %vm825_vm0, 1.0, %v18189_v54  ;;  %v1176_v3 = vsel %vm1112_vm3, 1.0, %v18189_v54  ;;  %7041 = vmatmul.mubr.bf16.gmra.mrb[84].mxu0 %v6518_v41  ;;  %vm1400_vm13 = vcmp.eq.s32.totalorder %v9739_v12, %v18845_v59  ;;  %3942 = vperm.xlu1 %8070, %v16138_v45   ;;  %v18849_v41 = vld [vmem:[#allocation251_spill] sm:$0xff] }
 0x539   :  { %vm1401_vm4 = vcmp.eq.s32.totalorder %v9754_v16, %v18845_v59  ;;  %v16429_v34 = vpack.c.bf16 %v4695_v61, %v4693_v57  ;;  %v16431_v15 = vpack.c.bf16 %v4694_v48, %v4692_v31  ;;  %v612_v63 = vsel %vm548_vm15, 1.0, %v18189_v54  ;;  %6054 = vmatpush1.bf16.msra.mxu1 %v8273_v40  ;;  %v18850_v8 = vld [vmem:[#allocation243_spill] sm:$0xff]  ;;  %v18851_v48 = vld [vmem:[#allocation78_spill] sm:$0xff] }
 0x53a   :  { %vm551_vm11 = vcmp.eq.s32.totalorder %v9754_v16, %v18844_v55  ;;  %v952_v25 = vadd.f32 %v888_v60, %v16212_v13  ;;  %v1177_v28 = vsel %vm1113_vm1, 1.0, %v18189_v54  ;;  %v613_v52 = vsel %vm549_vm10, 1.0, %v18189_v54 }
 0x53b   :  { %v953_v58 = vadd.f32 %v889_v56, %v16215_v5  ;;  %vm1688_vm14 = vcmp.eq.s32.totalorder %v9739_v12, %v18846_v17  ;;  %vm1689_vm0 = vcmp.eq.s32.totalorder %v9754_v16, %v18846_v17  ;;  %5976 = vmatprep.mubr.bf16.mxu1 %v16429_v34  ;;  %v614_v13 = vsel %vm550_vm9, 1.0, %v18189_v54  ;;  %v16470_v11 = vpop.permute.xlu1 %3636 }
 0x53c   :  { %v1240_v7 = vadd.f32 %v1176_v3, %v952_v25  ;;  %v1464_v5 = vsel %vm1400_vm13, 1.0, %v18189_v54  ;;  %v1465_v1 = vsel %vm1401_vm4, 1.0, %v18189_v54  ;;  %5977 = vmatmul.mubr.bf16.gmra.mrb[108].mxu1 %v16431_v15  ;;  %v615_v26 = vsel %vm551_vm11, 1.0, %v18189_v54  ;;  %8071 = vset.pattern.permute.xlu1 %v18367_v6  ;;  %v18852_v3 = vld [vmem:[#allocation122_spill] sm:$0xff] }
 0x53d   :  { %v1241_v62 = vadd.f32 %v1177_v28, %v953_v58  ;;  %vm1976_vm3 = vcmp.eq.s32.totalorder %v9739_v12, %v18847_v4  ;;  %vm1977_vm2 = vcmp.eq.s32.totalorder %v9754_v16, %v18847_v4  ;;  %v16473_v35 = vadd.f32 %v612_v63, %v16127_v19  ;;  %4230 = vperm.xlu1 %8071, %v16138_v45  }
 0x53e   :  { %vm828_vm12 = vcmp.eq.s32.totalorder %v9739_v12, %v18848_v10  ;;  %v1752_v21 = vsel %vm1688_vm14, 1.0, %v18189_v54  ;;  %v1753_v42 = vsel %vm1689_vm0, 1.0, %v18189_v54  ;;  %v1528_v6 = vadd.f32 %v1464_v5, %v1240_v7 }
 0x53f   :  { %v1529_v49 = vadd.f32 %v1465_v1, %v1241_v62  ;;  %vm2264_vm5 = vcmp.eq.s32.totalorder %v9739_v12, %v18849_v41  ;;  %vm2265_vm7 = vcmp.eq.s32.totalorder %v9754_v16, %v18849_v41  ;;  %v16490_v19 = vadd.f32 %v613_v52, %v325_v50  ;;  %v16515_v57 = vpop.permute.xlu1 %3924  ;;  %v18855_v41 = vld [vmem:[#allocation214_spill] sm:$0xff] }
 0x540   :  { %vm829_vm15 = vcmp.eq.s32.totalorder %v9754_v16, %v18848_v10  ;;  %v2040_v44 = vsel %vm1976_vm3, 1.0, %v18189_v54  ;;  %v2041_v45 = vsel %vm1977_vm2, 1.0, %v18189_v54  ;;  %v1816_v60 = vadd.f32 %v1752_v21, %v1528_v6  ;;  %v8276_v21 = vld [vmem:[#allocation5 + $0x1c8] ss:$16 sps:$4 sm:$0xff]  }
 0x541   :  { %v1817_v30 = vadd.f32 %v1753_v42, %v1529_v49  ;;  %vm2552_vm6 = vcmp.eq.s32.totalorder %v9739_v12, %v18850_v8  ;;  %vm2553_vm8 = vcmp.eq.s32.totalorder %v9754_v16, %v18850_v8  ;;  %v892_v50 = vsel %vm828_vm12, 1.0, %v18189_v54  ;;  %8072 = vset.pattern.permute.xlu1 %v18312_v24  ;;  %v18853_v42 = vld [vmem:[#allocation80_spill] sm:$0xff] }
 0x542   :  { %vm832_vm1 = vcmp.eq.s32.totalorder %v9739_v12, %v18851_v48  ;;  %v2328_v61 = vsel %vm2264_vm5, 1.0, %v18189_v54  ;;  %v2329_v31 = vsel %vm2265_vm7, 1.0, %v18189_v54  ;;  %v2104_v55 = vadd.f32 %v2040_v44, %v1816_v60  ;;  %4515 = vperm.xlu1 %8072, %v16233_v46   ;;  %v16533_v46 = vpop.f32.mrb[36].mxu0  ;;  %v8281_v60 = vld [vmem:[#allocation5 + $0x1ec] ss:$16 sps:$4 sm:$0xff]  }
 0x543   :  { %v2105_v56 = vadd.f32 %v2041_v45, %v1817_v30  ;;  %vm2840_vm10 = vcmp.eq.s32.totalorder %v9739_v12, %v18852_v3  ;;  %vm2841_vm9 = vcmp.eq.s32.totalorder %v9754_v16, %v18852_v3  ;;  %v893_v59 = vsel %vm829_vm15, 1.0, %v18189_v54  ;;  %v16546_v62 = vpop.permute.xlu1 %3063  ;;  %v8279_v45 = vld [vmem:[#allocation5 + $0x1e8] ss:$16 sps:$4 sm:$0xff]  }
 0x544   :  { %vm833_vm13 = vcmp.eq.s32.totalorder %v9754_v16, %v18851_v48  ;;  %v2616_v24 = vsel %vm2552_vm6, 1.0, %v18189_v54  ;;  %v2617_v63 = vsel %vm2553_vm8, 1.0, %v18189_v54  ;;  %v896_v25 = vsel %vm832_vm1, 1.0, %v18189_v54 }
 0x545   :  { %v2392_v28 = vadd.f32 %v2328_v61, %v2104_v55  ;;  %v2393_v52 = vadd.f32 %v2329_v31, %v2105_v56  ;;  %vm3128_vm4 = vcmp.eq.s32.totalorder %v9739_v12, %v16219_v29  ;;  %v16536_v58 = vadd.f32 %v614_v13, %v16096_v51  ;;  %v16609_v55 = vpop.permute.xlu0 %4500 }
 0x546   :  { %v2904_v17 = vsel %vm2840_vm10, 1.0, %v18189_v54  ;;  %v2905_v40 = vsel %vm2841_vm9, 1.0, %v18189_v54  ;;  %vm3129_vm11 = vcmp.eq.s32.totalorder %v9754_v16, %v16219_v29  ;;  %v16543_v39 = vadd.f32 %v615_v26, %v16106_v32  ;;  %v8278_v32 = vld [vmem:[#allocation5 + $0x1cc] ss:$16 sps:$4 sm:$0xff]   ;;  %v16558_v26 = vpop.f32.mrb[37].mxu0 }
 0x547   :  { %v897_v7 = vsel %vm833_vm13, 1.0, %v18189_v54  ;;  %v2680_v5 = vadd.f32 %v2616_v24, %v2392_v28  ;;  %v2681_v1 = vadd.f32 %v2617_v63, %v2393_v52  ;;  %v16549_v4 = vadd.f32 %v892_v50, %v16224_v27  ;;  %6055 = vmatprep.subr.bf16.mxu1 %v8278_v32  ;;  %v18856_v52 = vld [vmem:[#allocation152_spill] sm:$0xff] }
 0x548   :  { %v16552_v51 = vadd.f32 %v893_v59, %v16227_v9  ;;  %v16555_v13 = vadd.f32 %v896_v25, %v16265_v36  ;;  %v3192_v10 = vsel %vm3128_vm4, 1.0, %v18189_v54  ;;  %vm836_vm14 = vcmp.eq.s32.totalorder %v9739_v12, %v18853_v42  ;;  %v16566_v9 = vpop.f32.mrb[38].mxu0  ;;  %v18854_v36 = vld [vmem:[#allocation146_spill] sm:$0xff]  ;;  %6056 = vmatpush1.bf16.msra.mxu1 %v8276_v21  ;;  %v4210_v50 = vpop.permute.xlu1 %4209 }
 0x549   :  { %v2968_v6 = vadd.f32 %v2904_v17, %v2680_v5  ;;  %v2969_v49 = vadd.f32 %v2905_v40, %v2681_v1  ;;  %v3193_v27 = vsel %vm3129_vm11, 1.0, %v18189_v54  ;;  %vm3992_vm0 = vcmp.eq.s32.totalorder %v9739_v12, %v18854_v36  ;;  %v16576_v44 = vpop.f32.mrb[39].mxu0  ;;  %6057 = vmatprep.subr.bf16.mxu1 %v8281_v60 }
 0x54a   :  { %vm3993_vm3 = vcmp.eq.s32.totalorder %v9754_v16, %v18854_v36  ;;  %vm3416_vm2 = vcmp.eq.s32.totalorder %v9739_v12, %v18855_v41  ;;  %vm3418_vm12 = vcmp.eq.s32.totalorder %v9739_v12, %v16370_v37  ;;  %vm3417_vm5 = vcmp.eq.s32.totalorder %v9754_v16, %v18855_v41 }
 0x54b   :  { %v3256_v29 = vadd.f32 %v3192_v10, %v2968_v6  ;;  %vm3419_vm7 = vcmp.eq.s32.totalorder %v9754_v16, %v16370_v37  ;;  %vm3704_vm15 = vcmp.eq.s32.totalorder %v9739_v12, %v16427_v33  ;;  %v16585_v30 = vadd.f32 %v897_v7, %v16268_v0 }
 0x54c   :  { %v3257_v8 = vadd.f32 %v3193_v27, %v2969_v49  ;;  %vm3705_vm6 = vcmp.eq.s32.totalorder %v9754_v16, %v16427_v33  ;;  %vm3706_vm8 = vcmp.eq.s32.totalorder %v9739_v12, %v16470_v11  ;;  %v16595_v48 = vsel %vm836_vm14, 1.0, %v18189_v54  ;;  %6058 = vmatpush1.bf16.msra.mxu1 %v8279_v45  ;;  %v4213_v37 = vpop.permute.xlu1 %4212  ;;  %v18857_v33 = vld [vmem:[#allocation145_spill] sm:$0xff]  ;;  %v18858_v49 = vld [vmem:[#allocation83_spill] sm:$0xff] }
 0x54d   :  { %v4056_v0 = vsel %vm3992_vm0, 1.0, %v18189_v54  ;;  %v4057_v61 = vsel %vm3993_vm3, 1.0, %v18189_v54  ;;  %v3482_v31 = vsel %vm3418_vm12, 1.0, %v18189_v54  ;;  %v3480_v56 = vsel %vm3416_vm2, 1.0, %v18189_v54  ;;  %v18859_v27 = vld [vmem:[#allocation111_spill] sm:$0xff] }
 0x54e   :  { %v3481_v3 = vsel %vm3417_vm5, 1.0, %v18189_v54  ;;  %v3483_v59 = vsel %vm3419_vm7, 1.0, %v18189_v54  ;;  %v3768_v24 = vsel %vm3704_vm15, 1.0, %v18189_v54  ;;  %v3544_v63 = vadd.f32 %v3480_v56, %v3256_v29 }
 0x54f   :  { %v3769_v25 = vsel %vm3705_vm6, 1.0, %v18189_v54  ;;  %vm3707_vm1 = vcmp.eq.s32.totalorder %v9754_v16, %v16470_v11  ;;  %v3770_v28 = vsel %vm3706_vm8, 1.0, %v18189_v54  ;;  %v3546_v17 = vadd.f32 %v3482_v31, %v18856_v52  ;;  %v5928_v11 = vpop.f32.mrb[88].mxu1 }
 0x550   :  { %v3545_v40 = vadd.f32 %v3481_v3, %v3257_v8  ;;  %vm3994_vm10 = vcmp.eq.s32.totalorder %v9739_v12, %v16515_v57  ;;  %vm4570_vm9 = vcmp.eq.s32.totalorder %v9739_v12, %v16609_v55  ;;  %vm837_vm13 = vcmp.eq.s32.totalorder %v9754_v16, %v18853_v42  ;;  %v5930_v6 = vpop.f32.mrb[89].mxu1 }
 0x551   :  { %v3547_v7 = vadd.f32 %v3483_v59, %v18857_v33  ;;  %v3832_v5 = vadd.f32 %v3768_v24, %v3544_v63  ;;  %vm3995_vm4 = vcmp.eq.s32.totalorder %v9754_v16, %v16515_v57  ;;  %vm4571_vm11 = vcmp.eq.s32.totalorder %v9754_v16, %v16609_v55  ;;  %v5932_v41 = vpop.f32.mrb[90].mxu1  ;;  %v16668_v3 = vpop.permute.xlu1 %3354 }
 0x552   :  { %v3833_v1 = vadd.f32 %v3769_v25, %v3545_v40  ;;  %v3771_v10 = vsel %vm3707_vm1, 1.0, %v18189_v54  ;;  %v3834_v21 = vadd.f32 %v3770_v28, %v3546_v17  ;;  %v5929_v32 = vadd.f32 %v5928_v11, %v15597_v23  ;;  %v5934_v8 = vpop.f32.mrb[91].mxu1 }
 0x553   :  { %vm838_vm14 = vcmp.eq.s32.totalorder %v9739_v12, %v18858_v49  ;;  %vm839_vm0 = vcmp.eq.s32.totalorder %v9754_v16, %v18858_v49  ;;  %vm1116_vm3 = vcmp.eq.s32.totalorder %v9739_v12, %v18859_v27  ;;  %v4058_v36 = vsel %vm3994_vm10, 1.0, %v18189_v54 }
 0x554   :  { %vm4282_vm2 = vcmp.eq.s32.totalorder %v9739_v12, %v4213_v37  ;;  %vm4283_vm12 = vcmp.eq.s32.totalorder %v9754_v16, %v4213_v37  ;;  %v5931_v23 = vadd.f32 %v5930_v6, %v15623_v43  ;;  %v4059_v29 = vsel %vm3995_vm4, 1.0, %v18189_v54 }
 0x555   :  { %vm4280_vm5 = vcmp.eq.s32.totalorder %v9739_v12, %v4210_v50  ;;  %v6290_v45 = vadd.f32 %v15221_v2, %v5929_v32  ;;  %v5933_v60 = vadd.f32 %v5932_v41, %v15641_v18  ;;  %v3835_v31 = vadd.f32 %v3771_v10, %v3547_v7 }
 0x556   :  { %vm4281_vm7 = vcmp.eq.s32.totalorder %v9754_v16, %v4210_v50  ;;  %v6291_v56 = vadd.f32 %v15239_v38, %v5931_v23  ;;  %v5935_v43 = vadd.f32 %v5934_v8, %v15651_v20  ;;  %v4120_v59 = vadd.f32 %v4056_v0, %v3832_v5 }
 0x557   :  { %v4346_v57 = vsel %vm4282_vm2, 1.0, %v18189_v54  ;;  %v4347_v24 = vsel %vm4283_vm12, 1.0, %v18189_v54  ;;  %v6294_v63 = vadd.f32 %v15221_v2, %v5933_v60  ;;  %v4122_v25 = vadd.f32 %v4058_v36, %v3834_v21 }
 0x558   :  { %v4123_v28 = vadd.f32 %v4059_v29, %v3835_v31  ;;  %v4344_v18 = vsel %vm4280_vm5, 1.0, %v18189_v54  ;;  %v6295_v52 = vadd.f32 %v15239_v38, %v5935_v43  ;;  %v4121_v50 = vadd.f32 %v4057_v61, %v3833_v1  ;;  %v4498_v61 = vpop.permute.xlu1 %4497  ;;  %v18860_v31 = vld [vmem:[#allocation112_spill] sm:$0xff] }
 0x559   :  { %v4345_v17 = vsel %vm4281_vm7, 1.0, %v18189_v54  ;;  %v6418_v40 = vmax.f32 %v6290_v45, 0.0  ;;  %v6422_v20 = vmax.f32 %v6294_v63, 0.0  ;;  %v4410_v37 = vadd.f32 %v4346_v57, %v4122_v25 }
 0x55a   :  { %v4411_v33 = vadd.f32 %v4347_v24, %v4123_v28  ;;  %v6419_v0 = vmax.f32 %v6291_v56, 0.0  ;;  %v6423_v7 = vmax.f32 %v6295_v52, 0.0  ;;  %v4408_v5 = vadd.f32 %v4344_v18, %v4120_v59  ;;  %v18861_v56 = vld [vmem:[#allocation138_spill] sm:$0xff]  ;;  %v18862_v18 = vld [vmem:[#allocation177_spill] sm:$0xff] }
 0x55b   :  { %v4634_v11 = vsel %vm4570_vm9, 1.0, %v18189_v54  ;;  %v4635_v10 = vsel %vm4571_vm11, 1.0, %v18189_v54  ;;  %v6522_v1 = vpack.c.bf16 %v6422_v20, %v6418_v40  ;;  %v4409_v21 = vadd.f32 %v4345_v17, %v4121_v50  ;;  %v18863_v50 = vld [vmem:[#allocation200_spill] sm:$0xff]  ;;  %v18864_v40 = vld [vmem:[#allocation113_spill] sm:$0xff] }
 0x55c   :  { %vm4568_vm15 = vcmp.eq.s32.totalorder %v9739_v12, %v4498_v61  ;;  %vm4569_vm6 = vcmp.eq.s32.totalorder %v9754_v16, %v4498_v61  ;;  %v6523_v32 = vpack.c.bf16 %v6423_v7, %v6419_v0  ;;  %v901_v6 = vsel %vm837_vm13, 1.0, %v18189_v54  ;;  %v16712_v43 = vpop.permute.xlu1 %3639  ;;  %v18865_v0 = vld [vmem:[#allocation24_spill] sm:$0xff]  ;;  %v18866_v7 = vld [vmem:[#allocation115_spill] sm:$0xff] }
 0x55d   :  { %vm1117_vm8 = vcmp.eq.s32.totalorder %v9754_v16, %v18859_v27  ;;  %v4632_v36 = vsel %vm4568_vm15, 1.0, %v18189_v54  ;;  %v4633_v55 = vsel %vm4569_vm6, 1.0, %v18189_v54  ;;  %v4698_v23 = vadd.f32 %v4634_v11, %v4410_v37 }
 0x55e   :  { %v4699_v41 = vadd.f32 %v4635_v10, %v4411_v33  ;;  %v4696_v29 = vadd.f32 %v4632_v36, %v4408_v5  ;;  %v4697_v45 = vadd.f32 %v4633_v55, %v4409_v21  ;;  %7050 = vmatprep.mubr.bf16.mxu0 %v6523_v32  ;;  %v902_v60 = vsel %vm838_vm14, 1.0, %v18189_v54 }
 0x55f   :  { %v903_v42 = vsel %vm839_vm0, 1.0, %v18189_v54  ;;  %v1180_v8 = vsel %vm1116_vm3, 1.0, %v18189_v54  ;;  %vm1126_vm1 = vcmp.eq.s32.totalorder %v9739_v12, %v18860_v31  ;;  %7051 = vmatmul.mubr.bf16.gmra.mrb[88].mxu0 %v6522_v1  ;;  %vm1404_vm10 = vcmp.eq.s32.totalorder %v9739_v12, %v18861_v56  ;;  %v18867_v1 = vld [vmem:[#allocation51_spill] sm:$0xff] }
 0x560   :  { %vm1405_vm9 = vcmp.eq.s32.totalorder %v9754_v16, %v18861_v56  ;;  %v16714_v59 = vpack.c.bf16 %v4699_v41, %v4697_v45  ;;  %v16716_v49 = vpack.c.bf16 %v4698_v23, %v4696_v29  ;;  %v964_v57 = vadd.f32 %v16595_v48, %v16473_v35  ;;  %v18868_v41 = vld [vmem:[#allocation241_spill] sm:$0xff] }
 0x561   :  { %v965_v24 = vadd.f32 %v901_v6, %v16490_v19  ;;  %v1181_v63 = vsel %vm1117_vm8, 1.0, %v18189_v54  ;;  %vm1127_vm13 = vcmp.eq.s32.totalorder %v9754_v16, %v18860_v31  ;;  %v966_v25 = vadd.f32 %v902_v60, %v16536_v58 }
 0x562   :  { %v1190_v28 = vsel %vm1126_vm1, 1.0, %v18189_v54  ;;  %vm1692_vm4 = vcmp.eq.s32.totalorder %v9739_v12, %v18862_v18  ;;  %vm1693_vm11 = vcmp.eq.s32.totalorder %v9754_v16, %v18862_v18  ;;  %5986 = vmatprep.mubr.bf16.mxu1 %v16714_v59  ;;  %v967_v35 = vadd.f32 %v903_v42, %v16543_v39  ;;  %v16751_v39 = vpop.permute.xlu1 %3642 }
 0x563   :  { %v1244_v19 = vadd.f32 %v1180_v8, %v16549_v4  ;;  %v1468_v48 = vsel %vm1404_vm10, 1.0, %v18189_v54  ;;  %v1469_v58 = vsel %vm1405_vm9, 1.0, %v18189_v54  ;;  %5987 = vmatmul.mubr.bf16.gmra.mrb[112].mxu1 %v16716_v49  ;;  %v1245_v27 = vadd.f32 %v1181_v63, %v16552_v51  ;;  %v16753_v4 = vpop.f32.mrb[40].mxu0 }
 0x564   :  { %v1191_v52 = vsel %vm1127_vm13, 1.0, %v18189_v54  ;;  %vm1980_vm14 = vcmp.eq.s32.totalorder %v9739_v12, %v18863_v50  ;;  %vm1981_vm0 = vcmp.eq.s32.totalorder %v9754_v16, %v18863_v50  ;;  %v16755_v17 = vadd.f32 %v1190_v28, %v966_v25 }
 0x565   :  { %vm1120_vm3 = vcmp.eq.s32.totalorder %v9739_v12, %v18864_v40  ;;  %v1756_v51 = vsel %vm1692_vm4, 1.0, %v18189_v54  ;;  %v1757_v20 = vsel %vm1693_vm11, 1.0, %v18189_v54  ;;  %v1532_v37 = vadd.f32 %v1468_v48, %v1244_v19 }
 0x566   :  { %v1533_v33 = vadd.f32 %v1469_v58, %v1245_v27  ;;  %vm2268_vm2 = vcmp.eq.s32.totalorder %v9739_v12, %v18865_v0  ;;  %vm2269_vm12 = vcmp.eq.s32.totalorder %v9754_v16, %v18865_v0  ;;  %vm1121_vm5 = vcmp.eq.s32.totalorder %v9754_v16, %v18864_v40  ;;  %v16786_v36 = vpop.permute.xlu1 %3930 }
 0x567   :  { %vm1124_vm7 = vcmp.eq.s32.totalorder %v9739_v12, %v18866_v7  ;;  %v2044_v5 = vsel %vm1980_vm14, 1.0, %v18189_v54  ;;  %v2045_v11 = vsel %vm1981_vm0, 1.0, %v18189_v54  ;;  %v1820_v10 = vadd.f32 %v1756_v51, %v1532_v37 }
 0x568   :  { %v1821_v61 = vadd.f32 %v1757_v20, %v1533_v33  ;;  %vm2556_vm15 = vcmp.eq.s32.totalorder %v9739_v12, %v18867_v1  ;;  %vm2557_vm6 = vcmp.eq.s32.totalorder %v9754_v16, %v18867_v1  ;;  %v1184_v21 = vsel %vm1120_vm3, 1.0, %v18189_v54  ;;  %v4507_v1 = vpop.permute.xlu0 %4506 }
 0x569   :  { %vm1125_vm8 = vcmp.eq.s32.totalorder %v9754_v16, %v18866_v7  ;;  %v2332_v32 = vsel %vm2268_vm2, 1.0, %v18189_v54  ;;  %v2333_v6 = vsel %vm2269_vm12, 1.0, %v18189_v54  ;;  %v2108_v55 = vadd.f32 %v2044_v5, %v1820_v10 }
 0x56a   :  { %v2109_v23 = vadd.f32 %v2045_v11, %v1821_v61  ;;  %vm2844_vm1 = vcmp.eq.s32.totalorder %v9739_v12, %v18868_v41  ;;  %vm2845_vm10 = vcmp.eq.s32.totalorder %v9754_v16, %v18868_v41  ;;  %v1185_v29 = vsel %vm1121_vm5, 1.0, %v18189_v54  ;;  %v16817_v27 = vpop.permute.xlu1 %3069 }
 0x56b   :  { %v1188_v45 = vsel %vm1124_vm7, 1.0, %v18189_v54  ;;  %v2620_v60 = vsel %vm2556_vm15, 1.0, %v18189_v54  ;;  %v2621_v42 = vsel %vm2557_vm6, 1.0, %v18189_v54  ;;  %v1189_v8 = vsel %vm1125_vm8, 1.0, %v18189_v54 }
 0x56c   :  { %v2396_v31 = vadd.f32 %v2332_v32, %v2108_v55  ;;  %v2397_v56 = vadd.f32 %v2333_v6, %v2109_v23  ;;  %vm3132_vm9 = vcmp.eq.s32.totalorder %v9739_v12, %v16546_v62  ;;  %v16805_v63 = vadd.f32 %v1191_v52, %v967_v35  ;;  %v18869_v52 = vld [vmem:[#allocation140_spill] sm:$0xff] }
 0x56d   :  { %v2908_v25 = vsel %vm2844_vm1, 1.0, %v18189_v54  ;;  %v2909_v28 = vsel %vm2845_vm10, 1.0, %v18189_v54  ;;  %vm3133_vm13 = vcmp.eq.s32.totalorder %v9754_v16, %v16546_v62  ;;  %v16812_v18 = vadd.f32 %v1184_v21, %v16555_v13  ;;  %v16826_v62 = vpop.f32.mrb[41].mxu0 }
 0x56e   :  { %v16815_v19 = vadd.f32 %v1185_v29, %v16585_v30  ;;  %v2684_v48 = vadd.f32 %v2620_v60, %v2396_v31  ;;  %v2685_v58 = vadd.f32 %v2621_v42, %v2397_v56  ;;  %v16819_v50 = vadd.f32 %v1188_v45, %v964_v57  ;;  %v16831_v20 = vpop.f32.mrb[42].mxu0  ;;  %v18870_v57 = vld [vmem:[#allocation150_spill] sm:$0xff]  ;;  %v18872_v29 = vld [vmem:[#allocation148_spill] sm:$0xff] }
 0x56f   :  { %v16821_v35 = vadd.f32 %v1189_v8, %v965_v24  ;;  %vm1408_vm4 = vcmp.eq.s32.totalorder %v9739_v12, %v18869_v52  ;;  %v3196_v40 = vsel %vm3132_vm9, 1.0, %v18189_v54  ;;  %vm1409_vm11 = vcmp.eq.s32.totalorder %v9754_v16, %v18869_v52  ;;  %v18871_v24 = vld [vmem:[#allocation242_spill] sm:$0xff]  ;;  %v16841_v37 = vpop.f32.mrb[43].mxu0  ;;  %v4216_v5 = vpop.permute.xlu1 %4215  ;;  %v18873_v8 = vld [vmem:[#allocation147_spill] sm:$0xff] }
 0x570   :  { %v2972_v13 = vadd.f32 %v2908_v25, %v2684_v48  ;;  %v2973_v30 = vadd.f32 %v2909_v28, %v2685_v58  ;;  %v3197_v51 = vsel %vm3133_vm13, 1.0, %v18189_v54  ;;  %vm3996_vm14 = vcmp.eq.s32.totalorder %v9739_v12, %v18870_v57 }
 0x571   :  { %vm3997_vm0 = vcmp.eq.s32.totalorder %v9754_v16, %v18870_v57  ;;  %vm3420_vm3 = vcmp.eq.s32.totalorder %v9739_v12, %v18871_v24  ;;  %vm3422_vm2 = vcmp.eq.s32.totalorder %v9739_v12, %v16668_v3  ;;  %vm3421_vm12 = vcmp.eq.s32.totalorder %v9754_v16, %v18871_v24 }
 0x572   :  { %v3260_v33 = vadd.f32 %v3196_v40, %v2972_v13  ;;  %vm3423_vm5 = vcmp.eq.s32.totalorder %v9754_v16, %v16668_v3  ;;  %vm3708_vm7 = vcmp.eq.s32.totalorder %v9739_v12, %v16712_v43  ;;  %v16853_v0 = vsel %vm1408_vm4, 1.0, %v18189_v54  ;;  %v18874_v40 = vld [vmem:[#allocation142_spill] sm:$0xff]  ;;  %v18875_v13 = vld [vmem:[#allocation149_spill] sm:$0xff] }
 0x573   :  { %v3261_v7 = vadd.f32 %v3197_v51, %v2973_v30  ;;  %vm3709_vm15 = vcmp.eq.s32.totalorder %v9754_v16, %v16712_v43  ;;  %vm3710_vm6 = vcmp.eq.s32.totalorder %v9739_v12, %v16751_v39  ;;  %v16863_v3 = vsel %vm1409_vm11, 1.0, %v18189_v54  ;;  %v4219_v42 = vpop.permute.xlu1 %4218  ;;  %v5938_v25 = vpop.f32.mrb[92].mxu1 }
 0x574   :  { %v4060_v11 = vsel %vm3996_vm14, 1.0, %v18189_v54  ;;  %v4061_v10 = vsel %vm3997_vm0, 1.0, %v18189_v54  ;;  %v3486_v61 = vsel %vm3422_vm2, 1.0, %v18189_v54  ;;  %v3484_v43 = vsel %vm3420_vm3, 1.0, %v18189_v54  ;;  %v5940_v52 = vpop.f32.mrb[93].mxu1 }
 0x575   :  { %v3485_v21 = vsel %vm3421_vm12, 1.0, %v18189_v54  ;;  %v3487_v32 = vsel %vm3423_vm5, 1.0, %v18189_v54  ;;  %v3772_v6 = vsel %vm3708_vm7, 1.0, %v18189_v54  ;;  %v3548_v55 = vadd.f32 %v3484_v43, %v3260_v33  ;;  %v5942_v51 = vpop.f32.mrb[94].mxu1 }
 0x576   :  { %v3773_v23 = vsel %vm3709_vm15, 1.0, %v18189_v54  ;;  %vm3711_vm8 = vcmp.eq.s32.totalorder %v9754_v16, %v16751_v39  ;;  %v3774_v41 = vsel %vm3710_vm6, 1.0, %v18189_v54  ;;  %v3550_v45 = vadd.f32 %v3486_v61, %v18872_v29  ;;  %v5944_v33 = vpop.f32.mrb[95].mxu1 }
 0x577   :  { %v3549_v60 = vadd.f32 %v3485_v21, %v3261_v7  ;;  %vm3998_vm1 = vcmp.eq.s32.totalorder %v9739_v12, %v16786_v36  ;;  %vm4574_vm10 = vcmp.eq.s32.totalorder %v9739_v12, %v4507_v1  ;;  %v3551_v31 = vadd.f32 %v3487_v32, %v18873_v8 }
 0x578   :  { %v3836_v56 = vadd.f32 %v3772_v6, %v3548_v55  ;;  %vm3999_vm9 = vcmp.eq.s32.totalorder %v9754_v16, %v16786_v36  ;;  %vm4575_vm13 = vcmp.eq.s32.totalorder %v9754_v16, %v4507_v1  ;;  %v3775_v28 = vsel %vm3711_vm8, 1.0, %v18189_v54  ;;  %v16904_v21 = vpop.permute.xlu1 %3360 }
 0x579   :  { %v3837_v39 = vadd.f32 %v3773_v23, %v3549_v60  ;;  %v3838_v48 = vadd.f32 %v3774_v41, %v3550_v45  ;;  %v5939_v58 = vadd.f32 %v5938_v25, %v15881_v14  ;;  %vm1412_vm4 = vcmp.eq.s32.totalorder %v9739_v12, %v18874_v40 }
 0x57a   :  { %vm1414_vm11 = vcmp.eq.s32.totalorder %v9739_v12, %v18875_v13  ;;  %v4062_v30 = vsel %vm3998_vm1, 1.0, %v18189_v54  ;;  %vm4286_vm14 = vcmp.eq.s32.totalorder %v9739_v12, %v4219_v42  ;;  %vm4287_vm0 = vcmp.eq.s32.totalorder %v9754_v16, %v4219_v42 }
 0x57b   :  { %v5941_v36 = vadd.f32 %v5940_v52, %v15907_v22  ;;  %v4063_v57 = vsel %vm3999_vm9, 1.0, %v18189_v54  ;;  %vm4284_vm3 = vcmp.eq.s32.totalorder %v9739_v12, %v4216_v5  ;;  %v6298_v14 = vadd.f32 %v15221_v2, %v5939_v58 }
 0x57c   :  { %v5943_v24 = vadd.f32 %v5942_v51, %v15921_v53  ;;  %v3839_v7 = vadd.f32 %v3775_v28, %v3551_v31  ;;  %vm4285_vm2 = vcmp.eq.s32.totalorder %v9754_v16, %v4216_v5  ;;  %v5945_v43 = vadd.f32 %v5944_v33, %v15933_v47 }
 0x57d   :  { %v6299_v61 = vadd.f32 %v15239_v38, %v5941_v36  ;;  %v4124_v22 = vadd.f32 %v4060_v11, %v3836_v56  ;;  %v4350_v32 = vsel %vm4286_vm14, 1.0, %v18189_v54  ;;  %v4351_v6 = vsel %vm4287_vm0, 1.0, %v18189_v54 }
 0x57e   :  { %v6302_v55 = vadd.f32 %v15221_v2, %v5943_v24  ;;  %v4126_v23 = vadd.f32 %v4062_v30, %v3838_v48  ;;  %v4127_v41 = vadd.f32 %v4063_v57, %v3839_v7  ;;  %v4348_v53 = vsel %vm4284_vm3, 1.0, %v18189_v54  ;;  %v4504_v48 = vpop.permute.xlu1 %4503  ;;  %v18876_v7 = vld [vmem:[#allocation174_spill] sm:$0xff] }
 0x57f   :  { %v6303_v29 = vadd.f32 %v15239_v38, %v5945_v43  ;;  %v4125_v5 = vadd.f32 %v4061_v10, %v3837_v39  ;;  %v4349_v45 = vsel %vm4285_vm2, 1.0, %v18189_v54  ;;  %v6426_v60 = vmax.f32 %v6298_v14, 0.0 }
 0x580   :  { %v6430_v47 = vmax.f32 %v6302_v55, 0.0  ;;  %v4414_v42 = vadd.f32 %v4350_v32, %v4126_v23  ;;  %v4415_v8 = vadd.f32 %v4351_v6, %v4127_v41  ;;  %v6427_v11 = vmax.f32 %v6299_v61, 0.0  ;;  %v18877_v61 = vld [vmem:[#allocation179_spill] sm:$0xff]  ;;  %v18878_v41 = vld [vmem:[#allocation181_spill] sm:$0xff] }
 0x581   :  { %v6431_v31 = vmax.f32 %v6303_v29, 0.0  ;;  %v4412_v56 = vadd.f32 %v4348_v53, %v4124_v22  ;;  %v4638_v25 = vsel %vm4574_vm10, 1.0, %v18189_v54  ;;  %v4639_v28 = vsel %vm4575_vm13, 1.0, %v18189_v54 }
 0x582   :  { %v6526_v58 = vpack.c.bf16 %v6430_v47, %v6426_v60  ;;  %v4413_v10 = vadd.f32 %v4349_v45, %v4125_v5  ;;  %vm4572_vm12 = vcmp.eq.s32.totalorder %v9739_v12, %v4504_v48  ;;  %vm4573_vm5 = vcmp.eq.s32.totalorder %v9754_v16, %v4504_v48  ;;  %v18880_v47 = vld [vmem:[#allocation204_spill] sm:$0xff] }
 0x583   :  { %v6527_v39 = vpack.c.bf16 %v6431_v31, %v6427_v11  ;;  %vm1413_vm7 = vcmp.eq.s32.totalorder %v9754_v16, %v18874_v40  ;;  %vm1415_vm15 = vcmp.eq.s32.totalorder %v9754_v16, %v18875_v13  ;;  %v4636_v52 = vsel %vm4572_vm12, 1.0, %v18189_v54  ;;  %v18879_v13 = vld [vmem:[#allocation202_spill] sm:$0xff]  ;;  %v16987_v11 = vpop.f32.mrb[44].mxu0 }
 0x584   :  { %v4637_v30 = vsel %vm4573_vm5, 1.0, %v18189_v54  ;;  %v4702_v1 = vadd.f32 %v4638_v25, %v4414_v42  ;;  %v4703_v36 = vadd.f32 %v4639_v28, %v4415_v8  ;;  %v4700_v51 = vadd.f32 %v4636_v52, %v4412_v56  ;;  %v18882_v25 = vld [vmem:[#allocation26_spill] sm:$0xff]  ;;  %v18883_v52 = vld [vmem:[#allocation53_spill] sm:$0xff] }
 0x585   :  { %v4701_v57 = vadd.f32 %v4637_v30, %v4413_v10  ;;  %7060 = vmatprep.mubr.bf16.mxu0 %v6527_v39  ;;  %v1536_v14 = vadd.f32 %v16853_v0, %v16812_v18  ;;  %v1476_v24 = vsel %vm1412_vm4, 1.0, %v18189_v54  ;;  %v1478_v33 = vsel %vm1414_vm11, 1.0, %v18189_v54  ;;  %v16942_v18 = vpop.permute.xlu1 %3645  ;;  %v17002_v30 = vpop.permute.xlu0 %4509 }
 0x586   :  { %vm1702_vm6 = vcmp.eq.s32.totalorder %v9739_v12, %v18876_v7  ;;  %7061 = vmatmul.mubr.bf16.gmra.mrb[92].mxu0 %v6526_v58  ;;  %vm1703_vm8 = vcmp.eq.s32.totalorder %v9754_v16, %v18876_v7  ;;  %vm1696_vm1 = vcmp.eq.s32.totalorder %v9739_v12, %v18877_v61  ;;  %v16946_v43 = vpack.c.bf16 %v4702_v1, %v4700_v51  ;;  %v18885_v7 = vld [vmem:[#allocation82_spill] sm:$0xff] }
 0x587   :  { %v16944_v0 = vpack.c.bf16 %v4703_v36, %v4701_v57  ;;  %v1537_v22 = vadd.f32 %v16863_v3, %v16815_v19  ;;  %v1477_v32 = vsel %vm1413_vm7, 1.0, %v18189_v54  ;;  %v1479_v6 = vsel %vm1415_vm15, 1.0, %v18189_v54 }
 0x588   :  { %vm1697_vm10 = vcmp.eq.s32.totalorder %v9754_v16, %v18877_v61  ;;  %v1540_v55 = vadd.f32 %v1476_v24, %v16819_v50  ;;  %v1766_v23 = vsel %vm1702_vm6, 1.0, %v18189_v54  ;;  %vm1700_vm9 = vcmp.eq.s32.totalorder %v9739_v12, %v18878_v41  ;;  %v18884_v24 = vld [vmem:[#allocation236_spill] sm:$0xff] }
 0x589   :  { %vm1701_vm13 = vcmp.eq.s32.totalorder %v9754_v16, %v18878_v41  ;;  %5996 = vmatprep.mubr.bf16.mxu1 %v16944_v0  ;;  %v1542_v19 = vadd.f32 %v1478_v33, %v16755_v17  ;;  %v1767_v3 = vsel %vm1703_vm8, 1.0, %v18189_v54  ;;  %v1760_v40 = vsel %vm1696_vm1, 1.0, %v18189_v54  ;;  %v16978_v5 = vpop.permute.xlu1 %3648 }
 0x58a   :  { %vm1984_vm4 = vcmp.eq.s32.totalorder %v9739_v12, %v18879_v13  ;;  %5997 = vmatmul.mubr.bf16.gmra.mrb[116].mxu1 %v16946_v43  ;;  %v1541_v50 = vadd.f32 %v1477_v32, %v16821_v35  ;;  %v1543_v53 = vadd.f32 %v1479_v6, %v16805_v63  ;;  %v1761_v29 = vsel %vm1697_vm10, 1.0, %v18189_v54  ;;  %v18881_v63 = vld [vmem:[#allocation215_spill] sm:$0xff] }
 0x58b   :  { %vm1985_vm11 = vcmp.eq.s32.totalorder %v9754_v16, %v18879_v13  ;;  %v1830_v17 = vadd.f32 %v1766_v23, %v1542_v19  ;;  %v1764_v45 = vsel %vm1700_vm9, 1.0, %v18189_v54  ;;  %v1765_v60 = vsel %vm1701_vm13, 1.0, %v18189_v54 }
 0x58c   :  { %vm1988_vm14 = vcmp.eq.s32.totalorder %v9739_v12, %v18880_v47  ;;  %v1831_v42 = vadd.f32 %v1767_v3, %v1543_v53  ;;  %v1824_v8 = vadd.f32 %v1760_v40, %v1536_v14  ;;  %v2048_v35 = vsel %vm1984_vm4, 1.0, %v18189_v54  ;;  %v18886_v40 = vld [vmem:[#allocation29_spill] sm:$0xff]  ;;  %v17035_v53 = vpop.permute.xlu0 %3654 }
 0x58d   :  { %vm1990_vm0 = vcmp.eq.s32.totalorder %v9739_v12, %v18881_v63  ;;  %v1825_v31 = vadd.f32 %v1761_v29, %v1537_v22  ;;  %v2049_v56 = vsel %vm1985_vm11, 1.0, %v18189_v54  ;;  %vm1989_vm3 = vcmp.eq.s32.totalorder %v9754_v16, %v18880_v47  ;;  %v17004_v1 = vpop.permute.xlu1 %3933  ;;  %v17037_v29 = vpop.f32.mrb[45].mxu0 }
 0x58e   :  { %vm2272_vm2 = vcmp.eq.s32.totalorder %v9739_v12, %v18882_v25  ;;  %v1828_v28 = vadd.f32 %v1764_v45, %v1540_v55  ;;  %v1829_v48 = vadd.f32 %v1765_v60, %v1541_v50  ;;  %v2052_v58 = vsel %vm1988_vm14, 1.0, %v18189_v54 }
 0x58f   :  { %vm2273_vm12 = vcmp.eq.s32.totalorder %v9754_v16, %v18882_v25  ;;  %v2112_v10 = vadd.f32 %v2048_v35, %v1824_v8  ;;  %vm1991_vm5 = vcmp.eq.s32.totalorder %v9754_v16, %v18881_v63  ;;  %v2054_v39 = vsel %vm1990_vm0, 1.0, %v18189_v54  ;;  %v17040_v8 = vpop.f32.mrb[46].mxu0 }
 0x590   :  { %vm2560_vm7 = vcmp.eq.s32.totalorder %v9739_v12, %v18883_v52  ;;  %v2113_v36 = vadd.f32 %v2049_v56, %v1825_v31  ;;  %v2053_v51 = vsel %vm1989_vm3, 1.0, %v18189_v54  ;;  %v2336_v57 = vsel %vm2272_vm2, 1.0, %v18189_v54  ;;  %v17049_v56 = vpop.f32.mrb[47].mxu0 }
 0x591   :  { %vm2561_vm15 = vcmp.eq.s32.totalorder %v9754_v16, %v18883_v52  ;;  %v2116_v14 = vadd.f32 %v2052_v58, %v1828_v28  ;;  %vm2278_vm6 = vcmp.eq.s32.totalorder %v9739_v12, %v18884_v24  ;;  %v2337_v33 = vsel %vm2273_vm12, 1.0, %v18189_v54  ;;  %v17024_v23 = vpop.permute.xlu1 %3936 }
 0x592   :  { %vm2848_vm8 = vcmp.eq.s32.totalorder %v9739_v12, %v18885_v7  ;;  %v2055_v61 = vsel %vm1991_vm5, 1.0, %v18189_v54  ;;  %v2118_v22 = vadd.f32 %v2054_v39, %v1830_v17  ;;  %v2624_v32 = vsel %vm2560_vm7, 1.0, %v18189_v54  ;;  %v18888_v39 = vld [vmem:[#allocation54_spill] sm:$0xff] }
 0x593   :  { %vm2849_vm1 = vcmp.eq.s32.totalorder %v9754_v16, %v18885_v7  ;;  %vm2279_vm10 = vcmp.eq.s32.totalorder %v9754_v16, %v18884_v24  ;;  %v2400_v6 = vadd.f32 %v2336_v57, %v2112_v10  ;;  %v2625_v55 = vsel %vm2561_vm15, 1.0, %v18189_v54 }
 0x594   :  { %vm3136_vm9 = vcmp.eq.s32.totalorder %v9739_v12, %v16817_v27  ;;  %v2342_v41 = vsel %vm2278_vm6, 1.0, %v18189_v54  ;;  %v2401_v19 = vadd.f32 %v2337_v33, %v2113_v36  ;;  %v2912_v3 = vsel %vm2848_vm8, 1.0, %v18189_v54 }
 0x595   :  { %vm3137_vm13 = vcmp.eq.s32.totalorder %v9754_v16, %v16817_v27  ;;  %vm2276_vm4 = vcmp.eq.s32.totalorder %v9739_v12, %v18886_v40  ;;  %vm2277_vm11 = vcmp.eq.s32.totalorder %v9754_v16, %v18886_v40  ;;  %v2688_v13 = vadd.f32 %v2624_v32, %v2400_v6  ;;  %v17061_v58 = vpop.permute.xlu1 %3078 }
 0x596   :  { %v2913_v50 = vsel %vm2849_vm1, 1.0, %v18189_v54  ;;  %v2117_v17 = vadd.f32 %v2053_v51, %v1829_v48  ;;  %v2119_v45 = vadd.f32 %v2055_v61, %v1831_v42  ;;  %v2689_v60 = vadd.f32 %v2625_v55, %v2401_v19  ;;  %v18887_v48 = vld [vmem:[#allocation33_spill] sm:$0xff] }
 0x597   :  { %v3200_v47 = vsel %vm3136_vm9, 1.0, %v18189_v54  ;;  %v2343_v27 = vsel %vm2279_vm10, 1.0, %v18189_v54  ;;  %v17046_v35 = vadd.f32 %v2342_v41, %v2118_v22  ;;  %v2976_v63 = vadd.f32 %v2912_v3, %v2688_v13  ;;  %v18889_v3 = vld [vmem:[#allocation15_spill] sm:$0xff] }
 0x598   :  { %v3201_v31 = vsel %vm3137_vm13, 1.0, %v18189_v54  ;;  %v2340_v42 = vsel %vm2276_vm4, 1.0, %v18189_v54  ;;  %v2341_v25 = vsel %vm2277_vm11, 1.0, %v18189_v54  ;;  %v2977_v28 = vadd.f32 %v2913_v50, %v2689_v60  ;;  %v18890_v13 = vld [vmem:[#allocation127_spill] sm:$0xff] }
 0x599   :  { %vm3424_vm14 = vcmp.eq.s32.totalorder %v9739_v12, %v18887_v48  ;;  %v3264_v10 = vadd.f32 %v3200_v47, %v2976_v63  ;;  %vm3426_vm0 = vcmp.eq.s32.totalorder %v9739_v12, %v16904_v21  ;;  %vm3427_vm3 = vcmp.eq.s32.totalorder %v9754_v16, %v16904_v21  ;;  %v17083_v21 = vpop.permute.xlu0 %4224 }
 0x59a   :  { %vm3712_vm2 = vcmp.eq.s32.totalorder %v9739_v12, %v16942_v18  ;;  %vm2564_vm12 = vcmp.eq.s32.totalorder %v9739_v12, %v18888_v39  ;;  %vm2565_vm5 = vcmp.eq.s32.totalorder %v9754_v16, %v18888_v39  ;;  %vm3425_vm7 = vcmp.eq.s32.totalorder %v9754_v16, %v18887_v48  ;;  %v4222_v55 = vpop.permute.xlu1 %4221  ;;  %v5948_v19 = vpop.f32.mrb[96].mxu1  ;;  %v18894_v39 = vld [vmem:[#allocation183_spill] sm:$0xff] }
 0x59b   :  { %v3265_v52 = vadd.f32 %v3201_v31, %v2977_v28  ;;  %v17075_v36 = vadd.f32 %v2343_v27, %v2119_v45  ;;  %v17077_v51 = vadd.f32 %v2340_v42, %v2116_v14  ;;  %v17079_v57 = vadd.f32 %v2341_v25, %v2117_v17  ;;  %v18891_v45 = vld [vmem:[#allocation182_spill] sm:$0xff]  ;;  %v5950_v47 = vpop.f32.mrb[97].mxu1  ;;  %v18892_v27 = vld [vmem:[#allocation23_spill] sm:$0xff]  ;;  %v18893_v28 = vld [vmem:[#allocation25_spill] sm:$0xff] }
 0x59c   :  { %vm3713_vm15 = vcmp.eq.s32.totalorder %v9754_v16, %v16942_v18  ;;  %v3488_v24 = vsel %vm3424_vm14, 1.0, %v18189_v54  ;;  %v3490_v33 = vsel %vm3426_vm0, 1.0, %v18189_v54  ;;  %v3491_v7 = vsel %vm3427_vm3, 1.0, %v18189_v54  ;;  %v5952_v31 = vpop.f32.mrb[98].mxu1 }
 0x59d   :  { %v3776_v61 = vsel %vm3712_vm2, 1.0, %v18189_v54  ;;  %v2628_v22 = vsel %vm2564_vm12, 1.0, %v18189_v54  ;;  %v2629_v14 = vsel %vm2565_vm5, 1.0, %v18189_v54  ;;  %v3489_v32 = vsel %vm3425_vm7, 1.0, %v18189_v54 }
 0x59e   :  { %v3552_v6 = vadd.f32 %v3488_v24, %v3264_v10  ;;  %v3553_v41 = vadd.f32 %v3489_v32, %v3265_v52  ;;  %v3777_v18 = vsel %vm3713_vm15, 1.0, %v18189_v54  ;;  %vm4290_vm6 = vcmp.eq.s32.totalorder %v9739_v12, %v17083_v21  ;;  %v5954_v10 = vpop.f32.mrb[99].mxu1 }
 0x59f   :  { %vm4291_vm8 = vcmp.eq.s32.totalorder %v9754_v16, %v17083_v21  ;;  %v3554_v40 = vadd.f32 %v3490_v33, %v18889_v3  ;;  %v3555_v50 = vadd.f32 %v3491_v7, %v18890_v13  ;;  %v5949_v60 = vadd.f32 %v5948_v19, %v18891_v45  ;;  %v17117_v24 = vpop.permute.xlu1 %3363 }
 0x5a0   :  { %v3840_v17 = vadd.f32 %v3776_v61, %v3552_v6  ;;  %vm3714_vm1 = vcmp.eq.s32.totalorder %v9739_v12, %v16978_v5  ;;  %vm3715_vm10 = vcmp.eq.s32.totalorder %v9754_v16, %v16978_v5  ;;  %vm4000_vm9 = vcmp.eq.s32.totalorder %v9739_v12, %v17004_v1 }
 0x5a1   :  { %v5951_v63 = vadd.f32 %v5950_v47, %v18892_v27  ;;  %v3841_v42 = vadd.f32 %v3777_v18, %v3553_v41  ;;  %vm4001_vm13 = vcmp.eq.s32.totalorder %v9754_v16, %v17004_v1  ;;  %v6306_v25 = vadd.f32 %v15221_v2, %v5949_v60 }
 0x5a2   :  { %v5953_v48 = vadd.f32 %v5952_v31, %v18893_v28  ;;  %vm4002_vm4 = vcmp.eq.s32.totalorder %v9739_v12, %v17024_v23  ;;  %vm4003_vm11 = vcmp.eq.s32.totalorder %v9754_v16, %v17024_v23  ;;  %v5955_v52 = vadd.f32 %v5954_v10, %v18894_v39 }
 0x5a3   :  { %v6307_v5 = vadd.f32 %v15239_v38, %v5951_v63  ;;  %v3778_v33 = vsel %vm3714_vm1, 1.0, %v18189_v54  ;;  %v3779_v1 = vsel %vm3715_vm10, 1.0, %v18189_v54  ;;  %v4064_v7 = vsel %vm4000_vm9, 1.0, %v18189_v54  ;;  %v17129_v47 = vpop.permute.xlu1 %3366 }
 0x5a4   :  { %v6310_v61 = vadd.f32 %v15221_v2, %v5953_v48  ;;  %v4065_v32 = vsel %vm4001_vm13, 1.0, %v18189_v54  ;;  %vm4288_vm14 = vcmp.eq.s32.totalorder %v9739_v12, %v4222_v55  ;;  %vm4289_vm0 = vcmp.eq.s32.totalorder %v9754_v16, %v4222_v55 }
 0x5a5   :  { %v6311_v23 = vadd.f32 %v15239_v38, %v5955_v52  ;;  %v4066_v6 = vsel %vm4002_vm4, 1.0, %v18189_v54  ;;  %v4067_v41 = vsel %vm4003_vm11, 1.0, %v18189_v54  ;;  %v6434_v18 = vmax.f32 %v6306_v25, 0.0 }
 0x5a6   :  { %v6438_v19 = vmax.f32 %v6310_v61, 0.0  ;;  %v3842_v3 = vadd.f32 %v3778_v33, %v3554_v40  ;;  %v3843_v13 = vadd.f32 %v3779_v1, %v3555_v50  ;;  %v6435_v45 = vmax.f32 %v6307_v5, 0.0  ;;  %v8282_v5 = vld [vmem:[#allocation7 + $0x100] ss:$8 sps:$4 sm:$0xff]   ;;  %v8284_v33 = vld [vmem:[#allocation7 + $0x104] ss:$8 sps:$4 sm:$0xff]  }
 0x5a7   :  { %v6439_v60 = vmax.f32 %v6311_v23, 0.0  ;;  %v4128_v27 = vadd.f32 %v4064_v7, %v3840_v17  ;;  %v4352_v63 = vsel %vm4288_vm14, 1.0, %v18189_v54  ;;  %v4353_v31 = vsel %vm4289_vm0, 1.0, %v18189_v54  ;;  %7151 = vmatprep.subr.bf16.mxu0 %v8284_v33 }
 0x5a8   :  { %v6530_v55 = vpack.c.bf16 %v6438_v19, %v6434_v18  ;;  %v4129_v28 = vadd.f32 %v4065_v32, %v3841_v42  ;;  %v4130_v48 = vadd.f32 %v4066_v6, %v3842_v3  ;;  %v4131_v10 = vadd.f32 %v4067_v41, %v3843_v13  ;;  %v4513_v21 = vpop.permute.xlu1 %4512  ;;  %v18897_v3 = vld [vmem:[#allocation46_spill] sm:$0xff]  ;;  %7152 = vmatpush1.bf16.msra.mxu0 %v8282_v5  ;;  %v4228_v5 = vpop.permute.xlu0 %4227 }
 0x5a9   :  { %v6531_v39 = vpack.c.bf16 %v6439_v60, %v6435_v45  ;;  %v2692_v52 = vadd.f32 %v2628_v22, %v17077_v51  ;;  %v2693_v25 = vadd.f32 %v2629_v14, %v17079_v57  ;;  %v4354_v40 = vsel %vm4290_vm6, 1.0, %v18189_v54  ;;  %v18895_v57 = vld [vmem:[#allocation39_spill] sm:$0xff]  ;;  %v18896_v22 = vld [vmem:[#allocation126_spill] sm:$0xff] }
 0x5aa   :  { %v4355_v50 = vsel %vm4291_vm8, 1.0, %v18189_v54  ;;  %vm4576_vm3 = vcmp.eq.s32.totalorder %v9739_v12, %v17002_v30  ;;  %vm4577_vm2 = vcmp.eq.s32.totalorder %v9754_v16, %v17002_v30  ;;  %v4416_v17 = vadd.f32 %v4352_v63, %v4128_v27  ;;  %v18898_v45 = vld [vmem:[#allocation159_spill] sm:$0xff] }
 0x5ab   :  { %v4417_v51 = vadd.f32 %v4353_v31, %v4129_v28  ;;  %7070 = vmatprep.mubr.bf16.mxu0 %v6531_v39  ;;  %vm2566_vm12 = vcmp.eq.s32.totalorder %v9739_v12, %v18895_v57  ;;  %vm2567_vm5 = vcmp.eq.s32.totalorder %v9754_v16, %v18895_v57  ;;  %vm2852_vm7 = vcmp.eq.s32.totalorder %v9739_v12, %v18896_v22 }
 0x5ac   :  { %vm2853_vm15 = vcmp.eq.s32.totalorder %v9754_v16, %v18896_v22  ;;  %7071 = vmatmul.mubr.bf16.gmra.mrb[96].mxu0 %v6530_v55  ;;  %v4418_v14 = vadd.f32 %v4354_v40, %v4130_v48  ;;  %v4419_v42 = vadd.f32 %v4355_v50, %v4131_v10  ;;  %vm4578_vm6 = vcmp.eq.s32.totalorder %v9739_v12, %v4513_v21 }
 0x5ad   :  { %vm4579_vm8 = vcmp.eq.s32.totalorder %v9754_v16, %v4513_v21  ;;  %v4640_v1 = vsel %vm4576_vm3, 1.0, %v18189_v54  ;;  %v4641_v7 = vsel %vm4577_vm2, 1.0, %v18189_v54  ;;  %v4642_v61 = vsel %vm4578_vm6, 1.0, %v18189_v54  ;;  %v3652_v60 = vpop.permute.xlu1 %3651 }
 0x5ae   :  { %v4643_v32 = vsel %vm4579_vm8, 1.0, %v18189_v54  ;;  %v4704_v23 = vadd.f32 %v4640_v1, %v4416_v17  ;;  %v4705_v6 = vadd.f32 %v4641_v7, %v4417_v51  ;;  %v4706_v41 = vadd.f32 %v4642_v61, %v4418_v14  ;;  %v17213_v17 = vpop.f32.mrb[48].mxu0 }
 0x5af   :  { %v4707_v18 = vadd.f32 %v4643_v32, %v4419_v42  ;;  %v2630_v19 = vsel %vm2566_vm12, 1.0, %v18189_v54  ;;  %v2631_v30 = vsel %vm2567_vm5, 1.0, %v18189_v54  ;;  %vm2854_vm1 = vcmp.eq.s32.totalorder %v9739_v12, %v18897_v3 }
 0x5b0   :  { %vm2855_vm10 = vcmp.eq.s32.totalorder %v9754_v16, %v18897_v3  ;;  %v2916_v13 = vsel %vm2852_vm7, 1.0, %v18189_v54  ;;  %vm3140_vm9 = vcmp.eq.s32.totalorder %v9739_v12, %v18898_v45  ;;  %v17187_v63 = vpack.c.bf16 %v4706_v41, %v4704_v23 }
 0x5b1   :  { %v17185_v27 = vpack.c.bf16 %v4707_v18, %v4705_v6  ;;  %v2917_v31 = vsel %vm2853_vm15, 1.0, %v18189_v54  ;;  %vm3141_vm13 = vcmp.eq.s32.totalorder %v9754_v16, %v18898_v45  ;;  %vm3142_vm4 = vcmp.eq.s32.totalorder %v9739_v12, %v17061_v58  ;;  %v4519_v18 = vpop.permute.xlu0 %4518 }
 0x5b2   :  { %vm3143_vm11 = vcmp.eq.s32.totalorder %v9754_v16, %v17061_v58  ;;  %v2694_v55 = vadd.f32 %v2630_v19, %v17046_v35  ;;  %v2695_v28 = vadd.f32 %v2631_v30, %v17075_v36  ;;  %v2918_v48 = vsel %vm2854_vm1, 1.0, %v18189_v54  ;;  %v17238_v19 = vpop.f32.mrb[49].mxu0 }
 0x5b3   :  { %v2919_v10 = vsel %vm2855_vm10, 1.0, %v18189_v54  ;;  %6006 = vmatprep.mubr.bf16.mxu1 %v17185_v27  ;;  %v2980_v39 = vadd.f32 %v2916_v13, %v2692_v52  ;;  %v3204_v40 = vsel %vm3140_vm9, 1.0, %v18189_v54  ;;  %vm3430_vm14 = vcmp.eq.s32.totalorder %v9739_v12, %v17129_v47  ;;  %v17243_v45 = vpop.f32.mrb[50].mxu0 }
 0x5b4   :  { %vm3431_vm0 = vcmp.eq.s32.totalorder %v9754_v16, %v17129_v47  ;;  %6007 = vmatmul.mubr.bf16.gmra.mrb[120].mxu1 %v17187_v63  ;;  %v2981_v35 = vadd.f32 %v2917_v31, %v2693_v25  ;;  %v3205_v58 = vsel %vm3141_vm13, 1.0, %v18189_v54  ;;  %v3206_v36 = vsel %vm3142_vm4, 1.0, %v18189_v54  ;;  %v3940_v47 = vpop.permute.xlu1 %3939 }
 0x5b5   :  { %v3207_v50 = vsel %vm3143_vm11, 1.0, %v18189_v54  ;;  %v2982_v52 = vadd.f32 %v2918_v48, %v2694_v55  ;;  %v2983_v51 = vadd.f32 %v2919_v10, %v2695_v28  ;;  %vm3718_vm3 = vcmp.eq.s32.totalorder %v9739_v12, %v17035_v53  ;;  %v17247_v48 = vpop.f32.mrb[51].mxu0 }
 0x5b6   :  { %vm3428_vm2 = vcmp.eq.s32.totalorder %v9739_v12, %v17117_v24  ;;  %v3268_v57 = vadd.f32 %v3204_v40, %v2980_v39  ;;  %vm3429_vm12 = vcmp.eq.s32.totalorder %v9754_v16, %v17117_v24  ;;  %v3494_v25 = vsel %vm3430_vm14, 1.0, %v18189_v54 }
 0x5b7   :  { %v3495_v22 = vsel %vm3431_vm0, 1.0, %v18189_v54  ;;  %v3269_v21 = vadd.f32 %v3205_v58, %v2981_v35  ;;  %v3270_v14 = vadd.f32 %v3206_v36, %v2982_v52  ;;  %v3271_v42 = vadd.f32 %v3207_v50, %v2983_v51  ;;  %v8285_v35 = vld [vmem:[#allocation7 + $0x110] ss:$8 sps:$4 sm:$0xff]   ;;  %v8287_v58 = vld [vmem:[#allocation7 + $0x114] ss:$8 sps:$4 sm:$0xff]  }
 0x5b8   :  { %vm3716_vm5 = vcmp.eq.s32.totalorder %v9739_v12, %v3652_v60  ;;  %vm3719_vm7 = vcmp.eq.s32.totalorder %v9754_v16, %v17035_v53  ;;  %v3782_v33 = vsel %vm3718_vm3, 1.0, %v18189_v54  ;;  %v3492_v1 = vsel %vm3428_vm2, 1.0, %v18189_v54  ;;  %v3943_v32 = vpop.permute.xlu1 %3942  ;;  %7153 = vmatprep.subr.bf16.mxu0 %v8287_v58 }
 0x5b9   :  { %vm3717_vm15 = vcmp.eq.s32.totalorder %v9754_v16, %v3652_v60  ;;  %v3493_v24 = vsel %vm3429_vm12, 1.0, %v18189_v54  ;;  %v3558_v7 = vadd.f32 %v3494_v25, %v3270_v14  ;;  %v3559_v61 = vadd.f32 %v3495_v22, %v3271_v42  ;;  %7154 = vmatpush1.bf16.msra.mxu0 %v8285_v35 }
 0x5ba   :  { %vm4004_vm6 = vcmp.eq.s32.totalorder %v9739_v12, %v3940_v47  ;;  %v3780_v23 = vsel %vm3716_vm5, 1.0, %v18189_v54  ;;  %vm4005_vm8 = vcmp.eq.s32.totalorder %v9754_v16, %v3940_v47  ;;  %vm4006_vm1 = vcmp.eq.s32.totalorder %v9739_v12, %v3943_v32 }
 0x5bb   :  { %vm4007_vm10 = vcmp.eq.s32.totalorder %v9754_v16, %v3943_v32  ;;  %v3783_v53 = vsel %vm3719_vm7, 1.0, %v18189_v54  ;;  %v3556_v6 = vadd.f32 %v3492_v1, %v3268_v57  ;;  %v3781_v41 = vsel %vm3717_vm15, 1.0, %v18189_v54  ;;  %v8290_v1 = vld [vmem:[#allocation7 + $0x124] ss:$8 sps:$4 sm:$0xff]  }
 0x5bc   :  { %vm4292_vm9 = vcmp.eq.s32.totalorder %v9739_v12, %v4228_v5  ;;  %v3557_v30 = vadd.f32 %v3493_v24, %v3269_v21  ;;  %v4068_v3 = vsel %vm4004_vm6, 1.0, %v18189_v54  ;;  %vm4293_vm13 = vcmp.eq.s32.totalorder %v9754_v16, %v4228_v5  ;;  %v4231_v40 = vpop.permute.xlu1 %4230  ;;  %7155 = vmatprep.subr.bf16.mxu0 %v8290_v1  ;;  %v18903_v1 = vld [vmem:[#allocation27_spill] sm:$0xff] }
 0x5bd   :  { %v4070_v13 = vsel %vm4006_vm1, 1.0, %v18189_v54  ;;  %v3844_v60 = vadd.f32 %v3780_v23, %v3556_v6  ;;  %v4069_v31 = vsel %vm4005_vm8, 1.0, %v18189_v54  ;;  %v3846_v55 = vadd.f32 %v3782_v33, %v3558_v7  ;;  %v8288_v33 = vld [vmem:[#allocation7 + $0x120] ss:$8 sps:$4 sm:$0xff]   ;;  %v8293_v23 = vld [vmem:[#allocation7 + $0x134] ss:$8 sps:$4 sm:$0xff]  }
 0x5be   :  { %v4071_v28 = vsel %vm4007_vm10, 1.0, %v18189_v54  ;;  %v3845_v10 = vadd.f32 %v3781_v41, %v3557_v30  ;;  %v3847_v39 = vadd.f32 %v3783_v53, %v3559_v61  ;;  %vm4582_vm4 = vcmp.eq.s32.totalorder %v9739_v12, %v4519_v18  ;;  %7156 = vmatpush1.bf16.msra.mxu0 %v8288_v33  ;;  %v18902_v33 = vld [vmem:[#allocation56_spill] sm:$0xff] }
 0x5bf   :  { %vm4583_vm11 = vcmp.eq.s32.totalorder %v9754_v16, %v4519_v18  ;;  %v4132_v36 = vadd.f32 %v4068_v3, %v3844_v60  ;;  %v4134_v50 = vadd.f32 %v4070_v13, %v3846_v55  ;;  %vm4294_vm14 = vcmp.eq.s32.totalorder %v9739_v12, %v4231_v40  ;;  %v8291_v18 = vld [vmem:[#allocation7 + $0x130] ss:$8 sps:$4 sm:$0xff]   ;;  %7157 = vmatprep.subr.bf16.mxu0 %v8293_v23  ;;  %v8300_v23 = vld [vmem:[#allocation7 + $0x160] ss:$8 sps:$4 sm:$0xff]  }
 0x5c0   :  { %vm4295_vm0 = vcmp.eq.s32.totalorder %v9754_v16, %v4231_v40  ;;  %v4133_v52 = vadd.f32 %v4069_v31, %v3845_v10  ;;  %v4135_v51 = vadd.f32 %v4071_v28, %v3847_v39  ;;  %v4358_v47 = vsel %vm4294_vm14, 1.0, %v18189_v54 }
 0x5c1   :  { %v4359_v57 = vsel %vm4295_vm0, 1.0, %v18189_v54  ;;  %v4356_v25 = vsel %vm4292_vm9, 1.0, %v18189_v54  ;;  %v4357_v22 = vsel %vm4293_vm13, 1.0, %v18189_v54  ;;  %v4422_v21 = vadd.f32 %v4358_v47, %v4134_v50  ;;  %v4516_v7 = vpop.permute.xlu1 %4515  ;;  %v5958_v5 = vpop.f32.mrb[100].mxu1  ;;  %v8296_v50 = vld [vmem:[#allocation7 + $0x144] ss:$8 sps:$4 sm:$0xff]  }
 0x5c2   :  { %v4423_v14 = vadd.f32 %v4359_v57, %v4135_v51  ;;  %v4646_v42 = vsel %vm4582_vm4, 1.0, %v18189_v54  ;;  %v4647_v24 = vsel %vm4583_vm11, 1.0, %v18189_v54  ;;  %v4420_v61 = vadd.f32 %v4356_v25, %v4132_v36  ;;  %v5960_v3 = vpop.f32.mrb[101].mxu1  ;;  %7158 = vmatpush1.bf16.msra.mxu0 %v8291_v18  ;;  %v18899_v47 = vld [vmem:[#allocation37_spill] sm:$0xff]  ;;  %v8299_v57 = vld [vmem:[#allocation7 + $0x154] ss:$8 sps:$4 sm:$0xff]  }
 0x5c3   :  { %v4421_v32 = vadd.f32 %v4357_v22, %v4133_v52  ;;  %vm4580_vm3 = vcmp.eq.s32.totalorder %v9739_v12, %v4516_v7  ;;  %vm4581_vm2 = vcmp.eq.s32.totalorder %v9754_v16, %v4516_v7  ;;  %v4710_v53 = vadd.f32 %v4646_v42, %v4422_v21  ;;  %v5962_v55 = vpop.f32.mrb[102].mxu1  ;;  %v17285_v52 = vpop.f32.mrb[52].mxu0  ;;  %7159 = vmatprep.subr.bf16.mxu0 %v8296_v50  ;;  %v8297_v21 = vld [vmem:[#allocation7 + $0x150] ss:$8 sps:$4 sm:$0xff]  }
 0x5c4   :  { %v4644_v6 = vsel %vm4580_vm3, 1.0, %v18189_v54  ;;  %v4645_v41 = vsel %vm4581_vm2, 1.0, %v18189_v54  ;;  %v5959_v30 = vadd.f32 %v5958_v5, %v16533_v46  ;;  %v4711_v13 = vadd.f32 %v4647_v24, %v4423_v14  ;;  %v5964_v10 = vpop.f32.mrb[103].mxu1  ;;  %v18900_v14 = vld [vmem:[#allocation144_spill] sm:$0xff]  ;;  %v18901_v42 = vld [vmem:[#allocation14_spill] sm:$0xff]  ;;  %v17292_v24 = vpop.f32.mrb[53].mxu0 }
 0x5c5   :  { %v4708_v60 = vadd.f32 %v4644_v6, %v4420_v61  ;;  %v4709_v31 = vadd.f32 %v4645_v41, %v4421_v32  ;;  %v5961_v12 = vadd.f32 %v5960_v3, %v16558_v26  ;;  %v5963_v28 = vadd.f32 %v5962_v55, %v16566_v9  ;;  %v8294_v9 = vld [vmem:[#allocation7 + $0x140] ss:$8 sps:$4 sm:$0xff]   ;;  %v17294_v7 = vpop.f32.mrb[54].mxu0  ;;  %v18904_v61 = vld [vmem:[#allocation70_spill] sm:$0xff]  ;;  %v8308_v3 = vld [vmem:[#allocation7 + $0x184] ss:$8 sps:$4 sm:$0xff]  }
 0x5c6   :  { %v6314_v16 = vadd.f32 %v15221_v2, %v5959_v30  ;;  %v5965_v54 = vadd.f32 %v5964_v10, %v16576_v44  ;;  %7160 = vmatpush1.bf16.msra.mxu0 %v8294_v9  ;;  %v17297_v32 = vpop.f32.mrb[55].mxu0  ;;  %v18905_v5 = vld [vmem:[#allocation88_spill] sm:$0xff]  ;;  %v8303_v6 = vld [vmem:[#allocation7 + $0x170] ss:$8 sps:$4 sm:$0xff]   ;;  %v8305_v41 = vld [vmem:[#allocation7 + $0x174] ss:$8 sps:$4 sm:$0xff]  }
 0x5c7   :  { %v6315_v39 = vadd.f32 %v15239_v38, %v5961_v12  ;;  %v17277_v46 = vpack.c.bf16 %v4711_v13, %v4709_v31  ;;  %v17279_v40 = vpack.c.bf16 %v4710_v53, %v4708_v60  ;;  %v6318_v35 = vadd.f32 %v15221_v2, %v5963_v28  ;;  %7161 = vmatprep.subr.bf16.mxu0 %v8299_v57  ;;  %v8302_v53 = vld [vmem:[#allocation7 + $0x164] ss:$8 sps:$4 sm:$0xff]   ;;  %v17300_v18 = vpop.f32.mrb[56].mxu0  ;;  %v18906_v31 = vld [vmem:[#allocation143_spill] sm:$0xff]  ;;  %v8306_v28 = vld [vmem:[#allocation7 + $0x180] ss:$8 sps:$4 sm:$0xff]  }
 0x5c8   :  { %v6442_v58 = vmax.f32 %v6314_v16, 0.0  ;;  %v6319_v26 = vadd.f32 %v15239_v38, %v5965_v54  ;;  %v18907_v16 = vld [vmem:[#allocation35_spill] sm:$0xff] }
 0x5c9   :  { %6016 = vmatprep.mubr.bf16.mxu1 %v17277_v46  ;;  %v6446_v36 = vmax.f32 %v6318_v35, 0.0  ;;  %v6443_v44 = vmax.f32 %v6315_v39, 0.0  ;;  %v8311_v35 = vld [vmem:[#allocation7 + $0x194] ss:$8 sps:$4 sm:$0xff]  }
 0x5ca   :  { %6017 = vmatmul.mubr.bf16.gmra.mrb[124].mxu1 %v17279_v40  ;;  %v6447_v51 = vmax.f32 %v6319_v26, 0.0  ;;  %7162 = vmatpush1.bf16.msra.mxu0 %v8297_v21  ;;  %v18910_v21 = vld [vmem:[#allocation225_spill] sm:$0xff] }
 0x5cb   :  { %6059 = vmatprep.mubr.bf16.mxu1 %v18899_v47  ;;  %v6534_v25 = vpack.c.bf16 %v6446_v36, %v6442_v58  ;;  %7163 = vmatprep.subr.bf16.mxu0 %v8302_v53  ;;  %v8309_v36 = vld [vmem:[#allocation7 + $0x190] ss:$8 sps:$4 sm:$0xff]  }
 0x5cc   :  { %v6535_v22 = vpack.c.bf16 %v6447_v51, %v6443_v44  ;;  %v8314_v44 = vld [vmem:[#allocation7 + $0x1a4] ss:$8 sps:$4 sm:$0xff]  }
 0x5ce   :  { %7080 = vmatprep.mubr.bf16.mxu0 %v6535_v22  ;;  %7164 = vmatpush1.bf16.msra.mxu0 %v8300_v23 }
 0x5cf   :  { %7081 = vmatmul.mubr.bf16.gmra.mrb[100].mxu0 %v6534_v25  ;;  %7165 = vmatprep.subr.bf16.mxu0 %v8305_v41  ;;  %v18909_v25 = vld [vmem:[#allocation31_spill] sm:$0xff] }
 0x5d0   :  { %v8317_v41 = vld [vmem:[#allocation7 + $0x1b4] ss:$8 sps:$4 sm:$0xff]  }
 0x5d2   :  { %6060 = vmatmul.mubr.bf16.vlgmr.msra.gmra.mrb[0].mxu1 %v18900_v14  ;;  %7166 = vmatpush1.bf16.msra.mxu0 %v8303_v6  ;;  %v18911_v14 = vld [vmem:[#allocation228_spill] sm:$0xff]  ;;  %v8315_v6 = vld [vmem:[#allocation7 + $0x1b0] ss:$8 sps:$4 sm:$0xff]  }
 0x5d3   :  { %6069 = vmatprep.mubr.bf16.mxu1 %v18901_v42  ;;  %7167 = vmatprep.subr.bf16.mxu0 %v8308_v3  ;;  %v18912_v42 = vld [vmem:[#allocation172_spill] sm:$0xff] }
 0x5d6   :  { %7168 = vmatpush1.bf16.msra.mxu0 %v8306_v28 }
 0x5d7   :  { %7169 = vmatprep.subr.bf16.mxu0 %v8311_v35 }
 0x5da   :  { %6070 = vmatmul.mubr.bf16.gmra.mrb[4].mxu1 %v18902_v33  ;;  %7170 = vmatpush1.bf16.msra.mxu0 %v8309_v36  ;;  %v18913_v33 = vld [vmem:[#allocation212_spill] sm:$0xff] }
 0x5db   :  { %6079 = vmatprep.mubr.bf16.mxu1 %v18903_v1  ;;  %7171 = vmatprep.subr.bf16.mxu0 %v8314_v44  ;;  %v18914_v1 = vld [vmem:[#allocation153_spill] sm:$0xff] }
 0x5e2   :  { %6080 = vmatmul.mubr.bf16.gmra.mrb[8].mxu1 %v18904_v61  ;;  %v17319_v61 = vpop.f32.mrb[57].mxu0 }
 0x5e3   :  { %6089 = vmatprep.mubr.bf16.mxu1 %v18905_v5  ;;  %v18915_v5 = vld [vmem:[#allocation230_spill] sm:$0xff]  ;;  %v17322_v23 = vpop.f32.mrb[58].mxu0 }
 0x5e4   :  { %v17324_v53 = vpop.f32.mrb[59].mxu0 }
 0x5e5   :  { %v17331_v35 = vpop.f32.mrb[60].mxu0 }
 0x5e8   :  { %v5968_v30 = vpop.f32.mrb[104].mxu1 }
 0x5e9   :  { %v5969_v13 = vadd.f32 %v5968_v30, %v16753_v4  ;;  %v5970_v60 = vpop.f32.mrb[105].mxu1 }
 0x5ea   :  { %6090 = vmatmul.mubr.bf16.gmra.mrb[12].mxu1 %v18906_v31  ;;  %v5971_v12 = vadd.f32 %v5970_v60, %v16826_v62  ;;  %v5972_v55 = vpop.f32.mrb[106].mxu1 }
 0x5eb   :  { %6099 = vmatprep.mubr.bf16.mxu1 %v18907_v16  ;;  %v6322_v10 = vadd.f32 %v15221_v2, %v5969_v13  ;;  %v5973_v39 = vadd.f32 %v5972_v55, %v16831_v20  ;;  %v5974_v54 = vpop.f32.mrb[107].mxu1  ;;  %v18908_v20 = vld [vmem:[#allocation223_spill] sm:$0xff]  ;;  %v8320_v55 = vld [vmem:[#allocation7 + $0x1c4] ss:$8 sps:$4 sm:$0xff]  }
 0x5ec   :  { %v6323_v4 = vadd.f32 %v15239_v38, %v5971_v12  ;;  %v5975_v58 = vadd.f32 %v5974_v54, %v16841_v37  ;;  %v8312_v37 = vld [vmem:[#allocation7 + $0x1a0] ss:$8 sps:$4 sm:$0xff]   ;;  %v8323_v54 = vld [vmem:[#allocation7 + $0x1d4] ss:$8 sps:$4 sm:$0xff]  }
 0x5ed   :  { %v6326_v26 = vadd.f32 %v15221_v2, %v5973_v39  ;;  %v6450_v9 = vmax.f32 %v6322_v10, 0.0  ;;  %7172 = vmatpush1.bf16.msra.mxu0 %v8312_v37  ;;  %v8318_v12 = vld [vmem:[#allocation7 + $0x1c0] ss:$8 sps:$4 sm:$0xff]  }
 0x5ee   :  { %v6327_v62 = vadd.f32 %v15239_v38, %v5975_v58  ;;  %v6451_v51 = vmax.f32 %v6323_v4, 0.0  ;;  %7173 = vmatprep.subr.bf16.mxu0 %v8317_v41  ;;  %v18916_v39 = vld [vmem:[#allocation157_spill] sm:$0xff]  ;;  %v18917_v58 = vld [vmem:[#allocation166_spill] sm:$0xff] }
 0x5ef   :  { %v6454_v50 = vmax.f32 %v6326_v26, 0.0  ;;  %v8324_v37 = vld [vmem:[#allocation7 + $0x1e0] ss:$8 sps:$4 sm:$0xff]  }
 0x5f0   :  { %v6455_v47 = vmax.f32 %v6327_v62, 0.0  ;;  %v8321_v62 = vld [vmem:[#allocation7 + $0x1d0] ss:$8 sps:$4 sm:$0xff]  }
 0x5f1   :  { %v6538_v57 = vpack.c.bf16 %v6454_v50, %v6450_v9  ;;  %7174 = vmatpush1.bf16.msra.mxu0 %v8315_v6 }
 0x5f2   :  { %6100 = vmatmul.mubr.bf16.gmra.mrb[16].mxu1 %v18908_v20  ;;  %v6539_v22 = vpack.c.bf16 %v6455_v47, %v6451_v51  ;;  %7175 = vmatprep.subr.bf16.mxu0 %v8320_v55 }
 0x5f3   :  { %6109 = vmatprep.mubr.bf16.mxu1 %v18909_v25  ;;  %v18919_v25 = vld [vmem:[#allocation180_spill] sm:$0xff] }
 0x5f4   :  { %7090 = vmatprep.mubr.bf16.mxu0 %v6539_v22  ;;  %v18920_v22 = vld [vmem:[#allocation234_spill] sm:$0xff] }
 0x5f5   :  { %7091 = vmatmul.mubr.bf16.gmra.mrb[104].mxu0 %v6538_v57  ;;  %v18918_v57 = vld [vmem:[#allocation232_spill] sm:$0xff] }
 0x5f6   :  { %7176 = vmatpush1.bf16.msra.mxu0 %v8318_v12 }
 0x5f7   :  { %7177 = vmatprep.subr.bf16.mxu0 %v8323_v54 }
 0x5fa   :  { %6110 = vmatmul.mubr.bf16.gmra.mrb[20].mxu1 %v18910_v21  ;;  %7178 = vmatpush1.bf16.msra.mxu0 %v8321_v62  ;;  %v8326_v21 = vld [vmem:[#allocation7 + $0x1e4] ss:$8 sps:$4 sm:$0xff]  }
 0x5fb   :  { %6119 = vmatprep.mubr.bf16.mxu1 %v18911_v14  ;;  %7179 = vmatprep.subr.bf16.mxu0 %v8326_v21  ;;  %v8327_v14 = vld [vmem:[#allocation7 + $0x1f0] ss:$8 sps:$4 sm:$0xff]  }
 0x5fe   :  { %7180 = vmatpush1.bf16.msra.mxu0 %v8324_v37 }
 0x602   :  { %6120 = vmatmul.mubr.bf16.gmra.mrb[24].mxu1 %v18912_v42  ;;  %v8329_v42 = vld [vmem:[#allocation7 + $0x1f4] ss:$8 sps:$4 sm:$0xff]  }
 0x603   :  { %6129 = vmatprep.mubr.bf16.mxu1 %v18913_v33  ;;  %7181 = vmatprep.subr.bf16.mxu0 %v8329_v42 }
 0x604   :  { %7182 = vmatpush1.bf16.msra.mxu0 %v8327_v14 }
 0x60a   :  { %6130 = vmatmul.mubr.bf16.gmra.mrb[28].mxu1 %v18914_v1 }
 0x60b   :  { %6139 = vmatprep.mubr.bf16.mxu1 %v18915_v5 }
 0x60f   :  { %v5978_v30 = vpop.f32.mrb[108].mxu1 }
 0x610   :  { %v5979_v3 = vadd.f32 %v5978_v30, %v16987_v11  ;;  %v5980_v13 = vpop.f32.mrb[109].mxu1 }
 0x611   :  { %v5981_v60 = vadd.f32 %v5980_v13, %v17037_v29  ;;  %v5982_v31 = vpop.f32.mrb[110].mxu1  ;;  %v17336_v29 = vpop.f32.mrb[61].mxu0 }
 0x612   :  { %v6330_v16 = vadd.f32 %v15221_v2, %v5979_v3  ;;  %v5983_v28 = vadd.f32 %v5982_v31, %v17040_v8  ;;  %v5984_v10 = vpop.f32.mrb[111].mxu1  ;;  %6140 = vmatmul.mubr.bf16.gmra.mrb[32].mxu1 %v18916_v39  ;;  %v17339_v8 = vpop.f32.mrb[62].mxu0 }
 0x613   :  { %v6331_v4 = vadd.f32 %v15239_v38, %v5981_v60  ;;  %v5985_v11 = vadd.f32 %v5984_v10, %v17049_v56  ;;  %6149 = vmatprep.mubr.bf16.mxu1 %v18917_v58  ;;  %v17342_v9 = vpop.f32.mrb[63].mxu0 }
 0x614   :  { %v6334_v26 = vadd.f32 %v15221_v2, %v5983_v28  ;;  %v6458_v50 = vmax.f32 %v6330_v16, 0.0 }
 0x615   :  { %v6335_v36 = vadd.f32 %v15239_v38, %v5985_v11  ;;  %v6459_v51 = vmax.f32 %v6331_v4, 0.0 }
 0x616   :  { %v6462_v44 = vmax.f32 %v6334_v26, 0.0 }
 0x617   :  { %v6463_v56 = vmax.f32 %v6335_v36, 0.0 }
 0x618   :  { %v6542_v47 = vpack.c.bf16 %v6462_v44, %v6458_v50 }
 0x619   :  { %v6543_v20 = vpack.c.bf16 %v6463_v56, %v6459_v51 }
 0x61a   :  { %6150 = vmatmul.mubr.bf16.gmra.mrb[36].mxu1 %v18918_v57 }
 0x61b   :  { %6159 = vmatprep.mubr.bf16.mxu1 %v18919_v25  ;;  %7100 = vmatprep.mubr.bf16.mxu0 %v6543_v20 }
 0x61c   :  { %7101 = vmatmul.mubr.bf16.gmra.mrb[108].mxu0 %v6542_v47 }
 0x622   :  { %6160 = vmatmul.mubr.bf16.gmra.mrb[40].mxu1 %v18920_v22 }
 0x623   :  { %6169 = vmatprep.mubr.bf16.mxu1 %v16429_v34 }
 0x62a   :  { %6170 = vmatmul.mubr.bf16.gmra.mrb[44].mxu1 %v16431_v15 }
 0x62b   :  { %6179 = vmatprep.mubr.bf16.mxu1 %v16714_v59 }
 0x632   :  { %6180 = vmatmul.mubr.bf16.gmra.mrb[48].mxu1 %v16716_v49 }
 0x633   :  { %6189 = vmatprep.mubr.bf16.mxu1 %v16944_v0 }
 0x636   :  { %v5988_v33 = vpop.f32.mrb[112].mxu1 }
 0x637   :  { %v5989_v1 = vadd.f32 %v5988_v33, %v17213_v17  ;;  %v5990_v34 = vpop.f32.mrb[113].mxu1  ;;  %v18921_v33 = vld [vmem:[#allocation176_spill] sm:$0xff] }
 0x638   :  { %v5991_v5 = vadd.f32 %v5990_v34, %v17238_v19  ;;  %v5992_v6 = vpop.f32.mrb[114].mxu1 }
 0x639   :  { %v6338_v41 = vadd.f32 %v15221_v2, %v5989_v1  ;;  %v5993_v15 = vadd.f32 %v5992_v6, %v17243_v45  ;;  %v5994_v59 = vpop.f32.mrb[115].mxu1  ;;  %v6232_v1 = vsub.s32 2, %v18921_v33 }
 0x63a   :  { %v6339_v30 = vadd.f32 %v15239_v38, %v5991_v5  ;;  %v5995_v3 = vadd.f32 %v5994_v59, %v17247_v48  ;;  %6190 = vmatmul.mubr.bf16.gmra.mrb[52].mxu1 %v16946_v43  ;;  %v6236_v5 = vsub.s32 3, %v18921_v33 }
 0x63b   :  { %v6342_v49 = vadd.f32 %v15221_v2, %v5993_v15  ;;  %6199 = vmatprep.mubr.bf16.mxu1 %v17185_v27  ;;  %v6466_v17 = vmax.f32 %v6338_v41, 0.0 }
 0x63c   :  { %v6343_v0 = vadd.f32 %v15239_v38, %v5995_v3  ;;  %v6467_v13 = vmax.f32 %v6339_v30, 0.0 }
 0x63d   :  { %v6470_v19 = vmax.f32 %v6342_v49, 0.0 }
 0x63e   :  { %v6471_v60 = vmax.f32 %v6343_v0, 0.0 }
 0x63f   :  { %v6546_v31 = vpack.c.bf16 %v6470_v19, %v6466_v17 }
 0x640   :  { %v6547_v12 = vpack.c.bf16 %v6471_v60, %v6467_v13 }
 0x642   :  { %7110 = vmatprep.mubr.bf16.mxu0 %v6547_v12  ;;  %6200 = vmatmul.mubr.bf16.gmra.mrb[56].mxu1 %v17187_v63 }
 0x643   :  { %7111 = vmatmul.mubr.bf16.gmra.mrb[112].mxu0 %v6546_v31  ;;  %6209 = vmatprep.mubr.bf16.mxu1 %v17277_v46 }
 0x64a   :  { %6210 = vmatmul.mubr.bf16.gmra.mrb[60].mxu1 %v17279_v40 }
 0x65d   :  { %v5998_v45 = vpop.f32.mrb[116].mxu1 }
 0x65e   :  { %v5999_v43 = vadd.f32 %v5998_v45, %v17285_v52  ;;  %v6000_v48 = vpop.f32.mrb[117].mxu1 }
 0x65f   :  { %v6001_v27 = vadd.f32 %v6000_v48, %v17292_v24  ;;  %v6002_v55 = vpop.f32.mrb[118].mxu1 }
 0x660   :  { %v6346_v16 = vadd.f32 %v15221_v2, %v5999_v43  ;;  %v6003_v28 = vadd.f32 %v6002_v55, %v17294_v7  ;;  %v6004_v10 = vpop.f32.mrb[119].mxu1 }
 0x661   :  { %v6347_v39 = vadd.f32 %v15239_v38, %v6001_v27  ;;  %v6005_v63 = vadd.f32 %v6004_v10, %v17297_v32 }
 0x662   :  { %v6350_v46 = vadd.f32 %v15221_v2, %v6003_v28  ;;  %v6474_v54 = vmax.f32 %v6346_v16, 0.0 }
 0x663   :  { %v6351_v40 = vadd.f32 %v15239_v38, %v6005_v63  ;;  %v6475_v52 = vmax.f32 %v6347_v39, 0.0 }
 0x664   :  { %v6478_v4 = vmax.f32 %v6350_v46, 0.0 }
 0x665   :  { %v6479_v11 = vmax.f32 %v6351_v40, 0.0 }
 0x666   :  { %v6550_v58 = vpack.c.bf16 %v6478_v4, %v6474_v54 }
 0x667   :  { %v6551_v24 = vpack.c.bf16 %v6479_v11, %v6475_v52 }
 0x669   :  { %7120 = vmatprep.mubr.bf16.mxu0 %v6551_v24 }
 0x66a   :  { %7121 = vmatmul.mubr.bf16.gmra.mrb[116].mxu0 %v6550_v58 }
 0x687   :  { %v6008_v26 = vpop.f32.mrb[120].mxu1 }
 0x688   :  { %v6009_v7 = vadd.f32 %v6008_v26, %v17300_v18  ;;  %v6010_v62 = vpop.f32.mrb[121].mxu1 }
 0x689   :  { %v6011_v36 = vadd.f32 %v6010_v62, %v17319_v61  ;;  %v6012_v50 = vpop.f32.mrb[122].mxu1 }
 0x68a   :  { %v6354_v32 = vadd.f32 %v15221_v2, %v6009_v7  ;;  %v6013_v44 = vadd.f32 %v6012_v50, %v17322_v23  ;;  %v6014_v51 = vpop.f32.mrb[123].mxu1 }
 0x68b   :  { %v6355_v56 = vadd.f32 %v15239_v38, %v6011_v36  ;;  %v6015_v47 = vadd.f32 %v6014_v51, %v17324_v53 }
 0x68c   :  { %v6358_v20 = vadd.f32 %v15221_v2, %v6013_v44  ;;  %v6482_v25 = vmax.f32 %v6354_v32, 0.0 }
 0x68d   :  { %v6359_v57 = vadd.f32 %v15239_v38, %v6015_v47  ;;  %v6483_v18 = vmax.f32 %v6355_v56, 0.0 }
 0x68e   :  { %v6486_v22 = vmax.f32 %v6358_v20, 0.0 }
 0x68f   :  { %v6487_v37 = vmax.f32 %v6359_v57, 0.0 }
 0x690   :  { %v6554_v21 = vpack.c.bf16 %v6486_v22, %v6482_v25 }
 0x691   :  { %v6555_v61 = vpack.c.bf16 %v6487_v37, %v6483_v18 }
 0x693   :  { %7130 = vmatprep.mubr.bf16.mxu0 %v6555_v61 }
 0x694   :  { %7131 = vmatmul.mubr.bf16.gmra.mrb[120].mxu0 %v6554_v21 }
 0x69d   :  { %v6018_v14 = vpop.f32.mrb[124].mxu1 }
 0x69e   :  { %v6019_v23 = vadd.f32 %v6018_v14, %v17331_v35  ;;  %v6020_v42 = vpop.f32.mrb[125].mxu1  ;;  %v8436_v35 = vld [vmem:[%s17556_s4] sm:$0xf] }
 0x69f   :  { %v6021_v53 = vadd.f32 %v6020_v42, %v17336_v29  ;;  %v6022_v34 = vpop.f32.mrb[126].mxu1  ;;  %v17393_v49 = vrot.slane %v8436_v35, %v6232_v1  ;;  %v17396_v0 = vrot.slane %v8436_v35, %v6236_v5 }
 0x6a0   :  { %v6362_v6 = vadd.f32 %v15221_v2, %v6019_v23  ;;  %v6023_v41 = vadd.f32 %v6022_v34, %v17339_v8  ;;  %v6024_v15 = vpop.f32.mrb[127].mxu1 }
 0x6a1   :  { %v6363_v59 = vadd.f32 %v15239_v38, %v6021_v53  ;;  %v6025_v30 = vadd.f32 %v6024_v15, %v17342_v9 }
 0x6a2   :  { %v6366_v3 = vadd.f32 %v15221_v2, %v6023_v41  ;;  %v6490_v17 = vmax.f32 %v6362_v6, 0.0 }
 0x6a3   :  { %v6367_v29 = vadd.f32 %v15239_v38, %v6025_v30  ;;  %v6491_v8 = vmax.f32 %v6363_v59, 0.0 }
 0x6a4   :  { %v6494_v19 = vmax.f32 %v6366_v3, 0.0 }
 0x6a5   :  { %v6495_v13 = vmax.f32 %v6367_v29, 0.0  ;;  %v6061_v60 = vpop.f32.mrb[0].mxu1 }
 0x6a6   :  { %v6244_v31 = vadd.f32 %v17393_v49, %v6061_v60  ;;  %v6063_v9 = vpop.f32.mrb[1].mxu1  ;;  %v6558_v12 = vpack.c.bf16 %v6494_v19, %v6490_v17 }
 0x6a7   :  { %v6245_v2 = vadd.f32 %v17396_v0, %v6063_v9  ;;  %v6065_v45 = vpop.f32.mrb[2].mxu1  ;;  %v6559_v43 = vpack.c.bf16 %v6495_v13, %v6491_v8 }
 0x6a8   :  { %v6248_v48 = vadd.f32 %v17393_v49, %v6065_v45  ;;  %v6067_v27 = vpop.f32.mrb[3].mxu1  ;;  %v6372_v55 = vmax.f32 %v6244_v31, 0.0 }
 0x6a9   :  { %v6249_v38 = vadd.f32 %v17396_v0, %v6067_v27  ;;  %7140 = vmatprep.mubr.bf16.mxu0 %v6559_v43  ;;  %v6373_v28 = vmax.f32 %v6245_v2, 0.0 }
 0x6aa   :  { %v6376_v16 = vmax.f32 %v6248_v48, 0.0  ;;  %7141 = vmatmul.mubr.bf16.gmra.mrb[124].mxu0 %v6558_v12 }
 0x6ab   :  { %v6377_v10 = vmax.f32 %v6249_v38, 0.0 }
 0x6ac   :  { %v6500_v39 = vpack.c.bf16 %v6376_v16, %v6372_v55 }
 0x6ad   :  { %v6501_v63 = vpack.c.bf16 %v6377_v10, %v6373_v28  ;;  %v6071_v46 = vpop.f32.mrb[4].mxu1 }
 0x6ae   :  { %v6252_v40 = vadd.f32 %v17393_v49, %v6071_v46  ;;  %v6073_v54 = vpop.f32.mrb[5].mxu1 }
 0x6af   :  { %v6253_v4 = vadd.f32 %v17396_v0, %v6073_v54  ;;  %v6075_v52 = vpop.f32.mrb[6].mxu1  ;;  %7183 = vmatprep.mubr.bf16.mxu0 %v6501_v63 }
 0x6b0   :  { %v6256_v11 = vadd.f32 %v17393_v49, %v6075_v52  ;;  %v6077_v58 = vpop.f32.mrb[7].mxu1  ;;  %v6380_v26 = vmax.f32 %v6252_v40, 0.0 }
 0x6b1   :  { %v6257_v24 = vadd.f32 %v17396_v0, %v6077_v58  ;;  %v6381_v62 = vmax.f32 %v6253_v4, 0.0 }
 0x6b2   :  { %v6384_v7 = vmax.f32 %v6256_v11, 0.0  ;;  %7184 = vmatmul.mubr.bf16.vlgmr.msra.gmra.mrb[64].mxu0 %v6500_v39 }
 0x6b3   :  { %v6385_v36 = vmax.f32 %v6257_v24, 0.0 }
 0x6b4   :  { %v6504_v50 = vpack.c.bf16 %v6384_v7, %v6380_v26 }
 0x6b5   :  { %v6505_v32 = vpack.c.bf16 %v6385_v36, %v6381_v62  ;;  %v6081_v44 = vpop.f32.mrb[8].mxu1 }
 0x6b6   :  { %v6260_v51 = vadd.f32 %v17393_v49, %v6081_v44  ;;  %v6083_v56 = vpop.f32.mrb[9].mxu1 }
 0x6b7   :  { %v6261_v47 = vadd.f32 %v17396_v0, %v6083_v56  ;;  %v6085_v20 = vpop.f32.mrb[10].mxu1  ;;  %7193 = vmatprep.mubr.bf16.mxu0 %v6505_v32 }
 0x6b8   :  { %v6264_v57 = vadd.f32 %v17393_v49, %v6085_v20  ;;  %v6087_v25 = vpop.f32.mrb[11].mxu1  ;;  %v6388_v18 = vmax.f32 %v6260_v51, 0.0 }
 0x6b9   :  { %v6265_v22 = vadd.f32 %v17396_v0, %v6087_v25  ;;  %v6389_v21 = vmax.f32 %v6261_v47, 0.0 }
 0x6ba   :  { %v6392_v37 = vmax.f32 %v6264_v57, 0.0  ;;  %7194 = vmatmul.mubr.bf16.gmra.mrb[68].mxu0 %v6504_v50 }
 0x6bb   :  { %v6393_v61 = vmax.f32 %v6265_v22, 0.0 }
 0x6bc   :  { %v6508_v14 = vpack.c.bf16 %v6392_v37, %v6388_v18 }
 0x6bd   :  { %v6509_v23 = vpack.c.bf16 %v6393_v61, %v6389_v21  ;;  %v6091_v42 = vpop.f32.mrb[12].mxu1 }
 0x6be   :  { %v6268_v1 = vadd.f32 %v17393_v49, %v6091_v42  ;;  %v6093_v53 = vpop.f32.mrb[13].mxu1 }
 0x6bf   :  { %v6269_v34 = vadd.f32 %v17396_v0, %v6093_v53  ;;  %v6095_v5 = vpop.f32.mrb[14].mxu1  ;;  %7203 = vmatprep.mubr.bf16.mxu0 %v6509_v23 }
 0x6c0   :  { %v6272_v6 = vadd.f32 %v17393_v49, %v6095_v5  ;;  %v6097_v41 = vpop.f32.mrb[15].mxu1  ;;  %v6396_v59 = vmax.f32 %v6268_v1, 0.0 }
 0x6c1   :  { %v6273_v15 = vadd.f32 %v17396_v0, %v6097_v41  ;;  %v6397_v3 = vmax.f32 %v6269_v34, 0.0 }
 0x6c2   :  { %v6400_v30 = vmax.f32 %v6272_v6, 0.0  ;;  %7204 = vmatmul.mubr.bf16.gmra.mrb[72].mxu0 %v6508_v14 }
 0x6c3   :  { %v6401_v35 = vmax.f32 %v6273_v15, 0.0 }
 0x6c4   :  { %v6512_v29 = vpack.c.bf16 %v6400_v30, %v6396_v59 }
 0x6c5   :  { %v6513_v17 = vpack.c.bf16 %v6401_v35, %v6397_v3  ;;  %v6101_v19 = vpop.f32.mrb[16].mxu1 }
 0x6c6   :  { %v6276_v8 = vadd.f32 %v17393_v49, %v6101_v19  ;;  %v6103_v13 = vpop.f32.mrb[17].mxu1 }
 0x6c7   :  { %v6277_v60 = vadd.f32 %v17396_v0, %v6103_v13  ;;  %v6105_v31 = vpop.f32.mrb[18].mxu1  ;;  %7213 = vmatprep.mubr.bf16.mxu0 %v6513_v17 }
 0x6c8   :  { %v6280_v9 = vadd.f32 %v17393_v49, %v6105_v31  ;;  %v6107_v12 = vpop.f32.mrb[19].mxu1  ;;  %v6404_v45 = vmax.f32 %v6276_v8, 0.0 }
 0x6c9   :  { %v6281_v2 = vadd.f32 %v17396_v0, %v6107_v12  ;;  %v6405_v48 = vmax.f32 %v6277_v60, 0.0 }
 0x6ca   :  { %v6408_v43 = vmax.f32 %v6280_v9, 0.0  ;;  %7214 = vmatmul.mubr.bf16.gmra.mrb[76].mxu0 %v6512_v29 }
 0x6cb   :  { %v6409_v27 = vmax.f32 %v6281_v2, 0.0 }
 0x6cc   :  { %v6516_v38 = vpack.c.bf16 %v6408_v43, %v6404_v45 }
 0x6cd   :  { %v6517_v55 = vpack.c.bf16 %v6409_v27, %v6405_v48  ;;  %v6111_v16 = vpop.f32.mrb[20].mxu1 }
 0x6ce   :  { %v6284_v28 = vadd.f32 %v17393_v49, %v6111_v16  ;;  %v6113_v10 = vpop.f32.mrb[21].mxu1 }
 0x6cf   :  { %v6285_v39 = vadd.f32 %v17396_v0, %v6113_v10  ;;  %v6115_v63 = vpop.f32.mrb[22].mxu1  ;;  %7223 = vmatprep.mubr.bf16.mxu0 %v6517_v55 }
 0x6d0   :  { %v6288_v46 = vadd.f32 %v17393_v49, %v6115_v63  ;;  %v6117_v40 = vpop.f32.mrb[23].mxu1  ;;  %v6412_v4 = vmax.f32 %v6284_v28, 0.0 }
 0x6d1   :  { %v6289_v54 = vadd.f32 %v17396_v0, %v6117_v40  ;;  %v6413_v11 = vmax.f32 %v6285_v39, 0.0 }
 0x6d2   :  { %v6416_v52 = vmax.f32 %v6288_v46, 0.0  ;;  %7224 = vmatmul.mubr.bf16.gmra.mrb[80].mxu0 %v6516_v38 }
 0x6d3   :  { %v6417_v58 = vmax.f32 %v6289_v54, 0.0 }
 0x6d4   :  { %v6520_v24 = vpack.c.bf16 %v6416_v52, %v6412_v4 }
 0x6d5   :  { %v6521_v26 = vpack.c.bf16 %v6417_v58, %v6413_v11  ;;  %v6121_v7 = vpop.f32.mrb[24].mxu1 }
 0x6d6   :  { %v6292_v62 = vadd.f32 %v17393_v49, %v6121_v7  ;;  %v6123_v36 = vpop.f32.mrb[25].mxu1 }
 0x6d7   :  { %v6293_v50 = vadd.f32 %v17396_v0, %v6123_v36  ;;  %v6125_v32 = vpop.f32.mrb[26].mxu1  ;;  %7233 = vmatprep.mubr.bf16.mxu0 %v6521_v26 }
 0x6d8   :  { %v6296_v44 = vadd.f32 %v17393_v49, %v6125_v32  ;;  %v6127_v51 = vpop.f32.mrb[27].mxu1  ;;  %v6420_v47 = vmax.f32 %v6292_v62, 0.0 }
 0x6d9   :  { %v6297_v56 = vadd.f32 %v17396_v0, %v6127_v51  ;;  %v6421_v57 = vmax.f32 %v6293_v50, 0.0 }
 0x6da   :  { %v6424_v20 = vmax.f32 %v6296_v44, 0.0  ;;  %7234 = vmatmul.mubr.bf16.gmra.mrb[84].mxu0 %v6520_v24 }
 0x6db   :  { %v6425_v25 = vmax.f32 %v6297_v56, 0.0 }
 0x6dc   :  { %v6524_v22 = vpack.c.bf16 %v6424_v20, %v6420_v47 }
 0x6dd   :  { %v6525_v18 = vpack.c.bf16 %v6425_v25, %v6421_v57  ;;  %v6131_v37 = vpop.f32.mrb[28].mxu1 }
 0x6de   :  { %v6300_v21 = vadd.f32 %v17393_v49, %v6131_v37  ;;  %v6133_v61 = vpop.f32.mrb[29].mxu1 }
 0x6df   :  { %v6301_v14 = vadd.f32 %v17396_v0, %v6133_v61  ;;  %v6135_v23 = vpop.f32.mrb[30].mxu1  ;;  %7243 = vmatprep.mubr.bf16.mxu0 %v6525_v18 }
 0x6e0   :  { %v6304_v42 = vadd.f32 %v17393_v49, %v6135_v23  ;;  %v6137_v1 = vpop.f32.mrb[31].mxu1  ;;  %v6428_v34 = vmax.f32 %v6300_v21, 0.0 }
 0x6e1   :  { %v6305_v53 = vadd.f32 %v17396_v0, %v6137_v1  ;;  %v6429_v6 = vmax.f32 %v6301_v14, 0.0 }
 0x6e2   :  { %v6432_v5 = vmax.f32 %v6304_v42, 0.0  ;;  %7244 = vmatmul.mubr.bf16.gmra.mrb[88].mxu0 %v6524_v22 }
 0x6e3   :  { %v6433_v41 = vmax.f32 %v6305_v53, 0.0 }
 0x6e4   :  { %v6528_v15 = vpack.c.bf16 %v6432_v5, %v6428_v34 }
 0x6e5   :  { %v6529_v59 = vpack.c.bf16 %v6433_v41, %v6429_v6  ;;  %v6141_v30 = vpop.f32.mrb[32].mxu1 }
 0x6e6   :  { %v6308_v3 = vadd.f32 %v17393_v49, %v6141_v30  ;;  %v6143_v35 = vpop.f32.mrb[33].mxu1 }
 0x6e7   :  { %v6309_v29 = vadd.f32 %v17396_v0, %v6143_v35  ;;  %v6145_v17 = vpop.f32.mrb[34].mxu1  ;;  %7253 = vmatprep.mubr.bf16.mxu0 %v6529_v59 }
 0x6e8   :  { %v6312_v19 = vadd.f32 %v17393_v49, %v6145_v17  ;;  %v6147_v8 = vpop.f32.mrb[35].mxu1  ;;  %v6436_v60 = vmax.f32 %v6308_v3, 0.0 }
 0x6e9   :  { %v6313_v13 = vadd.f32 %v17396_v0, %v6147_v8  ;;  %v6437_v9 = vmax.f32 %v6309_v29, 0.0 }
 0x6ea   :  { %v6440_v31 = vmax.f32 %v6312_v19, 0.0  ;;  %7254 = vmatmul.mubr.bf16.gmra.mrb[92].mxu0 %v6528_v15 }
 0x6eb   :  { %v6441_v12 = vmax.f32 %v6313_v13, 0.0 }
 0x6ec   :  { %v6532_v2 = vpack.c.bf16 %v6440_v31, %v6436_v60 }
 0x6ed   :  { %v6533_v45 = vpack.c.bf16 %v6441_v12, %v6437_v9  ;;  %v6151_v43 = vpop.f32.mrb[36].mxu1 }
 0x6ee   :  { %v6316_v48 = vadd.f32 %v17393_v49, %v6151_v43  ;;  %v6153_v27 = vpop.f32.mrb[37].mxu1 }
 0x6ef   :  { %v6317_v38 = vadd.f32 %v17396_v0, %v6153_v27  ;;  %v6155_v55 = vpop.f32.mrb[38].mxu1  ;;  %7263 = vmatprep.mubr.bf16.mxu0 %v6533_v45 }
 0x6f0   :  { %v6320_v16 = vadd.f32 %v17393_v49, %v6155_v55  ;;  %v6157_v28 = vpop.f32.mrb[39].mxu1  ;;  %v6444_v39 = vmax.f32 %v6316_v48, 0.0 }
 0x6f1   :  { %v6321_v10 = vadd.f32 %v17396_v0, %v6157_v28  ;;  %v6445_v46 = vmax.f32 %v6317_v38, 0.0 }
 0x6f2   :  { %v6448_v63 = vmax.f32 %v6320_v16, 0.0  ;;  %7264 = vmatmul.mubr.bf16.gmra.mrb[96].mxu0 %v6532_v2 }
 0x6f3   :  { %v6449_v40 = vmax.f32 %v6321_v10, 0.0 }
 0x6f4   :  { %v6536_v54 = vpack.c.bf16 %v6448_v63, %v6444_v39 }
 0x6f5   :  { %v6537_v4 = vpack.c.bf16 %v6449_v40, %v6445_v46  ;;  %v6161_v52 = vpop.f32.mrb[40].mxu1 }
 0x6f6   :  { %v6324_v11 = vadd.f32 %v17393_v49, %v6161_v52  ;;  %v6163_v58 = vpop.f32.mrb[41].mxu1 }
 0x6f7   :  { %v6325_v24 = vadd.f32 %v17396_v0, %v6163_v58  ;;  %v6165_v26 = vpop.f32.mrb[42].mxu1  ;;  %7273 = vmatprep.mubr.bf16.mxu0 %v6537_v4 }
 0x6f8   :  { %v6328_v7 = vadd.f32 %v17393_v49, %v6165_v26  ;;  %v6167_v62 = vpop.f32.mrb[43].mxu1  ;;  %v6452_v50 = vmax.f32 %v6324_v11, 0.0 }
 0x6f9   :  { %v6329_v36 = vadd.f32 %v17396_v0, %v6167_v62  ;;  %v6453_v44 = vmax.f32 %v6325_v24, 0.0 }
 0x6fa   :  { %v6456_v32 = vmax.f32 %v6328_v7, 0.0  ;;  %7274 = vmatmul.mubr.bf16.gmra.mrb[100].mxu0 %v6536_v54 }
 0x6fb   :  { %v6457_v51 = vmax.f32 %v6329_v36, 0.0 }
 0x6fc   :  { %v6540_v56 = vpack.c.bf16 %v6456_v32, %v6452_v50 }
 0x6fd   :  { %v6541_v47 = vpack.c.bf16 %v6457_v51, %v6453_v44  ;;  %v6171_v20 = vpop.f32.mrb[44].mxu1 }
 0x6fe   :  { %v6332_v57 = vadd.f32 %v17393_v49, %v6171_v20  ;;  %v6173_v25 = vpop.f32.mrb[45].mxu1 }
 0x6ff   :  { %v6333_v22 = vadd.f32 %v17396_v0, %v6173_v25  ;;  %v6175_v18 = vpop.f32.mrb[46].mxu1  ;;  %7283 = vmatprep.mubr.bf16.mxu0 %v6541_v47 }
 0x700   :  { %v6336_v37 = vadd.f32 %v17393_v49, %v6175_v18  ;;  %v6177_v21 = vpop.f32.mrb[47].mxu1  ;;  %v6460_v14 = vmax.f32 %v6332_v57, 0.0 }
 0x701   :  { %v6337_v61 = vadd.f32 %v17396_v0, %v6177_v21  ;;  %v6461_v42 = vmax.f32 %v6333_v22, 0.0 }
 0x702   :  { %v6464_v23 = vmax.f32 %v6336_v37, 0.0  ;;  %7284 = vmatmul.mubr.bf16.gmra.mrb[104].mxu0 %v6540_v56 }
 0x703   :  { %v6465_v1 = vmax.f32 %v6337_v61, 0.0 }
 0x704   :  { %v6544_v53 = vpack.c.bf16 %v6464_v23, %v6460_v14  ;;  %v6626_v23 = vld [vmem:[%s17558_s6] sm:$0x3]  ;;  %s8557_s6 = smov [#allocation8]  }
 0x705   :  { %v6545_v34 = vpack.c.bf16 %v6465_v1, %v6461_v42  ;;  %v6181_v5 = vpop.f32.mrb[48].mxu1  ;;  %v18922_v42 = vsub.s32 0, %v18921_v33  ;;  %s7477_s1 = sshll.u32 %s8557_s6, 4  ;;  %s7478_s1 = int_to_ptr.vmem [resolvable:$true] %s7477_s1 }
 0x706   :  { %v6340_v6 = vadd.f32 %v17393_v49, %v6181_v5  ;;  %v6183_v41 = vpop.f32.mrb[49].mxu1  ;;  %s8503_s16 = scalar_lea.vmem %s7478_s1, 8192  ;;  %p8508_p11 = scmp.lt.s32.totalorder %s7478_s1, %s7478_s1 }
 0x707   :  { %v6341_v15 = vadd.f32 %v17396_v0, %v6183_v41  ;;  %v6185_v59 = vpop.f32.mrb[50].mxu1  ;;  %7293 = vmatprep.mubr.bf16.mxu0 %v6545_v34  ;;  %v17467_v1 = vrot.slane %v6626_v23, %v18922_v42  ;;  %p8504_p10 = scmp.ne.s32.totalorder %s7478_s1, %s8503_s16  ;;  %p8509_p12 = scmp.lt.s32.totalorder %s8503_s16, %s8503_s16 }
 0x708   :  { %v6344_v30 = vadd.f32 %v17393_v49, %v6185_v59  ;;  %v6187_v3 = vpop.f32.mrb[51].mxu1  ;;  %v6468_v29 = vmax.f32 %v6340_v6, 0.0 }
 0x709   :  { %v6345_v35 = vadd.f32 %v17396_v0, %v6187_v3  ;;  %v6469_v19 = vmax.f32 %v6341_v15, 0.0  ;;  %p8510_p13 = por %p8509_p12, %p8508_p11 }
 0x70a   :  { %v6472_v17 = vmax.f32 %v6344_v30, 0.0  ;;  %7294 = vmatmul.mubr.bf16.gmra.mrb[108].mxu0 %v6544_v53 }
 0x70b   :  { %v6473_v8 = vmax.f32 %v6345_v35, 0.0  ;;  %p8511_p0 = pnand %p8510_p13, %p8504_p10 }
 0x70c   :  { %v6548_v13 = vpack.c.bf16 %v6472_v17, %v6468_v29 }
 0x70d   :  { %v6549_v60 = vpack.c.bf16 %v6473_v8, %v6469_v19  ;;  %v6191_v31 = vpop.f32.mrb[52].mxu1 }
 0x70e   :  { %v6348_v9 = vadd.f32 %v17393_v49, %v6191_v31  ;;  %v6193_v12 = vpop.f32.mrb[53].mxu1 }
 0x70f   :  { %v6349_v2 = vadd.f32 %v17396_v0, %v6193_v12  ;;  %v6195_v45 = vpop.f32.mrb[54].mxu1  ;;  %7303 = vmatprep.mubr.bf16.mxu0 %v6549_v60 }
 0x710   :  { %v6352_v43 = vadd.f32 %v17393_v49, %v6195_v45  ;;  %v6197_v48 = vpop.f32.mrb[55].mxu1  ;;  %v6476_v38 = vmax.f32 %v6348_v9, 0.0 }
 0x711   :  { %v6353_v27 = vadd.f32 %v17396_v0, %v6197_v48  ;;  %v6477_v16 = vmax.f32 %v6349_v2, 0.0 }
 0x712   :  { %v6480_v55 = vmax.f32 %v6352_v43, 0.0  ;;  %7304 = vmatmul.mubr.bf16.gmra.mrb[112].mxu0 %v6548_v13 }
 0x713   :  { %v6481_v28 = vmax.f32 %v6353_v27, 0.0 }
 0x714   :  { %v6552_v10 = vpack.c.bf16 %v6480_v55, %v6476_v38 }
 0x715   :  { %v6553_v39 = vpack.c.bf16 %v6481_v28, %v6477_v16  ;;  %v6201_v63 = vpop.f32.mrb[56].mxu1 }
 0x716   :  { %v6356_v46 = vadd.f32 %v17393_v49, %v6201_v63  ;;  %v6203_v40 = vpop.f32.mrb[57].mxu1 }
 0x717   :  { %v6357_v54 = vadd.f32 %v17396_v0, %v6203_v40  ;;  %v6205_v4 = vpop.f32.mrb[58].mxu1  ;;  %7313 = vmatprep.mubr.bf16.mxu0 %v6553_v39 }
 0x718   :  { %v6360_v52 = vadd.f32 %v17393_v49, %v6205_v4  ;;  %v6207_v11 = vpop.f32.mrb[59].mxu1  ;;  %v6484_v24 = vmax.f32 %v6356_v46, 0.0 }
 0x719   :  { %v6361_v58 = vadd.f32 %v17396_v0, %v6207_v11  ;;  %v6485_v7 = vmax.f32 %v6357_v54, 0.0 }
 0x71a   :  { %v6488_v26 = vmax.f32 %v6360_v52, 0.0  ;;  %7314 = vmatmul.mubr.bf16.gmra.mrb[116].mxu0 %v6552_v10 }
 0x71b   :  { %v6489_v62 = vmax.f32 %v6361_v58, 0.0 }
 0x71c   :  { %v6556_v36 = vpack.c.bf16 %v6488_v26, %v6484_v24 }
 0x71d   :  { %v6557_v50 = vpack.c.bf16 %v6489_v62, %v6485_v7  ;;  %v6211_v32 = vpop.f32.mrb[60].mxu1 }
 0x71e   :  { %v6364_v44 = vadd.f32 %v17393_v49, %v6211_v32  ;;  %v6213_v51 = vpop.f32.mrb[61].mxu1 }
 0x71f   :  { %v6365_v56 = vadd.f32 %v17396_v0, %v6213_v51  ;;  %v6215_v47 = vpop.f32.mrb[62].mxu1  ;;  %7323 = vmatprep.mubr.bf16.mxu0 %v6557_v50 }
 0x720   :  { %v6368_v20 = vadd.f32 %v17393_v49, %v6215_v47  ;;  %v6217_v57 = vpop.f32.mrb[63].mxu1  ;;  %v6492_v22 = vmax.f32 %v6364_v44, 0.0  ;;  %v18923_v49 = vsub.s32 1, %v18921_v33 }
 0x721   :  { %v6369_v25 = vadd.f32 %v17396_v0, %v6217_v57  ;;  %v6493_v37 = vmax.f32 %v6365_v56, 0.0 }
 0x722   :  { %v6496_v18 = vmax.f32 %v6368_v20, 0.0  ;;  %7324 = vmatmul.mubr.bf16.gmra.mrb[120].mxu0 %v6556_v36  ;;  %v17471_v0 = vrot.slane %v6626_v23, %v18923_v49 }
 0x723   :  { %v6497_v21 = vmax.f32 %v6369_v25, 0.0 }
 0x724   :  { %v6560_v61 = vpack.c.bf16 %v6496_v18, %v6492_v22 }
 0x725   :  { %v6561_v14 = vpack.c.bf16 %v6497_v21, %v6493_v37 }
 0x727   :  { %7333 = vmatprep.mubr.bf16.mxu0 %v6561_v14 }
 0x72a   :  { %7334 = vmatmul.mubr.bf16.gmra.mrb[124].mxu0 %v6560_v61 }
 0x785   :  { %v7185_v53 = vpop.f32.mrb[64].mxu0 }
 0x786   :  { %v7730_v34 = vadd.f32 %v7185_v53, %v17467_v1  ;;  %v7187_v5 = vpop.f32.mrb[65].mxu0 }
 0x787   :  { %v7731_v6 = vadd.f32 %v7187_v5, %v17471_v0  ;;  %v7189_v41 = vpop.f32.mrb[66].mxu0 }
 0x788   :  { %v7344_v15 = vmax.f32 %v7730_v34, 0.0  ;;  %v7732_v59 = vadd.f32 %v7189_v41, %v17467_v1  ;;  %v7191_v30 = vpop.f32.mrb[67].mxu0 }
 0x789   :  { %v7345_v3 = vmax.f32 %v7731_v6, 0.0  ;;  %v7733_v35 = vadd.f32 %v7191_v30, %v17471_v0 }
 0x78a   :  { %7408 = vst [vmem:[#allocation8] sm:$0xff] %v7344_v15  ;;  %v7346_v29 = vmax.f32 %v7732_v59, 0.0 }
 0x78b   :  { %7409 = vst [vmem:[#allocation8 + $0x8] sm:$0xff] %v7345_v3  ;;  %v7347_v33 = vmax.f32 %v7733_v35, 0.0 }
 0x78c   :  { %7410 = vst [vmem:[#allocation8 + $0x10] sm:$0xff] %v7346_v29 }
 0x78d   :  { %7411 = vst [vmem:[#allocation8 + $0x18] sm:$0xff] %v7347_v33  ;;  %v7195_v17 = vpop.f32.mrb[68].mxu0 }
 0x78e   :  { %v7734_v19 = vadd.f32 %v7195_v17, %v17467_v1  ;;  %v7197_v8 = vpop.f32.mrb[69].mxu0 }
 0x78f   :  { %v7735_v13 = vadd.f32 %v7197_v8, %v17471_v0  ;;  %v7199_v60 = vpop.f32.mrb[70].mxu0 }
 0x790   :  { %v7348_v31 = vmax.f32 %v7734_v19, 0.0  ;;  %v7736_v9 = vadd.f32 %v7199_v60, %v17467_v1  ;;  %v7201_v12 = vpop.f32.mrb[71].mxu0 }
 0x791   :  { %v7349_v2 = vmax.f32 %v7735_v13, 0.0  ;;  %v7737_v45 = vadd.f32 %v7201_v12, %v17471_v0 }
 0x792   :  { %7412 = vst [vmem:[#allocation8 + $0x20] sm:$0xff] %v7348_v31  ;;  %v7350_v43 = vmax.f32 %v7736_v9, 0.0 }
 0x793   :  { %7413 = vst [vmem:[#allocation8 + $0x28] sm:$0xff] %v7349_v2  ;;  %v7351_v48 = vmax.f32 %v7737_v45, 0.0 }
 0x794   :  { %7414 = vst [vmem:[#allocation8 + $0x30] sm:$0xff] %v7350_v43 }
 0x795   :  { %7415 = vst [vmem:[#allocation8 + $0x38] sm:$0xff] %v7351_v48  ;;  %v7205_v27 = vpop.f32.mrb[72].mxu0 }
 0x796   :  { %v7738_v38 = vadd.f32 %v7205_v27, %v17467_v1  ;;  %v7207_v55 = vpop.f32.mrb[73].mxu0 }
 0x797   :  { %v7739_v16 = vadd.f32 %v7207_v55, %v17471_v0  ;;  %v7209_v28 = vpop.f32.mrb[74].mxu0 }
 0x798   :  { %v7352_v10 = vmax.f32 %v7738_v38, 0.0  ;;  %v7740_v39 = vadd.f32 %v7209_v28, %v17467_v1  ;;  %v7211_v63 = vpop.f32.mrb[75].mxu0 }
 0x799   :  { %v7353_v46 = vmax.f32 %v7739_v16, 0.0  ;;  %v7741_v40 = vadd.f32 %v7211_v63, %v17471_v0 }
 0x79a   :  { %7416 = vst [vmem:[#allocation8 + $0x40] sm:$0xff] %v7352_v10  ;;  %v7354_v54 = vmax.f32 %v7740_v39, 0.0 }
 0x79b   :  { %7417 = vst [vmem:[#allocation8 + $0x48] sm:$0xff] %v7353_v46  ;;  %v7355_v4 = vmax.f32 %v7741_v40, 0.0 }
 0x79c   :  { %7418 = vst [vmem:[#allocation8 + $0x50] sm:$0xff] %v7354_v54 }
 0x79d   :  { %7419 = vst [vmem:[#allocation8 + $0x58] sm:$0xff] %v7355_v4  ;;  %v7215_v52 = vpop.f32.mrb[76].mxu0 }
 0x79e   :  { %v7742_v11 = vadd.f32 %v7215_v52, %v17467_v1  ;;  %v7217_v58 = vpop.f32.mrb[77].mxu0 }
 0x79f   :  { %v7743_v24 = vadd.f32 %v7217_v58, %v17471_v0  ;;  %v7219_v26 = vpop.f32.mrb[78].mxu0 }
 0x7a0   :  { %v7356_v7 = vmax.f32 %v7742_v11, 0.0  ;;  %v7744_v62 = vadd.f32 %v7219_v26, %v17467_v1  ;;  %v7221_v36 = vpop.f32.mrb[79].mxu0 }
 0x7a1   :  { %v7357_v50 = vmax.f32 %v7743_v24, 0.0  ;;  %v7745_v32 = vadd.f32 %v7221_v36, %v17471_v0 }
 0x7a2   :  { %7420 = vst [vmem:[#allocation8 + $0x60] sm:$0xff] %v7356_v7  ;;  %v7358_v44 = vmax.f32 %v7744_v62, 0.0 }
 0x7a3   :  { %7421 = vst [vmem:[#allocation8 + $0x68] sm:$0xff] %v7357_v50  ;;  %v7359_v51 = vmax.f32 %v7745_v32, 0.0 }
 0x7a4   :  { %7422 = vst [vmem:[#allocation8 + $0x70] sm:$0xff] %v7358_v44 }
 0x7a5   :  { %7423 = vst [vmem:[#allocation8 + $0x78] sm:$0xff] %v7359_v51  ;;  %v7225_v56 = vpop.f32.mrb[80].mxu0 }
 0x7a6   :  { %v7746_v47 = vadd.f32 %v7225_v56, %v17467_v1  ;;  %v7227_v20 = vpop.f32.mrb[81].mxu0 }
 0x7a7   :  { %v7747_v57 = vadd.f32 %v7227_v20, %v17471_v0  ;;  %v7229_v25 = vpop.f32.mrb[82].mxu0 }
 0x7a8   :  { %v7360_v22 = vmax.f32 %v7746_v47, 0.0  ;;  %v7748_v18 = vadd.f32 %v7229_v25, %v17467_v1  ;;  %v7231_v37 = vpop.f32.mrb[83].mxu0 }
 0x7a9   :  { %v7361_v21 = vmax.f32 %v7747_v57, 0.0  ;;  %v7749_v61 = vadd.f32 %v7231_v37, %v17471_v0 }
 0x7aa   :  { %7424 = vst [vmem:[#allocation8 + $0x80] sm:$0xff] %v7360_v22  ;;  %v7362_v14 = vmax.f32 %v7748_v18, 0.0 }
 0x7ab   :  { %7425 = vst [vmem:[#allocation8 + $0x88] sm:$0xff] %v7361_v21  ;;  %v7363_v23 = vmax.f32 %v7749_v61, 0.0 }
 0x7ac   :  { %7426 = vst [vmem:[#allocation8 + $0x90] sm:$0xff] %v7362_v14 }
 0x7ad   :  { %7427 = vst [vmem:[#allocation8 + $0x98] sm:$0xff] %v7363_v23  ;;  %v7235_v42 = vpop.f32.mrb[84].mxu0 }
 0x7ae   :  { %v7750_v49 = vadd.f32 %v7235_v42, %v17467_v1  ;;  %v7237_v53 = vpop.f32.mrb[85].mxu0 }
 0x7af   :  { %v7751_v34 = vadd.f32 %v7237_v53, %v17471_v0  ;;  %v7239_v5 = vpop.f32.mrb[86].mxu0 }
 0x7b0   :  { %v7364_v6 = vmax.f32 %v7750_v49, 0.0  ;;  %v7752_v41 = vadd.f32 %v7239_v5, %v17467_v1  ;;  %v7241_v15 = vpop.f32.mrb[87].mxu0 }
 0x7b1   :  { %v7365_v59 = vmax.f32 %v7751_v34, 0.0  ;;  %v7753_v30 = vadd.f32 %v7241_v15, %v17471_v0 }
 0x7b2   :  { %7428 = vst [vmem:[#allocation8 + $0xa0] sm:$0xff] %v7364_v6  ;;  %v7366_v3 = vmax.f32 %v7752_v41, 0.0 }
 0x7b3   :  { %7429 = vst [vmem:[#allocation8 + $0xa8] sm:$0xff] %v7365_v59  ;;  %v7367_v35 = vmax.f32 %v7753_v30, 0.0 }
 0x7b4   :  { %7430 = vst [vmem:[#allocation8 + $0xb0] sm:$0xff] %v7366_v3 }
 0x7b5   :  { %7431 = vst [vmem:[#allocation8 + $0xb8] sm:$0xff] %v7367_v35  ;;  %v7245_v29 = vpop.f32.mrb[88].mxu0 }
 0x7b6   :  { %v7754_v33 = vadd.f32 %v7245_v29, %v17467_v1  ;;  %v7247_v17 = vpop.f32.mrb[89].mxu0 }
 0x7b7   :  { %v7755_v19 = vadd.f32 %v7247_v17, %v17471_v0  ;;  %v7249_v8 = vpop.f32.mrb[90].mxu0 }
 0x7b8   :  { %v7368_v13 = vmax.f32 %v7754_v33, 0.0  ;;  %v7756_v60 = vadd.f32 %v7249_v8, %v17467_v1  ;;  %v7251_v31 = vpop.f32.mrb[91].mxu0 }
 0x7b9   :  { %v7369_v9 = vmax.f32 %v7755_v19, 0.0  ;;  %v7757_v12 = vadd.f32 %v7251_v31, %v17471_v0 }
 0x7ba   :  { %7432 = vst [vmem:[#allocation8 + $0xc0] sm:$0xff] %v7368_v13  ;;  %v7370_v2 = vmax.f32 %v7756_v60, 0.0 }
 0x7bb   :  { %7433 = vst [vmem:[#allocation8 + $0xc8] sm:$0xff] %v7369_v9  ;;  %v7371_v45 = vmax.f32 %v7757_v12, 0.0 }
 0x7bc   :  { %7434 = vst [vmem:[#allocation8 + $0xd0] sm:$0xff] %v7370_v2 }
 0x7bd   :  { %7435 = vst [vmem:[#allocation8 + $0xd8] sm:$0xff] %v7371_v45  ;;  %v7255_v43 = vpop.f32.mrb[92].mxu0 }
 0x7be   :  { %v7758_v48 = vadd.f32 %v7255_v43, %v17467_v1  ;;  %v7257_v27 = vpop.f32.mrb[93].mxu0 }
 0x7bf   :  { %v7759_v38 = vadd.f32 %v7257_v27, %v17471_v0  ;;  %v7259_v55 = vpop.f32.mrb[94].mxu0 }
 0x7c0   :  { %v7372_v16 = vmax.f32 %v7758_v48, 0.0  ;;  %v7760_v28 = vadd.f32 %v7259_v55, %v17467_v1  ;;  %v7261_v10 = vpop.f32.mrb[95].mxu0 }
 0x7c1   :  { %v7373_v39 = vmax.f32 %v7759_v38, 0.0  ;;  %v7761_v63 = vadd.f32 %v7261_v10, %v17471_v0 }
 0x7c2   :  { %7436 = vst [vmem:[#allocation8 + $0xe0] sm:$0xff] %v7372_v16  ;;  %v7374_v46 = vmax.f32 %v7760_v28, 0.0 }
 0x7c3   :  { %7437 = vst [vmem:[#allocation8 + $0xe8] sm:$0xff] %v7373_v39  ;;  %v7375_v40 = vmax.f32 %v7761_v63, 0.0 }
 0x7c4   :  { %7438 = vst [vmem:[#allocation8 + $0xf0] sm:$0xff] %v7374_v46 }
 0x7c5   :  { %7439 = vst [vmem:[#allocation8 + $0xf8] sm:$0xff] %v7375_v40  ;;  %v7265_v54 = vpop.f32.mrb[96].mxu0 }
 0x7c6   :  { %v7762_v4 = vadd.f32 %v7265_v54, %v17467_v1  ;;  %v7267_v52 = vpop.f32.mrb[97].mxu0 }
 0x7c7   :  { %v7763_v11 = vadd.f32 %v7267_v52, %v17471_v0  ;;  %v7269_v58 = vpop.f32.mrb[98].mxu0 }
 0x7c8   :  { %v7376_v24 = vmax.f32 %v7762_v4, 0.0  ;;  %v7764_v26 = vadd.f32 %v7269_v58, %v17467_v1  ;;  %v7271_v7 = vpop.f32.mrb[99].mxu0 }
 0x7c9   :  { %v7377_v62 = vmax.f32 %v7763_v11, 0.0  ;;  %v7765_v36 = vadd.f32 %v7271_v7, %v17471_v0 }
 0x7ca   :  { %7440 = vst [vmem:[#allocation8 + $0x100] sm:$0xff] %v7376_v24  ;;  %v7378_v50 = vmax.f32 %v7764_v26, 0.0 }
 0x7cb   :  { %7441 = vst [vmem:[#allocation8 + $0x108] sm:$0xff] %v7377_v62  ;;  %v7379_v32 = vmax.f32 %v7765_v36, 0.0 }
 0x7cc   :  { %7442 = vst [vmem:[#allocation8 + $0x110] sm:$0xff] %v7378_v50 }
 0x7cd   :  { %7443 = vst [vmem:[#allocation8 + $0x118] sm:$0xff] %v7379_v32  ;;  %v7275_v44 = vpop.f32.mrb[100].mxu0 }
 0x7ce   :  { %v7766_v51 = vadd.f32 %v7275_v44, %v17467_v1  ;;  %v7277_v56 = vpop.f32.mrb[101].mxu0 }
 0x7cf   :  { %v7767_v47 = vadd.f32 %v7277_v56, %v17471_v0  ;;  %v7279_v20 = vpop.f32.mrb[102].mxu0 }
 0x7d0   :  { %v7380_v57 = vmax.f32 %v7766_v51, 0.0  ;;  %v7768_v25 = vadd.f32 %v7279_v20, %v17467_v1  ;;  %v7281_v22 = vpop.f32.mrb[103].mxu0 }
 0x7d1   :  { %v7381_v18 = vmax.f32 %v7767_v47, 0.0  ;;  %v7769_v37 = vadd.f32 %v7281_v22, %v17471_v0 }
 0x7d2   :  { %7444 = vst [vmem:[#allocation8 + $0x120] sm:$0xff] %v7380_v57  ;;  %v7382_v21 = vmax.f32 %v7768_v25, 0.0 }
 0x7d3   :  { %7445 = vst [vmem:[#allocation8 + $0x128] sm:$0xff] %v7381_v18  ;;  %v7383_v61 = vmax.f32 %v7769_v37, 0.0 }
 0x7d4   :  { %7446 = vst [vmem:[#allocation8 + $0x130] sm:$0xff] %v7382_v21 }
 0x7d5   :  { %7447 = vst [vmem:[#allocation8 + $0x138] sm:$0xff] %v7383_v61  ;;  %v7285_v14 = vpop.f32.mrb[104].mxu0 }
 0x7d6   :  { %v7770_v23 = vadd.f32 %v7285_v14, %v17467_v1  ;;  %v7287_v42 = vpop.f32.mrb[105].mxu0 }
 0x7d7   :  { %v7771_v49 = vadd.f32 %v7287_v42, %v17471_v0  ;;  %v7289_v53 = vpop.f32.mrb[106].mxu0 }
 0x7d8   :  { %v7384_v34 = vmax.f32 %v7770_v23, 0.0  ;;  %v7772_v5 = vadd.f32 %v7289_v53, %v17467_v1  ;;  %v7291_v6 = vpop.f32.mrb[107].mxu0 }
 0x7d9   :  { %v7385_v41 = vmax.f32 %v7771_v49, 0.0  ;;  %v7773_v15 = vadd.f32 %v7291_v6, %v17471_v0 }
 0x7da   :  { %7448 = vst [vmem:[#allocation8 + $0x140] sm:$0xff] %v7384_v34  ;;  %v7386_v59 = vmax.f32 %v7772_v5, 0.0 }
 0x7db   :  { %7449 = vst [vmem:[#allocation8 + $0x148] sm:$0xff] %v7385_v41  ;;  %v7387_v30 = vmax.f32 %v7773_v15, 0.0 }
 0x7dc   :  { %7450 = vst [vmem:[#allocation8 + $0x150] sm:$0xff] %v7386_v59 }
 0x7dd   :  { %7451 = vst [vmem:[#allocation8 + $0x158] sm:$0xff] %v7387_v30  ;;  %v7295_v3 = vpop.f32.mrb[108].mxu0 }
 0x7de   :  { %v7774_v35 = vadd.f32 %v7295_v3, %v17467_v1  ;;  %v7297_v29 = vpop.f32.mrb[109].mxu0 }
 0x7df   :  { %v7775_v33 = vadd.f32 %v7297_v29, %v17471_v0  ;;  %v7299_v17 = vpop.f32.mrb[110].mxu0 }
 0x7e0   :  { %v7388_v19 = vmax.f32 %v7774_v35, 0.0  ;;  %v7776_v8 = vadd.f32 %v7299_v17, %v17467_v1  ;;  %v7301_v13 = vpop.f32.mrb[111].mxu0 }
 0x7e1   :  { %v7389_v60 = vmax.f32 %v7775_v33, 0.0  ;;  %v7777_v31 = vadd.f32 %v7301_v13, %v17471_v0 }
 0x7e2   :  { %7452 = vst [vmem:[#allocation8 + $0x160] sm:$0xff] %v7388_v19  ;;  %v7390_v9 = vmax.f32 %v7776_v8, 0.0 }
 0x7e3   :  { %7453 = vst [vmem:[#allocation8 + $0x168] sm:$0xff] %v7389_v60  ;;  %v7391_v12 = vmax.f32 %v7777_v31, 0.0 }
 0x7e4   :  { %7454 = vst [vmem:[#allocation8 + $0x170] sm:$0xff] %v7390_v9 }
 0x7e5   :  { %7455 = vst [vmem:[#allocation8 + $0x178] sm:$0xff] %v7391_v12  ;;  %v7305_v2 = vpop.f32.mrb[112].mxu0 }
 0x7e6   :  { %v7778_v45 = vadd.f32 %v7305_v2, %v17467_v1  ;;  %v7307_v43 = vpop.f32.mrb[113].mxu0 }
 0x7e7   :  { %v7779_v48 = vadd.f32 %v7307_v43, %v17471_v0  ;;  %v7309_v27 = vpop.f32.mrb[114].mxu0 }
 0x7e8   :  { %v7392_v38 = vmax.f32 %v7778_v45, 0.0  ;;  %v7780_v55 = vadd.f32 %v7309_v27, %v17467_v1  ;;  %v7311_v16 = vpop.f32.mrb[115].mxu0 }
 0x7e9   :  { %v7393_v28 = vmax.f32 %v7779_v48, 0.0  ;;  %v7781_v10 = vadd.f32 %v7311_v16, %v17471_v0 }
 0x7ea   :  { %7456 = vst [vmem:[#allocation8 + $0x180] sm:$0xff] %v7392_v38  ;;  %v7394_v39 = vmax.f32 %v7780_v55, 0.0 }
 0x7eb   :  { %7457 = vst [vmem:[#allocation8 + $0x188] sm:$0xff] %v7393_v28  ;;  %v7395_v63 = vmax.f32 %v7781_v10, 0.0 }
 0x7ec   :  { %7458 = vst [vmem:[#allocation8 + $0x190] sm:$0xff] %v7394_v39 }
 0x7ed   :  { %7459 = vst [vmem:[#allocation8 + $0x198] sm:$0xff] %v7395_v63  ;;  %v7315_v46 = vpop.f32.mrb[116].mxu0 }
 0x7ee   :  { %v7782_v40 = vadd.f32 %v7315_v46, %v17467_v1  ;;  %v7317_v54 = vpop.f32.mrb[117].mxu0 }
 0x7ef   :  { %v7783_v4 = vadd.f32 %v7317_v54, %v17471_v0  ;;  %v7319_v52 = vpop.f32.mrb[118].mxu0 }
 0x7f0   :  { %v7396_v11 = vmax.f32 %v7782_v40, 0.0  ;;  %v7784_v58 = vadd.f32 %v7319_v52, %v17467_v1  ;;  %v7321_v24 = vpop.f32.mrb[119].mxu0 }
 0x7f1   :  { %v7397_v26 = vmax.f32 %v7783_v4, 0.0  ;;  %v7785_v7 = vadd.f32 %v7321_v24, %v17471_v0 }
 0x7f2   :  { %7460 = vst [vmem:[#allocation8 + $0x1a0] sm:$0xff] %v7396_v11  ;;  %v7398_v62 = vmax.f32 %v7784_v58, 0.0 }
 0x7f3   :  { %7461 = vst [vmem:[#allocation8 + $0x1a8] sm:$0xff] %v7397_v26  ;;  %v7399_v36 = vmax.f32 %v7785_v7, 0.0 }
 0x7f4   :  { %7462 = vst [vmem:[#allocation8 + $0x1b0] sm:$0xff] %v7398_v62 }
 0x7f5   :  { %7463 = vst [vmem:[#allocation8 + $0x1b8] sm:$0xff] %v7399_v36  ;;  %v7325_v50 = vpop.f32.mrb[120].mxu0 }
 0x7f6   :  { %v7786_v32 = vadd.f32 %v7325_v50, %v17467_v1  ;;  %v7327_v44 = vpop.f32.mrb[121].mxu0 }
 0x7f7   :  { %v7787_v51 = vadd.f32 %v7327_v44, %v17471_v0  ;;  %v7329_v56 = vpop.f32.mrb[122].mxu0 }
 0x7f8   :  { %v7400_v47 = vmax.f32 %v7786_v32, 0.0  ;;  %v7788_v20 = vadd.f32 %v7329_v56, %v17467_v1  ;;  %v7331_v57 = vpop.f32.mrb[123].mxu0 }
 0x7f9   :  { %v7401_v25 = vmax.f32 %v7787_v51, 0.0  ;;  %v7789_v22 = vadd.f32 %v7331_v57, %v17471_v0 }
 0x7fa   :  { %7464 = vst [vmem:[#allocation8 + $0x1c0] sm:$0xff] %v7400_v47  ;;  %v7402_v18 = vmax.f32 %v7788_v20, 0.0 }
 0x7fb   :  { %7465 = vst [vmem:[#allocation8 + $0x1c8] sm:$0xff] %v7401_v25  ;;  %v7403_v37 = vmax.f32 %v7789_v22, 0.0 }
 0x7fc   :  { %7466 = vst [vmem:[#allocation8 + $0x1d0] sm:$0xff] %v7402_v18 }
 0x7fd   :  { %7467 = vst [vmem:[#allocation8 + $0x1d8] sm:$0xff] %v7403_v37  ;;  %v7335_v21 = vpop.f32.mrb[124].mxu0 }
 0x7fe   :  { %v7790_v61 = vadd.f32 %v7335_v21, %v17467_v1  ;;  %v7337_v14 = vpop.f32.mrb[125].mxu0 }
 0x7ff   :  { %v7791_v23 = vadd.f32 %v7337_v14, %v17471_v0  ;;  %v7339_v42 = vpop.f32.mrb[126].mxu0 }
 0x800   :  { %v7404_v49 = vmax.f32 %v7790_v61, 0.0  ;;  %v7792_v53 = vadd.f32 %v7339_v42, %v17467_v1  ;;  %v7341_v34 = vpop.f32.mrb[127].mxu0 }
 0x801   :  { %v7405_v5 = vmax.f32 %v7791_v23, 0.0  ;;  %v7793_v6 = vadd.f32 %v7341_v34, %v17471_v0 }
 0x802   :  { %7468 = vst [vmem:[#allocation8 + $0x1e0] sm:$0xff] %v7404_v49  ;;  %v7406_v41 = vmax.f32 %v7792_v53, 0.0 }
 0x803   :  { %7469 = vst [vmem:[#allocation8 + $0x1e8] sm:$0xff] %v7405_v5  ;;  %v7407_v15 = vmax.f32 %v7793_v6, 0.0 }
 0x804   :  { %7470 = vst [vmem:[#allocation8 + $0x1f0] sm:$0xff] %v7406_v41 }
 0x805   :  { %7471 = vst [vmem:[#allocation8 + $0x1f8] sm:$0xff] %v7407_v15 }
 0x806   :  { %8514 = shalt.err (!%p8511_p0)
}
 0x807   :  { %s8515_s20 = scalar_lea.hbm %s17559_s7, 8192 }
 0x808   :  { %p8516_p1 = scmp.ne.s32.totalorder %s17559_s7, %s8515_s20  ;;  %p8519_p2 = scmp.lt.u32.totalorder %s8515_s20, %s17559_s7 }
 0x80a   :  { %p8521_p3 = pnand %p8519_p2, %p8516_p1 }
 0x80c   :  { %8524 = shalt.err (!%p8521_p3)
}
 0x80d   :  { %7483 = dma.vmem_to_hbm [thread:$0]  %s7478_s1, 8192, %s17559_s7, [#allocation4], %s8532_s11, %s8532_s11, %s8533_s12  }
 0x80e   :  { %8529 = dma.done.wait [#allocation4], 8192  }
 0x80f   :  { %8530 = vsyncadd [#allocation4], 4294959104 }
 0x810   :  { %7487 = vsyncpa [#allocation3], 1 }
 0x811   :  { %7488 = vsyncpa [#allocation6], 1 }
 0x812   :  { %7489 = vsyncpa [#allocation4], 1 }

</bundles_post_ra>
